<compile_context>
chip_gen: v7x
topology: tpu7x:2x2x1
jax: 0.10.0
libtpu: 0.0.40
codegen_flags: <defaults>
</compile_context>

<pallas_src>
import functools

import jax
import jax.numpy as jnp
from jax.experimental import pallas as pl
from jax.experimental.pallas import tpu as pltpu

CP = 128  # padded channel / feature width == TPU lane count


def _round_up(x: int, m: int) -> int:
    return (x + m - 1) // m * m


# ==========================================================================================
# In-kernel helpers
# ==========================================================================================
def _lane_mask(cp: int, c_real: int):
    return (jax.lax.broadcasted_iota(jnp.int32, (1, cp), 1) < c_real).astype(jnp.float32)


def _masked_layernorm(y, g, bt, mask, c_real: int):
    # y's pad lanes are exactly zero by construction; stats over the first c_real lanes only.
    inv_c = 1.0 / float(c_real)
    mu = jnp.sum(y, axis=-1, keepdims=True) * inv_c
    d = (y - mu) * mask
    var = jnp.sum(d * d, axis=-1, keepdims=True) * inv_c
    return (y - mu) * jax.lax.rsqrt(var + 1e-5) * g + bt


def _mlp(x_b, w1_ref, w2_ref, vec_ref, mask, c_real, *, final_act, layer_norm):
    """Fused Linear -> SiLU -> Linear [-> SiLU] [-> masked LayerNorm]. x_b is bf16."""
    v = vec_ref[...].astype(jnp.float32)                  # rows: [b1, b2, gamma, beta]
    b1, b2, g, bt = v[0:1, :], v[1:2, :], v[2:3, :], v[3:4, :]
    h = jnp.dot(x_b, w1_ref[...], preferred_element_type=jnp.float32) + b1
    h = jax.nn.silu(h).astype(jnp.bfloat16)
    y = jnp.dot(h, w2_ref[...], preferred_element_type=jnp.float32) + b2
    if final_act:
        y = jax.nn.silu(y)
    if layer_norm:
        y = _masked_layernorm(y, g, bt, mask, c_real)
    return y                                              # f32, pad lanes zero


def _mp_block(x_src_b, x_dst_f, e_f, src_oh_b, dst_oh_b,
              ew1_ref, ew2_ref, evec_ref, nw1_ref, nw2_ref, nvec_ref,
              mask, c_real):
    """Interaction-network block:
       msg       = LN(SiLU(SiLU([x_i|x_j|e] W1 + b1) W2 + b2)) + e
       agg       = scatter_add(msg -> dst)            (one-hot^T matmul on the MXU)
       x_dst_new = LN(SiLU(SiLU([x_dst|agg] W1 + b1) W2 + b2)) + x_dst
    """
    cp = x_dst_f.shape[-1]
    ev = evec_ref[...].astype(jnp.float32)
    eb1, eb2, eg, ebt = ev[0:1, :], ev[1:2, :], ev[2:3, :], ev[3:4, :]
    nv = nvec_ref[...].astype(jnp.float32)
    nb1, nb2, ng, nbt = nv[0:1, :], nv[1:2, :], nv[2:3, :], nv[3:4, :]

    x_dst_b = x_dst_f.astype(jnp.bfloat16)
    e_b = e_f.astype(jnp.bfloat16)

    # gather via one-hot matmuls (stays on the MXU; no data-dependent loads)
    x_j = jnp.dot(src_oh_b, x_src_b, preferred_element_type=jnp.float32)   # x_src[src]
    x_i = jnp.dot(dst_oh_b, x_dst_b, preferred_element_type=jnp.float32)   # x_dst[dst]

    # edge MLP on concat([x_i, x_j, e]) -- concat avoided with static ref-slices of W1
    h = (jnp.dot(x_i.astype(jnp.bfloat16), ew1_ref[0:cp, :], preferred_element_type=jnp.float32)
         + jnp.dot(x_j.astype(jnp.bfloat16), ew1_ref[cp:2 * cp, :], preferred_element_type=jnp.float32)
         + jnp.dot(e_b, ew1_ref[2 * cp:3 * cp, :], preferred_element_type=jnp.float32)
         + eb1)
    h = jax.nn.silu(h).astype(jnp.bfloat16)
    m = jnp.dot(h, ew2_ref[...], preferred_element_type=jnp.float32) + eb2
    m = jax.nn.silu(m)
    m = _masked_layernorm(m, eg, ebt, mask, c_real)
    e_new = m + e_f

    # scatter-add to destination nodes: one-hot^T @ messages
    agg = jax.lax.dot_general(dst_oh_b, e_new.astype(jnp.bfloat16),
                              (((0,), (0,)), ((), ())),
                              preferred_element_type=jnp.float32)           # (Nd, CP)

    # node MLP on concat([x_dst, agg])
    u = (jnp.dot(x_dst_b, nw1_ref[0:cp, :], preferred_element_type=jnp.float32)
         + jnp.dot(agg.astype(jnp.bfloat16), nw1_ref[cp:2 * cp, :], preferred_element_type=jnp.float32)
         + nb1)
    u = jax.nn.silu(u).astype(jnp.bfloat16)
    u = jnp.dot(u, nw2_ref[...], preferred_element_type=jnp.float32) + nb2
    u = jax.nn.silu(u)
    u = _masked_layernorm(u, ng, nbt, mask, c_real)
    x_new = u + x_dst_f
    return x_new, e_new


# ==========================================================================================
# Stage kernels
# ==========================================================================================
def _fwd_mapper_kernel(xs_ref, xd_ref, ea_ref, soh_ref, doh_ref,
                       sw1_ref, sw2_ref, svec_ref,
                       dw1_ref, dw2_ref, dvec_ref,
                       eew1_ref, eew2_ref, eevec_ref,
                       mew1_ref, mew2_ref, mevec_ref,
                       mnw1_ref, mnw2_ref, mnvec_ref,
                       xs_out_ref, xd_out_ref, *, c_real):
    cp = xs_out_ref.shape[-1]
    mask = _lane_mask(cp, c_real)
    x_src = _mlp(xs_ref[...], sw1_ref, sw2_ref, svec_ref, mask, c_real,
                 final_act=True, layer_norm=True)
    x_dst = _mlp(xd_ref[...], dw1_ref, dw2_ref, dvec_ref, mask, c_real,
                 final_act=True, layer_norm=True)
    e = _mlp(ea_ref[...], eew1_ref, eew2_ref, eevec_ref, mask, c_real,
             final_act=True, layer_norm=True)
    x_src_b = x_src.astype(jnp.bfloat16)
    x_dst_new, _ = _mp_block(x_src_b, x_dst, e, soh_ref[...], doh_ref[...],
                             mew1_ref, mew2_ref, mevec_ref,
                             mnw1_ref, mnw2_ref, mnvec_ref, mask, c_real)
    xs_out_ref[...] = x_src_b                              # x_era_hidden
    xd_out_ref[...] = x_dst_new.astype(xd_out_ref.dtype)   # x_latent


def _processor_kernel(x_ref, ea_ref, soh_ref, doh_ref,
                      eew1_ref, eew2_ref, eevec_ref,
                      mew1_ref, mew2_ref, mevec_ref,
                      mnw1_ref, mnw2_ref, mnvec_ref,
                      x_out_ref, x_s, e_s, *, c_real):
    cp = x_out_ref.shape[-1]
    mask = _lane_mask(cp, c_real)
    layer = pl.program_id(0)

    @pl.when(layer == 0)
    def _init():
        e_s[...] = _mlp(ea_ref[...], eew1_ref, eew2_ref, eevec_ref, mask, c_real,
                        final_act=True, layer_norm=True)
        x_s[...] = x_ref[...].astype(jnp.float32)

    x_cur = x_s[...]
    e_cur = e_s[...]
    x_new, e_new = _mp_block(x_cur.astype(jnp.bfloat16), x_cur, e_cur,
                             soh_ref[...], doh_ref[...],
                             mew1_ref, mew2_ref, mevec_ref,
                             mnw1_ref, mnw2_ref, mnvec_ref, mask, c_real)
    x_s[...] = x_new
    e_s[...] = e_new

    @pl.when(layer == pl.num_programs(0) - 1)
    def _finalize():
        # fold the module-level residual: x_latent_proc + x_latent
        x_out_ref[...] = (x_new + x_ref[...].astype(jnp.float32)).astype(x_out_ref.dtype)


def _bwd_mapper_kernel(xs_ref, xd_ref, ea_ref, soh_ref, doh_ref,
                       eew1_ref, eew2_ref, eevec_ref,
                       mew1_ref, mew2_ref, mevec_ref,
                       mnw1_ref, mnw2_ref, mnvec_ref,
                       xw1_ref, xw2_ref, xvec_ref,
                       out_ref, *, c_real):
    cp = out_ref.shape[-1]
    mask = _lane_mask(cp, c_real)
    e = _mlp(ea_ref[...], eew1_ref, eew2_ref, eevec_ref, mask, c_real,
             final_act=True, layer_norm=True)
    x_dst = xd_ref[...].astype(jnp.float32)
    x_new, _ = _mp_block(xs_ref[...], x_dst, e, soh_ref[...], doh_ref[...],
                         mew1_ref, mew2_ref, mevec_ref,
                         mnw1_ref, mnw2_ref, mnvec_ref, mask, c_real)
    y = _mlp(x_new.astype(jnp.bfloat16), xw1_ref, xw2_ref, xvec_ref, mask, c_real,
             final_act=False, layer_norm=False)            # extractor
    out_ref[...] = y.astype(out_ref.dtype)


# ==========================================================================================
# pallas_call wrappers
# ==========================================================================================
def _forward_mapper_call(xs, xd, ea, soh, doh, p, *, c_real):
    kernel = functools.partial(_fwd_mapper_kernel, c_real=c_real)
    return pl.pallas_call(
        kernel,
        out_shape=(jax.ShapeDtypeStruct(xs.shape, jnp.bfloat16),
                   jax.ShapeDtypeStruct(xd.shape, jnp.bfloat16)),
    )(xs, xd, ea, soh, doh,
      p["emb_src"]["w1"], p["emb_src"]["w2"], p["emb_src"]["vec"],
      p["emb_dst"]["w1"], p["emb_dst"]["w2"], p["emb_dst"]["vec"],
      p["emb_edges"]["w1"], p["emb_edges"]["w2"], p["emb_edges"]["vec"],
      p["proc"]["edge"]["w1"], p["proc"]["edge"]["w2"], p["proc"]["edge"]["vec"],
      p["proc"]["node"]["w1"], p["proc"]["node"]["w2"], p["proc"]["node"]["vec"])


def _processor_call(x, ea, soh, doh, p_emb, stack, *, c_real, num_layers):
    nh, cp = x.shape
    ne = ea.shape[0]
    kernel = functools.partial(_processor_kernel, c_real=c_real)

    def const_spec(arr):
        return pl.BlockSpec(arr.shape, lambda l: (0, 0))

    def layer_spec(arr):
        return pl.BlockSpec((None,) + arr.shape[1:], lambda l: (l, 0, 0))

    in_specs = ([const_spec(a) for a in (x, ea, soh, doh,
                                         p_emb["w1"], p_emb["w2"], p_emb["vec"])]
                + [layer_spec(a) for a in (stack["ew1"], stack["ew2"], stack["evec"],
                                           stack["nw1"], stack["nw2"], stack["nvec"])])

    return pl.pallas_call(
        kernel,
        out_shape=jax.ShapeDtypeStruct((nh, cp), jnp.bfloat16),
        grid=(num_layers,),
        in_specs=in_specs,
        out_specs=pl.BlockSpec((nh, cp), lambda l: (0, 0)),
        scratch_shapes=[pltpu.VMEM((nh, cp), jnp.float32),
                        pltpu.VMEM((ne, cp), jnp.float32)],
        compiler_params=pltpu.CompilerParams(dimension_semantics=("arbitrary",)),
    )(x, ea, soh, doh,
      p_emb["w1"], p_emb["w2"], p_emb["vec"],
      stack["ew1"], stack["ew2"], stack["evec"],
      stack["nw1"], stack["nw2"], stack["nvec"])


def _backward_mapper_call(xs, xd, ea, soh, doh, p, *, c_real):
    kernel = functools.partial(_bwd_mapper_kernel, c_real=c_real)
    return pl.pallas_call(
        kernel,
        out_shape=jax.ShapeDtypeStruct(xd.shape, jnp.float32),
    )(xs, xd, ea, soh, doh,
      p["emb_edges"]["w1"], p["emb_edges"]["w2"], p["emb_edges"]["vec"],
      p["proc"]["edge"]["w1"], p["proc"]["edge"]["w2"], p["proc"]["edge"]["vec"],
      p["proc"]["node"]["w1"], p["proc"]["node"]["w2"], p["proc"]["node"]["vec"],
      p["extractor"]["w1"], p["extractor"]["w2"], p["extractor"]["vec"])


# ==========================================================================================
# Parameter construction (deterministic, gen_mlp shapes with mlp_extra_layers=0, padded to CP)
# ==========================================================================================
def _pad_block(w, rows, cols):
    return jnp.zeros((rows, cols), jnp.float32).at[:w.shape[0], :w.shape[1]].set(
        w.astype(jnp.float32))


def _init_mlp(key, din, hid, dout, *, layer_norm=True, cp=CP):
    k1, k2 = jax.random.split(key)
    w1 = jax.random.normal(k1, (din, hid), jnp.float32) / jnp.sqrt(float(din))
    w2 = jax.random.normal(k2, (hid, dout), jnp.float32) / jnp.sqrt(float(hid))
    vec = jnp.zeros((4, cp), jnp.float32)          # rows: [b1, b2, gamma, beta]
    if layer_norm:
        vec = vec.at[2, :dout].set(1.0)
    return {"w1": _pad_block(w1, cp, cp).astype(jnp.bfloat16),
            "w2": _pad_block(w2, cp, cp).astype(jnp.bfloat16),
            "vec": vec.astype(jnp.bfloat16)}


def _init_concat_w1(key, n_chunks, c, dout, cp=CP):
    keys = jax.random.split(key, n_chunks)
    w = jnp.zeros((n_chunks * cp, cp), jnp.float32)
    scale = 1.0 / jnp.sqrt(float(n_chunks * c))
    for i in range(n_chunks):
        blk = jax.random.normal(keys[i], (c, dout), jnp.float32) * scale
        w = w.at[i * cp:i * cp + c, :dout].set(blk)
    return w.astype(jnp.bfloat16)


def _init_mp_block(key, c, cp=CP):
    ke1, ke2, kn1, kn2 = jax.random.split(key, 4)
    ln_vec = jnp.zeros((4, cp), jnp.float32).at[2, :c].set(1.0).astype(jnp.bfloat16)
    return {
        "edge": {"w1": _init_concat_w1(ke1, 3, c, c, cp),
                 "w2": _pad_block(jax.random.normal(ke2, (c, c), jnp.float32)
                                  / jnp.sqrt(float(c)), cp, cp).astype(jnp.bfloat16),
                 "vec": ln_vec},
        "node": {"w1": _init_concat_w1(kn1, 2, c, c, cp),
                 "w2": _pad_block(jax.random.normal(kn2, (c, c), jnp.float32)
                                  / jnp.sqrt(float(c)), cp, cp).astype(jnp.bfloat16),
                 "vec": ln_vec},
    }


def _stack_mp_blocks(blocks):
    def st(a, b):
        return jnp.stack([blk[a][b] for blk in blocks], axis=0)
    return {"ew1": st("edge", "w1"), "ew2": st("edge", "w2"), "evec": st("edge", "vec"),
            "nw1": st("node", "w1"), "nw2": st("node", "w2"), "nvec": st("node", "vec")}


# ==========================================================================================
# GraphMSG
# ==========================================================================================
class GraphMSG:
    def __init__(self, key, *, n_era=16, n_h=8, n_e2h=24, n_h2h=16, n_h2e=24,
                 num_input_channels=4, num_output_channels=5, multi_step=2,
                 num_channels=32, processor_layers=2, edge_attr_dim=3,
                 era_trainable_size=1, h_trainable_size=1,
                 e2h_trainable_size=1, h2e_trainable_size=1, h2h_trainable_size=1):
        ks = list(jax.random.split(key, 20))
        self.n_era, self.n_h = n_era, n_h
        self.multi_step = multi_step
        self.num_in = num_input_channels
        self.num_out = num_output_channels
        self.num_channels = num_channels
        self.processor_layers = processor_layers
        self.in_idx = jnp.arange(num_input_channels)        # prognostic input vars
        self.out_idx = jnp.arange(num_input_channels)       # prognostic output vars

        assert num_channels <= CP
        assert multi_step * num_input_channels + 4 + era_trainable_size <= CP
        assert edge_attr_dim + max(e2h_trainable_size, h2h_trainable_size,
                                   h2e_trainable_size) <= CP

        # --- synthetic graph buffers (coords, edge_index, edge_attr) ---------------------
        era_coords = jax.random.uniform(ks[0], (n_era, 2), jnp.float32) * jnp.pi
        h_coords = jax.random.uniform(ks[1], (n_h, 2), jnp.float32) * jnp.pi
        self.era_latlons = jnp.concatenate([jnp.sin(era_coords), jnp.cos(era_coords)], -1)
        self.h_latlons = jnp.concatenate([jnp.sin(h_coords), jnp.cos(h_coords)], -1)

        def mk_edges(k, ne, ns, nd):
            ka, kb = jax.random.split(k)
            src = jax.random.randint(ka, (ne,), 0, ns, jnp.int32)
            dst = jax.random.randint(kb, (ne,), 0, nd, jnp.int32)
            return jnp.stack([src, dst], 0)

        self.e2h_edge_index = mk_edges(ks[2], n_e2h, n_era, n_h)
        self.h2h_edge_index = mk_edges(ks[3], n_h2h, n_h, n_h)
        self.h2e_edge_index = mk_edges(ks[4], n_h2e, n_h, n_era)
        self.e2h_edge_attr = jax.random.normal(ks[5], (n_e2h, edge_attr_dim), jnp.float32)
        self.h2h_edge_attr = jax.random.normal(ks[6], (n_h2h, edge_attr_dim), jnp.float32)
        self.h2e_edge_attr = jax.random.normal(ks[7], (n_h2e, edge_attr_dim), jnp.float32)

        # --- trainable attributes (zeros, as nn.Parameter(torch.zeros(...))) ------------
        self.era_trainable = jnp.zeros((n_era, era_trainable_size), jnp.float32)
        self.h_trainable = jnp.zeros((n_h, h_trainable_size), jnp.float32)
        self.e2h_trainable = jnp.zeros((n_e2h, e2h_trainable_size), jnp.float32)
        self.h2e_trainable = jnp.zeros((n_h2e, h2e_trainable_size), jnp.float32)
        self.h2h_trainable = jnp.zeros((n_h2h, h2h_trainable_size), jnp.float32)

        # --- network parameters (zero-padded to CP lanes; bf16 in HBM) -------------------
        c = num_channels
        in_src_fwd = multi_step * num_input_channels + self.era_latlons.shape[1] + era_trainable_size
        in_dst_fwd = self.h_latlons.shape[1] + h_trainable_size
        e2h_dim = edge_attr_dim + e2h_trainable_size
        h2h_dim = edge_attr_dim + h2h_trainable_size
        h2e_dim = edge_attr_dim + h2e_trainable_size

        proc_blocks = [_init_mp_block(k, c) for k in jax.random.split(ks[13], processor_layers)]
        self.params = {
            "fwd": {
                "emb_edges": _init_mlp(ks[8], e2h_dim, c, c),
                "emb_src": _init_mlp(ks[9], in_src_fwd, c, c),
                "emb_dst": _init_mlp(ks[10], in_dst_fwd, c, c),
                "proc": _init_mp_block(ks[11], c),
            },
            "proc": {
                "emb_edges": _init_mlp(ks[12], h2h_dim, c, c),
                "stack": _stack_mp_blocks(proc_blocks),
            },
            "bwd": {
                "emb_edges": _init_mlp(ks[14], h2e_dim, c, c),
                "proc": _init_mp_block(ks[15], c),
                "extractor": _init_mlp(ks[16], c, c, num_output_channels, layer_norm=False),
            },
        }

        self._cache = {}                       # per-batch-size static inputs
        self._forward_jit = jax.jit(self._forward_impl)

    # -------- per-batch static inputs: fused attrs, padded slabs, one-hot matrices -------
    def _get_cache(self, b):
        if b in self._cache:
            return self._cache[b]
        cp = CP
        rows_era = b * self.n_era
        rows_era_p = _round_up(rows_era, 8)
        rows_h = b * self.n_h
        rows_h_p = _round_up(rows_h, 8)
        mf = self.multi_step * self.num_in

        def fuse(attr, trainable):
            parts = [jnp.tile(attr, (b, 1))]
            if trainable is not None:
                parts.append(jnp.tile(trainable, (b, 1)))
            return jnp.concatenate(parts, axis=-1)

        h_static = fuse(self.h_latlons, self.h_trainable)          # (rows_h, 5)
        x_h = _pad_block(h_static, rows_h_p, cp).astype(jnp.bfloat16)

        era_static = fuse(self.era_latlons, self.era_trainable)    # (rows_era, 5)
        tail = jnp.zeros((rows_era, cp - mf), jnp.float32)
        tail = tail.at[:, :era_static.shape[1]].set(era_static).astype(jnp.bfloat16)

        def edge_cache(edge_index, attr, trainable, n_src, n_dst, rows_src_p, rows_dst_p):
            ne = edge_index.shape[1]
            e_rows = b * ne
            e_rows_p = _round_up(e_rows, 8)
            ea = fuse(attr, trainable)
            ea_p = _pad_block(ea, e_rows_p, cp).astype(jnp.bfloat16)
            src = jnp.concatenate([edge_index[0] + i * n_src for i in range(b)], axis=0)
            dst = jnp.concatenate([edge_index[1] + i * n_dst for i in range(b)], axis=0)
            soh = (src[:, None] == jnp.arange(rows_src_p)[None, :]).astype(jnp.float32)
            doh = (dst[:, None] == jnp.arange(rows_dst_p)[None, :]).astype(jnp.float32)
            soh = _pad_block(soh, e_rows_p, rows_src_p).astype(jnp.bfloat16)
            doh = _pad_block(doh, e_rows_p, rows_dst_p).astype(jnp.bfloat16)
            return {"attr": ea_p, "soh": soh, "doh": doh}

        cache = {
            "x_h": x_h, "era_tail": tail,
            "e2h": edge_cache(self.e2h_edge_index, self.e2h_edge_attr, self.e2h_trainable,
                              self.n_era, self.n_h, rows_era_p, rows_h_p),
            "h2h": edge_cache(self.h2h_edge_index, self.h2h_edge_attr, self.h2h_trainable,
                              self.n_h, self.n_h, rows_h_p, rows_h_p),
            "h2e": edge_cache(self.h2e_edge_index, self.h2e_edge_attr, self.h2e_trainable,
                              self.n_h, self.n_era, rows_h_p, rows_era_p),
        }
        self._cache[b] = cache
        return cache

    # -------- forward --------------------------------------------------------------------
    def _forward_impl(self, params, cache, x):
        b = x.shape[0]
        mf = self.multi_step * self.num_in
        rows_era = b * self.n_era
        rows_era_p = cache["e2h"]["soh"].shape[1]

        # 'b m n f -> (b n) (m f)', then place into the lane-padded latent slab
        x_flat = jnp.transpose(x, (0, 2, 1, 3)).reshape(rows_era, mf).astype(jnp.bfloat16)
        x_era_latent = jnp.concatenate([x_flat, cache["era_tail"]], axis=-1)
        if rows_era_p != rows_era:
            x_era_latent = jnp.pad(x_era_latent, ((0, rows_era_p - rows_era), (0, 0)))

        # stage 1: forward mapper (era -> hidden), fully fused
        x_era_hidden, x_latent = _forward_mapper_call(
            x_era_latent, cache["x_h"],
            cache["e2h"]["attr"], cache["e2h"]["soh"], cache["e2h"]["doh"],
            params["fwd"], c_real=self.num_channels)

        # stage 2: hidden processor, all layers in one pallas_call (grid over layers)
        x_latent_proc = _processor_call(
            x_latent, cache["h2h"]["attr"], cache["h2h"]["soh"], cache["h2h"]["doh"],
            params["proc"]["emb_edges"], params["proc"]["stack"],
            c_real=self.num_channels, num_layers=self.processor_layers)

        # stage 3: backward mapper (hidden -> era) + extractor, fully fused
        out_slab = _backward_mapper_call(
            x_latent_proc, x_era_hidden,
            cache["h2e"]["attr"], cache["h2e"]["soh"], cache["h2e"]["doh"],
            params["bwd"], c_real=self.num_channels)

        x_out = out_slab[:rows_era, :self.num_out].reshape(b, self.n_era, self.num_out)
        x_out = x_out.astype(x.dtype)
        # residual add of last-step prognostic inputs onto prognostic outputs
        x_out = x_out.at[..., self.out_idx].add(x[:, -1, :, :][..., self.in_idx])
        return x_out

    def __call__(self, x):
        cache = self._get_cache(x.shape[0])
        return self._forward_jit(self.params, cache, x)


# ==========================================================================================
if __name__ == "__main__":
    key = jax.random.PRNGKey(0)
    k_model, k_x = jax.random.split(key)

    batch, multi_step, n_era, num_in, num_out = 2, 2, 16, 4, 5
    model = GraphMSG(k_model, n_era=n_era, n_h=8,
                     num_input_channels=num_in, num_output_channels=num_out,
                     multi_step=multi_step, num_channels=32, processor_layers=2)

    x = jax.random.normal(k_x, (batch, multi_step, n_era, num_in), jnp.float32)
    out = model(x)
    out = jax.block_until_ready(out)
    assert out.shape == (batch, n_era, num_out), out.shape
    assert bool(jnp.all(jnp.isfinite(out)))
    print("KERNEL_OK")
</pallas_src>

<mosaic_0001>
module attributes {stable_mosaic.version = 11 : i64} {
  func.func @_processor_kernel(%arg0: i32, %arg1: memref<16x128xbf16, #tpu.memory_space<vmem>>, %arg2: memref<32x128xbf16, #tpu.memory_space<vmem>>, %arg3: memref<32x16xbf16, #tpu.memory_space<vmem>>, %arg4: memref<32x16xbf16, #tpu.memory_space<vmem>>, %arg5: memref<128x128xbf16, #tpu.memory_space<vmem>>, %arg6: memref<128x128xbf16, #tpu.memory_space<vmem>>, %arg7: memref<4x128xbf16, #tpu.memory_space<vmem>>, %arg8: memref<1x384x128xbf16, #tpu.memory_space<vmem>>, %arg9: memref<1x128x128xbf16, #tpu.memory_space<vmem>>, %arg10: memref<1x4x128xbf16, #tpu.memory_space<vmem>>, %arg11: memref<1x256x128xbf16, #tpu.memory_space<vmem>>, %arg12: memref<1x128x128xbf16, #tpu.memory_space<vmem>>, %arg13: memref<1x4x128xbf16, #tpu.memory_space<vmem>>, %arg14: memref<16x128xbf16, #tpu.memory_space<vmem>>, %arg15: memref<16x128xf32, #tpu.memory_space<vmem>>, %arg16: memref<32x128xf32, #tpu.memory_space<vmem>>) attributes {dimension_semantics = [#tpu.dimension_semantics<arbitrary>], iteration_bounds = array<i64: 2>, scalar_prefetch = 0 : i64, scratch_operands = 2 : i64, tpu.core_type = #tpu.core_type<tc>, window_params = [{pipeline_mode = #tpu.pipeline_mode<synchronous>, transform_indices = @transform_0, window_bounds = array<i64: 16, 128>}, {pipeline_mode = #tpu.pipeline_mode<synchronous>, transform_indices = @transform_1, window_bounds = array<i64: 32, 128>}, {pipeline_mode = #tpu.pipeline_mode<synchronous>, transform_indices = @transform_2, window_bounds = array<i64: 32, 16>}, {pipeline_mode = #tpu.pipeline_mode<synchronous>, transform_indices = @transform_3, window_bounds = array<i64: 32, 16>}, {pipeline_mode = #tpu.pipeline_mode<synchronous>, transform_indices = @transform_4, window_bounds = array<i64: 128, 128>}, {pipeline_mode = #tpu.pipeline_mode<synchronous>, transform_indices = @transform_5, window_bounds = array<i64: 128, 128>}, {pipeline_mode = #tpu.pipeline_mode<synchronous>, transform_indices = @transform_6, window_bounds = array<i64: 4, 128>}, {transform_indices = @transform_7, window_bounds = array<i64: 1, 384, 128>}, {transform_indices = @transform_8, window_bounds = array<i64: 1, 128, 128>}, {transform_indices = @transform_9, window_bounds = array<i64: 1, 4, 128>}, {transform_indices = @transform_10, window_bounds = array<i64: 1, 256, 128>}, {transform_indices = @transform_11, window_bounds = array<i64: 1, 128, 128>}, {transform_indices = @transform_12, window_bounds = array<i64: 1, 4, 128>}, {pipeline_mode = #tpu.pipeline_mode<synchronous>, transform_indices = @transform_13, window_bounds = array<i64: 16, 128>}]} {
    %0 = tpu.iota {dimensions = array<i32: 1>} : vector<1x128xi32>
    %c32_i32 = arith.constant 32 : i32
    %1 = vector.broadcast %c32_i32 : i32 to vector<1x128xi32>
    %2 = arith.cmpi slt, %0, %1 : vector<1x128xi32>
    %3 = arith.extui %2 : vector<1x128xi1> to vector<1x128xi32>
    %4 = arith.sitofp %3 : vector<1x128xi32> to vector<1x128xf32>
    %c0_i32 = arith.constant 0 : i32
    %5 = arith.cmpi eq, %arg0, %c0_i32 : i32
    %6 = arith.extui %5 : i1 to i32
    %c0_i32_0 = arith.constant 0 : i32
    %7 = arith.cmpi ne, %6, %c0_i32_0 : i32
    scf.if %7 {
      %c0_61 = arith.constant 0 : index
      %c0_62 = arith.constant 0 : index
      %149 = vector.load %arg2[%c0_61, %c0_62] : memref<32x128xbf16, #tpu.memory_space<vmem>>, vector<32x128xbf16>
      %c0_63 = arith.constant 0 : index
      %c0_64 = arith.constant 0 : index
      %150 = vector.load %arg7[%c0_63, %c0_64] : memref<4x128xbf16, #tpu.memory_space<vmem>>, vector<4x128xbf16>
      %151 = arith.extf %150 : vector<4x128xbf16> to vector<4x128xf32>
      %152 = vector.extract_strided_slice %151 {offsets = [0, 0], sizes = [1, 128], strides = [1, 1]} : vector<4x128xf32> to vector<1x128xf32>
      %153 = vector.extract_strided_slice %151 {offsets = [1, 0], sizes = [1, 128], strides = [1, 1]} : vector<4x128xf32> to vector<1x128xf32>
      %154 = vector.extract_strided_slice %151 {offsets = [2, 0], sizes = [1, 128], strides = [1, 1]} : vector<4x128xf32> to vector<1x128xf32>
      %155 = vector.extract_strided_slice %151 {offsets = [3, 0], sizes = [1, 128], strides = [1, 1]} : vector<4x128xf32> to vector<1x128xf32>
      %c0_65 = arith.constant 0 : index
      %c0_66 = arith.constant 0 : index
      %156 = vector.load %arg5[%c0_65, %c0_66] : memref<128x128xbf16, #tpu.memory_space<vmem>>, vector<128x128xbf16>
      %cst_67 = arith.constant dense<0.000000e+00> : vector<32x128xf32>
      %157 = tpu.matmul %149, %156, %cst_67 {dimension_numbers = #tpu.dot_dimension_numbers<[1], [0], [0], [1], [0, 0, 1, 1], [], []>} : vector<32x128xbf16>, vector<128x128xbf16>, vector<32x128xf32> -> vector<32x128xf32>
      %158 = vector.broadcast %152 : vector<1x128xf32> to vector<32x128xf32>
      %159 = arith.addf %157, %158 : vector<32x128xf32>
      %160 = arith.negf %159 : vector<32x128xf32>
      %161 = math.exp %160 : vector<32x128xf32>
      %cst_68 = arith.constant 1.000000e+00 : f32
      %162 = vector.broadcast %cst_68 : f32 to vector<32x128xf32>
      %163 = arith.addf %162, %161 : vector<32x128xf32>
      %164 = arith.divf %162, %163 : vector<32x128xf32>
      %165 = arith.mulf %159, %164 : vector<32x128xf32>
      %166 = arith.truncf %165 : vector<32x128xf32> to vector<32x128xbf16>
      %c0_69 = arith.constant 0 : index
      %c0_70 = arith.constant 0 : index
      %167 = vector.load %arg6[%c0_69, %c0_70] : memref<128x128xbf16, #tpu.memory_space<vmem>>, vector<128x128xbf16>
      %cst_71 = arith.constant dense<0.000000e+00> : vector<32x128xf32>
      %168 = tpu.matmul %166, %167, %cst_71 {dimension_numbers = #tpu.dot_dimension_numbers<[1], [0], [0], [1], [0, 0, 1, 1], [], []>} : vector<32x128xbf16>, vector<128x128xbf16>, vector<32x128xf32> -> vector<32x128xf32>
      %169 = vector.broadcast %153 : vector<1x128xf32> to vector<32x128xf32>
      %170 = arith.addf %168, %169 : vector<32x128xf32>
      %171 = arith.negf %170 : vector<32x128xf32>
      %172 = math.exp %171 : vector<32x128xf32>
      %cst_72 = arith.constant 1.000000e+00 : f32
      %173 = vector.broadcast %cst_72 : f32 to vector<32x128xf32>
      %174 = arith.addf %173, %172 : vector<32x128xf32>
      %175 = arith.divf %173, %174 : vector<32x128xf32>
      %176 = arith.mulf %170, %175 : vector<32x128xf32>
      %cst_73 = arith.constant dense<0.000000e+00> : vector<32xf32>
      %177 = vector.multi_reduction <add>, %176, %cst_73 [1] : vector<32x128xf32> to vector<32xf32>
      %178 = vector.shape_cast %177 : vector<32xf32> to vector<32x1xf32>
      %cst_74 = arith.constant 3.125000e-02 : f32
      %179 = vector.broadcast %cst_74 : f32 to vector<32x1xf32>
      %180 = arith.mulf %178, %179 : vector<32x1xf32>
      %181 = vector.broadcast %180 : vector<32x1xf32> to vector<32x128xf32>
      %182 = arith.subf %176, %181 : vector<32x128xf32>
      %183 = vector.broadcast %4 : vector<1x128xf32> to vector<32x128xf32>
      %184 = arith.mulf %182, %183 : vector<32x128xf32>
      %185 = arith.mulf %184, %184 : vector<32x128xf32>
      %cst_75 = arith.constant dense<0.000000e+00> : vector<32xf32>
      %186 = vector.multi_reduction <add>, %185, %cst_75 [1] : vector<32x128xf32> to vector<32xf32>
      %187 = vector.shape_cast %186 : vector<32xf32> to vector<32x1xf32>
      %cst_76 = arith.constant 3.125000e-02 : f32
      %188 = vector.broadcast %cst_76 : f32 to vector<32x1xf32>
      %189 = arith.mulf %187, %188 : vector<32x1xf32>
      %190 = vector.broadcast %180 : vector<32x1xf32> to vector<32x128xf32>
      %191 = arith.subf %176, %190 : vector<32x128xf32>
      %cst_77 = arith.constant 9.99999974E-6 : f32
      %192 = vector.broadcast %cst_77 : f32 to vector<32x1xf32>
      %193 = arith.addf %189, %192 : vector<32x1xf32>
      %194 = math.rsqrt %193 : vector<32x1xf32>
      %195 = vector.broadcast %194 : vector<32x1xf32> to vector<32x128xf32>
      %196 = arith.mulf %191, %195 : vector<32x128xf32>
      %197 = vector.broadcast %154 : vector<1x128xf32> to vector<32x128xf32>
      %198 = arith.mulf %196, %197 : vector<32x128xf32>
      %199 = vector.broadcast %155 : vector<1x128xf32> to vector<32x128xf32>
      %200 = arith.addf %198, %199 : vector<32x128xf32>
      %c0_78 = arith.constant 0 : index
      %c0_79 = arith.constant 0 : index
      %201 = vector.load %arg16[%c0_78, %c0_79] : memref<32x128xf32, #tpu.memory_space<vmem>>, vector<32x128xf32>
      tpu.vector_store %arg16[%c0_78, %c0_79], %200 {strides = array<i32>} : memref<32x128xf32, #tpu.memory_space<vmem>>, vector<32x128xf32>,
      %c0_80 = arith.constant 0 : index
      %c0_81 = arith.constant 0 : index
      %202 = vector.load %arg1[%c0_80, %c0_81] : memref<16x128xbf16, #tpu.memory_space<vmem>>, vector<16x128xbf16>
      %203 = arith.extf %202 : vector<16x128xbf16> to vector<16x128xf32>
      %c0_82 = arith.constant 0 : index
      %c0_83 = arith.constant 0 : index
      %204 = vector.load %arg15[%c0_82, %c0_83] : memref<16x128xf32, #tpu.memory_space<vmem>>, vector<16x128xf32>
      tpu.vector_store %arg15[%c0_82, %c0_83], %203 {strides = array<i32>} : memref<16x128xf32, #tpu.memory_space<vmem>>, vector<16x128xf32>,
    } else {
    }
    %c0 = arith.constant 0 : index
    %c0_1 = arith.constant 0 : index
    %8 = vector.load %arg15[%c0, %c0_1] : memref<16x128xf32, #tpu.memory_space<vmem>>, vector<16x128xf32>
    %c0_2 = arith.constant 0 : index
    %c0_3 = arith.constant 0 : index
    %9 = vector.load %arg16[%c0_2, %c0_3] : memref<32x128xf32, #tpu.memory_space<vmem>>, vector<32x128xf32>
    %10 = arith.truncf %8 : vector<16x128xf32> to vector<16x128xbf16>
    %c0_4 = arith.constant 0 : index
    %c0_5 = arith.constant 0 : index
    %11 = vector.load %arg3[%c0_4, %c0_5] : memref<32x16xbf16, #tpu.memory_space<vmem>>, vector<32x16xbf16>
    %c0_6 = arith.constant 0 : index
    %c0_7 = arith.constant 0 : index
    %12 = vector.load %arg4[%c0_6, %c0_7] : memref<32x16xbf16, #tpu.memory_space<vmem>>, vector<32x16xbf16>
    %c0_8 = arith.constant 0 : index
    %c0_9 = arith.constant 0 : index
    %c0_10 = arith.constant 0 : index
    %13 = vector.load %arg10[%c0_8, %c0_9, %c0_10] : memref<1x4x128xbf16, #tpu.memory_space<vmem>>, vector<1x4x128xbf16>
    %14 = vector.shape_cast %13 : vector<1x4x128xbf16> to vector<4x128xbf16>
    %15 = arith.extf %14 : vector<4x128xbf16> to vector<4x128xf32>
    %16 = vector.extract_strided_slice %15 {offsets = [0, 0], sizes = [1, 128], strides = [1, 1]} : vector<4x128xf32> to vector<1x128xf32>
    %17 = vector.extract_strided_slice %15 {offsets = [1, 0], sizes = [1, 128], strides = [1, 1]} : vector<4x128xf32> to vector<1x128xf32>
    %18 = vector.extract_strided_slice %15 {offsets = [2, 0], sizes = [1, 128], strides = [1, 1]} : vector<4x128xf32> to vector<1x128xf32>
    %19 = vector.extract_strided_slice %15 {offsets = [3, 0], sizes = [1, 128], strides = [1, 1]} : vector<4x128xf32> to vector<1x128xf32>
    %c0_11 = arith.constant 0 : index
    %c0_12 = arith.constant 0 : index
    %c0_13 = arith.constant 0 : index
    %20 = vector.load %arg13[%c0_11, %c0_12, %c0_13] : memref<1x4x128xbf16, #tpu.memory_space<vmem>>, vector<1x4x128xbf16>
    %21 = vector.shape_cast %20 : vector<1x4x128xbf16> to vector<4x128xbf16>
    %22 = arith.extf %21 : vector<4x128xbf16> to vector<4x128xf32>
    %23 = vector.extract_strided_slice %22 {offsets = [0, 0], sizes = [1, 128], strides = [1, 1]} : vector<4x128xf32> to vector<1x128xf32>
    %24 = vector.extract_strided_slice %22 {offsets = [1, 0], sizes = [1, 128], strides = [1, 1]} : vector<4x128xf32> to vector<1x128xf32>
    %25 = vector.extract_strided_slice %22 {offsets = [2, 0], sizes = [1, 128], strides = [1, 1]} : vector<4x128xf32> to vector<1x128xf32>
    %26 = vector.extract_strided_slice %22 {offsets = [3, 0], sizes = [1, 128], strides = [1, 1]} : vector<4x128xf32> to vector<1x128xf32>
    %27 = arith.truncf %8 : vector<16x128xf32> to vector<16x128xbf16>
    %28 = arith.truncf %9 : vector<32x128xf32> to vector<32x128xbf16>
    %cst = arith.constant dense<0.000000e+00> : vector<32x128xf32>
    %29 = tpu.matmul %11, %10, %cst {dimension_numbers = #tpu.dot_dimension_numbers<[1], [0], [0], [1], [0, 0, 1, 1], [], []>} : vector<32x16xbf16>, vector<16x128xbf16>, vector<32x128xf32> -> vector<32x128xf32>
    %cst_14 = arith.constant dense<0.000000e+00> : vector<32x128xf32>
    %30 = tpu.matmul %12, %27, %cst_14 {dimension_numbers = #tpu.dot_dimension_numbers<[1], [0], [0], [1], [0, 0, 1, 1], [], []>} : vector<32x16xbf16>, vector<16x128xbf16>, vector<32x128xf32> -> vector<32x128xf32>
    %31 = arith.truncf %30 : vector<32x128xf32> to vector<32x128xbf16>
    %c0_15 = arith.constant 0 : index
    %c0_16 = arith.constant 0 : index
    %c0_17 = arith.constant 0 : index
    %32 = vector.load %arg8[%c0_15, %c0_16, %c0_17] : memref<1x384x128xbf16, #tpu.memory_space<vmem>>, vector<1x128x128xbf16>
    %33 = vector.shape_cast %32 : vector<1x128x128xbf16> to vector<128x128xbf16>
    %cst_18 = arith.constant dense<0.000000e+00> : vector<32x128xf32>
    %34 = tpu.matmul %31, %33, %cst_18 {dimension_numbers = #tpu.dot_dimension_numbers<[1], [0], [0], [1], [0, 0, 1, 1], [], []>} : vector<32x128xbf16>, vector<128x128xbf16>, vector<32x128xf32> -> vector<32x128xf32>
    %35 = arith.truncf %29 : vector<32x128xf32> to vector<32x128xbf16>
    %c0_19 = arith.constant 0 : index
    %c128 = arith.constant 128 : index
    %c0_20 = arith.constant 0 : index
    %36 = vector.load %arg8[%c0_19, %c128, %c0_20] : memref<1x384x128xbf16, #tpu.memory_space<vmem>>, vector<1x128x128xbf16>
    %37 = vector.shape_cast %36 : vector<1x128x128xbf16> to vector<128x128xbf16>
    %cst_21 = arith.constant dense<0.000000e+00> : vector<32x128xf32>
    %38 = tpu.matmul %35, %37, %cst_21 {dimension_numbers = #tpu.dot_dimension_numbers<[1], [0], [0], [1], [0, 0, 1, 1], [], []>} : vector<32x128xbf16>, vector<128x128xbf16>, vector<32x128xf32> -> vector<32x128xf32>
    %39 = arith.addf %34, %38 : vector<32x128xf32>
    %c0_22 = arith.constant 0 : index
    %c256 = arith.constant 256 : index
    %c0_23 = arith.constant 0 : index
    %40 = vector.load %arg8[%c0_22, %c256, %c0_23] : memref<1x384x128xbf16, #tpu.memory_space<vmem>>, vector<1x128x128xbf16>
    %41 = vector.shape_cast %40 : vector<1x128x128xbf16> to vector<128x128xbf16>
    %cst_24 = arith.constant dense<0.000000e+00> : vector<32x128xf32>
    %42 = tpu.matmul %28, %41, %cst_24 {dimension_numbers = #tpu.dot_dimension_numbers<[1], [0], [0], [1], [0, 0, 1, 1], [], []>} : vector<32x128xbf16>, vector<128x128xbf16>, vector<32x128xf32> -> vector<32x128xf32>
    %43 = arith.addf %39, %42 : vector<32x128xf32>
    %44 = vector.broadcast %16 : vector<1x128xf32> to vector<32x128xf32>
    %45 = arith.addf %43, %44 : vector<32x128xf32>
    %46 = arith.negf %45 : vector<32x128xf32>
    %47 = math.exp %46 : vector<32x128xf32>
    %cst_25 = arith.constant 1.000000e+00 : f32
    %48 = vector.broadcast %cst_25 : f32 to vector<32x128xf32>
    %49 = arith.addf %48, %47 : vector<32x128xf32>
    %50 = arith.divf %48, %49 : vector<32x128xf32>
    %51 = arith.mulf %45, %50 : vector<32x128xf32>
    %52 = arith.truncf %51 : vector<32x128xf32> to vector<32x128xbf16>
    %c0_26 = arith.constant 0 : index
    %c0_27 = arith.constant 0 : index
    %c0_28 = arith.constant 0 : index
    %53 = vector.load %arg9[%c0_26, %c0_27, %c0_28] : memref<1x128x128xbf16, #tpu.memory_space<vmem>>, vector<1x128x128xbf16>
    %54 = vector.shape_cast %53 : vector<1x128x128xbf16> to vector<128x128xbf16>
    %cst_29 = arith.constant dense<0.000000e+00> : vector<32x128xf32>
    %55 = tpu.matmul %52, %54, %cst_29 {dimension_numbers = #tpu.dot_dimension_numbers<[1], [0], [0], [1], [0, 0, 1, 1], [], []>} : vector<32x128xbf16>, vector<128x128xbf16>, vector<32x128xf32> -> vector<32x128xf32>
    %56 = vector.broadcast %17 : vector<1x128xf32> to vector<32x128xf32>
    %57 = arith.addf %55, %56 : vector<32x128xf32>
    %58 = arith.negf %57 : vector<32x128xf32>
    %59 = math.exp %58 : vector<32x128xf32>
    %cst_30 = arith.constant 1.000000e+00 : f32
    %60 = vector.broadcast %cst_30 : f32 to vector<32x128xf32>
    %61 = arith.addf %60, %59 : vector<32x128xf32>
    %62 = arith.divf %60, %61 : vector<32x128xf32>
    %63 = arith.mulf %57, %62 : vector<32x128xf32>
    %cst_31 = arith.constant dense<0.000000e+00> : vector<32xf32>
    %64 = vector.multi_reduction <add>, %63, %cst_31 [1] : vector<32x128xf32> to vector<32xf32>
    %65 = vector.shape_cast %64 : vector<32xf32> to vector<32x1xf32>
    %cst_32 = arith.constant 3.125000e-02 : f32
    %66 = vector.broadcast %cst_32 : f32 to vector<32x1xf32>
    %67 = arith.mulf %65, %66 : vector<32x1xf32>
    %68 = vector.broadcast %67 : vector<32x1xf32> to vector<32x128xf32>
    %69 = arith.subf %63, %68 : vector<32x128xf32>
    %70 = vector.broadcast %4 : vector<1x128xf32> to vector<32x128xf32>
    %71 = arith.mulf %69, %70 : vector<32x128xf32>
    %72 = arith.mulf %71, %71 : vector<32x128xf32>
    %cst_33 = arith.constant dense<0.000000e+00> : vector<32xf32>
    %73 = vector.multi_reduction <add>, %72, %cst_33 [1] : vector<32x128xf32> to vector<32xf32>
    %74 = vector.shape_cast %73 : vector<32xf32> to vector<32x1xf32>
    %cst_34 = arith.constant 3.125000e-02 : f32
    %75 = vector.broadcast %cst_34 : f32 to vector<32x1xf32>
    %76 = arith.mulf %74, %75 : vector<32x1xf32>
    %77 = vector.broadcast %67 : vector<32x1xf32> to vector<32x128xf32>
    %78 = arith.subf %63, %77 : vector<32x128xf32>
    %cst_35 = arith.constant 9.99999974E-6 : f32
    %79 = vector.broadcast %cst_35 : f32 to vector<32x1xf32>
    %80 = arith.addf %76, %79 : vector<32x1xf32>
    %81 = math.rsqrt %80 : vector<32x1xf32>
    %82 = vector.broadcast %81 : vector<32x1xf32> to vector<32x128xf32>
    %83 = arith.mulf %78, %82 : vector<32x128xf32>
    %84 = vector.broadcast %18 : vector<1x128xf32> to vector<32x128xf32>
    %85 = arith.mulf %83, %84 : vector<32x128xf32>
    %86 = vector.broadcast %19 : vector<1x128xf32> to vector<32x128xf32>
    %87 = arith.addf %85, %86 : vector<32x128xf32>
    %88 = arith.addf %87, %9 : vector<32x128xf32>
    %89 = arith.truncf %88 : vector<32x128xf32> to vector<32x128xbf16>
    %cst_36 = arith.constant dense<0.000000e+00> : vector<16x128xf32>
    %90 = tpu.matmul %12, %89, %cst_36 {dimension_numbers = #tpu.dot_dimension_numbers<[0], [0], [1], [1], [0, 1, 1, 1], [], []>} : vector<32x16xbf16>, vector<32x128xbf16>, vector<16x128xf32> -> vector<16x128xf32>
    %c0_37 = arith.constant 0 : index
    %c0_38 = arith.constant 0 : index
    %c0_39 = arith.constant 0 : index
    %91 = vector.load %arg11[%c0_37, %c0_38, %c0_39] : memref<1x256x128xbf16, #tpu.memory_space<vmem>>, vector<1x128x128xbf16>
    %92 = vector.shape_cast %91 : vector<1x128x128xbf16> to vector<128x128xbf16>
    %cst_40 = arith.constant dense<0.000000e+00> : vector<16x128xf32>
    %93 = tpu.matmul %27, %92, %cst_40 {dimension_numbers = #tpu.dot_dimension_numbers<[1], [0], [0], [1], [0, 0, 1, 1], [], []>} : vector<16x128xbf16>, vector<128x128xbf16>, vector<16x128xf32> -> vector<16x128xf32>
    %94 = arith.truncf %90 : vector<16x128xf32> to vector<16x128xbf16>
    %c0_41 = arith.constant 0 : index
    %c128_42 = arith.constant 128 : index
    %c0_43 = arith.constant 0 : index
    %95 = vector.load %arg11[%c0_41, %c128_42, %c0_43] : memref<1x256x128xbf16, #tpu.memory_space<vmem>>, vector<1x128x128xbf16>
    %96 = vector.shape_cast %95 : vector<1x128x128xbf16> to vector<128x128xbf16>
    %cst_44 = arith.constant dense<0.000000e+00> : vector<16x128xf32>
    %97 = tpu.matmul %94, %96, %cst_44 {dimension_numbers = #tpu.dot_dimension_numbers<[1], [0], [0], [1], [0, 0, 1, 1], [], []>} : vector<16x128xbf16>, vector<128x128xbf16>, vector<16x128xf32> -> vector<16x128xf32>
    %98 = arith.addf %93, %97 : vector<16x128xf32>
    %99 = vector.broadcast %23 : vector<1x128xf32> to vector<16x128xf32>
    %100 = arith.addf %98, %99 : vector<16x128xf32>
    %101 = arith.negf %100 : vector<16x128xf32>
    %102 = math.exp %101 : vector<16x128xf32>
    %cst_45 = arith.constant 1.000000e+00 : f32
    %103 = vector.broadcast %cst_45 : f32 to vector<16x128xf32>
    %104 = arith.addf %103, %102 : vector<16x128xf32>
    %105 = arith.divf %103, %104 : vector<16x128xf32>
    %106 = arith.mulf %100, %105 : vector<16x128xf32>
    %107 = arith.truncf %106 : vector<16x128xf32> to vector<16x128xbf16>
    %c0_46 = arith.constant 0 : index
    %c0_47 = arith.constant 0 : index
    %c0_48 = arith.constant 0 : index
    %108 = vector.load %arg12[%c0_46, %c0_47, %c0_48] : memref<1x128x128xbf16, #tpu.memory_space<vmem>>, vector<1x128x128xbf16>
    %109 = vector.shape_cast %108 : vector<1x128x128xbf16> to vector<128x128xbf16>
    %cst_49 = arith.constant dense<0.000000e+00> : vector<16x128xf32>
    %110 = tpu.matmul %107, %109, %cst_49 {dimension_numbers = #tpu.dot_dimension_numbers<[1], [0], [0], [1], [0, 0, 1, 1], [], []>} : vector<16x128xbf16>, vector<128x128xbf16>, vector<16x128xf32> -> vector<16x128xf32>
    %111 = vector.broadcast %24 : vector<1x128xf32> to vector<16x128xf32>
    %112 = arith.addf %110, %111 : vector<16x128xf32>
    %113 = arith.negf %112 : vector<16x128xf32>
    %114 = math.exp %113 : vector<16x128xf32>
    %cst_50 = arith.constant 1.000000e+00 : f32
    %115 = vector.broadcast %cst_50 : f32 to vector<16x128xf32>
    %116 = arith.addf %115, %114 : vector<16x128xf32>
    %117 = arith.divf %115, %116 : vector<16x128xf32>
    %118 = arith.mulf %112, %117 : vector<16x128xf32>
    %cst_51 = arith.constant dense<0.000000e+00> : vector<16xf32>
    %119 = vector.multi_reduction <add>, %118, %cst_51 [1] : vector<16x128xf32> to vector<16xf32>
    %120 = vector.shape_cast %119 : vector<16xf32> to vector<16x1xf32>
    %cst_52 = arith.constant 3.125000e-02 : f32
    %121 = vector.broadcast %cst_52 : f32 to vector<16x1xf32>
    %122 = arith.mulf %120, %121 : vector<16x1xf32>
    %123 = vector.broadcast %122 : vector<16x1xf32> to vector<16x128xf32>
    %124 = arith.subf %118, %123 : vector<16x128xf32>
    %125 = vector.broadcast %4 : vector<1x128xf32> to vector<16x128xf32>
    %126 = arith.mulf %124, %125 : vector<16x128xf32>
    %127 = arith.mulf %126, %126 : vector<16x128xf32>
    %cst_53 = arith.constant dense<0.000000e+00> : vector<16xf32>
    %128 = vector.multi_reduction <add>, %127, %cst_53 [1] : vector<16x128xf32> to vector<16xf32>
    %129 = vector.shape_cast %128 : vector<16xf32> to vector<16x1xf32>
    %cst_54 = arith.constant 3.125000e-02 : f32
    %130 = vector.broadcast %cst_54 : f32 to vector<16x1xf32>
    %131 = arith.mulf %129, %130 : vector<16x1xf32>
    %132 = vector.broadcast %122 : vector<16x1xf32> to vector<16x128xf32>
    %133 = arith.subf %118, %132 : vector<16x128xf32>
    %cst_55 = arith.constant 9.99999974E-6 : f32
    %134 = vector.broadcast %cst_55 : f32 to vector<16x1xf32>
    %135 = arith.addf %131, %134 : vector<16x1xf32>
    %136 = math.rsqrt %135 : vector<16x1xf32>
    %137 = vector.broadcast %136 : vector<16x1xf32> to vector<16x128xf32>
    %138 = arith.mulf %133, %137 : vector<16x128xf32>
    %139 = vector.broadcast %25 : vector<1x128xf32> to vector<16x128xf32>
    %140 = arith.mulf %138, %139 : vector<16x128xf32>
    %141 = vector.broadcast %26 : vector<1x128xf32> to vector<16x128xf32>
    %142 = arith.addf %140, %141 : vector<16x128xf32>
    %143 = arith.addf %142, %8 : vector<16x128xf32>
    %c0_56 = arith.constant 0 : index
    %c0_57 = arith.constant 0 : index
    %144 = vector.load %arg15[%c0_56, %c0_57] : memref<16x128xf32, #tpu.memory_space<vmem>>, vector<16x128xf32>
    tpu.vector_store %arg15[%c0_56, %c0_57], %143 {strides = array<i32>} : memref<16x128xf32, #tpu.memory_space<vmem>>, vector<16x128xf32>,
    %c0_58 = arith.constant 0 : index
    %c0_59 = arith.constant 0 : index
    %145 = vector.load %arg16[%c0_58, %c0_59] : memref<32x128xf32, #tpu.memory_space<vmem>>, vector<32x128xf32>
    tpu.vector_store %arg16[%c0_58, %c0_59], %88 {strides = array<i32>} : memref<32x128xf32, #tpu.memory_space<vmem>>, vector<32x128xf32>,
    %c1_i32 = arith.constant 1 : i32
    %146 = arith.cmpi eq, %arg0, %c1_i32 : i32
    %147 = arith.extui %146 : i1 to i32
    %c0_i32_60 = arith.constant 0 : i32
    %148 = arith.cmpi ne, %147, %c0_i32_60 : i32
    scf.if %148 {
      %c0_61 = arith.constant 0 : index
      %c0_62 = arith.constant 0 : index
      %149 = vector.load %arg1[%c0_61, %c0_62] : memref<16x128xbf16, #tpu.memory_space<vmem>>, vector<16x128xbf16>
      %150 = arith.extf %149 : vector<16x128xbf16> to vector<16x128xf32>
      %151 = arith.addf %143, %150 : vector<16x128xf32>
      %152 = arith.truncf %151 : vector<16x128xf32> to vector<16x128xbf16>
      %c0_63 = arith.constant 0 : index
      %c0_64 = arith.constant 0 : index
      %153 = vector.load %arg14[%c0_63, %c0_64] : memref<16x128xbf16, #tpu.memory_space<vmem>>, vector<16x128xbf16>
      tpu.vector_store %arg14[%c0_63, %c0_64], %152 {strides = array<i32>} : memref<16x128xbf16, #tpu.memory_space<vmem>>, vector<16x128xbf16>,
    } else {
    }
    return
  }
  func.func @transform_0(%arg0: i32) -> (i32, i32) {
    %c0_i32 = arith.constant 0 : i32
    %c0_i32_0 = arith.constant 0 : i32
    %c0_i32_1 = arith.constant 0 : i32
    return %c0_i32, %c0_i32_0 : i32, i32
  }
  func.func @transform_1(%arg0: i32) -> (i32, i32) {
    %c0_i32 = arith.constant 0 : i32
    %c0_i32_0 = arith.constant 0 : i32
    %c0_i32_1 = arith.constant 0 : i32
    return %c0_i32, %c0_i32_0 : i32, i32
  }
  func.func @transform_2(%arg0: i32) -> (i32, i32) {
    %c0_i32 = arith.constant 0 : i32
    %c0_i32_0 = arith.constant 0 : i32
    %c0_i32_1 = arith.constant 0 : i32
    return %c0_i32, %c0_i32_0 : i32, i32
  }
  func.func @transform_3(%arg0: i32) -> (i32, i32) {
    %c0_i32 = arith.constant 0 : i32
    %c0_i32_0 = arith.constant 0 : i32
    %c0_i32_1 = arith.constant 0 : i32
    return %c0_i32, %c0_i32_0 : i32, i32
  }
  func.func @transform_4(%arg0: i32) -> (i32, i32) {
    %c0_i32 = arith.constant 0 : i32
    %c0_i32_0 = arith.constant 0 : i32
    %c0_i32_1 = arith.constant 0 : i32
    return %c0_i32, %c0_i32_0 : i32, i32
  }
  func.func @transform_5(%arg0: i32) -> (i32, i32) {
    %c0_i32 = arith.constant 0 : i32
    %c0_i32_0 = arith.constant 0 : i32
    %c0_i32_1 = arith.constant 0 : i32
    return %c0_i32, %c0_i32_0 : i32, i32
  }
  func.func @transform_6(%arg0: i32) -> (i32, i32) {
    %c0_i32 = arith.constant 0 : i32
    %c0_i32_0 = arith.constant 0 : i32
    %c0_i32_1 = arith.constant 0 : i32
    return %c0_i32, %c0_i32_0 : i32, i32
  }
  func.func @transform_7(%arg0: i32) -> (i32, i32, i32) {
    %c0_i32 = arith.constant 0 : i32
    %c0_i32_0 = arith.constant 0 : i32
    %c0_i32_1 = arith.constant 0 : i32
    return %arg0, %c0_i32, %c0_i32_0 : i32, i32, i32
  }
  func.func @transform_8(%arg0: i32) -> (i32, i32, i32) {
    %c0_i32 = arith.constant 0 : i32
    %c0_i32_0 = arith.constant 0 : i32
    %c0_i32_1 = arith.constant 0 : i32
    return %arg0, %c0_i32, %c0_i32_0 : i32, i32, i32
  }
  func.func @transform_9(%arg0: i32) -> (i32, i32, i32) {
    %c0_i32 = arith.constant 0 : i32
    %c0_i32_0 = arith.constant 0 : i32
    %c0_i32_1 = arith.constant 0 : i32
    return %arg0, %c0_i32, %c0_i32_0 : i32, i32, i32
  }
  func.func @transform_10(%arg0: i32) -> (i32, i32, i32) {
    %c0_i32 = arith.constant 0 : i32
    %c0_i32_0 = arith.constant 0 : i32
    %c0_i32_1 = arith.constant 0 : i32
    return %arg0, %c0_i32, %c0_i32_0 : i32, i32, i32
  }
  func.func @transform_11(%arg0: i32) -> (i32, i32, i32) {
    %c0_i32 = arith.constant 0 : i32
    %c0_i32_0 = arith.constant 0 : i32
    %c0_i32_1 = arith.constant 0 : i32
    return %arg0, %c0_i32, %c0_i32_0 : i32, i32, i32
  }
  func.func @transform_12(%arg0: i32) -> (i32, i32, i32) {
    %c0_i32 = arith.constant 0 : i32
    %c0_i32_0 = arith.constant 0 : i32
    %c0_i32_1 = arith.constant 0 : i32
    return %arg0, %c0_i32, %c0_i32_0 : i32, i32, i32
  }
  func.func @transform_13(%arg0: i32) -> (i32, i32) {
    %c0_i32 = arith.constant 0 : i32
    %c0_i32_0 = arith.constant 0 : i32
    %c0_i32_1 = arith.constant 0 : i32
    return %c0_i32, %c0_i32_0 : i32, i32
  }
}

module attributes {stable_mosaic.version = 11 : i64} {
  func.func @_fwd_mapper_kernel(%arg0: memref<32x128xbf16, #tpu.memory_space<vmem>>, %arg1: memref<16x128xbf16, #tpu.memory_space<vmem>>, %arg2: memref<48x128xbf16, #tpu.memory_space<vmem>>, %arg3: memref<48x32xbf16, #tpu.memory_space<vmem>>, %arg4: memref<48x16xbf16, #tpu.memory_space<vmem>>, %arg5: memref<128x128xbf16, #tpu.memory_space<vmem>>, %arg6: memref<128x128xbf16, #tpu.memory_space<vmem>>, %arg7: memref<4x128xbf16, #tpu.memory_space<vmem>>, %arg8: memref<128x128xbf16, #tpu.memory_space<vmem>>, %arg9: memref<128x128xbf16, #tpu.memory_space<vmem>>, %arg10: memref<4x128xbf16, #tpu.memory_space<vmem>>, %arg11: memref<128x128xbf16, #tpu.memory_space<vmem>>, %arg12: memref<128x128xbf16, #tpu.memory_space<vmem>>, %arg13: memref<4x128xbf16, #tpu.memory_space<vmem>>, %arg14: memref<384x128xbf16, #tpu.memory_space<vmem>>, %arg15: memref<128x128xbf16, #tpu.memory_space<vmem>>, %arg16: memref<4x128xbf16, #tpu.memory_space<vmem>>, %arg17: memref<256x128xbf16, #tpu.memory_space<vmem>>, %arg18: memref<128x128xbf16, #tpu.memory_space<vmem>>, %arg19: memref<4x128xbf16, #tpu.memory_space<vmem>>, %arg20: memref<32x128xbf16, #tpu.memory_space<vmem>>, %arg21: memref<16x128xbf16, #tpu.memory_space<vmem>>) attributes {dimension_semantics = [], scalar_prefetch = 0 : i64, scratch_operands = 0 : i64, tpu.core_type = #tpu.core_type<tc>} {
    %0 = tpu.iota {dimensions = array<i32: 1>} : vector<1x128xi32>
    %c32_i32 = arith.constant 32 : i32
    %1 = vector.broadcast %c32_i32 : i32 to vector<1x128xi32>
    %2 = arith.cmpi slt, %0, %1 : vector<1x128xi32>
    %3 = arith.extui %2 : vector<1x128xi1> to vector<1x128xi32>
    %4 = arith.sitofp %3 : vector<1x128xi32> to vector<1x128xf32>
    %c0 = arith.constant 0 : index
    %c0_0 = arith.constant 0 : index
    %5 = vector.load %arg0[%c0, %c0_0] : memref<32x128xbf16, #tpu.memory_space<vmem>>, vector<32x128xbf16>
    %c0_1 = arith.constant 0 : index
    %c0_2 = arith.constant 0 : index
    %6 = vector.load %arg7[%c0_1, %c0_2] : memref<4x128xbf16, #tpu.memory_space<vmem>>, vector<4x128xbf16>
    %7 = arith.extf %6 : vector<4x128xbf16> to vector<4x128xf32>
    %8 = vector.extract_strided_slice %7 {offsets = [0, 0], sizes = [1, 128], strides = [1, 1]} : vector<4x128xf32> to vector<1x128xf32>
    %9 = vector.extract_strided_slice %7 {offsets = [1, 0], sizes = [1, 128], strides = [1, 1]} : vector<4x128xf32> to vector<1x128xf32>
    %10 = vector.extract_strided_slice %7 {offsets = [2, 0], sizes = [1, 128], strides = [1, 1]} : vector<4x128xf32> to vector<1x128xf32>
    %11 = vector.extract_strided_slice %7 {offsets = [3, 0], sizes = [1, 128], strides = [1, 1]} : vector<4x128xf32> to vector<1x128xf32>
    %c0_3 = arith.constant 0 : index
    %c0_4 = arith.constant 0 : index
    %12 = vector.load %arg5[%c0_3, %c0_4] : memref<128x128xbf16, #tpu.memory_space<vmem>>, vector<128x128xbf16>
    %cst = arith.constant dense<0.000000e+00> : vector<32x128xf32>
    %13 = tpu.matmul %5, %12, %cst {dimension_numbers = #tpu.dot_dimension_numbers<[1], [0], [0], [1], [0, 0, 1, 1], [], []>} : vector<32x128xbf16>, vector<128x128xbf16>, vector<32x128xf32> -> vector<32x128xf32>
    %14 = vector.broadcast %8 : vector<1x128xf32> to vector<32x128xf32>
    %15 = arith.addf %13, %14 : vector<32x128xf32>
    %16 = arith.negf %15 : vector<32x128xf32>
    %17 = math.exp %16 : vector<32x128xf32>
    %cst_5 = arith.constant 1.000000e+00 : f32
    %18 = vector.broadcast %cst_5 : f32 to vector<32x128xf32>
    %19 = arith.addf %18, %17 : vector<32x128xf32>
    %20 = arith.divf %18, %19 : vector<32x128xf32>
    %21 = arith.mulf %15, %20 : vector<32x128xf32>
    %22 = arith.truncf %21 : vector<32x128xf32> to vector<32x128xbf16>
    %c0_6 = arith.constant 0 : index
    %c0_7 = arith.constant 0 : index
    %23 = vector.load %arg6[%c0_6, %c0_7] : memref<128x128xbf16, #tpu.memory_space<vmem>>, vector<128x128xbf16>
    %cst_8 = arith.constant dense<0.000000e+00> : vector<32x128xf32>
    %24 = tpu.matmul %22, %23, %cst_8 {dimension_numbers = #tpu.dot_dimension_numbers<[1], [0], [0], [1], [0, 0, 1, 1], [], []>} : vector<32x128xbf16>, vector<128x128xbf16>, vector<32x128xf32> -> vector<32x128xf32>
    %25 = vector.broadcast %9 : vector<1x128xf32> to vector<32x128xf32>
    %26 = arith.addf %24, %25 : vector<32x128xf32>
    %27 = arith.negf %26 : vector<32x128xf32>
    %28 = math.exp %27 : vector<32x128xf32>
    %cst_9 = arith.constant 1.000000e+00 : f32
    %29 = vector.broadcast %cst_9 : f32 to vector<32x128xf32>
    %30 = arith.addf %29, %28 : vector<32x128xf32>
    %31 = arith.divf %29, %30 : vector<32x128xf32>
    %32 = arith.mulf %26, %31 : vector<32x128xf32>
    %cst_10 = arith.constant dense<0.000000e+00> : vector<32xf32>
    %33 = vector.multi_reduction <add>, %32, %cst_10 [1] : vector<32x128xf32> to vector<32xf32>
    %34 = vector.shape_cast %33 : vector<32xf32> to vector<32x1xf32>
    %cst_11 = arith.constant 3.125000e-02 : f32
    %35 = vector.broadcast %cst_11 : f32 to vector<32x1xf32>
    %36 = arith.mulf %34, %35 : vector<32x1xf32>
    %37 = vector.broadcast %36 : vector<32x1xf32> to vector<32x128xf32>
    %38 = arith.subf %32, %37 : vector<32x128xf32>
    %39 = vector.broadcast %4 : vector<1x128xf32> to vector<32x128xf32>
    %40 = arith.mulf %38, %39 : vector<32x128xf32>
    %41 = arith.mulf %40, %40 : vector<32x128xf32>
    %cst_12 = arith.constant dense<0.000000e+00> : vector<32xf32>
    %42 = vector.multi_reduction <add>, %41, %cst_12 [1] : vector<32x128xf32> to vector<32xf32>
    %43 = vector.shape_cast %42 : vector<32xf32> to vector<32x1xf32>
    %cst_13 = arith.constant 3.125000e-02 : f32
    %44 = vector.broadcast %cst_13 : f32 to vector<32x1xf32>
    %45 = arith.mulf %43, %44 : vector<32x1xf32>
    %46 = vector.broadcast %36 : vector<32x1xf32> to vector<32x128xf32>
    %47 = arith.subf %32, %46 : vector<32x128xf32>
    %cst_14 = arith.constant 9.99999974E-6 : f32
    %48 = vector.broadcast %cst_14 : f32 to vector<32x1xf32>
    %49 = arith.addf %45, %48 : vector<32x1xf32>
    %50 = math.rsqrt %49 : vector<32x1xf32>
    %51 = vector.broadcast %50 : vector<32x1xf32> to vector<32x128xf32>
    %52 = arith.mulf %47, %51 : vector<32x128xf32>
    %53 = vector.broadcast %10 : vector<1x128xf32> to vector<32x128xf32>
    %54 = arith.mulf %52, %53 : vector<32x128xf32>
    %55 = vector.broadcast %11 : vector<1x128xf32> to vector<32x128xf32>
    %56 = arith.addf %54, %55 : vector<32x128xf32>
    %c0_15 = arith.constant 0 : index
    %c0_16 = arith.constant 0 : index
    %57 = vector.load %arg1[%c0_15, %c0_16] : memref<16x128xbf16, #tpu.memory_space<vmem>>, vector<16x128xbf16>
    %c0_17 = arith.constant 0 : index
    %c0_18 = arith.constant 0 : index
    %58 = vector.load %arg10[%c0_17, %c0_18] : memref<4x128xbf16, #tpu.memory_space<vmem>>, vector<4x128xbf16>
    %59 = arith.extf %58 : vector<4x128xbf16> to vector<4x128xf32>
    %60 = vector.extract_strided_slice %59 {offsets = [0, 0], sizes = [1, 128], strides = [1, 1]} : vector<4x128xf32> to vector<1x128xf32>
    %61 = vector.extract_strided_slice %59 {offsets = [1, 0], sizes = [1, 128], strides = [1, 1]} : vector<4x128xf32> to vector<1x128xf32>
    %62 = vector.extract_strided_slice %59 {offsets = [2, 0], sizes = [1, 128], strides = [1, 1]} : vector<4x128xf32> to vector<1x128xf32>
    %63 = vector.extract_strided_slice %59 {offsets = [3, 0], sizes = [1, 128], strides = [1, 1]} : vector<4x128xf32> to vector<1x128xf32>
    %c0_19 = arith.constant 0 : index
    %c0_20 = arith.constant 0 : index
    %64 = vector.load %arg8[%c0_19, %c0_20] : memref<128x128xbf16, #tpu.memory_space<vmem>>, vector<128x128xbf16>
    %cst_21 = arith.constant dense<0.000000e+00> : vector<16x128xf32>
    %65 = tpu.matmul %57, %64, %cst_21 {dimension_numbers = #tpu.dot_dimension_numbers<[1], [0], [0], [1], [0, 0, 1, 1], [], []>} : vector<16x128xbf16>, vector<128x128xbf16>, vector<16x128xf32> -> vector<16x128xf32>
    %66 = vector.broadcast %60 : vector<1x128xf32> to vector<16x128xf32>
    %67 = arith.addf %65, %66 : vector<16x128xf32>
    %68 = arith.negf %67 : vector<16x128xf32>
    %69 = math.exp %68 : vector<16x128xf32>
    %cst_22 = arith.constant 1.000000e+00 : f32
    %70 = vector.broadcast %cst_22 : f32 to vector<16x128xf32>
    %71 = arith.addf %70, %69 : vector<16x128xf32>
    %72 = arith.divf %70, %71 : vector<16x128xf32>
    %73 = arith.mulf %67, %72 : vector<16x128xf32>
    %74 = arith.truncf %73 : vector<16x128xf32> to vector<16x128xbf16>
    %c0_23 = arith.constant 0 : index
    %c0_24 = arith.constant 0 : index
    %75 = vector.load %arg9[%c0_23, %c0_24] : memref<128x128xbf16, #tpu.memory_space<vmem>>, vector<128x128xbf16>
    %cst_25 = arith.constant dense<0.000000e+00> : vector<16x128xf32>
    %76 = tpu.matmul %74, %75, %cst_25 {dimension_numbers = #tpu.dot_dimension_numbers<[1], [0], [0], [1], [0, 0, 1, 1], [], []>} : vector<16x128xbf16>, vector<128x128xbf16>, vector<16x128xf32> -> vector<16x128xf32>
    %77 = vector.broadcast %61 : vector<1x128xf32> to vector<16x128xf32>
    %78 = arith.addf %76, %77 : vector<16x128xf32>
    %79 = arith.negf %78 : vector<16x128xf32>
    %80 = math.exp %79 : vector<16x128xf32>
    %cst_26 = arith.constant 1.000000e+00 : f32
    %81 = vector.broadcast %cst_26 : f32 to vector<16x128xf32>
    %82 = arith.addf %81, %80 : vector<16x128xf32>
    %83 = arith.divf %81, %82 : vector<16x128xf32>
    %84 = arith.mulf %78, %83 : vector<16x128xf32>
    %cst_27 = arith.constant dense<0.000000e+00> : vector<16xf32>
    %85 = vector.multi_reduction <add>, %84, %cst_27 [1] : vector<16x128xf32> to vector<16xf32>
    %86 = vector.shape_cast %85 : vector<16xf32> to vector<16x1xf32>
    %cst_28 = arith.constant 3.125000e-02 : f32
    %87 = vector.broadcast %cst_28 : f32 to vector<16x1xf32>
    %88 = arith.mulf %86, %87 : vector<16x1xf32>
    %89 = vector.broadcast %88 : vector<16x1xf32> to vector<16x128xf32>
    %90 = arith.subf %84, %89 : vector<16x128xf32>
    %91 = vector.broadcast %4 : vector<1x128xf32> to vector<16x128xf32>
    %92 = arith.mulf %90, %91 : vector<16x128xf32>
    %93 = arith.mulf %92, %92 : vector<16x128xf32>
    %cst_29 = arith.constant dense<0.000000e+00> : vector<16xf32>
    %94 = vector.multi_reduction <add>, %93, %cst_29 [1] : vector<16x128xf32> to vector<16xf32>
    %95 = vector.shape_cast %94 : vector<16xf32> to vector<16x1xf32>
    %cst_30 = arith.constant 3.125000e-02 : f32
    %96 = vector.broadcast %cst_30 : f32 to vector<16x1xf32>
    %97 = arith.mulf %95, %96 : vector<16x1xf32>
    %98 = vector.broadcast %88 : vector<16x1xf32> to vector<16x128xf32>
    %99 = arith.subf %84, %98 : vector<16x128xf32>
    %cst_31 = arith.constant 9.99999974E-6 : f32
    %100 = vector.broadcast %cst_31 : f32 to vector<16x1xf32>
    %101 = arith.addf %97, %100 : vector<16x1xf32>
    %102 = math.rsqrt %101 : vector<16x1xf32>
    %103 = vector.broadcast %102 : vector<16x1xf32> to vector<16x128xf32>
    %104 = arith.mulf %99, %103 : vector<16x128xf32>
    %105 = vector.broadcast %62 : vector<1x128xf32> to vector<16x128xf32>
    %106 = arith.mulf %104, %105 : vector<16x128xf32>
    %107 = vector.broadcast %63 : vector<1x128xf32> to vector<16x128xf32>
    %108 = arith.addf %106, %107 : vector<16x128xf32>
    %c0_32 = arith.constant 0 : index
    %c0_33 = arith.constant 0 : index
    %109 = vector.load %arg2[%c0_32, %c0_33] : memref<48x128xbf16, #tpu.memory_space<vmem>>, vector<48x128xbf16>
    %c0_34 = arith.constant 0 : index
    %c0_35 = arith.constant 0 : index
    %110 = vector.load %arg13[%c0_34, %c0_35] : memref<4x128xbf16, #tpu.memory_space<vmem>>, vector<4x128xbf16>
    %111 = arith.extf %110 : vector<4x128xbf16> to vector<4x128xf32>
    %112 = vector.extract_strided_slice %111 {offsets = [0, 0], sizes = [1, 128], strides = [1, 1]} : vector<4x128xf32> to vector<1x128xf32>
    %113 = vector.extract_strided_slice %111 {offsets = [1, 0], sizes = [1, 128], strides = [1, 1]} : vector<4x128xf32> to vector<1x128xf32>
    %114 = vector.extract_strided_slice %111 {offsets = [2, 0], sizes = [1, 128], strides = [1, 1]} : vector<4x128xf32> to vector<1x128xf32>
    %115 = vector.extract_strided_slice %111 {offsets = [3, 0], sizes = [1, 128], strides = [1, 1]} : vector<4x128xf32> to vector<1x128xf32>
    %c0_36 = arith.constant 0 : index
    %c0_37 = arith.constant 0 : index
    %116 = vector.load %arg11[%c0_36, %c0_37] : memref<128x128xbf16, #tpu.memory_space<vmem>>, vector<128x128xbf16>
    %cst_38 = arith.constant dense<0.000000e+00> : vector<48x128xf32>
    %117 = tpu.matmul %109, %116, %cst_38 {dimension_numbers = #tpu.dot_dimension_numbers<[1], [0], [0], [1], [0, 0, 1, 1], [], []>} : vector<48x128xbf16>, vector<128x128xbf16>, vector<48x128xf32> -> vector<48x128xf32>
    %118 = vector.broadcast %112 : vector<1x128xf32> to vector<48x128xf32>
    %119 = arith.addf %117, %118 : vector<48x128xf32>
    %120 = arith.negf %119 : vector<48x128xf32>
    %121 = math.exp %120 : vector<48x128xf32>
    %cst_39 = arith.constant 1.000000e+00 : f32
    %122 = vector.broadcast %cst_39 : f32 to vector<48x128xf32>
    %123 = arith.addf %122, %121 : vector<48x128xf32>
    %124 = arith.divf %122, %123 : vector<48x128xf32>
    %125 = arith.mulf %119, %124 : vector<48x128xf32>
    %126 = arith.truncf %125 : vector<48x128xf32> to vector<48x128xbf16>
    %c0_40 = arith.constant 0 : index
    %c0_41 = arith.constant 0 : index
    %127 = vector.load %arg12[%c0_40, %c0_41] : memref<128x128xbf16, #tpu.memory_space<vmem>>, vector<128x128xbf16>
    %cst_42 = arith.constant dense<0.000000e+00> : vector<48x128xf32>
    %128 = tpu.matmul %126, %127, %cst_42 {dimension_numbers = #tpu.dot_dimension_numbers<[1], [0], [0], [1], [0, 0, 1, 1], [], []>} : vector<48x128xbf16>, vector<128x128xbf16>, vector<48x128xf32> -> vector<48x128xf32>
    %129 = vector.broadcast %113 : vector<1x128xf32> to vector<48x128xf32>
    %130 = arith.addf %128, %129 : vector<48x128xf32>
    %131 = arith.negf %130 : vector<48x128xf32>
    %132 = math.exp %131 : vector<48x128xf32>
    %cst_43 = arith.constant 1.000000e+00 : f32
    %133 = vector.broadcast %cst_43 : f32 to vector<48x128xf32>
    %134 = arith.addf %133, %132 : vector<48x128xf32>
    %135 = arith.divf %133, %134 : vector<48x128xf32>
    %136 = arith.mulf %130, %135 : vector<48x128xf32>
    %cst_44 = arith.constant dense<0.000000e+00> : vector<48xf32>
    %137 = vector.multi_reduction <add>, %136, %cst_44 [1] : vector<48x128xf32> to vector<48xf32>
    %138 = vector.shape_cast %137 : vector<48xf32> to vector<48x1xf32>
    %cst_45 = arith.constant 3.125000e-02 : f32
    %139 = vector.broadcast %cst_45 : f32 to vector<48x1xf32>
    %140 = arith.mulf %138, %139 : vector<48x1xf32>
    %141 = vector.broadcast %140 : vector<48x1xf32> to vector<48x128xf32>
    %142 = arith.subf %136, %141 : vector<48x128xf32>
    %143 = vector.broadcast %4 : vector<1x128xf32> to vector<48x128xf32>
    %144 = arith.mulf %142, %143 : vector<48x128xf32>
    %145 = arith.mulf %144, %144 : vector<48x128xf32>
    %cst_46 = arith.constant dense<0.000000e+00> : vector<48xf32>
    %146 = vector.multi_reduction <add>, %145, %cst_46 [1] : vector<48x128xf32> to vector<48xf32>
    %147 = vector.shape_cast %146 : vector<48xf32> to vector<48x1xf32>
    %cst_47 = arith.constant 3.125000e-02 : f32
    %148 = vector.broadcast %cst_47 : f32 to vector<48x1xf32>
    %149 = arith.mulf %147, %148 : vector<48x1xf32>
    %150 = vector.broadcast %140 : vector<48x1xf32> to vector<48x128xf32>
    %151 = arith.subf %136, %150 : vector<48x128xf32>
    %cst_48 = arith.constant 9.99999974E-6 : f32
    %152 = vector.broadcast %cst_48 : f32 to vector<48x1xf32>
    %153 = arith.addf %149, %152 : vector<48x1xf32>
    %154 = math.rsqrt %153 : vector<48x1xf32>
    %155 = vector.broadcast %154 : vector<48x1xf32> to vector<48x128xf32>
    %156 = arith.mulf %151, %155 : vector<48x128xf32>
    %157 = vector.broadcast %114 : vector<1x128xf32> to vector<48x128xf32>
    %158 = arith.mulf %156, %157 : vector<48x128xf32>
    %159 = vector.broadcast %115 : vector<1x128xf32> to vector<48x128xf32>
    %160 = arith.addf %158, %159 : vector<48x128xf32>
    %161 = arith.truncf %56 : vector<32x128xf32> to vector<32x128xbf16>
    %c0_49 = arith.constant 0 : index
    %c0_50 = arith.constant 0 : index
    %162 = vector.load %arg3[%c0_49, %c0_50] : memref<48x32xbf16, #tpu.memory_space<vmem>>, vector<48x32xbf16>
    %c0_51 = arith.constant 0 : index
    %c0_52 = arith.constant 0 : index
    %163 = vector.load %arg4[%c0_51, %c0_52] : memref<48x16xbf16, #tpu.memory_space<vmem>>, vector<48x16xbf16>
    %c0_53 = arith.constant 0 : index
    %c0_54 = arith.constant 0 : index
    %164 = vector.load %arg16[%c0_53, %c0_54] : memref<4x128xbf16, #tpu.memory_space<vmem>>, vector<4x128xbf16>
    %165 = arith.extf %164 : vector<4x128xbf16> to vector<4x128xf32>
    %166 = vector.extract_strided_slice %165 {offsets = [0, 0], sizes = [1, 128], strides = [1, 1]} : vector<4x128xf32> to vector<1x128xf32>
    %167 = vector.extract_strided_slice %165 {offsets = [1, 0], sizes = [1, 128], strides = [1, 1]} : vector<4x128xf32> to vector<1x128xf32>
    %168 = vector.extract_strided_slice %165 {offsets = [2, 0], sizes = [1, 128], strides = [1, 1]} : vector<4x128xf32> to vector<1x128xf32>
    %169 = vector.extract_strided_slice %165 {offsets = [3, 0], sizes = [1, 128], strides = [1, 1]} : vector<4x128xf32> to vector<1x128xf32>
    %c0_55 = arith.constant 0 : index
    %c0_56 = arith.constant 0 : index
    %170 = vector.load %arg19[%c0_55, %c0_56] : memref<4x128xbf16, #tpu.memory_space<vmem>>, vector<4x128xbf16>
    %171 = arith.extf %170 : vector<4x128xbf16> to vector<4x128xf32>
    %172 = vector.extract_strided_slice %171 {offsets = [0, 0], sizes = [1, 128], strides = [1, 1]} : vector<4x128xf32> to vector<1x128xf32>
    %173 = vector.extract_strided_slice %171 {offsets = [1, 0], sizes = [1, 128], strides = [1, 1]} : vector<4x128xf32> to vector<1x128xf32>
    %174 = vector.extract_strided_slice %171 {offsets = [2, 0], sizes = [1, 128], strides = [1, 1]} : vector<4x128xf32> to vector<1x128xf32>
    %175 = vector.extract_strided_slice %171 {offsets = [3, 0], sizes = [1, 128], strides = [1, 1]} : vector<4x128xf32> to vector<1x128xf32>
    %176 = arith.truncf %108 : vector<16x128xf32> to vector<16x128xbf16>
    %177 = arith.truncf %160 : vector<48x128xf32> to vector<48x128xbf16>
    %cst_57 = arith.constant dense<0.000000e+00> : vector<48x128xf32>
    %178 = tpu.matmul %162, %161, %cst_57 {dimension_numbers = #tpu.dot_dimension_numbers<[1], [0], [0], [1], [0, 0, 1, 1], [], []>} : vector<48x32xbf16>, vector<32x128xbf16>, vector<48x128xf32> -> vector<48x128xf32>
    %cst_58 = arith.constant dense<0.000000e+00> : vector<48x128xf32>
    %179 = tpu.matmul %163, %176, %cst_58 {dimension_numbers = #tpu.dot_dimension_numbers<[1], [0], [0], [1], [0, 0, 1, 1], [], []>} : vector<48x16xbf16>, vector<16x128xbf16>, vector<48x128xf32> -> vector<48x128xf32>
    %180 = arith.truncf %179 : vector<48x128xf32> to vector<48x128xbf16>
    %c0_59 = arith.constant 0 : index
    %c0_60 = arith.constant 0 : index
    %181 = vector.load %arg14[%c0_59, %c0_60] : memref<384x128xbf16, #tpu.memory_space<vmem>>, vector<128x128xbf16>
    %cst_61 = arith.constant dense<0.000000e+00> : vector<48x128xf32>
    %182 = tpu.matmul %180, %181, %cst_61 {dimension_numbers = #tpu.dot_dimension_numbers<[1], [0], [0], [1], [0, 0, 1, 1], [], []>} : vector<48x128xbf16>, vector<128x128xbf16>, vector<48x128xf32> -> vector<48x128xf32>
    %183 = arith.truncf %178 : vector<48x128xf32> to vector<48x128xbf16>
    %c128 = arith.constant 128 : index
    %c0_62 = arith.constant 0 : index
    %184 = vector.load %arg14[%c128, %c0_62] : memref<384x128xbf16, #tpu.memory_space<vmem>>, vector<128x128xbf16>
    %cst_63 = arith.constant dense<0.000000e+00> : vector<48x128xf32>
    %185 = tpu.matmul %183, %184, %cst_63 {dimension_numbers = #tpu.dot_dimension_numbers<[1], [0], [0], [1], [0, 0, 1, 1], [], []>} : vector<48x128xbf16>, vector<128x128xbf16>, vector<48x128xf32> -> vector<48x128xf32>
    %186 = arith.addf %182, %185 : vector<48x128xf32>
    %c256 = arith.constant 256 : index
    %c0_64 = arith.constant 0 : index
    %187 = vector.load %arg14[%c256, %c0_64] : memref<384x128xbf16, #tpu.memory_space<vmem>>, vector<128x128xbf16>
    %cst_65 = arith.constant dense<0.000000e+00> : vector<48x128xf32>
    %188 = tpu.matmul %177, %187, %cst_65 {dimension_numbers = #tpu.dot_dimension_numbers<[1], [0], [0], [1], [0, 0, 1, 1], [], []>} : vector<48x128xbf16>, vector<128x128xbf16>, vector<48x128xf32> -> vector<48x128xf32>
    %189 = arith.addf %186, %188 : vector<48x128xf32>
    %190 = vector.broadcast %166 : vector<1x128xf32> to vector<48x128xf32>
    %191 = arith.addf %189, %190 : vector<48x128xf32>
    %192 = arith.negf %191 : vector<48x128xf32>
    %193 = math.exp %192 : vector<48x128xf32>
    %cst_66 = arith.constant 1.000000e+00 : f32
    %194 = vector.broadcast %cst_66 : f32 to vector<48x128xf32>
    %195 = arith.addf %194, %193 : vector<48x128xf32>
    %196 = arith.divf %194, %195 : vector<48x128xf32>
    %197 = arith.mulf %191, %196 : vector<48x128xf32>
    %198 = arith.truncf %197 : vector<48x128xf32> to vector<48x128xbf16>
    %c0_67 = arith.constant 0 : index
    %c0_68 = arith.constant 0 : index
    %199 = vector.load %arg15[%c0_67, %c0_68] : memref<128x128xbf16, #tpu.memory_space<vmem>>, vector<128x128xbf16>
    %cst_69 = arith.constant dense<0.000000e+00> : vector<48x128xf32>
    %200 = tpu.matmul %198, %199, %cst_69 {dimension_numbers = #tpu.dot_dimension_numbers<[1], [0], [0], [1], [0, 0, 1, 1], [], []>} : vector<48x128xbf16>, vector<128x128xbf16>, vector<48x128xf32> -> vector<48x128xf32>
    %201 = vector.broadcast %167 : vector<1x128xf32> to vector<48x128xf32>
    %202 = arith.addf %200, %201 : vector<48x128xf32>
    %203 = arith.negf %202 : vector<48x128xf32>
    %204 = math.exp %203 : vector<48x128xf32>
    %cst_70 = arith.constant 1.000000e+00 : f32
    %205 = vector.broadcast %cst_70 : f32 to vector<48x128xf32>
    %206 = arith.addf %205, %204 : vector<48x128xf32>
    %207 = arith.divf %205, %206 : vector<48x128xf32>
    %208 = arith.mulf %202, %207 : vector<48x128xf32>
    %cst_71 = arith.constant dense<0.000000e+00> : vector<48xf32>
    %209 = vector.multi_reduction <add>, %208, %cst_71 [1] : vector<48x128xf32> to vector<48xf32>
    %210 = vector.shape_cast %209 : vector<48xf32> to vector<48x1xf32>
    %cst_72 = arith.constant 3.125000e-02 : f32
    %211 = vector.broadcast %cst_72 : f32 to vector<48x1xf32>
    %212 = arith.mulf %210, %211 : vector<48x1xf32>
    %213 = vector.broadcast %212 : vector<48x1xf32> to vector<48x128xf32>
    %214 = arith.subf %208, %213 : vector<48x128xf32>
    %215 = vector.broadcast %4 : vector<1x128xf32> to vector<48x128xf32>
    %216 = arith.mulf %214, %215 : vector<48x128xf32>
    %217 = arith.mulf %216, %216 : vector<48x128xf32>
    %cst_73 = arith.constant dense<0.000000e+00> : vector<48xf32>
    %218 = vector.multi_reduction <add>, %217, %cst_73 [1] : vector<48x128xf32> to vector<48xf32>
    %219 = vector.shape_cast %218 : vector<48xf32> to vector<48x1xf32>
    %cst_74 = arith.constant 3.125000e-02 : f32
    %220 = vector.broadcast %cst_74 : f32 to vector<48x1xf32>
    %221 = arith.mulf %219, %220 : vector<48x1xf32>
    %222 = vector.broadcast %212 : vector<48x1xf32> to vector<48x128xf32>
    %223 = arith.subf %208, %222 : vector<48x128xf32>
    %cst_75 = arith.constant 9.99999974E-6 : f32
    %224 = vector.broadcast %cst_75 : f32 to vector<48x1xf32>
    %225 = arith.addf %221, %224 : vector<48x1xf32>
    %226 = math.rsqrt %225 : vector<48x1xf32>
    %227 = vector.broadcast %226 : vector<48x1xf32> to vector<48x128xf32>
    %228 = arith.mulf %223, %227 : vector<48x128xf32>
    %229 = vector.broadcast %168 : vector<1x128xf32> to vector<48x128xf32>
    %230 = arith.mulf %228, %229 : vector<48x128xf32>
    %231 = vector.broadcast %169 : vector<1x128xf32> to vector<48x128xf32>
    %232 = arith.addf %230, %231 : vector<48x128xf32>
    %233 = arith.addf %232, %160 : vector<48x128xf32>
    %234 = arith.truncf %233 : vector<48x128xf32> to vector<48x128xbf16>
    %cst_76 = arith.constant dense<0.000000e+00> : vector<16x128xf32>
    %235 = tpu.matmul %163, %234, %cst_76 {dimension_numbers = #tpu.dot_dimension_numbers<[0], [0], [1], [1], [0, 1, 1, 1], [], []>} : vector<48x16xbf16>, vector<48x128xbf16>, vector<16x128xf32> -> vector<16x128xf32>
    %c0_77 = arith.constant 0 : index
    %c0_78 = arith.constant 0 : index
    %236 = vector.load %arg17[%c0_77, %c0_78] : memref<256x128xbf16, #tpu.memory_space<vmem>>, vector<128x128xbf16>
    %cst_79 = arith.constant dense<0.000000e+00> : vector<16x128xf32>
    %237 = tpu.matmul %176, %236, %cst_79 {dimension_numbers = #tpu.dot_dimension_numbers<[1], [0], [0], [1], [0, 0, 1, 1], [], []>} : vector<16x128xbf16>, vector<128x128xbf16>, vector<16x128xf32> -> vector<16x128xf32>
    %238 = arith.truncf %235 : vector<16x128xf32> to vector<16x128xbf16>
    %c128_80 = arith.constant 128 : index
    %c0_81 = arith.constant 0 : index
    %239 = vector.load %arg17[%c128_80, %c0_81] : memref<256x128xbf16, #tpu.memory_space<vmem>>, vector<128x128xbf16>
    %cst_82 = arith.constant dense<0.000000e+00> : vector<16x128xf32>
    %240 = tpu.matmul %238, %239, %cst_82 {dimension_numbers = #tpu.dot_dimension_numbers<[1], [0], [0], [1], [0, 0, 1, 1], [], []>} : vector<16x128xbf16>, vector<128x128xbf16>, vector<16x128xf32> -> vector<16x128xf32>
    %241 = arith.addf %237, %240 : vector<16x128xf32>
    %242 = vector.broadcast %172 : vector<1x128xf32> to vector<16x128xf32>
    %243 = arith.addf %241, %242 : vector<16x128xf32>
    %244 = arith.negf %243 : vector<16x128xf32>
    %245 = math.exp %244 : vector<16x128xf32>
    %cst_83 = arith.constant 1.000000e+00 : f32
    %246 = vector.broadcast %cst_83 : f32 to vector<16x128xf32>
    %247 = arith.addf %246, %245 : vector<16x128xf32>
    %248 = arith.divf %246, %247 : vector<16x128xf32>
    %249 = arith.mulf %243, %248 : vector<16x128xf32>
    %250 = arith.truncf %249 : vector<16x128xf32> to vector<16x128xbf16>
    %c0_84 = arith.constant 0 : index
    %c0_85 = arith.constant 0 : index
    %251 = vector.load %arg18[%c0_84, %c0_85] : memref<128x128xbf16, #tpu.memory_space<vmem>>, vector<128x128xbf16>
    %cst_86 = arith.constant dense<0.000000e+00> : vector<16x128xf32>
    %252 = tpu.matmul %250, %251, %cst_86 {dimension_numbers = #tpu.dot_dimension_numbers<[1], [0], [0], [1], [0, 0, 1, 1], [], []>} : vector<16x128xbf16>, vector<128x128xbf16>, vector<16x128xf32> -> vector<16x128xf32>
    %253 = vector.broadcast %173 : vector<1x128xf32> to vector<16x128xf32>
    %254 = arith.addf %252, %253 : vector<16x128xf32>
    %255 = arith.negf %254 : vector<16x128xf32>
    %256 = math.exp %255 : vector<16x128xf32>
    %cst_87 = arith.constant 1.000000e+00 : f32
    %257 = vector.broadcast %cst_87 : f32 to vector<16x128xf32>
    %258 = arith.addf %257, %256 : vector<16x128xf32>
    %259 = arith.divf %257, %258 : vector<16x128xf32>
    %260 = arith.mulf %254, %259 : vector<16x128xf32>
    %cst_88 = arith.constant dense<0.000000e+00> : vector<16xf32>
    %261 = vector.multi_reduction <add>, %260, %cst_88 [1] : vector<16x128xf32> to vector<16xf32>
    %262 = vector.shape_cast %261 : vector<16xf32> to vector<16x1xf32>
    %cst_89 = arith.constant 3.125000e-02 : f32
    %263 = vector.broadcast %cst_89 : f32 to vector<16x1xf32>
    %264 = arith.mulf %262, %263 : vector<16x1xf32>
    %265 = vector.broadcast %264 : vector<16x1xf32> to vector<16x128xf32>
    %266 = arith.subf %260, %265 : vector<16x128xf32>
    %267 = vector.broadcast %4 : vector<1x128xf32> to vector<16x128xf32>
    %268 = arith.mulf %266, %267 : vector<16x128xf32>
    %269 = arith.mulf %268, %268 : vector<16x128xf32>
    %cst_90 = arith.constant dense<0.000000e+00> : vector<16xf32>
    %270 = vector.multi_reduction <add>, %269, %cst_90 [1] : vector<16x128xf32> to vector<16xf32>
    %271 = vector.shape_cast %270 : vector<16xf32> to vector<16x1xf32>
    %cst_91 = arith.constant 3.125000e-02 : f32
    %272 = vector.broadcast %cst_91 : f32 to vector<16x1xf32>
    %273 = arith.mulf %271, %272 : vector<16x1xf32>
    %274 = vector.broadcast %264 : vector<16x1xf32> to vector<16x128xf32>
    %275 = arith.subf %260, %274 : vector<16x128xf32>
    %cst_92 = arith.constant 9.99999974E-6 : f32
    %276 = vector.broadcast %cst_92 : f32 to vector<16x1xf32>
    %277 = arith.addf %273, %276 : vector<16x1xf32>
    %278 = math.rsqrt %277 : vector<16x1xf32>
    %279 = vector.broadcast %278 : vector<16x1xf32> to vector<16x128xf32>
    %280 = arith.mulf %275, %279 : vector<16x128xf32>
    %281 = vector.broadcast %174 : vector<1x128xf32> to vector<16x128xf32>
    %282 = arith.mulf %280, %281 : vector<16x128xf32>
    %283 = vector.broadcast %175 : vector<1x128xf32> to vector<16x128xf32>
    %284 = arith.addf %282, %283 : vector<16x128xf32>
    %285 = arith.addf %284, %108 : vector<16x128xf32>
    %c0_93 = arith.constant 0 : index
    %c0_94 = arith.constant 0 : index
    %286 = vector.load %arg20[%c0_93, %c0_94] : memref<32x128xbf16, #tpu.memory_space<vmem>>, vector<32x128xbf16>
    tpu.vector_store %arg20[%c0_93, %c0_94], %161 {strides = array<i32>} : memref<32x128xbf16, #tpu.memory_space<vmem>>, vector<32x128xbf16>,
    %287 = arith.truncf %285 : vector<16x128xf32> to vector<16x128xbf16>
    %c0_95 = arith.constant 0 : index
    %c0_96 = arith.constant 0 : index
    %288 = vector.load %arg21[%c0_95, %c0_96] : memref<16x128xbf16, #tpu.memory_space<vmem>>, vector<16x128xbf16>
    tpu.vector_store %arg21[%c0_95, %c0_96], %287 {strides = array<i32>} : memref<16x128xbf16, #tpu.memory_space<vmem>>, vector<16x128xbf16>,
    return
  }
}

module attributes {stable_mosaic.version = 11 : i64} {
  func.func @_bwd_mapper_kernel(%arg0: memref<16x128xbf16, #tpu.memory_space<vmem>>, %arg1: memref<32x128xbf16, #tpu.memory_space<vmem>>, %arg2: memref<48x128xbf16, #tpu.memory_space<vmem>>, %arg3: memref<48x16xbf16, #tpu.memory_space<vmem>>, %arg4: memref<48x32xbf16, #tpu.memory_space<vmem>>, %arg5: memref<128x128xbf16, #tpu.memory_space<vmem>>, %arg6: memref<128x128xbf16, #tpu.memory_space<vmem>>, %arg7: memref<4x128xbf16, #tpu.memory_space<vmem>>, %arg8: memref<384x128xbf16, #tpu.memory_space<vmem>>, %arg9: memref<128x128xbf16, #tpu.memory_space<vmem>>, %arg10: memref<4x128xbf16, #tpu.memory_space<vmem>>, %arg11: memref<256x128xbf16, #tpu.memory_space<vmem>>, %arg12: memref<128x128xbf16, #tpu.memory_space<vmem>>, %arg13: memref<4x128xbf16, #tpu.memory_space<vmem>>, %arg14: memref<128x128xbf16, #tpu.memory_space<vmem>>, %arg15: memref<128x128xbf16, #tpu.memory_space<vmem>>, %arg16: memref<4x128xbf16, #tpu.memory_space<vmem>>, %arg17: memref<32x128xf32, #tpu.memory_space<vmem>>) attributes {dimension_semantics = [], scalar_prefetch = 0 : i64, scratch_operands = 0 : i64, tpu.core_type = #tpu.core_type<tc>} {
    %0 = tpu.iota {dimensions = array<i32: 1>} : vector<1x128xi32>
    %c32_i32 = arith.constant 32 : i32
    %1 = vector.broadcast %c32_i32 : i32 to vector<1x128xi32>
    %2 = arith.cmpi slt, %0, %1 : vector<1x128xi32>
    %3 = arith.extui %2 : vector<1x128xi1> to vector<1x128xi32>
    %4 = arith.sitofp %3 : vector<1x128xi32> to vector<1x128xf32>
    %c0 = arith.constant 0 : index
    %c0_0 = arith.constant 0 : index
    %5 = vector.load %arg2[%c0, %c0_0] : memref<48x128xbf16, #tpu.memory_space<vmem>>, vector<48x128xbf16>
    %c0_1 = arith.constant 0 : index
    %c0_2 = arith.constant 0 : index
    %6 = vector.load %arg7[%c0_1, %c0_2] : memref<4x128xbf16, #tpu.memory_space<vmem>>, vector<4x128xbf16>
    %7 = arith.extf %6 : vector<4x128xbf16> to vector<4x128xf32>
    %8 = vector.extract_strided_slice %7 {offsets = [0, 0], sizes = [1, 128], strides = [1, 1]} : vector<4x128xf32> to vector<1x128xf32>
    %9 = vector.extract_strided_slice %7 {offsets = [1, 0], sizes = [1, 128], strides = [1, 1]} : vector<4x128xf32> to vector<1x128xf32>
    %10 = vector.extract_strided_slice %7 {offsets = [2, 0], sizes = [1, 128], strides = [1, 1]} : vector<4x128xf32> to vector<1x128xf32>
    %11 = vector.extract_strided_slice %7 {offsets = [3, 0], sizes = [1, 128], strides = [1, 1]} : vector<4x128xf32> to vector<1x128xf32>
    %c0_3 = arith.constant 0 : index
    %c0_4 = arith.constant 0 : index
    %12 = vector.load %arg5[%c0_3, %c0_4] : memref<128x128xbf16, #tpu.memory_space<vmem>>, vector<128x128xbf16>
    %cst = arith.constant dense<0.000000e+00> : vector<48x128xf32>
    %13 = tpu.matmul %5, %12, %cst {dimension_numbers = #tpu.dot_dimension_numbers<[1], [0], [0], [1], [0, 0, 1, 1], [], []>} : vector<48x128xbf16>, vector<128x128xbf16>, vector<48x128xf32> -> vector<48x128xf32>
    %14 = vector.broadcast %8 : vector<1x128xf32> to vector<48x128xf32>
    %15 = arith.addf %13, %14 : vector<48x128xf32>
    %16 = arith.negf %15 : vector<48x128xf32>
    %17 = math.exp %16 : vector<48x128xf32>
    %cst_5 = arith.constant 1.000000e+00 : f32
    %18 = vector.broadcast %cst_5 : f32 to vector<48x128xf32>
    %19 = arith.addf %18, %17 : vector<48x128xf32>
    %20 = arith.divf %18, %19 : vector<48x128xf32>
    %21 = arith.mulf %15, %20 : vector<48x128xf32>
    %22 = arith.truncf %21 : vector<48x128xf32> to vector<48x128xbf16>
    %c0_6 = arith.constant 0 : index
    %c0_7 = arith.constant 0 : index
    %23 = vector.load %arg6[%c0_6, %c0_7] : memref<128x128xbf16, #tpu.memory_space<vmem>>, vector<128x128xbf16>
    %cst_8 = arith.constant dense<0.000000e+00> : vector<48x128xf32>
    %24 = tpu.matmul %22, %23, %cst_8 {dimension_numbers = #tpu.dot_dimension_numbers<[1], [0], [0], [1], [0, 0, 1, 1], [], []>} : vector<48x128xbf16>, vector<128x128xbf16>, vector<48x128xf32> -> vector<48x128xf32>
    %25 = vector.broadcast %9 : vector<1x128xf32> to vector<48x128xf32>
    %26 = arith.addf %24, %25 : vector<48x128xf32>
    %27 = arith.negf %26 : vector<48x128xf32>
    %28 = math.exp %27 : vector<48x128xf32>
    %cst_9 = arith.constant 1.000000e+00 : f32
    %29 = vector.broadcast %cst_9 : f32 to vector<48x128xf32>
    %30 = arith.addf %29, %28 : vector<48x128xf32>
    %31 = arith.divf %29, %30 : vector<48x128xf32>
    %32 = arith.mulf %26, %31 : vector<48x128xf32>
    %cst_10 = arith.constant dense<0.000000e+00> : vector<48xf32>
    %33 = vector.multi_reduction <add>, %32, %cst_10 [1] : vector<48x128xf32> to vector<48xf32>
    %34 = vector.shape_cast %33 : vector<48xf32> to vector<48x1xf32>
    %cst_11 = arith.constant 3.125000e-02 : f32
    %35 = vector.broadcast %cst_11 : f32 to vector<48x1xf32>
    %36 = arith.mulf %34, %35 : vector<48x1xf32>
    %37 = vector.broadcast %36 : vector<48x1xf32> to vector<48x128xf32>
    %38 = arith.subf %32, %37 : vector<48x128xf32>
    %39 = vector.broadcast %4 : vector<1x128xf32> to vector<48x128xf32>
    %40 = arith.mulf %38, %39 : vector<48x128xf32>
    %41 = arith.mulf %40, %40 : vector<48x128xf32>
    %cst_12 = arith.constant dense<0.000000e+00> : vector<48xf32>
    %42 = vector.multi_reduction <add>, %41, %cst_12 [1] : vector<48x128xf32> to vector<48xf32>
    %43 = vector.shape_cast %42 : vector<48xf32> to vector<48x1xf32>
    %cst_13 = arith.constant 3.125000e-02 : f32
    %44 = vector.broadcast %cst_13 : f32 to vector<48x1xf32>
    %45 = arith.mulf %43, %44 : vector<48x1xf32>
    %46 = vector.broadcast %36 : vector<48x1xf32> to vector<48x128xf32>
    %47 = arith.subf %32, %46 : vector<48x128xf32>
    %cst_14 = arith.constant 9.99999974E-6 : f32
    %48 = vector.broadcast %cst_14 : f32 to vector<48x1xf32>
    %49 = arith.addf %45, %48 : vector<48x1xf32>
    %50 = math.rsqrt %49 : vector<48x1xf32>
    %51 = vector.broadcast %50 : vector<48x1xf32> to vector<48x128xf32>
    %52 = arith.mulf %47, %51 : vector<48x128xf32>
    %53 = vector.broadcast %10 : vector<1x128xf32> to vector<48x128xf32>
    %54 = arith.mulf %52, %53 : vector<48x128xf32>
    %55 = vector.broadcast %11 : vector<1x128xf32> to vector<48x128xf32>
    %56 = arith.addf %54, %55 : vector<48x128xf32>
    %c0_15 = arith.constant 0 : index
    %c0_16 = arith.constant 0 : index
    %57 = vector.load %arg1[%c0_15, %c0_16] : memref<32x128xbf16, #tpu.memory_space<vmem>>, vector<32x128xbf16>
    %58 = arith.extf %57 : vector<32x128xbf16> to vector<32x128xf32>
    %c0_17 = arith.constant 0 : index
    %c0_18 = arith.constant 0 : index
    %59 = vector.load %arg0[%c0_17, %c0_18] : memref<16x128xbf16, #tpu.memory_space<vmem>>, vector<16x128xbf16>
    %c0_19 = arith.constant 0 : index
    %c0_20 = arith.constant 0 : index
    %60 = vector.load %arg3[%c0_19, %c0_20] : memref<48x16xbf16, #tpu.memory_space<vmem>>, vector<48x16xbf16>
    %c0_21 = arith.constant 0 : index
    %c0_22 = arith.constant 0 : index
    %61 = vector.load %arg4[%c0_21, %c0_22] : memref<48x32xbf16, #tpu.memory_space<vmem>>, vector<48x32xbf16>
    %c0_23 = arith.constant 0 : index
    %c0_24 = arith.constant 0 : index
    %62 = vector.load %arg10[%c0_23, %c0_24] : memref<4x128xbf16, #tpu.memory_space<vmem>>, vector<4x128xbf16>
    %63 = arith.extf %62 : vector<4x128xbf16> to vector<4x128xf32>
    %64 = vector.extract_strided_slice %63 {offsets = [0, 0], sizes = [1, 128], strides = [1, 1]} : vector<4x128xf32> to vector<1x128xf32>
    %65 = vector.extract_strided_slice %63 {offsets = [1, 0], sizes = [1, 128], strides = [1, 1]} : vector<4x128xf32> to vector<1x128xf32>
    %66 = vector.extract_strided_slice %63 {offsets = [2, 0], sizes = [1, 128], strides = [1, 1]} : vector<4x128xf32> to vector<1x128xf32>
    %67 = vector.extract_strided_slice %63 {offsets = [3, 0], sizes = [1, 128], strides = [1, 1]} : vector<4x128xf32> to vector<1x128xf32>
    %c0_25 = arith.constant 0 : index
    %c0_26 = arith.constant 0 : index
    %68 = vector.load %arg13[%c0_25, %c0_26] : memref<4x128xbf16, #tpu.memory_space<vmem>>, vector<4x128xbf16>
    %69 = arith.extf %68 : vector<4x128xbf16> to vector<4x128xf32>
    %70 = vector.extract_strided_slice %69 {offsets = [0, 0], sizes = [1, 128], strides = [1, 1]} : vector<4x128xf32> to vector<1x128xf32>
    %71 = vector.extract_strided_slice %69 {offsets = [1, 0], sizes = [1, 128], strides = [1, 1]} : vector<4x128xf32> to vector<1x128xf32>
    %72 = vector.extract_strided_slice %69 {offsets = [2, 0], sizes = [1, 128], strides = [1, 1]} : vector<4x128xf32> to vector<1x128xf32>
    %73 = vector.extract_strided_slice %69 {offsets = [3, 0], sizes = [1, 128], strides = [1, 1]} : vector<4x128xf32> to vector<1x128xf32>
    %74 = arith.truncf %58 : vector<32x128xf32> to vector<32x128xbf16>
    %75 = arith.truncf %56 : vector<48x128xf32> to vector<48x128xbf16>
    %cst_27 = arith.constant dense<0.000000e+00> : vector<48x128xf32>
    %76 = tpu.matmul %60, %59, %cst_27 {dimension_numbers = #tpu.dot_dimension_numbers<[1], [0], [0], [1], [0, 0, 1, 1], [], []>} : vector<48x16xbf16>, vector<16x128xbf16>, vector<48x128xf32> -> vector<48x128xf32>
    %cst_28 = arith.constant dense<0.000000e+00> : vector<48x128xf32>
    %77 = tpu.matmul %61, %74, %cst_28 {dimension_numbers = #tpu.dot_dimension_numbers<[1], [0], [0], [1], [0, 0, 1, 1], [], []>} : vector<48x32xbf16>, vector<32x128xbf16>, vector<48x128xf32> -> vector<48x128xf32>
    %78 = arith.truncf %77 : vector<48x128xf32> to vector<48x128xbf16>
    %c0_29 = arith.constant 0 : index
    %c0_30 = arith.constant 0 : index
    %79 = vector.load %arg8[%c0_29, %c0_30] : memref<384x128xbf16, #tpu.memory_space<vmem>>, vector<128x128xbf16>
    %cst_31 = arith.constant dense<0.000000e+00> : vector<48x128xf32>
    %80 = tpu.matmul %78, %79, %cst_31 {dimension_numbers = #tpu.dot_dimension_numbers<[1], [0], [0], [1], [0, 0, 1, 1], [], []>} : vector<48x128xbf16>, vector<128x128xbf16>, vector<48x128xf32> -> vector<48x128xf32>
    %81 = arith.truncf %76 : vector<48x128xf32> to vector<48x128xbf16>
    %c128 = arith.constant 128 : index
    %c0_32 = arith.constant 0 : index
    %82 = vector.load %arg8[%c128, %c0_32] : memref<384x128xbf16, #tpu.memory_space<vmem>>, vector<128x128xbf16>
    %cst_33 = arith.constant dense<0.000000e+00> : vector<48x128xf32>
    %83 = tpu.matmul %81, %82, %cst_33 {dimension_numbers = #tpu.dot_dimension_numbers<[1], [0], [0], [1], [0, 0, 1, 1], [], []>} : vector<48x128xbf16>, vector<128x128xbf16>, vector<48x128xf32> -> vector<48x128xf32>
    %84 = arith.addf %80, %83 : vector<48x128xf32>
    %c256 = arith.constant 256 : index
    %c0_34 = arith.constant 0 : index
    %85 = vector.load %arg8[%c256, %c0_34] : memref<384x128xbf16, #tpu.memory_space<vmem>>, vector<128x128xbf16>
    %cst_35 = arith.constant dense<0.000000e+00> : vector<48x128xf32>
    %86 = tpu.matmul %75, %85, %cst_35 {dimension_numbers = #tpu.dot_dimension_numbers<[1], [0], [0], [1], [0, 0, 1, 1], [], []>} : vector<48x128xbf16>, vector<128x128xbf16>, vector<48x128xf32> -> vector<48x128xf32>
    %87 = arith.addf %84, %86 : vector<48x128xf32>
    %88 = vector.broadcast %64 : vector<1x128xf32> to vector<48x128xf32>
    %89 = arith.addf %87, %88 : vector<48x128xf32>
    %90 = arith.negf %89 : vector<48x128xf32>
    %91 = math.exp %90 : vector<48x128xf32>
    %cst_36 = arith.constant 1.000000e+00 : f32
    %92 = vector.broadcast %cst_36 : f32 to vector<48x128xf32>
    %93 = arith.addf %92, %91 : vector<48x128xf32>
    %94 = arith.divf %92, %93 : vector<48x128xf32>
    %95 = arith.mulf %89, %94 : vector<48x128xf32>
    %96 = arith.truncf %95 : vector<48x128xf32> to vector<48x128xbf16>
    %c0_37 = arith.constant 0 : index
    %c0_38 = arith.constant 0 : index
    %97 = vector.load %arg9[%c0_37, %c0_38] : memref<128x128xbf16, #tpu.memory_space<vmem>>, vector<128x128xbf16>
    %cst_39 = arith.constant dense<0.000000e+00> : vector<48x128xf32>
    %98 = tpu.matmul %96, %97, %cst_39 {dimension_numbers = #tpu.dot_dimension_numbers<[1], [0], [0], [1], [0, 0, 1, 1], [], []>} : vector<48x128xbf16>, vector<128x128xbf16>, vector<48x128xf32> -> vector<48x128xf32>
    %99 = vector.broadcast %65 : vector<1x128xf32> to vector<48x128xf32>
    %100 = arith.addf %98, %99 : vector<48x128xf32>
    %101 = arith.negf %100 : vector<48x128xf32>
    %102 = math.exp %101 : vector<48x128xf32>
    %cst_40 = arith.constant 1.000000e+00 : f32
    %103 = vector.broadcast %cst_40 : f32 to vector<48x128xf32>
    %104 = arith.addf %103, %102 : vector<48x128xf32>
    %105 = arith.divf %103, %104 : vector<48x128xf32>
    %106 = arith.mulf %100, %105 : vector<48x128xf32>
    %cst_41 = arith.constant dense<0.000000e+00> : vector<48xf32>
    %107 = vector.multi_reduction <add>, %106, %cst_41 [1] : vector<48x128xf32> to vector<48xf32>
    %108 = vector.shape_cast %107 : vector<48xf32> to vector<48x1xf32>
    %cst_42 = arith.constant 3.125000e-02 : f32
    %109 = vector.broadcast %cst_42 : f32 to vector<48x1xf32>
    %110 = arith.mulf %108, %109 : vector<48x1xf32>
    %111 = vector.broadcast %110 : vector<48x1xf32> to vector<48x128xf32>
    %112 = arith.subf %106, %111 : vector<48x128xf32>
    %113 = vector.broadcast %4 : vector<1x128xf32> to vector<48x128xf32>
    %114 = arith.mulf %112, %113 : vector<48x128xf32>
    %115 = arith.mulf %114, %114 : vector<48x128xf32>
    %cst_43 = arith.constant dense<0.000000e+00> : vector<48xf32>
    %116 = vector.multi_reduction <add>, %115, %cst_43 [1] : vector<48x128xf32> to vector<48xf32>
    %117 = vector.shape_cast %116 : vector<48xf32> to vector<48x1xf32>
    %cst_44 = arith.constant 3.125000e-02 : f32
    %118 = vector.broadcast %cst_44 : f32 to vector<48x1xf32>
    %119 = arith.mulf %117, %118 : vector<48x1xf32>
    %120 = vector.broadcast %110 : vector<48x1xf32> to vector<48x128xf32>
    %121 = arith.subf %106, %120 : vector<48x128xf32>
    %cst_45 = arith.constant 9.99999974E-6 : f32
    %122 = vector.broadcast %cst_45 : f32 to vector<48x1xf32>
    %123 = arith.addf %119, %122 : vector<48x1xf32>
    %124 = math.rsqrt %123 : vector<48x1xf32>
    %125 = vector.broadcast %124 : vector<48x1xf32> to vector<48x128xf32>
    %126 = arith.mulf %121, %125 : vector<48x128xf32>
    %127 = vector.broadcast %66 : vector<1x128xf32> to vector<48x128xf32>
    %128 = arith.mulf %126, %127 : vector<48x128xf32>
    %129 = vector.broadcast %67 : vector<1x128xf32> to vector<48x128xf32>
    %130 = arith.addf %128, %129 : vector<48x128xf32>
    %131 = arith.addf %130, %56 : vector<48x128xf32>
    %132 = arith.truncf %131 : vector<48x128xf32> to vector<48x128xbf16>
    %cst_46 = arith.constant dense<0.000000e+00> : vector<32x128xf32>
    %133 = tpu.matmul %61, %132, %cst_46 {dimension_numbers = #tpu.dot_dimension_numbers<[0], [0], [1], [1], [0, 1, 1, 1], [], []>} : vector<48x32xbf16>, vector<48x128xbf16>, vector<32x128xf32> -> vector<32x128xf32>
    %c0_47 = arith.constant 0 : index
    %c0_48 = arith.constant 0 : index
    %134 = vector.load %arg11[%c0_47, %c0_48] : memref<256x128xbf16, #tpu.memory_space<vmem>>, vector<128x128xbf16>
    %cst_49 = arith.constant dense<0.000000e+00> : vector<32x128xf32>
    %135 = tpu.matmul %74, %134, %cst_49 {dimension_numbers = #tpu.dot_dimension_numbers<[1], [0], [0], [1], [0, 0, 1, 1], [], []>} : vector<32x128xbf16>, vector<128x128xbf16>, vector<32x128xf32> -> vector<32x128xf32>
    %136 = arith.truncf %133 : vector<32x128xf32> to vector<32x128xbf16>
    %c128_50 = arith.constant 128 : index
    %c0_51 = arith.constant 0 : index
    %137 = vector.load %arg11[%c128_50, %c0_51] : memref<256x128xbf16, #tpu.memory_space<vmem>>, vector<128x128xbf16>
    %cst_52 = arith.constant dense<0.000000e+00> : vector<32x128xf32>
    %138 = tpu.matmul %136, %137, %cst_52 {dimension_numbers = #tpu.dot_dimension_numbers<[1], [0], [0], [1], [0, 0, 1, 1], [], []>} : vector<32x128xbf16>, vector<128x128xbf16>, vector<32x128xf32> -> vector<32x128xf32>
    %139 = arith.addf %135, %138 : vector<32x128xf32>
    %140 = vector.broadcast %70 : vector<1x128xf32> to vector<32x128xf32>
    %141 = arith.addf %139, %140 : vector<32x128xf32>
    %142 = arith.negf %141 : vector<32x128xf32>
    %143 = math.exp %142 : vector<32x128xf32>
    %cst_53 = arith.constant 1.000000e+00 : f32
    %144 = vector.broadcast %cst_53 : f32 to vector<32x128xf32>
    %145 = arith.addf %144, %143 : vector<32x128xf32>
    %146 = arith.divf %144, %145 : vector<32x128xf32>
    %147 = arith.mulf %141, %146 : vector<32x128xf32>
    %148 = arith.truncf %147 : vector<32x128xf32> to vector<32x128xbf16>
    %c0_54 = arith.constant 0 : index
    %c0_55 = arith.constant 0 : index
    %149 = vector.load %arg12[%c0_54, %c0_55] : memref<128x128xbf16, #tpu.memory_space<vmem>>, vector<128x128xbf16>
    %cst_56 = arith.constant dense<0.000000e+00> : vector<32x128xf32>
    %150 = tpu.matmul %148, %149, %cst_56 {dimension_numbers = #tpu.dot_dimension_numbers<[1], [0], [0], [1], [0, 0, 1, 1], [], []>} : vector<32x128xbf16>, vector<128x128xbf16>, vector<32x128xf32> -> vector<32x128xf32>
    %151 = vector.broadcast %71 : vector<1x128xf32> to vector<32x128xf32>
    %152 = arith.addf %150, %151 : vector<32x128xf32>
    %153 = arith.negf %152 : vector<32x128xf32>
    %154 = math.exp %153 : vector<32x128xf32>
    %cst_57 = arith.constant 1.000000e+00 : f32
    %155 = vector.broadcast %cst_57 : f32 to vector<32x128xf32>
    %156 = arith.addf %155, %154 : vector<32x128xf32>
    %157 = arith.divf %155, %156 : vector<32x128xf32>
    %158 = arith.mulf %152, %157 : vector<32x128xf32>
    %cst_58 = arith.constant dense<0.000000e+00> : vector<32xf32>
    %159 = vector.multi_reduction <add>, %158, %cst_58 [1] : vector<32x128xf32> to vector<32xf32>
    %160 = vector.shape_cast %159 : vector<32xf32> to vector<32x1xf32>
    %cst_59 = arith.constant 3.125000e-02 : f32
    %161 = vector.broadcast %cst_59 : f32 to vector<32x1xf32>
    %162 = arith.mulf %160, %161 : vector<32x1xf32>
    %163 = vector.broadcast %162 : vector<32x1xf32> to vector<32x128xf32>
    %164 = arith.subf %158, %163 : vector<32x128xf32>
    %165 = vector.broadcast %4 : vector<1x128xf32> to vector<32x128xf32>
    %166 = arith.mulf %164, %165 : vector<32x128xf32>
    %167 = arith.mulf %166, %166 : vector<32x128xf32>
    %cst_60 = arith.constant dense<0.000000e+00> : vector<32xf32>
    %168 = vector.multi_reduction <add>, %167, %cst_60 [1] : vector<32x128xf32> to vector<32xf32>
    %169 = vector.shape_cast %168 : vector<32xf32> to vector<32x1xf32>
    %cst_61 = arith.constant 3.125000e-02 : f32
    %170 = vector.broadcast %cst_61 : f32 to vector<32x1xf32>
    %171 = arith.mulf %169, %170 : vector<32x1xf32>
    %172 = vector.broadcast %162 : vector<32x1xf32> to vector<32x128xf32>
    %173 = arith.subf %158, %172 : vector<32x128xf32>
    %cst_62 = arith.constant 9.99999974E-6 : f32
    %174 = vector.broadcast %cst_62 : f32 to vector<32x1xf32>
    %175 = arith.addf %171, %174 : vector<32x1xf32>
    %176 = math.rsqrt %175 : vector<32x1xf32>
    %177 = vector.broadcast %176 : vector<32x1xf32> to vector<32x128xf32>
    %178 = arith.mulf %173, %177 : vector<32x128xf32>
    %179 = vector.broadcast %72 : vector<1x128xf32> to vector<32x128xf32>
    %180 = arith.mulf %178, %179 : vector<32x128xf32>
    %181 = vector.broadcast %73 : vector<1x128xf32> to vector<32x128xf32>
    %182 = arith.addf %180, %181 : vector<32x128xf32>
    %183 = arith.addf %182, %58 : vector<32x128xf32>
    %184 = arith.truncf %183 : vector<32x128xf32> to vector<32x128xbf16>
    %c0_63 = arith.constant 0 : index
    %c0_64 = arith.constant 0 : index
    %185 = vector.load %arg16[%c0_63, %c0_64] : memref<4x128xbf16, #tpu.memory_space<vmem>>, vector<4x128xbf16>
    %186 = arith.extf %185 : vector<4x128xbf16> to vector<4x128xf32>
    %187 = vector.extract_strided_slice %186 {offsets = [0, 0], sizes = [1, 128], strides = [1, 1]} : vector<4x128xf32> to vector<1x128xf32>
    %188 = vector.extract_strided_slice %186 {offsets = [1, 0], sizes = [1, 128], strides = [1, 1]} : vector<4x128xf32> to vector<1x128xf32>
    %c0_65 = arith.constant 0 : index
    %c0_66 = arith.constant 0 : index
    %189 = vector.load %arg14[%c0_65, %c0_66] : memref<128x128xbf16, #tpu.memory_space<vmem>>, vector<128x128xbf16>
    %cst_67 = arith.constant dense<0.000000e+00> : vector<32x128xf32>
    %190 = tpu.matmul %184, %189, %cst_67 {dimension_numbers = #tpu.dot_dimension_numbers<[1], [0], [0], [1], [0, 0, 1, 1], [], []>} : vector<32x128xbf16>, vector<128x128xbf16>, vector<32x128xf32> -> vector<32x128xf32>
    %191 = vector.broadcast %187 : vector<1x128xf32> to vector<32x128xf32>
    %192 = arith.addf %190, %191 : vector<32x128xf32>
    %193 = arith.negf %192 : vector<32x128xf32>
    %194 = math.exp %193 : vector<32x128xf32>
    %cst_68 = arith.constant 1.000000e+00 : f32
    %195 = vector.broadcast %cst_68 : f32 to vector<32x128xf32>
    %196 = arith.addf %195, %194 : vector<32x128xf32>
    %197 = arith.divf %195, %196 : vector<32x128xf32>
    %198 = arith.mulf %192, %197 : vector<32x128xf32>
    %199 = arith.truncf %198 : vector<32x128xf32> to vector<32x128xbf16>
    %c0_69 = arith.constant 0 : index
    %c0_70 = arith.constant 0 : index
    %200 = vector.load %arg15[%c0_69, %c0_70] : memref<128x128xbf16, #tpu.memory_space<vmem>>, vector<128x128xbf16>
    %cst_71 = arith.constant dense<0.000000e+00> : vector<32x128xf32>
    %201 = tpu.matmul %199, %200, %cst_71 {dimension_numbers = #tpu.dot_dimension_numbers<[1], [0], [0], [1], [0, 0, 1, 1], [], []>} : vector<32x128xbf16>, vector<128x128xbf16>, vector<32x128xf32> -> vector<32x128xf32>
    %202 = vector.broadcast %188 : vector<1x128xf32> to vector<32x128xf32>
    %203 = arith.addf %201, %202 : vector<32x128xf32>
    %c0_72 = arith.constant 0 : index
    %c0_73 = arith.constant 0 : index
    %204 = vector.load %arg17[%c0_72, %c0_73] : memref<32x128xf32, #tpu.memory_space<vmem>>, vector<32x128xf32>
    tpu.vector_store %arg17[%c0_72, %c0_73], %203 {strides = array<i32>} : memref<32x128xf32, #tpu.memory_space<vmem>>, vector<32x128xf32>,
    return
  }
}

</mosaic_0001>

<bundles_post_ra>
// kernel: _forward_impl.3
= control target key start
LH: loop header
LB: loop body
LE: loop exit
PB: predicated region body
PF: predicated region fallthrough
CT: control target
= control target key end

     0   :  { %s5014_s0 = inlined_call_operand.vmem [shape: bf16[32,128], index: 0, kind: input, shape index: {}]   ;;  %s5015_s1 = inlined_call_operand.hbm [shape: bf16[16,128], index: 1, kind: input, shape index: {}]   ;;  %s5016_s2 = inlined_call_operand.vmem [shape: bf16[48,128], index: 2, kind: input, shape index: {}]   ;;  %s5017_s3 = inlined_call_operand.vmem [shape: bf16[48,32], index: 3, kind: input, shape index: {}]   ;;  %s5018_s4 = inlined_call_operand.vmem [shape: bf16[48,16], index: 4, kind: input, shape index: {}]   ;;  %s5019_s5 = inlined_call_operand.vmem [shape: bf16[128,128], index: 5, kind: input, shape index: {}]   ;;  %s5020_s6 = inlined_call_operand.hbm [shape: bf16[128,128], index: 6, kind: input, shape index: {}]   ;;  %s5021_s7 = inlined_call_operand.hbm [shape: bf16[4,128], index: 7, kind: input, shape index: {}]   ;;  %s5022_s8 = inlined_call_operand.hbm [shape: bf16[128,128], index: 8, kind: input, shape index: {}]   ;;  %s5023_s9 = inlined_call_operand.hbm [shape: bf16[128,128], index: 9, kind: input, shape index: {}]   ;;  %s5024_s10 = inlined_call_operand.hbm [shape: bf16[4,128], index: 10, kind: input, shape index: {}]   ;;  %s5025_s11 = inlined_call_operand.hbm [shape: bf16[128,128], index: 11, kind: input, shape index: {}]   ;;  %s5026_s12 = inlined_call_operand.hbm [shape: bf16[128,128], index: 12, kind: input, shape index: {}]   ;;  %s5027_s13 = inlined_call_operand.hbm [shape: bf16[4,128], index: 13, kind: input, shape index: {}]   ;;  %s5028_s14 = inlined_call_operand.vmem [shape: bf16[384,128], index: 14, kind: input, shape index: {}]   ;;  %s5029_s15 = inlined_call_operand.hbm [shape: bf16[128,128], index: 15, kind: input, shape index: {}]   ;;  %s5030_s16 = inlined_call_operand.hbm [shape: bf16[4,128], index: 16, kind: input, shape index: {}]   ;;  %s5031_s17 = inlined_call_operand.hbm [shape: bf16[256,128], index: 17, kind: input, shape index: {}]   ;;  %s5032_s18 = inlined_call_operand.hbm [shape: bf16[128,128], index: 18, kind: input, shape index: {}]   ;;  %s5033_s19 = inlined_call_operand.hbm [shape: bf16[4,128], index: 19, kind: input, shape index: {}]   ;;  %s5034_s20 = inlined_call_operand.vmem [shape: bf16[32,128], index: 20, kind: output, shape index: {0}]   ;;  %s5035_s21 = inlined_call_operand.vmem [shape: bf16[16,128], index: 21, kind: output, shape index: {1}]  }
   0x1   :  { %5042 = sst [smem:[#allocation32_spill]] %s5014_s0 }
   0x2   :  { %5043 = sst [smem:[#allocation33_spill]] %s5015_s1 }
   0x3   :  { %5044 = sst [smem:[#allocation34_spill]] %s5016_s2 }
   0x4   :  { %5045 = sst [smem:[#allocation35_spill]] %s5017_s3 }
   0x5   :  { %5046 = sst [smem:[#allocation36_spill]] %s5018_s4 }
   0x6   :  { %5047 = sst [smem:[#allocation37_spill]] %s5019_s5 }
   0x7   :  { %27 = vsyncpa [#allocation3], 0 }
   0x8   :  { %28 = vsyncpa [#allocation5], 0 }
   0x9   :  { %29 = vsyncpa [#allocation8], 0 }
   0xa   :  { %30 = vsyncpa [#allocation11], 0 }
   0xb   :  { %31 = vsyncpa [#allocation14], 0 }
   0xc   :  { %32 = vsyncpa [#allocation17], 0 }
   0xd   :  { %33 = vsyncpa [#allocation20], 0 }
   0xe   :  { %34 = vsyncpa [#allocation23], 0  ;;  %s4103_s2 = smov [#allocation4]   ;;  %s4104_s26 = smov [#allocation7]  }
   0xf   :  { %s62_s25 = sshll.u32 %s4103_s2, 4  ;;  %s84_s27 = sshll.u32 %s4104_s26, 4  ;;  %s63_s25 = int_to_ptr.vmem [resolvable:$true] %s62_s25  ;;  %s4231_s27 = int_to_ptr.vmem [resolvable:$true] %s84_s27 }
  0x10   :  { %s3779_s29 = scalar_lea.hbm %s5020_s6, 1024 }
  0x11   :  { %p3780_p0 = scmp.ne.s32.totalorder %s5020_s6, %s3779_s29  ;;  %p3783_p1 = scmp.lt.u32.totalorder %s3779_s29, %s5020_s6 }
  0x13   :  { %p3785_p2 = pnand %p3783_p1, %p3780_p0 }
  0x15   :  { %3788 = shalt.err (!%p3785_p2)
}
  0x16   :  { %s3789_s22 = scalar_lea.vmem %s63_s25, 1024  ;;  %p3794_p4 = scmp.lt.s32.totalorder %s63_s25, %s63_s25 }
  0x17   :  { %p3790_p3 = scmp.ne.s32.totalorder %s63_s25, %s3789_s22  ;;  %p3795_p5 = scmp.lt.s32.totalorder %s3789_s22, %s3789_s22 }
  0x19   :  { %p3796_p6 = por %p3795_p5, %p3794_p4 }
  0x1b   :  { %p3797_p7 = pnand %p3796_p6, %p3790_p3 }
  0x1d   :  { %3800 = shalt.err (!%p3797_p7)
}
  0x1e   :  { %s4105_s23 = smov 64   ;;  %s4106_s1 = smov 4  }
  0x1f   :  { %68 = dma.hbm_to_vmem [thread:$0]  %s5020_s6, 1024, %s63_s25, [#allocation5], %s4105_s23, %s4105_s23, %s4106_s1  }
  0x20   :  { %s3801_s28 = scalar_lea.hbm %s5022_s8, 1024 }
  0x21   :  { %p3802_p8 = scmp.ne.s32.totalorder %s5022_s8, %s3801_s28  ;;  %p3805_p9 = scmp.lt.u32.totalorder %s3801_s28, %s5022_s8 }
  0x23   :  { %p3807_p10 = pnand %p3805_p9, %p3802_p8 }
  0x25   :  { %3810 = shalt.err (!%p3807_p10)
}
  0x26   :  { %s3811_s5 = scalar_lea.vmem %s4231_s27, 1024  ;;  %p3816_p12 = scmp.lt.s32.totalorder %s4231_s27, %s4231_s27 }
  0x27   :  { %p3812_p11 = scmp.ne.s32.totalorder %s4231_s27, %s3811_s5  ;;  %p3817_p13 = scmp.lt.s32.totalorder %s3811_s5, %s3811_s5 }
  0x29   :  { %p3818_p0 = por %p3817_p13, %p3816_p12 }
  0x2b   :  { %p3819_p1 = pnand %p3818_p0, %p3812_p11 }
  0x2d   :  { %3822 = shalt.err (!%p3819_p1)
}
  0x2e   :  { %90 = dma.hbm_to_vmem [thread:$0]  %s5022_s8, 1024, %s4231_s27, [#allocation8], %s4105_s23, %s4105_s23, %s4106_s1  }
  0x2f   :  { %s4107_s22 = smov [#allocation10]   ;;  %s4108_s2 = smov [#allocation13]  }
  0x30   :  { %s109_s24 = sshll.u32 %s4107_s22, 4  ;;  %s130_s26 = sshll.u32 %s4108_s2, 4  ;;  %s110_s24 = int_to_ptr.vmem [resolvable:$true] %s109_s24  ;;  %s4268_s26 = int_to_ptr.vmem [resolvable:$true] %s130_s26 }
  0x31   :  { %s3823_s29 = scalar_lea.hbm %s5024_s10, 32 }
  0x32   :  { %p3824_p2 = scmp.ne.s32.totalorder %s5024_s10, %s3823_s29  ;;  %p3827_p3 = scmp.lt.u32.totalorder %s3823_s29, %s5024_s10 }
  0x34   :  { %p3829_p4 = pnand %p3827_p3, %p3824_p2 }
  0x36   :  { %3832 = shalt.err (!%p3829_p4)
}
  0x37   :  { %s3833_s8 = scalar_lea.vmem %s110_s24, 32  ;;  %p3838_p6 = scmp.lt.s32.totalorder %s110_s24, %s110_s24 }
  0x38   :  { %p3834_p5 = scmp.ne.s32.totalorder %s110_s24, %s3833_s8  ;;  %p3839_p7 = scmp.lt.s32.totalorder %s3833_s8, %s3833_s8 }
  0x3a   :  { %p3840_p8 = por %p3839_p7, %p3838_p6 }
  0x3c   :  { %p3841_p9 = pnand %p3840_p8, %p3834_p5 }
  0x3e   :  { %3844 = shalt.err (!%p3841_p9)
}
  0x3f   :  { %112 = dma.hbm_to_vmem [thread:$0]  %s5024_s10, 32, %s110_s24, [#allocation11]  }
  0x40   :  { %s3845_s2 = scalar_lea.hbm %s5026_s12, 1024 }
  0x41   :  { %p3846_p10 = scmp.ne.s32.totalorder %s5026_s12, %s3845_s2  ;;  %p3849_p11 = scmp.lt.u32.totalorder %s3845_s2, %s5026_s12 }
  0x43   :  { %p3851_p12 = pnand %p3849_p11, %p3846_p10 }
  0x45   :  { %3854 = shalt.err (!%p3851_p12)
}
  0x46   :  { %s3855_s4 = scalar_lea.vmem %s4268_s26, 1024  ;;  %p3860_p0 = scmp.lt.s32.totalorder %s4268_s26, %s4268_s26 }
  0x47   :  { %p3856_p13 = scmp.ne.s32.totalorder %s4268_s26, %s3855_s4  ;;  %p3861_p1 = scmp.lt.s32.totalorder %s3855_s4, %s3855_s4 }
  0x49   :  { %p3862_p2 = por %p3861_p1, %p3860_p0 }
  0x4b   :  { %p3863_p3 = pnand %p3862_p2, %p3856_p13 }
  0x4d   :  { %3866 = shalt.err (!%p3863_p3)
}
  0x4e   :  { %136 = dma.hbm_to_vmem [thread:$0]  %s5026_s12, 1024, %s4268_s26, [#allocation14], %s4105_s23, %s4105_s23, %s4106_s1  }
  0x4f   :  { %s4109_s30 = smov [#allocation16]   ;;  %s4110_s8 = smov [#allocation19]  }
  0x50   :  { %s154_s5 = sshll.u32 %s4109_s30, 4  ;;  %s176_s27 = sshll.u32 %s4110_s8, 4  ;;  %s155_s5 = int_to_ptr.vmem [resolvable:$true] %s154_s5  ;;  %s4302_s27 = int_to_ptr.vmem [resolvable:$true] %s176_s27 }
  0x51   :  { %s3867_s22 = scalar_lea.hbm %s5029_s15, 1024 }
  0x52   :  { %p3868_p4 = scmp.ne.s32.totalorder %s5029_s15, %s3867_s22  ;;  %p3871_p5 = scmp.lt.u32.totalorder %s3867_s22, %s5029_s15 }
  0x54   :  { %p3873_p6 = pnand %p3871_p5, %p3868_p4 }
  0x56   :  { %3876 = shalt.err (!%p3873_p6)
}
  0x57   :  { %s3877_s12 = scalar_lea.vmem %s155_s5, 1024  ;;  %p3882_p8 = scmp.lt.s32.totalorder %s155_s5, %s155_s5 }
  0x58   :  { %p3878_p7 = scmp.ne.s32.totalorder %s155_s5, %s3877_s12  ;;  %p3883_p9 = scmp.lt.s32.totalorder %s3877_s12, %s3877_s12 }
  0x5a   :  { %p3884_p10 = por %p3883_p9, %p3882_p8 }
  0x5c   :  { %p3885_p11 = pnand %p3884_p10, %p3878_p7 }
  0x5e   :  { %3888 = shalt.err (!%p3885_p11)
}
  0x5f   :  { %160 = dma.hbm_to_vmem [thread:$0]  %s5029_s15, 1024, %s155_s5, [#allocation17], %s4105_s23, %s4105_s23, %s4106_s1  }
  0x60   :  { %s3889_s24 = scalar_lea.hbm %s5031_s17, 2048 }
  0x61   :  { %p3890_p12 = scmp.ne.s32.totalorder %s5031_s17, %s3889_s24  ;;  %p3893_p13 = scmp.lt.u32.totalorder %s3889_s24, %s5031_s17 }
  0x63   :  { %p3895_p0 = pnand %p3893_p13, %p3890_p12 }
  0x65   :  { %3898 = shalt.err (!%p3895_p0)
}
  0x66   :  { %s3899_s22 = scalar_lea.vmem %s4302_s27, 2048  ;;  %p3904_p2 = scmp.lt.s32.totalorder %s4302_s27, %s4302_s27 }
  0x67   :  { %p3900_p1 = scmp.ne.s32.totalorder %s4302_s27, %s3899_s22  ;;  %p3905_p3 = scmp.lt.s32.totalorder %s3899_s22, %s3899_s22 }
  0x69   :  { %p3906_p4 = por %p3905_p3, %p3904_p2 }
  0x6b   :  { %p3907_p5 = pnand %p3906_p4, %p3900_p1 }
  0x6d   :  { %3910 = shalt.err (!%p3907_p5)
}
  0x6e   :  { %182 = dma.hbm_to_vmem [thread:$0]  %s5031_s17, 2048, %s4302_s27, [#allocation20], %s4105_s23, %s4105_s23, %s4106_s1  }
  0x6f   :  { %s4111_s2 = smov [#allocation2]   ;;  %s4112_s28 = smov [#allocation6]  }
  0x70   :  { %s42_s3 = sshll.u32 %s4111_s2, 4  ;;  %s75_s29 = sshll.u32 %s4112_s28, 4  ;;  %s43_s3 = int_to_ptr.vmem [resolvable:$true] %s42_s3  ;;  %s76_s29 = int_to_ptr.vmem [resolvable:$true] %s75_s29 }
  0x71   :  { %s5048_s0 = sld [smem:[#allocation33_spill]] }
  0x77   :  { %s3911_s4 = scalar_lea.hbm %s5048_s0, 128 }
  0x78   :  { %p3912_p6 = scmp.ne.s32.totalorder %s5048_s0, %s3911_s4  ;;  %p3915_p7 = scmp.lt.u32.totalorder %s3911_s4, %s5048_s0 }
  0x7a   :  { %p3917_p8 = pnand %p3915_p7, %p3912_p6 }
  0x7c   :  { %3920 = shalt.err (!%p3917_p8)
}
  0x7d   :  { %s3921_s17 = scalar_lea.vmem %s43_s3, 128  ;;  %p3926_p10 = scmp.lt.s32.totalorder %s43_s3, %s43_s3 }
  0x7e   :  { %p3922_p9 = scmp.ne.s32.totalorder %s43_s3, %s3921_s17  ;;  %p3927_p11 = scmp.lt.s32.totalorder %s3921_s17, %s3921_s17 }
  0x80   :  { %p3928_p12 = por %p3927_p11, %p3926_p10 }
  0x82   :  { %p3929_p13 = pnand %p3928_p12, %p3922_p9 }
  0x84   :  { %3932 = shalt.err (!%p3929_p13)
}
  0x85   :  { %48 = dma.hbm_to_vmem [thread:$0]  %s5048_s0, 128, %s43_s3, [#allocation3], %s4105_s23, %s4105_s23, %s4106_s1  }
  0x86   :  { %s3933_s15 = scalar_lea.hbm %s5021_s7, 32 }
  0x87   :  { %p3934_p0 = scmp.ne.s32.totalorder %s5021_s7, %s3933_s15  ;;  %p3937_p1 = scmp.lt.u32.totalorder %s3933_s15, %s5021_s7 }
  0x89   :  { %p3939_p2 = pnand %p3937_p1, %p3934_p0 }
  0x8b   :  { %3942 = shalt.err (!%p3939_p2)
}
  0x8c   :  { %s3943_s26 = scalar_lea.vmem %s76_s29, 32  ;;  %p3948_p4 = scmp.lt.s32.totalorder %s76_s29, %s76_s29 }
  0x8d   :  { %p3944_p3 = scmp.ne.s32.totalorder %s76_s29, %s3943_s26  ;;  %p3949_p5 = scmp.lt.s32.totalorder %s3943_s26, %s3943_s26 }
  0x8f   :  { %p3950_p6 = por %p3949_p5, %p3948_p4 }
  0x91   :  { %p3951_p7 = pnand %p3950_p6, %p3944_p3 }
  0x93   :  { %3954 = shalt.err (!%p3951_p7)
}
  0x94   :  { %78 = dma.hbm_to_vmem [thread:$0]  %s5021_s7, 32, %s76_s29, [#allocation5]  }
  0x95   :  { %s4113_s4 = smov [#allocation9]   ;;  %s4114_s24 = smov [#allocation12]  }
  0x96   :  { %s96_s10 = sshll.u32 %s4113_s4, 4  ;;  %s118_s30 = sshll.u32 %s4114_s24, 4  ;;  %s97_s10 = int_to_ptr.vmem [resolvable:$true] %s96_s10  ;;  %s4366_s30 = int_to_ptr.vmem [resolvable:$true] %s118_s30 }
  0x97   :  { %s3955_s27 = scalar_lea.hbm %s5023_s9, 1024 }
  0x98   :  { %p3956_p8 = scmp.ne.s32.totalorder %s5023_s9, %s3955_s27  ;;  %p3959_p9 = scmp.lt.u32.totalorder %s3955_s27, %s5023_s9 }
  0x9a   :  { %p3961_p10 = pnand %p3959_p9, %p3956_p8 }
  0x9c   :  { %3964 = shalt.err (!%p3961_p10)
}
  0x9d   :  { %s3965_s7 = scalar_lea.vmem %s97_s10, 1024  ;;  %p3970_p12 = scmp.lt.s32.totalorder %s97_s10, %s97_s10 }
  0x9e   :  { %p3966_p11 = scmp.ne.s32.totalorder %s97_s10, %s3965_s7  ;;  %p3971_p13 = scmp.lt.s32.totalorder %s3965_s7, %s3965_s7 }
  0xa0   :  { %p3972_p0 = por %p3971_p13, %p3970_p12 }
  0xa2   :  { %p3973_p1 = pnand %p3972_p0, %p3966_p11 }
  0xa4   :  { %3976 = shalt.err (!%p3973_p1)
}
  0xa5   :  { %102 = dma.hbm_to_vmem [thread:$0]  %s5023_s9, 1024, %s97_s10, [#allocation8], %s4105_s23, %s4105_s23, %s4106_s1  }
  0xa6   :  { %s3977_s12 = scalar_lea.hbm %s5025_s11, 1024 }
  0xa7   :  { %p3978_p2 = scmp.ne.s32.totalorder %s5025_s11, %s3977_s12  ;;  %p3981_p3 = scmp.lt.u32.totalorder %s3977_s12, %s5025_s11 }
  0xa9   :  { %p3983_p4 = pnand %p3981_p3, %p3978_p2 }
  0xab   :  { %3986 = shalt.err (!%p3983_p4)
}
  0xac   :  { %s3987_s24 = scalar_lea.vmem %s4366_s30, 1024  ;;  %p3992_p6 = scmp.lt.s32.totalorder %s4366_s30, %s4366_s30 }
  0xad   :  { %p3988_p5 = scmp.ne.s32.totalorder %s4366_s30, %s3987_s24  ;;  %p3993_p7 = scmp.lt.s32.totalorder %s3987_s24, %s3987_s24 }
  0xaf   :  { %p3994_p8 = por %p3993_p7, %p3992_p6 }
  0xb1   :  { %p3995_p9 = pnand %p3994_p8, %p3988_p5 }
  0xb3   :  { %3998 = shalt.err (!%p3995_p9)
}
  0xb4   :  { %124 = dma.hbm_to_vmem [thread:$0]  %s5025_s11, 1024, %s4366_s30, [#allocation11], %s4105_s23, %s4105_s23, %s4106_s1  }
  0xb5   :  { %s4115_s8 = smov [#allocation15]   ;;  %s4116_s27 = smov [#allocation18]  }
  0xb6   :  { %s143_s17 = sshll.u32 %s4115_s8, 4  ;;  %s167_s6 = sshll.u32 %s4116_s27, 4  ;;  %s144_s17 = int_to_ptr.vmem [resolvable:$true] %s143_s17  ;;  %s168_s6 = int_to_ptr.vmem [resolvable:$true] %s167_s6 }
  0xb7   :  { %s3999_s15 = scalar_lea.hbm %s5027_s13, 32 }
  0xb8   :  { %p4000_p10 = scmp.ne.s32.totalorder %s5027_s13, %s3999_s15  ;;  %p4003_p11 = scmp.lt.u32.totalorder %s3999_s15, %s5027_s13 }
  0xba   :  { %p4005_p12 = pnand %p4003_p11, %p4000_p10 }
  0xbc   :  { %4008 = shalt.err (!%p4005_p12)
}
  0xbd   :  { %s4009_s11 = scalar_lea.vmem %s144_s17, 32  ;;  %p4014_p0 = scmp.lt.s32.totalorder %s144_s17, %s144_s17 }
  0xbe   :  { %p4010_p13 = scmp.ne.s32.totalorder %s144_s17, %s4009_s11  ;;  %p4015_p1 = scmp.lt.s32.totalorder %s4009_s11, %s4009_s11 }
  0xc0   :  { %p4016_p2 = por %p4015_p1, %p4014_p0 }
  0xc2   :  { %p4017_p3 = pnand %p4016_p2, %p4010_p13 }
  0xc4   :  { %4020 = shalt.err (!%p4017_p3)
}
  0xc5   :  { %146 = dma.hbm_to_vmem [thread:$0]  %s5027_s13, 32, %s144_s17, [#allocation14]  }
  0xc6   :  { %s4021_s3 = scalar_lea.hbm %s5030_s16, 32 }
  0xc7   :  { %p4022_p4 = scmp.ne.s32.totalorder %s5030_s16, %s4021_s3  ;;  %p4025_p5 = scmp.lt.u32.totalorder %s4021_s3, %s5030_s16 }
  0xc9   :  { %p4027_p6 = pnand %p4025_p5, %p4022_p4 }
  0xcb   :  { %4030 = shalt.err (!%p4027_p6)
}
  0xcc   :  { %s4031_s10 = scalar_lea.vmem %s168_s6, 32  ;;  %p4036_p8 = scmp.lt.s32.totalorder %s168_s6, %s168_s6 }
  0xcd   :  { %p4032_p7 = scmp.ne.s32.totalorder %s168_s6, %s4031_s10  ;;  %p4037_p9 = scmp.lt.s32.totalorder %s4031_s10, %s4031_s10 }
  0xcf   :  { %p4038_p10 = por %p4037_p9, %p4036_p8 }
  0xd1   :  { %p4039_p11 = pnand %p4038_p10, %p4032_p7 }
  0xd3   :  { %4042 = shalt.err (!%p4039_p11)
}
  0xd4   :  { %170 = dma.hbm_to_vmem [thread:$0]  %s5030_s16, 32, %s168_s6, [#allocation17]  }
  0xd5   :  { %s4117_s17 = smov [#allocation21]   ;;  %s4118_s25 = smov [#allocation22]  }
  0xd6   :  { %s188_s27 = sshll.u32 %s4117_s17, 4  ;;  %s201_s22 = sshll.u32 %s4118_s25, 4  ;;  %s189_s27 = int_to_ptr.vmem [resolvable:$true] %s188_s27  ;;  %s202_s22 = int_to_ptr.vmem [resolvable:$true] %s201_s22 }
  0xd7   :  { %s4043_s29 = scalar_lea.hbm %s5032_s18, 1024 }
  0xd8   :  { %p4044_p12 = scmp.ne.s32.totalorder %s5032_s18, %s4043_s29  ;;  %p4047_p13 = scmp.lt.u32.totalorder %s4043_s29, %s5032_s18 }
  0xda   :  { %p4049_p0 = pnand %p4047_p13, %p4044_p12 }
  0xdc   :  { %4052 = shalt.err (!%p4049_p0)
}
  0xdd   :  { %s4053_s16 = scalar_lea.vmem %s189_s27, 1024  ;;  %p4058_p2 = scmp.lt.s32.totalorder %s189_s27, %s189_s27 }
  0xde   :  { %p4054_p1 = scmp.ne.s32.totalorder %s189_s27, %s4053_s16  ;;  %p4059_p3 = scmp.lt.s32.totalorder %s4053_s16, %s4053_s16 }
  0xe0   :  { %p4060_p4 = por %p4059_p3, %p4058_p2 }
  0xe2   :  { %p4061_p5 = pnand %p4060_p4, %p4054_p1 }
  0xe4   :  { %4064 = shalt.err (!%p4061_p5)
}
  0xe5   :  { %194 = dma.hbm_to_vmem [thread:$0]  %s5032_s18, 1024, %s189_s27, [#allocation20], %s4105_s23, %s4105_s23, %s4106_s1  }
  0xe6   :  { %s4065_s3 = scalar_lea.hbm %s5033_s19, 32 }
  0xe7   :  { %p4066_p6 = scmp.ne.s32.totalorder %s5033_s19, %s4065_s3  ;;  %p4069_p7 = scmp.lt.u32.totalorder %s4065_s3, %s5033_s19 }
  0xe9   :  { %p4071_p8 = pnand %p4069_p7, %p4066_p6 }
  0xeb   :  { %4074 = shalt.err (!%p4071_p8)
}
  0xec   :  { %s4075_s10 = scalar_lea.vmem %s202_s22, 32  ;;  %p4080_p10 = scmp.lt.s32.totalorder %s202_s22, %s202_s22 }
  0xed   :  { %p4076_p9 = scmp.ne.s32.totalorder %s202_s22, %s4075_s10  ;;  %p4081_p11 = scmp.lt.s32.totalorder %s4075_s10, %s4075_s10 }
  0xef   :  { %p4082_p12 = por %p4081_p11, %p4080_p10 }
  0xf1   :  { %p4083_p13 = pnand %p4082_p12, %p4076_p9 }
  0xf3   :  { %4086 = shalt.err (!%p4083_p13)
}
  0xf4   :  { %204 = dma.hbm_to_vmem [thread:$0]  %s5033_s19, 32, %s202_s22, [#allocation23]  }
  0xf5   :  { %4087 = dma.done.wait [#allocation3], 128  }
  0xf6   :  { %4088 = vsyncadd [#allocation3], 4294967168 }
  0xf7   :  { %4089 = dma.done.wait [#allocation5], 1056  }
  0xf8   :  { %4090 = vsyncadd [#allocation5], 4294966240 }
  0xf9   :  { %4091 = dma.done.wait [#allocation8], 2048  }
  0xfa   :  { %4092 = vsyncadd [#allocation8], 4294965248 }
  0xfb   :  { %4093 = dma.done.wait [#allocation11], 1056  }
  0xfc   :  { %4094 = vsyncadd [#allocation11], 4294966240 }
  0xfd   :  { %4095 = dma.done.wait [#allocation14], 1056  }
  0xfe   :  { %4096 = vsyncadd [#allocation14], 4294966240 }
  0xff   :  { %4097 = dma.done.wait [#allocation17], 1056  }
 0x100   :  { %4098 = vsyncadd [#allocation17], 4294966240 }
 0x101   :  { %4099 = dma.done.wait [#allocation20], 3072  }
 0x102   :  { %4100 = vsyncadd [#allocation20], 4294964224 }
 0x103   :  { %4101 = dma.done.wait [#allocation23], 32  }
 0x104   :  { %4102 = vsyncadd [#allocation23], 4294967264  ;;  %s5049_s8 = sld [smem:[#allocation37_spill]]  ;;  %s5050_s5 = sld [smem:[#allocation32_spill]]  ;;  %v3473_v10 = vld [vmem:[#allocation7] sm:$0xff]   ;;  %v4119_v11 = vmov 0.0   ;;  %v248_v39 = vlaneseq }
 0x105   :  { %v3474_v12 = vld [vmem:[#allocation7 + $0x8] sm:$0xff]   ;;  %vm4120_vm0 = vmmov 0   ;;  %v3475_v13 = vld [vmem:[#allocation7 + $0x10] sm:$0xff]   ;;  %v3476_v14 = vld [vmem:[#allocation7 + $0x18] sm:$0xff]   ;;  %s5051_s9 = sld [smem:[#allocation34_spill]]  ;;  %s5052_s27 = sld [smem:[#allocation35_spill]] }
 0x106   :  { %v3477_v15 = vld [vmem:[#allocation7 + $0x20] sm:$0xff]   ;;  %v3478_v16 = vld [vmem:[#allocation7 + $0x28] sm:$0xff]   ;;  %v3479_v17 = vld [vmem:[#allocation7 + $0x30] sm:$0xff]   ;;  %v4522_v40 = vshrl.u32 %v248_v39, 7  ;;  %vm1412_vm2 = vcmask 261120   ;;  %s5053_s11 = sld [smem:[#allocation36_spill]] }
 0x107   :  { %v3480_v18 = vld [vmem:[#allocation7 + $0x38] sm:$0xff]   ;;  %v3482_v20 = vld [vmem:[#allocation12] sm:$0xff]   ;;  %v3483_v21 = vld [vmem:[#allocation12 + $0x8] sm:$0xff]   ;;  %vm1494_vm3 = vcmask 130048   ;;  %vm2278_vm4 = vcmask 392192  }
 0x108   :  { %v3481_v19 = vld [vmem:[#allocation2] sm:$0xff]   ;;  %v3486_v24 = vld [vmem:[#allocation12 + $0x20] sm:$0xff]   ;;  %v3487_v25 = vld [vmem:[#allocation12 + $0x28] sm:$0xff]   ;;  %v4527_v43 = vsub.s32 0, %v4522_v40 }
 0x109   :  { %v3484_v22 = vld [vmem:[#allocation12 + $0x10] sm:$0xff]   ;;  %v3485_v23 = vld [vmem:[#allocation12 + $0x18] sm:$0xff]   ;;  %v3494_v32 = vld [vmem:[#allocation4 + $0x8] sm:$0xff]  }
 0x10a   :  { %v3463_v0 = vld [vmem:[%s5049_s8] sm:$0xff]   ;;  %v3464_v1 = vld [vmem:[%s5049_s8 + $0x8] sm:$0xff]   ;;  %v3465_v2 = vld [vmem:[%s5049_s8 + $0x10] sm:$0xff]  }
 0x10b   :  { %3096 = vmatprep.subr.bf16.mxu0 %v3463_v0  ;;  %v3466_v3 = vld [vmem:[%s5049_s8 + $0x18] sm:$0xff]   ;;  %v3471_v4 = vld [vmem:[%s5050_s5] sm:$0xff]   ;;  %v3468_v6 = vld [vmem:[%s5049_s8 + $0x28] sm:$0xff]  }
 0x10c   :  { %3097 = vmatpush3.bf16.msra.mxu0 %v3463_v0  ;;  %3112 = vmatprep.mubr.bf16.mxu0 %v3471_v4  ;;  %v3467_v5 = vld [vmem:[%s5049_s8 + $0x20] sm:$0xff]   ;;  %v3469_v7 = vld [vmem:[%s5049_s8 + $0x30] sm:$0xff]   ;;  %v3470_v8 = vld [vmem:[%s5049_s8 + $0x38] sm:$0xff]  }
 0x10d   :  { %3098 = vmatprep.subr.bf16.mxu0 %v3464_v1  ;;  %v3472_v9 = vld [vmem:[%s5050_s5 + $0x8] sm:$0xff]   ;;  %v3488_v26 = vld [vmem:[#allocation12 + $0x30] sm:$0xff]   ;;  %v3492_v30 = vld [vmem:[%s5051_s9 + $0x10] sm:$0xff]  }
 0x10e   :  { %v3489_v27 = vld [vmem:[#allocation12 + $0x38] sm:$0xff]   ;;  %v3495_v33 = vld [vmem:[#allocation4 + $0x10] sm:$0xff]   ;;  %v3498_v36 = vld [vmem:[#allocation4 + $0x28] sm:$0xff]  }
 0x10f   :  { %v3490_v28 = vld [vmem:[%s5051_s9] sm:$0xff]   ;;  %v3491_v29 = vld [vmem:[%s5051_s9 + $0x8] sm:$0xff]   ;;  %v3499_v37 = vld [vmem:[#allocation4 + $0x30] sm:$0xff]  }
 0x110   :  { %3099 = vmatpush3.bf16.msra.mxu0 %v3464_v1  ;;  %v3493_v31 = vld [vmem:[#allocation4] sm:$0xff]   ;;  %v3496_v34 = vld [vmem:[#allocation4 + $0x18] sm:$0xff]  }
 0x111   :  { %3100 = vmatprep.subr.bf16.mxu0 %v3465_v2  ;;  %3116 = vmatprep.subr.bf16.mxu1 %v3493_v31  ;;  %v3497_v35 = vld [vmem:[#allocation4 + $0x20] sm:$0xff]   ;;  %v3500_v38 = vld [vmem:[#allocation4 + $0x38] sm:$0xff]  }
 0x112   :  { %3117 = vmatpush3.bf16.msra.mxu1 %v3493_v31  ;;  %v257_v41 = vld [vmem:[#allocation6] sm:$0x3]  ;;  %v629_v1 = vld [vmem:[#allocation10] sm:$0x3] }
 0x113   :  { %3118 = vmatprep.subr.bf16.mxu1 %v3494_v32  ;;  %v4524_v42 = vunpack.c.l.bf16 %v257_v41  ;;  %v3505_v31 = vld [vmem:[#allocation9 + $0x20] sm:$0xff]   ;;  %v3508_v41 = vld [vmem:[#allocation9 + $0x38] sm:$0xff]  }
 0x114   :  { %3101 = vmatpush3.bf16.msra.mxu0 %v3465_v2  ;;  %v4531_v2 = vunpack.c.l.bf16 %v629_v1 }
 0x115   :  { %3102 = vmatprep.subr.bf16.mxu0 %v3466_v3  ;;  %v278_v44 = vrot.slane %v4524_v42, %v4527_v43 }
 0x116   :  { %3119 = vmatpush3.bf16.msra.mxu1 %v3494_v32  ;;  %v3506_v32 = vld [vmem:[#allocation9 + $0x28] sm:$0xff]  }
 0x117   :  { %3120 = vmatprep.subr.bf16.mxu1 %v3495_v33 }
 0x118   :  { %3103 = vmatpush3.bf16.msra.mxu0 %v3466_v3 }
 0x119   :  { %3104 = vmatprep.subr.bf16.mxu0 %v3467_v5 }
 0x11a   :  { %3121 = vmatpush3.bf16.msra.mxu1 %v3495_v33  ;;  %v926_v33 = vld [vmem:[#allocation15] sm:$0x3] }
 0x11b   :  { %3122 = vmatprep.subr.bf16.mxu1 %v3496_v34 }
 0x11c   :  { %3105 = vmatpush3.bf16.msra.mxu0 %v3467_v5  ;;  %v650_v5 = vrot.slane %v4531_v2, %v4527_v43 }
 0x11d   :  { %3106 = vmatprep.subr.bf16.mxu0 %v3468_v6 }
 0x11e   :  { %3123 = vmatpush3.bf16.msra.mxu1 %v3496_v34  ;;  %v4542_v34 = vunpack.c.l.bf16 %v926_v33 }
 0x11f   :  { %3124 = vmatprep.subr.bf16.mxu1 %v3497_v35 }
 0x120   :  { %3107 = vmatpush3.bf16.msra.mxu0 %v3468_v6 }
 0x121   :  { %3108 = vmatprep.subr.bf16.mxu0 %v3469_v7 }
 0x122   :  { %3125 = vmatpush3.bf16.msra.mxu1 %v3497_v35  ;;  %v3507_v35 = vld [vmem:[#allocation9 + $0x30] sm:$0xff]  }
 0x123   :  { %3126 = vmatprep.subr.bf16.mxu1 %v3498_v36 }
 0x124   :  { %3109 = vmatpush3.bf16.msra.mxu0 %v3469_v7 }
 0x125   :  { %3110 = vmatprep.subr.bf16.mxu0 %v3470_v8 }
 0x126   :  { %3127 = vmatpush3.bf16.msra.mxu1 %v3498_v36 }
 0x127   :  { %3128 = vmatprep.subr.bf16.mxu1 %v3499_v37 }
 0x128   :  { %3111 = vmatpush3.bf16.msra.mxu0 %v3470_v8 }
 0x129   :  { %3136 = vmatprep.subr.bf16.mxu0 %v4119_v11 }
 0x12a   :  { %3129 = vmatpush3.bf16.msra.mxu1 %v3499_v37  ;;  %v947_v37 = vrot.slane %v4542_v34, %v4527_v43 }
 0x12b   :  { %3113 = vmatmul.mubr.bf16.vlgmr.msra.gmra.mrb[0].mxu0 %v3472_v9  ;;  %3130 = vmatprep.subr.bf16.mxu1 %v3500_v38 }
 0x12c   :  { %3137 = vmatpush3.bf16.msra.mxu0 %v3473_v10  ;;  %3152 = vmatprep.mubr.msk.bf16.mxu0 %vm4120_vm0, %v4119_v11 }
 0x12d   :  { %3138 = vmatprep.subr.bf16.mxu0 %v4119_v11 }
 0x12e   :  { %3131 = vmatpush3.bf16.msra.mxu1 %v3500_v38 }
 0x12f   :  { %3156 = vmatprep.subr.bf16.mxu1 %v4119_v11 }
 0x130   :  { %3139 = vmatpush3.bf16.msra.mxu0 %v3474_v12 }
 0x131   :  { %3140 = vmatprep.subr.bf16.mxu0 %v4119_v11 }
 0x134   :  { %3141 = vmatpush3.bf16.msra.mxu0 %v3475_v13 }
 0x135   :  { %3142 = vmatprep.subr.bf16.mxu0 %v4119_v11 }
 0x138   :  { %3143 = vmatpush3.bf16.msra.mxu0 %v3476_v14 }
 0x139   :  { %3144 = vmatprep.subr.bf16.mxu0 %v4119_v11 }
 0x13c   :  { %3145 = vmatpush3.bf16.msra.mxu0 %v3477_v15 }
 0x13d   :  { %3146 = vmatprep.subr.bf16.mxu0 %v4119_v11 }
 0x140   :  { %3147 = vmatpush3.bf16.msra.mxu0 %v3478_v16 }
 0x141   :  { %3148 = vmatprep.subr.bf16.mxu0 %v4119_v11 }
 0x144   :  { %3149 = vmatpush3.bf16.msra.mxu0 %v3479_v17 }
 0x145   :  { %3150 = vmatprep.subr.bf16.mxu0 %v4119_v11 }
 0x148   :  { %3151 = vmatpush3.bf16.msra.mxu0 %v3480_v18 }
 0x149   :  { %3176 = vmatprep.subr.bf16.mxu0 %v4119_v11 }
 0x14b   :  { %3153 = vmatmul.mubr.bf16.vlgmr.msra.gmra.mrb[4].mxu0 %v3481_v19  ;;  %v3501_v19 = vld [vmem:[#allocation9] sm:$0xff]  }
 0x14c   :  { %3177 = vmatpush3.bf16.msra.mxu0 %v3482_v20  ;;  %3192 = vmatprep.mubr.msk.bf16.mxu0 %vm4120_vm0, %v4119_v11 }
 0x14d   :  { %3178 = vmatprep.subr.bf16.mxu0 %v4119_v11 }
 0x150   :  { %3179 = vmatpush3.bf16.msra.mxu0 %v3483_v21 }
 0x151   :  { %3180 = vmatprep.subr.bf16.mxu0 %v4119_v11 }
 0x154   :  { %3181 = vmatpush3.bf16.msra.mxu0 %v3484_v22 }
 0x155   :  { %3182 = vmatprep.subr.bf16.mxu0 %v4119_v11 }
 0x158   :  { %3183 = vmatpush3.bf16.msra.mxu0 %v3485_v23 }
 0x159   :  { %3184 = vmatprep.subr.bf16.mxu0 %v4119_v11 }
 0x15c   :  { %3185 = vmatpush3.bf16.msra.mxu0 %v3486_v24  ;;  %v3502_v24 = vld [vmem:[#allocation9 + $0x8] sm:$0xff]  }
 0x15d   :  { %3186 = vmatprep.subr.bf16.mxu0 %v4119_v11 }
 0x160   :  { %3187 = vmatpush3.bf16.msra.mxu0 %v3487_v25  ;;  %v3503_v25 = vld [vmem:[#allocation9 + $0x10] sm:$0xff]  }
 0x161   :  { %3188 = vmatprep.subr.bf16.mxu0 %v4119_v11 }
 0x164   :  { %3189 = vmatpush3.bf16.msra.mxu0 %v3488_v26  ;;  %v3504_v26 = vld [vmem:[#allocation9 + $0x18] sm:$0xff]  }
 0x165   :  { %3190 = vmatprep.subr.bf16.mxu0 %v4119_v11 }
 0x168   :  { %3191 = vmatpush3.bf16.msra.mxu0 %v3489_v27 }
 0x169   :  { %3232 = vmatprep.subr.bf16.mxu0 %v4119_v11 }
 0x16b   :  { %3193 = vmatmul.mubr.bf16.vlgmr.msra.gmra.mrb[8].mxu0 %v3490_v28 }
 0x16c   :  { %3196 = vmatprep.mubr.msk.bf16.mxu0 %vm4120_vm0, %v4119_v11 }
 0x173   :  { %3197 = vmatmul.mubr.bf16.gmra.mrb[12].mxu0 %v3491_v29 }
 0x174   :  { %3200 = vmatprep.mubr.msk.bf16.mxu0 %vm4120_vm0, %v4119_v11 }
 0x17b   :  { %3201 = vmatmul.mubr.bf16.gmra.mrb[16].mxu0 %v3492_v30 }
 0x17c   :  { %3236 = vmatprep.mubr.msk.bf16.mxu0 %vm4120_vm0, %v4119_v11 }
 0x1fe   :  { %v3114_v45 = vpop.f32.mrb[0].mxu0 }
 0x1ff   :  { %v382_v46 = vadd.f32 %v3114_v45, %v278_v44  ;;  %v373_v47 = vpop.f32.mrb[1].mxu0 }
 0x200   :  { %v374_v48 = vadd.f32 %v373_v47, %v278_v44  ;;  %v3115_v49 = vpop.f32.mrb[2].mxu0 }
 0x201   :  { %v2773_v50 = vmul.f32 -1.442695, %v382_v46  ;;  %v385_v51 = vadd.f32 %v3115_v49, %v278_v44  ;;  %v376_v52 = vpop.f32.mrb[3].mxu0 }
 0x202   :  { %v2771_v53 = vmul.f32 -1.442695, %v374_v48  ;;  %v377_v54 = vadd.f32 %v376_v52, %v278_v44 }
 0x203   :  { %3579 = vpow2.f32 %v2773_v50  ;;  %v2774_v55 = vmul.f32 -1.442695, %v385_v51 }
 0x204   :  { %3581 = vpow2.f32 %v2771_v53  ;;  %v2772_v56 = vmul.f32 -1.442695, %v377_v54 }
 0x205   :  { %3583 = vpow2.f32 %v2774_v55 }
 0x206   :  { %3585 = vpow2.f32 %v2772_v56  ;;  %v3510_v56 = vld [vmem:[#allocation13 + $0x8] sm:$0xff]  }
 0x20d   :  { %v3580_v57 = vpop.eup %3579 }
 0x20e   :  { %v3582_v58 = vpop.eup %3581  ;;  %v402_v59 = vadd.f32 1.0, %v3580_v57 }
 0x20f   :  { %v3584_v60 = vpop.eup %3583  ;;  %v400_v61 = vadd.f32 1.0, %v3582_v58 }
 0x210   :  { %v3586_v62 = vpop.eup %3585  ;;  %3587 = vrcp.f32 %v402_v59  ;;  %v403_v63 = vadd.f32 1.0, %v3584_v60 }
 0x211   :  { %3589 = vrcp.f32 %v400_v61  ;;  %v401_v0 = vadd.f32 1.0, %v3586_v62  ;;  %v3511_v61 = vld [vmem:[#allocation13 + $0x10] sm:$0xff]  }
 0x212   :  { %3591 = vrcp.f32 %v403_v63 }
 0x213   :  { %3593 = vrcp.f32 %v401_v0 }
 0x21a   :  { %v3588_v3 = vpop.eup %3587 }
 0x21b   :  { %v3590_v4 = vpop.eup %3589  ;;  %v414_v8 = vmul.f32 %v3588_v3, %v382_v46  ;;  %v3512_v3 = vld [vmem:[#allocation13 + $0x18] sm:$0xff]  }
 0x21c   :  { %v3592_v6 = vpop.eup %3591  ;;  %v412_v12 = vmul.f32 %v3590_v4, %v374_v48 }
 0x21d   :  { %v3594_v7 = vpop.eup %3593  ;;  %v415_v9 = vmul.f32 %v3592_v6, %v385_v51  ;;  %v3509_v51 = vld [vmem:[#allocation13] sm:$0xff]  }
 0x21e   :  { %v739_v10 = vpop.f32.mrb[4].mxu0  ;;  %v413_v13 = vmul.f32 %v3594_v7, %v377_v54 }
 0x21f   :  { %v740_v14 = vadd.f32 %v739_v10, %v650_v5  ;;  %v3154_v15 = vpop.f32.mrb[5].mxu0  ;;  %v417_v16 = vpack.c.bf16 %v415_v9, %v414_v8 }
 0x220   :  { %v742_v17 = vpop.f32.mrb[6].mxu0  ;;  %v416_v18 = vpack.c.bf16 %v413_v13, %v412_v12  ;;  %v3513_v13 = vld [vmem:[#allocation13 + $0x20] sm:$0xff]  }
 0x221   :  { %v2796_v20 = vmul.f32 -1.442695, %v740_v14  ;;  %v743_v21 = vadd.f32 %v742_v17, %v650_v5  ;;  %v3155_v22 = vpop.f32.mrb[7].mxu0 }
 0x222   :  { %3132 = vmatprep.mubr.bf16.mxu1 %v416_v18  ;;  %v3514_v18 = vld [vmem:[#allocation13 + $0x28] sm:$0xff]  }
 0x223   :  { %3595 = vpow2.f32 %v2796_v20  ;;  %v2797_v23 = vmul.f32 -1.442695, %v743_v21  ;;  %3133 = vmatmul.mubr.bf16.vlgmr.msra.gmra.mrb[0].mxu1 %v417_v16 }
 0x224   :  { %3157 = vmatpush3.bf16.msra.mxu1 %v3501_v19  ;;  %3172 = vmatprep.mubr.msk.bf16.mxu1 %vm4120_vm0, %v4119_v11 }
 0x225   :  { %3597 = vpow2.f32 %v2797_v23  ;;  %3158 = vmatprep.subr.bf16.mxu1 %v4119_v11  ;;  %v3515_v23 = vld [vmem:[#allocation13 + $0x30] sm:$0xff]  }
 0x228   :  { %3159 = vmatpush3.bf16.msra.mxu1 %v3502_v24 }
 0x229   :  { %3160 = vmatprep.subr.bf16.mxu1 %v4119_v11 }
 0x22c   :  { %3161 = vmatpush3.bf16.msra.mxu1 %v3503_v25 }
 0x22d   :  { %v3596_v27 = vpop.eup %3595  ;;  %3162 = vmatprep.subr.bf16.mxu1 %v4119_v11 }
 0x22e   :  { %v752_v28 = vadd.f32 1.0, %v3596_v27  ;;  %v3516_v27 = vld [vmem:[#allocation13 + $0x38] sm:$0xff]  }
 0x22f   :  { %v3598_v29 = vpop.eup %3597 }
 0x230   :  { %3599 = vrcp.f32 %v752_v28  ;;  %v753_v30 = vadd.f32 1.0, %v3598_v29  ;;  %3163 = vmatpush3.bf16.msra.mxu1 %v3504_v26 }
 0x231   :  { %3164 = vmatprep.subr.bf16.mxu1 %v4119_v11 }
 0x232   :  { %3601 = vrcp.f32 %v753_v30 }
 0x234   :  { %3165 = vmatpush3.bf16.msra.mxu1 %v3505_v31 }
 0x235   :  { %3166 = vmatprep.subr.bf16.mxu1 %v4119_v11 }
 0x238   :  { %3167 = vmatpush3.bf16.msra.mxu1 %v3506_v32 }
 0x239   :  { %3168 = vmatprep.subr.bf16.mxu1 %v4119_v11 }
 0x23a   :  { %v3600_v36 = vpop.eup %3599 }
 0x23b   :  { %v758_v44 = vmul.f32 %v3600_v36, %v740_v14 }
 0x23c   :  { %v3602_v38 = vpop.eup %3601  ;;  %3169 = vmatpush3.bf16.msra.mxu1 %v3507_v35 }
 0x23d   :  { %v759_v45 = vmul.f32 %v3602_v38, %v743_v21  ;;  %3170 = vmatprep.subr.bf16.mxu1 %v4119_v11 }
 0x23e   :  { %v1048_v46 = vpop.f32.mrb[8].mxu0 }
 0x23f   :  { %v760_v47 = vpack.c.bf16 %v759_v45, %v758_v44  ;;  %v4548_v48 = vadd.f32 %v1048_v46, %v947_v37  ;;  %v3194_v49 = vpop.f32.mrb[9].mxu0 }
 0x240   :  { %3171 = vmatpush3.bf16.msra.mxu1 %v3508_v41  ;;  %v1051_v50 = vpop.f32.mrb[10].mxu0  ;;  %v4578_v49 = vsub.s32 1, %v4522_v40 }
 0x241   :  { %v2819_v52 = vmul.f32 -1.442695, %v4548_v48  ;;  %v4551_v53 = vadd.f32 %v1051_v50, %v947_v37  ;;  %3204 = vmatprep.subr.bf16.mxu1 %v4119_v11  ;;  %v3195_v54 = vpop.f32.mrb[11].mxu0 }
 0x242   :  { %v437_v50 = vrot.slane %v4524_v42, %v4578_v49 }
 0x243   :  { %3173 = vmatmul.mubr.bf16.vlgmr.msra.gmra.mrb[4].mxu1 %v760_v47  ;;  %3603 = vpow2.f32 %v2819_v52  ;;  %v2820_v55 = vmul.f32 -1.442695, %v4551_v53 }
 0x244   :  { %3205 = vmatpush3.bf16.msra.mxu1 %v3509_v51  ;;  %3220 = vmatprep.mubr.msk.bf16.mxu1 %vm4120_vm0, %v4119_v11 }
 0x245   :  { %3605 = vpow2.f32 %v2820_v55  ;;  %3206 = vmatprep.subr.bf16.mxu1 %v4119_v11 }
 0x246   :  { %v1056_v57 = vpop.f32.mrb[12].mxu0 }
 0x247   :  { %v4558_v58 = vadd.f32 %v1056_v57, %v947_v37  ;;  %v3198_v59 = vpop.f32.mrb[13].mxu0 }
 0x248   :  { %3207 = vmatpush3.bf16.msra.mxu1 %v3510_v56  ;;  %v1059_v60 = vpop.f32.mrb[14].mxu0 }
 0x249   :  { %v2821_v62 = vmul.f32 -1.442695, %v4558_v58  ;;  %v1060_v63 = vadd.f32 %v1059_v60, %v947_v37  ;;  %3208 = vmatprep.subr.bf16.mxu1 %v4119_v11  ;;  %v3199_v0 = vpop.f32.mrb[15].mxu0 }
 0x24b   :  { %3607 = vpow2.f32 %v2821_v62  ;;  %v2822_v1 = vmul.f32 -1.442695, %v1060_v63 }
 0x24c   :  { %3209 = vmatpush3.bf16.msra.mxu1 %v3511_v61 }
 0x24d   :  { %v3604_v4 = vpop.eup %3603  ;;  %3609 = vpow2.f32 %v2822_v1  ;;  %3210 = vmatprep.subr.bf16.mxu1 %v4119_v11 }
 0x24e   :  { %v1089_v5 = vadd.f32 1.0, %v3604_v4  ;;  %v1064_v6 = vpop.f32.mrb[16].mxu0 }
 0x24f   :  { %v3606_v7 = vpop.eup %3605  ;;  %v1065_v8 = vadd.f32 %v1064_v6, %v947_v37  ;;  %v3202_v9 = vpop.f32.mrb[17].mxu0 }
 0x250   :  { %3611 = vrcp.f32 %v1089_v5  ;;  %v1090_v10 = vadd.f32 1.0, %v3606_v7  ;;  %3211 = vmatpush3.bf16.msra.mxu1 %v3512_v3  ;;  %v1067_v12 = vpop.f32.mrb[18].mxu0 }
 0x251   :  { %v2823_v14 = vmul.f32 -1.442695, %v1065_v8  ;;  %v1068_v15 = vadd.f32 %v1067_v12, %v947_v37  ;;  %3212 = vmatprep.subr.bf16.mxu1 %v4119_v11  ;;  %v3203_v16 = vpop.f32.mrb[19].mxu0  ;;  %v780_v12 = vrot.slane %v4531_v2, %v4578_v49 }
 0x252   :  { %3613 = vrcp.f32 %v1090_v10 }
 0x253   :  { %3615 = vpow2.f32 %v2823_v14  ;;  %v2824_v17 = vmul.f32 -1.442695, %v1068_v15 }
 0x254   :  { %3213 = vmatpush3.bf16.msra.mxu1 %v3513_v13 }
 0x255   :  { %v3608_v19 = vpop.eup %3607  ;;  %3617 = vpow2.f32 %v2824_v17  ;;  %3214 = vmatprep.subr.bf16.mxu1 %v4119_v11 }
 0x256   :  { %v1091_v20 = vadd.f32 1.0, %v3608_v19 }
 0x257   :  { %v3610_v21 = vpop.eup %3609 }
 0x258   :  { %3619 = vrcp.f32 %v1091_v20  ;;  %v1092_v22 = vadd.f32 1.0, %v3610_v21  ;;  %3215 = vmatpush3.bf16.msra.mxu1 %v3514_v18 }
 0x259   :  { %3216 = vmatprep.subr.bf16.mxu1 %v4119_v11 }
 0x25a   :  { %v3612_v24 = vpop.eup %3611  ;;  %3621 = vrcp.f32 %v1092_v22 }
 0x25b   :  { %v1107_v25 = vmul.f32 %v3612_v24, %v4548_v48 }
 0x25c   :  { %v3614_v26 = vpop.eup %3613  ;;  %3217 = vmatpush3.bf16.msra.mxu1 %v3515_v23 }
 0x25d   :  { %v3616_v28 = vpop.eup %3615  ;;  %v1108_v29 = vmul.f32 %v3614_v26, %v4551_v53  ;;  %3218 = vmatprep.subr.bf16.mxu1 %v4119_v11 }
 0x25e   :  { %v1093_v30 = vadd.f32 1.0, %v3616_v28 }
 0x25f   :  { %v3618_v31 = vpop.eup %3617  ;;  %v1113_v32 = vpack.c.bf16 %v1108_v29, %v1107_v25 }
 0x260   :  { %3623 = vrcp.f32 %v1093_v30  ;;  %v1094_v33 = vadd.f32 1.0, %v3618_v31  ;;  %3219 = vmatpush3.bf16.msra.mxu1 %v3516_v27 }
 0x261   :  { %3248 = vmatprep.subr.bf16.mxu1 %v4119_v11 }
 0x262   :  { %v3620_v35 = vpop.eup %3619  ;;  %3625 = vrcp.f32 %v1094_v33 }
 0x263   :  { %v1109_v36 = vmul.f32 %v3620_v35, %v4558_v58  ;;  %3221 = vmatmul.mubr.bf16.vlgmr.msra.gmra.mrb[8].mxu1 %v1113_v32 }
 0x264   :  { %v3622_v37 = vpop.eup %3621  ;;  %3224 = vmatprep.mubr.msk.bf16.mxu1 %vm4120_vm0, %v4119_v11 }
 0x265   :  { %v1110_v38 = vmul.f32 %v3622_v37, %v1060_v63 }
 0x267   :  { %v1114_v41 = vpack.c.bf16 %v1110_v38, %v1109_v36 }
 0x26a   :  { %v3624_v44 = vpop.eup %3623 }
 0x26b   :  { %v1111_v45 = vmul.f32 %v3624_v44, %v1065_v8  ;;  %3225 = vmatmul.mubr.bf16.gmra.mrb[12].mxu1 %v1114_v41 }
 0x26c   :  { %v3626_v46 = vpop.eup %3625  ;;  %3228 = vmatprep.mubr.msk.bf16.mxu1 %vm4120_vm0, %v4119_v11 }
 0x26d   :  { %v1112_v47 = vmul.f32 %v3626_v46, %v1068_v15 }
 0x26f   :  { %v1115_v48 = vpack.c.bf16 %v1112_v47, %v1111_v45 }
 0x273   :  { %3229 = vmatmul.mubr.bf16.gmra.mrb[16].mxu1 %v1115_v48 }
 0x274   :  { %3250 = vmatprep.mubr.msk.bf16.mxu1 %vm4120_vm0, %v4119_v11 }
 0x2f6   :  { %v3134_v51 = vpop.f32.mrb[0].mxu1 }
 0x2f7   :  { %v529_v52 = vadd.f32 %v3134_v51, %v437_v50  ;;  %v520_v53 = vpop.f32.mrb[1].mxu1 }
 0x2f8   :  { %v521_v54 = vadd.f32 %v520_v53, %v437_v50  ;;  %v3135_v55 = vpop.f32.mrb[2].mxu1  ;;  %v1135_v53 = vrot.slane %v4542_v34, %v4578_v49 }
 0x2f9   :  { %v2785_v56 = vmul.f32 -1.442695, %v529_v52  ;;  %v532_v57 = vadd.f32 %v3135_v55, %v437_v50  ;;  %v523_v58 = vpop.f32.mrb[3].mxu1 }
 0x2fa   :  { %v2783_v59 = vmul.f32 -1.442695, %v521_v54  ;;  %v524_v60 = vadd.f32 %v523_v58, %v437_v50 }
 0x2fb   :  { %3627 = vpow2.f32 %v2785_v56  ;;  %v2786_v61 = vmul.f32 -1.442695, %v532_v57 }
 0x2fc   :  { %3629 = vpow2.f32 %v2783_v59  ;;  %v2784_v62 = vmul.f32 -1.442695, %v524_v60 }
 0x2fd   :  { %3631 = vpow2.f32 %v2786_v61 }
 0x2fe   :  { %3633 = vpow2.f32 %v2784_v62 }
 0x305   :  { %v3628_v63 = vpop.eup %3627 }
 0x306   :  { %v3630_v0 = vpop.eup %3629  ;;  %v549_v1 = vadd.f32 1.0, %v3628_v63 }
 0x307   :  { %v3632_v3 = vpop.eup %3631  ;;  %v547_v4 = vadd.f32 1.0, %v3630_v0 }
 0x308   :  { %v3634_v5 = vpop.eup %3633  ;;  %3635 = vrcp.f32 %v549_v1  ;;  %v550_v6 = vadd.f32 1.0, %v3632_v3 }
 0x309   :  { %3637 = vrcp.f32 %v547_v4  ;;  %v548_v7 = vadd.f32 1.0, %v3634_v5 }
 0x30a   :  { %3639 = vrcp.f32 %v550_v6 }
 0x30b   :  { %3641 = vrcp.f32 %v548_v7 }
 0x312   :  { %v3636_v8 = vpop.eup %3635 }
 0x313   :  { %v3638_v9 = vpop.eup %3637  ;;  %v561_v10 = vmul.f32 %v3636_v8, %v529_v52  ;;  %v249_v52 = vand.u32 127, %v248_v39 }
 0x314   :  { %v3640_v13 = vpop.eup %3639  ;;  %v559_v14 = vmul.f32 %v3638_v9, %v521_v54 }
 0x315   :  { %v3642_v15 = vpop.eup %3641  ;;  %567 = vadd.xlane.f32.xlu1 %v561_v10  ;;  %v562_v19 = vmul.f32 %v3640_v13, %v532_v57  ;;  %vm250_vm1 = vcmp.lt.s32.totalorder %v249_v52, 32 }
 0x316   :  { %v863_v16 = vpop.f32.mrb[4].mxu1  ;;  %563 = vadd.xlane.f32.xlu0 %v559_v14  ;;  %v560_v21 = vmul.f32 %v3642_v15, %v524_v60  ;;  %v4594_v58 = vsel %vm250_vm1, 1.0, %v4119_v11 }
 0x317   :  { %v864_v17 = vadd.f32 %v863_v16, %v780_v12  ;;  %v3174_v18 = vpop.f32.mrb[5].mxu1 }
 0x318   :  { %v866_v20 = vpop.f32.mrb[6].mxu1 }
 0x319   :  { %v2806_v22 = vmul.f32 -1.442695, %v864_v17  ;;  %v867_v23 = vadd.f32 %v866_v20, %v780_v12  ;;  %v3175_v24 = vpop.f32.mrb[7].mxu1  ;;  %569 = vadd.xlane.f32.xlu1 %v562_v19 }
 0x31a   :  { %565 = vadd.xlane.f32.xlu0 %v560_v21 }
 0x31b   :  { %3643 = vpow2.f32 %v2806_v22  ;;  %v2807_v25 = vmul.f32 -1.442695, %v867_v23 }
 0x31d   :  { %3645 = vpow2.f32 %v2807_v25 }
 0x325   :  { %v3644_v26 = vpop.eup %3643 }
 0x326   :  { %v876_v27 = vadd.f32 1.0, %v3644_v26 }
 0x327   :  { %v3646_v28 = vpop.eup %3645 }
 0x328   :  { %3647 = vrcp.f32 %v876_v27  ;;  %v877_v29 = vadd.f32 1.0, %v3646_v28 }
 0x32a   :  { %3649 = vrcp.f32 %v877_v29 }
 0x332   :  { %v3648_v30 = vpop.eup %3647 }
 0x333   :  { %v4584_v31 = vmul.f32 %v3648_v30, %v864_v17 }
 0x334   :  { %v3650_v32 = vpop.eup %3649 }
 0x335   :  { %884 = vadd.xlane.f32.xlu0 %v4584_v31  ;;  %v4587_v33 = vmul.f32 %v3650_v32, %v867_v23 }
 0x336   :  { %v1218_v35 = vpop.f32.mrb[8].mxu1 }
 0x337   :  { %886 = vadd.xlane.f32.xlu1 %v4587_v33  ;;  %v3222_v36 = vpop.f32.mrb[9].mxu1  ;;  %v4596_v59 = vadd.f32 %v1218_v35, %v1135_v53 }
 0x338   :  { %v1221_v37 = vpop.f32.mrb[10].mxu1 }
 0x339   :  { %v3223_v38 = vpop.f32.mrb[11].mxu1  ;;  %v4602_v0 = vadd.f32 %v1221_v37, %v1135_v53  ;;  %v2833_v4 = vmul.f32 -1.442695, %v4596_v59 }
 0x33b   :  { %3651 = vpow2.f32 %v2833_v4 }
 0x33e   :  { %v1226_v41 = vpop.f32.mrb[12].mxu1 }
 0x33f   :  { %v3226_v44 = vpop.f32.mrb[13].mxu1  ;;  %v4607_v5 = vadd.f32 %v1226_v41, %v1135_v53 }
 0x340   :  { %v1229_v45 = vpop.f32.mrb[14].mxu1 }
 0x341   :  { %v3227_v46 = vpop.f32.mrb[15].mxu1  ;;  %v1230_v12 = vadd.f32 %v1229_v45, %v1135_v53 }
 0x345   :  { %v3652_v24 = vpop.eup %3651 }
 0x346   :  { %v1234_v47 = vpop.f32.mrb[16].mxu1  ;;  %v1259_v26 = vadd.f32 1.0, %v3652_v24 }
 0x347   :  { %v3230_v48 = vpop.f32.mrb[17].mxu1  ;;  %v1235_v15 = vadd.f32 %v1234_v47, %v1135_v53 }
 0x348   :  { %v1237_v50 = vpop.f32.mrb[18].mxu1 }
 0x349   :  { %v3231_v51 = vpop.f32.mrb[19].mxu1  ;;  %v1238_v20 = vadd.f32 %v1237_v50, %v1135_v53 }
 0x34b   :  { %v2838_v23 = vmul.f32 -1.442695, %v1238_v20 }
 0x3a2   :  { %v568_v54 = vpop.xlane.xlu1 %567 }
 0x3a3   :  { %v573_v55 = vmul.f32 0.03125, %v568_v54  ;;  %v564_v56 = vpop.xlane.xlu0 %563 }
 0x3a4   :  { %v571_v57 = vmul.f32 0.03125, %v564_v56 }
 0x3a5   :  { %v4598_v60 = vsub.f32 %v561_v10, %v573_v55  ;;  %v2834_v10 = vmul.f32 -1.442695, %v4602_v0 }
 0x3a6   :  { %v4600_v61 = vsub.f32 %v559_v14, %v571_v57  ;;  %v570_v62 = vpop.xlane.xlu1 %569  ;;  %v2835_v14 = vmul.f32 -1.442695, %v4607_v5 }
 0x3a7   :  { %v574_v63 = vmul.f32 0.03125, %v570_v62  ;;  %v566_v39 = vpop.xlane.xlu0 %565  ;;  %v581_v9 = vmul.f32 %v4594_v58, %v4598_v60  ;;  %3653 = vpow2.f32 %v2834_v10 }
 0x3a8   :  { %v572_v1 = vmul.f32 0.03125, %v566_v39  ;;  %v579_v3 = vmul.f32 %v4594_v58, %v4600_v61  ;;  %3655 = vpow2.f32 %v2835_v14 }
 0x3a9   :  { %v4609_v6 = vsub.f32 %v562_v19, %v574_v63  ;;  %v585_v16 = vmul.f32 %v581_v9, %v581_v9  ;;  %v2836_v19 = vmul.f32 -1.442695, %v1230_v12 }
 0x3aa   :  { %v4611_v7 = vsub.f32 %v560_v21, %v572_v1  ;;  %v583_v8 = vmul.f32 %v579_v3, %v579_v3  ;;  %v2837_v21 = vmul.f32 -1.442695, %v1235_v15 }
 0x3ab   :  { %v582_v18 = vmul.f32 %v4594_v58, %v4609_v6  ;;  %3657 = vpow2.f32 %v2836_v19 }
 0x3ac   :  { %587 = vadd.xlane.f32.xlu0 %v583_v8  ;;  %v580_v13 = vmul.f32 %v4594_v58, %v4611_v7  ;;  %3659 = vpow2.f32 %v2837_v21 }
 0x3ad   :  { %v586_v22 = vmul.f32 %v582_v18, %v582_v18  ;;  %3661 = vpow2.f32 %v2838_v23  ;;  %v4653_v18 = vsub.s32 2, %v4522_v40 }
 0x3ae   :  { %v584_v17 = vmul.f32 %v580_v13, %v580_v13  ;;  %3663 = vrcp.f32 %v1259_v26 }
 0x3af   :  { %v614_v21 = vrot.slane %v4524_v42, %v4653_v18 }
 0x3b0   :  { %591 = vadd.xlane.f32.xlu0 %v585_v16  ;;  %589 = vadd.xlane.f32.xlu1 %v584_v17 }
 0x3b1   :  { %v3654_v25 = vpop.eup %3653 }
 0x3b2   :  { %v3656_v27 = vpop.eup %3655  ;;  %v1260_v28 = vadd.f32 1.0, %v3654_v25 }
 0x3b3   :  { %v1261_v30 = vadd.f32 1.0, %v3656_v27 }
 0x3b4   :  { %593 = vadd.xlane.f32.xlu1 %v586_v22  ;;  %3665 = vrcp.f32 %v1260_v28  ;;  %v4659_v22 = vsub.s32 3, %v4522_v40 }
 0x3b5   :  { %v3658_v29 = vpop.eup %3657  ;;  %3667 = vrcp.f32 %v1261_v30 }
 0x3b6   :  { %v3660_v32 = vpop.eup %3659  ;;  %v1262_v35 = vadd.f32 1.0, %v3658_v29  ;;  %v622_v27 = vrot.slane %v4524_v42, %v4659_v22 }
 0x3b7   :  { %v3662_v36 = vpop.eup %3661  ;;  %v1263_v37 = vadd.f32 1.0, %v3660_v32 }
 0x3b8   :  { %3669 = vrcp.f32 %v1262_v35  ;;  %v1264_v44 = vadd.f32 1.0, %v3662_v36  ;;  %v3664_v51 = vpop.eup %3663 }
 0x3b9   :  { %3671 = vrcp.f32 %v1263_v37 }
 0x3ba   :  { %3673 = vrcp.f32 %v1264_v44 }
 0x3be   :  { %v3666_v54 = vpop.eup %3665 }
 0x3bf   :  { %v3668_v56 = vpop.eup %3667 }
 0x3c0   :  { %v4639_v62 = vmul.f32 %v3668_v56, %v4607_v5 }
 0x3c2   :  { %v885_v38 = vpop.xlane.xlu0 %884  ;;  %v3670_v57 = vpop.eup %3669 }
 0x3c3   :  { %v888_v41 = vmul.f32 0.03125, %v885_v38  ;;  %v3672_v63 = vpop.eup %3671  ;;  %v4642_v39 = vmul.f32 %v3670_v57, %v1230_v12  ;;  %v3518_v57 = vld [vmem:[%s5052_s27 + $0x8] sm:$0xff]  }
 0x3c4   :  { %v887_v45 = vpop.xlane.xlu1 %886  ;;  %v3674_v1 = vpop.eup %3673 }
 0x3c5   :  { %v4622_v46 = vsub.f32 %v4584_v31, %v888_v41  ;;  %v889_v47 = vmul.f32 0.03125, %v887_v45  ;;  %v4632_v31 = vmul.f32 %v3664_v51, %v4596_v59  ;;  %v4645_v59 = vmul.f32 %v3672_v63, %v1235_v15 }
 0x3c7   :  { %v4625_v48 = vsub.f32 %v4587_v33, %v889_v47  ;;  %v892_v50 = vmul.f32 %v4594_v58, %v4622_v46  ;;  %v4635_v33 = vmul.f32 %v3666_v54, %v4602_v0  ;;  %v4648_v0 = vmul.f32 %v3674_v1, %v1238_v20 }
 0x3c9   :  { %v894_v52 = vmul.f32 %v892_v50, %v892_v50  ;;  %v893_v53 = vmul.f32 %v4594_v58, %v4625_v48 }
 0x3cb   :  { %896 = vadd.xlane.f32.xlu0 %v894_v52  ;;  %v895_v55 = vmul.f32 %v893_v53, %v893_v53 }
 0x3cd   :  { %898 = vadd.xlane.f32.xlu1 %v895_v55 }
 0x3cf   :  { %1283 = vadd.xlane.f32.xlu0 %v4632_v31 }
 0x3d1   :  { %1285 = vadd.xlane.f32.xlu1 %v4635_v33 }
 0x3d3   :  { %1287 = vadd.xlane.f32.xlu0 %v4639_v62 }
 0x3d5   :  { %1289 = vadd.xlane.f32.xlu1 %v4642_v39 }
 0x3d7   :  { %1291 = vadd.xlane.f32.xlu0 %v4645_v59 }
 0x3d9   :  { %1293 = vadd.xlane.f32.xlu1 %v4648_v0 }
 0x439   :  { %v588_v3 = vpop.xlane.xlu0 %587 }
 0x43a   :  { %v595_v4 = vmul.f32 0.03125, %v588_v3 }
 0x43c   :  { %v599_v5 = vadd.f32 1e-05, %v595_v4 }
 0x43d   :  { %v590_v8 = vpop.xlane.xlu1 %589  ;;  %v592_v9 = vpop.xlane.xlu0 %591 }
 0x43e   :  { %3675 = vrsqrt.f32 %v599_v5  ;;  %v596_v10 = vmul.f32 0.03125, %v590_v8  ;;  %v597_v12 = vmul.f32 0.03125, %v592_v9 }
 0x440   :  { %v600_v13 = vadd.f32 1e-05, %v596_v10  ;;  %v601_v14 = vadd.f32 1e-05, %v597_v12 }
 0x441   :  { %v594_v15 = vpop.xlane.xlu1 %593 }
 0x442   :  { %3677 = vrsqrt.f32 %v600_v13  ;;  %v598_v16 = vmul.f32 0.03125, %v594_v15  ;;  %v911_v15 = vrot.slane %v4531_v2, %v4653_v18 }
 0x443   :  { %3679 = vrsqrt.f32 %v601_v14 }
 0x444   :  { %v602_v17 = vadd.f32 1e-05, %v598_v16 }
 0x446   :  { %3681 = vrsqrt.f32 %v602_v17 }
 0x448   :  { %v3676_v19 = vpop.eup %3675 }
 0x449   :  { %v607_v20 = vmul.f32 %v3676_v19, %v4600_v61 }
 0x44b   :  { %v615_v26 = vmul.f32 %v614_v21, %v607_v20 }
 0x44c   :  { %v3678_v23 = vpop.eup %3677 }
 0x44d   :  { %v3680_v24 = vpop.eup %3679  ;;  %v608_v25 = vmul.f32 %v3678_v23, %v4611_v7  ;;  %v623_v32 = vadd.f32 %v622_v27, %v615_v26  ;;  %v3519_v23 = vld [vmem:[%s5052_s27 + $0x10] sm:$0xff]  }
 0x44e   :  { %v609_v28 = vmul.f32 %v3680_v24, %v4598_v60 }
 0x44f   :  { %v616_v29 = vmul.f32 %v614_v21, %v608_v25 }
 0x450   :  { %v3682_v30 = vpop.eup %3681  ;;  %v617_v36 = vmul.f32 %v614_v21, %v609_v28 }
 0x451   :  { %v610_v61 = vmul.f32 %v3682_v30, %v4609_v6  ;;  %v624_v35 = vadd.f32 %v622_v27, %v616_v29  ;;  %v3517_v6 = vld [vmem:[%s5052_s27] sm:$0xff]   ;;  %v917_v29 = vrot.slane %v4531_v2, %v4659_v22 }
 0x452   :  { %v625_v7 = vadd.f32 %v622_v27, %v617_v36  ;;  %v4749_v36 = vld [vmem:[%s5053_s11 + $0x8] sm:$0xff]  }
 0x453   :  { %v1375_v37 = vpack.c.bf16 %v624_v35, %v623_v32  ;;  %v618_v40 = vmul.f32 %v614_v21, %v610_v61  ;;  %v4739_v35 = vld [vmem:[%s5053_s11] sm:$0xff]  }
 0x455   :  { %3233 = vmatpush3.bf16.msra.mxu0 %v1375_v37  ;;  %2940 = vst [vmem:[%s5034_s20] sm:$0xff] %v1375_v37   ;;  %v626_v38 = vadd.f32 %v622_v27, %v618_v40  ;;  %v4757_v37 = vld [vmem:[%s5053_s11 + $0x10] sm:$0xff]   ;;  %v3523_v40 = vld [vmem:[%s5028_s14 + $0x40] sm:$0xff]  }
 0x456   :  { %3234 = vmatprep.subr.bf16.mxu0 %v4119_v11 }
 0x457   :  { %v1376_v42 = vpack.c.bf16 %v626_v38, %v625_v7  ;;  %v3524_v7 = vld [vmem:[%s5028_s14 + $0x48] sm:$0xff]   ;;  %v3530_v38 = vld [vmem:[%s5028_s14] sm:$0xff]  }
 0x458   :  { %v897_v60 = vpop.xlane.xlu0 %896 }
 0x459   :  { %v900_v41 = vmul.f32 0.03125, %v897_v60  ;;  %3235 = vmatpush3.bf16.msra.mxu0 %v1376_v42  ;;  %2951 = vst [vmem:[%s5034_s20 + $0x8] sm:$0xff] %v1376_v42   ;;  %v3525_v42 = vld [vmem:[%s5028_s14 + $0x50] sm:$0xff]   ;;  %v3526_v60 = vld [vmem:[%s5028_s14 + $0x58] sm:$0xff]  }
 0x45a   :  { %v899_v44 = vpop.xlane.xlu1 %898  ;;  %3262 = vmatprep.subr.bf16.mxu0 %v4119_v11 }
 0x45b   :  { %v902_v45 = vadd.f32 1e-05, %v900_v41  ;;  %v901_v47 = vmul.f32 0.03125, %v899_v44  ;;  %v3528_v41 = vld [vmem:[%s5028_s14 + $0x68] sm:$0xff]   ;;  %v3529_v44 = vld [vmem:[%s5028_s14 + $0x70] sm:$0xff]  }
 0x45c   :  { %v1284_v50 = vpop.xlane.xlu0 %1283  ;;  %3237 = vmatmul.mubr.msk.bf16.vlgmr.msra.gmra.mrb[20].mxu0 %vm1412_vm2, %v3517_v6  ;;  %v3527_v6 = vld [vmem:[%s5028_s14 + $0x60] sm:$0xff]  }
 0x45d   :  { %3683 = vrsqrt.f32 %v902_v45  ;;  %v903_v51 = vadd.f32 1e-05, %v901_v47  ;;  %v1295_v52 = vmul.f32 0.03125, %v1284_v50  ;;  %3240 = vmatprep.mubr.msk.bf16.mxu0 %vm4120_vm0, %v4119_v11  ;;  %3263 = vmatpush3.bf16.msra.mxu0 %v3523_v40  ;;  %v3531_v45 = vld [vmem:[%s5028_s14 + $0x78] sm:$0xff]   ;;  %v3532_v47 = vld [vmem:[%s5028_s14 + $0x8] sm:$0xff]   ;;  %v3534_v50 = vld [vmem:[%s5028_s14 + $0x10] sm:$0xff]  }
 0x45e   :  { %v1286_v53 = vpop.xlane.xlu1 %1285  ;;  %3264 = vmatprep.subr.bf16.mxu0 %v4119_v11 }
 0x45f   :  { %3685 = vrsqrt.f32 %v903_v51  ;;  %v4681_v54 = vsub.f32 %v4632_v31, %v1295_v52  ;;  %v1296_v55 = vmul.f32 0.03125, %v1286_v53  ;;  %v3536_v51 = vld [vmem:[%s5028_s14 + $0x18] sm:$0xff]   ;;  %v3538_v52 = vld [vmem:[%s5028_s14 + $0x20] sm:$0xff]   ;;  %v3540_v53 = vld [vmem:[%s5028_s14 + $0x28] sm:$0xff]  }
 0x460   :  { %v1288_v56 = vpop.xlane.xlu0 %1287 }
 0x461   :  { %v4687_v63 = vsub.f32 %v4635_v33, %v1296_v55  ;;  %v1297_v1 = vmul.f32 0.03125, %v1288_v56  ;;  %v1307_v3 = vmul.f32 %v4594_v58, %v4681_v54  ;;  %3265 = vmatpush3.bf16.msra.mxu0 %v3524_v7  ;;  %v3542_v55 = vld [vmem:[%s5028_s14 + $0x30] sm:$0xff]   ;;  %v3544_v56 = vld [vmem:[%s5028_s14 + $0x38] sm:$0xff]  }
 0x462   :  { %v1290_v4 = vpop.xlane.xlu1 %1289  ;;  %3266 = vmatprep.subr.bf16.mxu0 %v4119_v11 }
 0x463   :  { %v4692_v5 = vsub.f32 %v4639_v62, %v1297_v1  ;;  %v1298_v8 = vmul.f32 0.03125, %v1290_v4  ;;  %v1313_v31 = vmul.f32 %v1307_v3, %v1307_v3  ;;  %v1308_v9 = vmul.f32 %v4594_v58, %v4687_v63 }
 0x464   :  { %v1292_v10 = vpop.xlane.xlu0 %1291  ;;  %3241 = vmatmul.mubr.msk.bf16.gmra.mrb[24].mxu0 %vm1412_vm2, %v3518_v57 }
 0x465   :  { %v4698_v12 = vsub.f32 %v4642_v39, %v1298_v8  ;;  %v1299_v33 = vmul.f32 0.03125, %v1292_v10  ;;  %1319 = vadd.xlane.f32.xlu0 %v1313_v31  ;;  %v1314_v13 = vmul.f32 %v1308_v9, %v1308_v9  ;;  %v1309_v14 = vmul.f32 %v4594_v58, %v4692_v5  ;;  %3244 = vmatprep.mubr.msk.bf16.mxu0 %vm4120_vm0, %v4119_v11  ;;  %v3533_v9 = vld [vmem:[%s5028_s14 + $0x80] sm:$0xff]  }
 0x466   :  { %v1294_v62 = vpop.xlane.xlu1 %1293  ;;  %3267 = vmatpush3.bf16.msra.mxu0 %v3525_v42 }
 0x467   :  { %v3684_v16 = vpop.eup %3683  ;;  %v4707_v17 = vsub.f32 %v4645_v59, %v1299_v33  ;;  %v1300_v19 = vmul.f32 0.03125, %v1294_v62  ;;  %1321 = vadd.xlane.f32.xlu1 %v1314_v13  ;;  %v1315_v39 = vmul.f32 %v1309_v14, %v1309_v14  ;;  %v1310_v20 = vmul.f32 %v4594_v58, %v4698_v12  ;;  %3268 = vmatprep.subr.bf16.mxu0 %v4119_v11  ;;  %v3535_v62 = vld [vmem:[%s5028_s14 + $0x88] sm:$0xff]  }
 0x468   :  { %v906_v21 = vmul.f32 %v3684_v16, %v4622_v46 }
 0x469   :  { %v3686_v24 = vpop.eup %3685  ;;  %v4716_v25 = vsub.f32 %v4648_v0, %v1300_v19  ;;  %1323 = vadd.xlane.f32.xlu0 %v1315_v39  ;;  %v1316_v26 = vmul.f32 %v1310_v20, %v1310_v20  ;;  %v1311_v59 = vmul.f32 %v4594_v58, %v4707_v17 }
 0x46a   :  { %v907_v27 = vmul.f32 %v3686_v24, %v4625_v48  ;;  %v912_v28 = vmul.f32 %v911_v15, %v906_v21  ;;  %3269 = vmatpush3.bf16.msra.mxu0 %v3526_v60 }
 0x46b   :  { %1325 = vadd.xlane.f32.xlu1 %v1316_v26  ;;  %v1317_v46 = vmul.f32 %v1311_v59, %v1311_v59  ;;  %v1312_v30 = vmul.f32 %v4594_v58, %v4716_v25  ;;  %3270 = vmatprep.subr.bf16.mxu0 %v4119_v11 }
 0x46c   :  { %v913_v61 = vmul.f32 %v911_v15, %v907_v27  ;;  %3245 = vmatmul.mubr.msk.bf16.gmra.mrb[28].mxu0 %vm1412_vm2, %v3519_v23  ;;  %v4728_v32 = vadd.f32 %v917_v29, %v912_v28  ;;  %v3537_v23 = vld [vmem:[%s5028_s14 + $0x90] sm:$0xff]  }
 0x46d   :  { %1327 = vadd.xlane.f32.xlu0 %v1317_v46  ;;  %v1318_v0 = vmul.f32 %v1312_v30, %v1312_v30  ;;  %3278 = vmatprep.mubr.msk.bf16.mxu0 %vm4120_vm0, %v4119_v11 }
 0x46e   :  { %v4730_v48 = vadd.f32 %v917_v29, %v913_v61  ;;  %3271 = vmatpush3.bf16.msra.mxu0 %v3527_v6  ;;  %v3539_v29 = vld [vmem:[%s5028_s14 + $0x98] sm:$0xff]  }
 0x46f   :  { %1329 = vadd.xlane.f32.xlu1 %v1318_v0  ;;  %3272 = vmatprep.subr.bf16.mxu0 %v4119_v11 }
 0x470   :  { %v4734_v2 = vpack.c.bf16 %v4730_v48, %v4728_v32 }
 0x472   :  { %3249 = vmatpush3.bf16.msra.mxu1 %v4734_v2  ;;  %3273 = vmatpush3.bf16.msra.mxu0 %v3528_v41 }
 0x473   :  { %3290 = vmatprep.subr.bf16.mxu1 %v4119_v11  ;;  %3274 = vmatprep.subr.bf16.mxu0 %v4119_v11 }
 0x475   :  { %3251 = vmatmul.mubr.msk.bf16.vlgmr.msra.gmra.mrb[20].mxu1 %vm1494_vm3, %v4739_v35 }
 0x476   :  { %3254 = vmatprep.mubr.msk.bf16.mxu1 %vm4120_vm0, %v4119_v11  ;;  %3291 = vmatpush3.bf16.msra.mxu1 %v3530_v38  ;;  %v3541_v38 = vld [vmem:[%s5028_s14 + $0xa0] sm:$0xff]  }
 0x477   :  { %3292 = vmatprep.subr.bf16.mxu1 %v4119_v11  ;;  %3275 = vmatpush3.bf16.msra.mxu0 %v3529_v44 }
 0x478   :  { %3276 = vmatprep.subr.bf16.mxu0 %v4119_v11 }
 0x47a   :  { %3293 = vmatpush3.bf16.msra.mxu1 %v3532_v47 }
 0x47b   :  { %3277 = vmatpush3.bf16.msra.mxu0 %v3531_v45  ;;  %3294 = vmatprep.subr.bf16.mxu1 %v4119_v11 }
 0x47c   :  { %3318 = vmatprep.subr.bf16.mxu0 %v4119_v11 }
 0x47d   :  { %3255 = vmatmul.mubr.msk.bf16.gmra.mrb[24].mxu1 %vm1494_vm3, %v4749_v36 }
 0x47e   :  { %3258 = vmatprep.mubr.msk.bf16.mxu1 %vm4120_vm0, %v4119_v11  ;;  %3295 = vmatpush3.bf16.msra.mxu1 %v3534_v50  ;;  %v3543_v50 = vld [vmem:[%s5028_s14 + $0xa8] sm:$0xff]  }
 0x47f   :  { %3296 = vmatprep.subr.bf16.mxu1 %v4119_v11 }
 0x482   :  { %3297 = vmatpush3.bf16.msra.mxu1 %v3536_v51 }
 0x483   :  { %3298 = vmatprep.subr.bf16.mxu1 %v4119_v11 }
 0x485   :  { %3259 = vmatmul.mubr.msk.bf16.gmra.mrb[28].mxu1 %vm1494_vm3, %v4757_v37 }
 0x486   :  { %3306 = vmatprep.mubr.msk.bf16.mxu1 %vm4120_vm0, %v4119_v11  ;;  %3299 = vmatpush3.bf16.msra.mxu1 %v3538_v52 }
 0x487   :  { %3300 = vmatprep.subr.bf16.mxu1 %v4119_v11 }
 0x48a   :  { %3301 = vmatpush3.bf16.msra.mxu1 %v3540_v53  ;;  %v1358_v53 = vrot.slane %v4542_v34, %v4653_v18 }
 0x48b   :  { %3302 = vmatprep.subr.bf16.mxu1 %v4119_v11 }
 0x48e   :  { %3303 = vmatpush3.bf16.msra.mxu1 %v3542_v55 }
 0x48f   :  { %3304 = vmatprep.subr.bf16.mxu1 %v4119_v11 }
 0x492   :  { %3305 = vmatpush3.bf16.msra.mxu1 %v3544_v56 }
 0x493   :  { %3346 = vmatprep.subr.bf16.mxu1 %v4119_v11 }
 0x4f2   :  { %v1320_v3 = vpop.xlane.xlu0 %1319 }
 0x4f3   :  { %v1331_v13 = vmul.f32 0.03125, %v1320_v3 }
 0x4f4   :  { %v1322_v57 = vpop.xlane.xlu1 %1321 }
 0x4f5   :  { %v1332_v8 = vmul.f32 0.03125, %v1322_v57  ;;  %v1337_v16 = vadd.f32 1e-05, %v1331_v13 }
 0x4f6   :  { %v1324_v39 = vpop.xlane.xlu0 %1323 }
 0x4f7   :  { %v1338_v14 = vadd.f32 1e-05, %v1332_v8  ;;  %v1333_v27 = vmul.f32 0.03125, %v1324_v39 }
 0x4f8   :  { %v1326_v15 = vpop.xlane.xlu1 %1325 }
 0x4f9   :  { %3687 = vrsqrt.f32 %v1338_v14  ;;  %v1334_v21 = vmul.f32 0.03125, %v1326_v15  ;;  %v1339_v30 = vadd.f32 1e-05, %v1333_v27 }
 0x4fa   :  { %3689 = vrsqrt.f32 %v1337_v16  ;;  %v1328_v0 = vpop.xlane.xlu0 %1327 }
 0x4fb   :  { %v1340_v28 = vadd.f32 1e-05, %v1334_v21  ;;  %v1335_v44 = vmul.f32 0.03125, %v1328_v0 }
 0x4fc   :  { %v1330_v46 = vpop.xlane.xlu1 %1329 }
 0x4fd   :  { %3691 = vrsqrt.f32 %v1340_v28  ;;  %v1336_v7 = vmul.f32 0.03125, %v1330_v46  ;;  %v1341_v52 = vadd.f32 1e-05, %v1335_v44  ;;  %v3550_v44 = vld [vmem:[#allocation16 + $0x18] sm:$0xff]  }
 0x4fe   :  { %3693 = vrsqrt.f32 %v1339_v30 }
 0x4ff   :  { %v1342_v47 = vadd.f32 1e-05, %v1336_v7 }
 0x501   :  { %3695 = vrsqrt.f32 %v1342_v47  ;;  %v3552_v47 = vld [vmem:[#allocation16 + $0x28] sm:$0xff]  }
 0x502   :  { %3697 = vrsqrt.f32 %v1341_v52 }
 0x503   :  { %v3688_v41 = vpop.eup %3687 }
 0x504   :  { %v3690_v45 = vpop.eup %3689  ;;  %v1350_v51 = vmul.f32 %v3688_v41, %v4687_v63  ;;  %v3549_v41 = vld [vmem:[#allocation16 + $0x10] sm:$0xff]  }
 0x505   :  { %v1349_v55 = vmul.f32 %v3690_v45, %v4681_v54  ;;  %v1368_v54 = vrot.slane %v4542_v34, %v4659_v22  ;;  %v3551_v45 = vld [vmem:[#allocation16 + $0x20] sm:$0xff]  }
 0x506   :  { %v1360_v3 = vmul.f32 %v1358_v53, %v1350_v51  ;;  %v3554_v51 = vld [vmem:[#allocation16 + $0x38] sm:$0xff]  }
 0x507   :  { %v3692_v63 = vpop.eup %3691 }
 0x508   :  { %v4871_v13 = vadd.f32 %v1368_v54, %v1360_v3  ;;  %v1352_v14 = vmul.f32 %v3692_v63, %v4698_v12 }
 0x52f   :  { %v1456_v1 = vpop.f32.mrb[20].mxu0 }
 0x530   :  { %v3238_v4 = vpop.f32.mrb[21].mxu0 }
 0x531   :  { %v1459_v31 = vpop.f32.mrb[22].mxu0 }
 0x532   :  { %v1580_v10 = vpack.c.bf16 %v1459_v31, %v1456_v1  ;;  %v3239_v33 = vpop.f32.mrb[23].mxu0  ;;  %v3545_v1 = vld [vmem:[%s5028_s14 + $0xb0] sm:$0xff]  }
 0x533   :  { %v3546_v33 = vld [vmem:[%s5028_s14 + $0xb8] sm:$0xff]  }
 0x534   :  { %3279 = vmatmul.mubr.bf16.vlgmr.msra.gmra.mrb[32].mxu0 %v1580_v10  ;;  %v3694_v10 = vpop.eup %3693 }
 0x535   :  { %3319 = vmatpush3.bf16.msra.mxu0 %v3533_v9  ;;  %3282 = vmatprep.mubr.msk.bf16.mxu0 %vm4120_vm0, %v4119_v11  ;;  %v1359_v9 = vmul.f32 %v1358_v53, %v1349_v55  ;;  %v1351_v34 = vmul.f32 %v3694_v10, %v4692_v5  ;;  %v3696_v21 = vpop.eup %3695 }
 0x536   :  { %3320 = vmatprep.subr.bf16.mxu0 %v4119_v11  ;;  %v3698_v12 = vpop.eup %3697 }
 0x537   :  { %v1464_v19 = vpop.f32.mrb[24].mxu0  ;;  %v4874_v15 = vadd.f32 %v1368_v54, %v1359_v9 }
 0x538   :  { %v3242_v20 = vpop.f32.mrb[25].mxu0 }
 0x539   :  { %3321 = vmatpush3.bf16.msra.mxu0 %v3535_v62  ;;  %v1467_v24 = vpop.f32.mrb[26].mxu0  ;;  %v1394_v39 = vpack.c.bf16 %v4871_v13, %v4874_v15  ;;  %v1362_v20 = vmul.f32 %v1358_v53, %v1352_v14 }
 0x53a   :  { %3322 = vmatprep.subr.bf16.mxu0 %v4119_v11  ;;  %v1581_v26 = vpack.c.bf16 %v1467_v24, %v1464_v19  ;;  %v3243_v59 = vpop.f32.mrb[27].mxu0 }
 0x53b   :  { %v4884_v5 = vadd.f32 %v1368_v54, %v1362_v20  ;;  %v1354_v59 = vmul.f32 %v3696_v21, %v4716_v25 }
 0x53c   :  { %3283 = vmatmul.mubr.bf16.gmra.mrb[36].mxu0 %v1581_v26  ;;  %v1361_v26 = vmul.f32 %v1358_v53, %v1351_v34 }
 0x53d   :  { %3323 = vmatpush3.bf16.msra.mxu0 %v3537_v23  ;;  %3286 = vmatprep.mubr.msk.bf16.mxu0 %vm4120_vm0, %v4119_v11  ;;  %v1364_v0 = vmul.f32 %v1358_v53, %v1354_v59 }
 0x53e   :  { %3324 = vmatprep.subr.bf16.mxu0 %v4119_v11  ;;  %v4887_v28 = vadd.f32 %v1368_v54, %v1361_v26 }
 0x53f   :  { %v1472_v61 = vpop.f32.mrb[28].mxu0  ;;  %v4894_v25 = vadd.f32 %v1368_v54, %v1364_v0 }
 0x540   :  { %v3246_v40 = vpop.f32.mrb[29].mxu0 }
 0x541   :  { %3325 = vmatpush3.bf16.msra.mxu0 %v3539_v29  ;;  %v1475_v42 = vpop.f32.mrb[30].mxu0  ;;  %v1353_v29 = vmul.f32 %v3698_v12, %v4707_v17 }
 0x542   :  { %3326 = vmatprep.subr.bf16.mxu0 %v4119_v11  ;;  %v1582_v60 = vpack.c.bf16 %v1475_v42, %v1472_v61  ;;  %v3247_v6 = vpop.f32.mrb[31].mxu0  ;;  %v1395_v61 = vpack.c.bf16 %v4884_v5, %v4887_v28 }
 0x543   :  { %v3548_v6 = vld [vmem:[#allocation16 + $0x8] sm:$0xff]  }
 0x544   :  { %3287 = vmatmul.mubr.bf16.gmra.mrb[40].mxu0 %v1582_v60  ;;  %v3547_v60 = vld [vmem:[#allocation16] sm:$0xff]  }
 0x545   :  { %3327 = vmatpush3.bf16.msra.mxu0 %v3541_v38  ;;  %3334 = vmatprep.mubr.msk.bf16.mxu0 %vm4120_vm0, %v4119_v11  ;;  %v1363_v38 = vmul.f32 %v1358_v53, %v1353_v29 }
 0x546   :  { %3328 = vmatprep.subr.bf16.mxu0 %v4119_v11 }
 0x547   :  { %v4898_v17 = vadd.f32 %v1368_v54, %v1363_v38  ;;  %v1389_v54 = vld [vmem:[#allocation18] sm:$0x3] }
 0x548   :  { %v1538_v56 = vpop.f32.mrb[20].mxu1  ;;  %v4912_v34 = vunpack.c.l.bf16 %v1389_v54 }
 0x549   :  { %v3252_v57 = vpop.f32.mrb[21].mxu1  ;;  %3329 = vmatpush3.bf16.msra.mxu0 %v3543_v50  ;;  %v1396_v42 = vpack.c.bf16 %v4894_v25, %v4898_v17  ;;  %v3553_v50 = vld [vmem:[#allocation16 + $0x30] sm:$0xff]  }
 0x54a   :  { %v1541_v4 = vpop.f32.mrb[22].mxu1  ;;  %3330 = vmatprep.subr.bf16.mxu0 %v4119_v11 }
 0x54b   :  { %v1561_v8 = vpack.c.bf16 %v1541_v4, %v1538_v56  ;;  %v3253_v31 = vpop.f32.mrb[23].mxu1 }
 0x54d   :  { %3307 = vmatmul.mubr.bf16.vlgmr.msra.gmra.mrb[32].mxu1 %v1561_v8  ;;  %3331 = vmatpush3.bf16.msra.mxu0 %v3545_v1 }
 0x54e   :  { %3332 = vmatprep.subr.bf16.mxu0 %v4119_v11  ;;  %3310 = vmatprep.mubr.msk.bf16.mxu1 %vm4120_vm0, %v4119_v11 }
 0x54f   :  { %3347 = vmatpush3.bf16.msra.mxu1 %v3547_v60 }
 0x550   :  { %v1546_v62 = vpop.f32.mrb[24].mxu1  ;;  %3348 = vmatprep.subr.bf16.mxu1 %v4119_v11 }
 0x551   :  { %v3256_v16 = vpop.f32.mrb[25].mxu1  ;;  %3333 = vmatpush3.bf16.msra.mxu0 %v3546_v33 }
 0x552   :  { %v1549_v19 = vpop.f32.mrb[26].mxu1  ;;  %3374 = vmatprep.subr.bf16.mxu0 %v4119_v11 }
 0x553   :  { %v1562_v23 = vpack.c.bf16 %v1549_v19, %v1546_v62  ;;  %v3257_v24 = vpop.f32.mrb[27].mxu1  ;;  %3349 = vmatpush3.bf16.msra.mxu1 %v3548_v6 }
 0x554   :  { %3335 = vmatmul.mubr.bf16.vlgmr.msra.gmra.mrb[44].mxu0 %v1394_v39  ;;  %3350 = vmatprep.subr.bf16.mxu1 %v4119_v11  ;;  %v1939_v39 = vrot.slane %v4912_v34, %v4527_v43 }
 0x555   :  { %3311 = vmatmul.mubr.bf16.gmra.mrb[36].mxu1 %v1562_v23  ;;  %3338 = vmatprep.mubr.msk.bf16.mxu0 %vm4120_vm0, %v4119_v11 }
 0x556   :  { %3314 = vmatprep.mubr.msk.bf16.mxu1 %vm4120_vm0, %v4119_v11 }
 0x557   :  { %3351 = vmatpush3.bf16.msra.mxu1 %v3549_v41 }
 0x558   :  { %v1554_v27 = vpop.f32.mrb[28].mxu1  ;;  %3352 = vmatprep.subr.bf16.mxu1 %v4119_v11 }
 0x559   :  { %v3260_v46 = vpop.f32.mrb[29].mxu1 }
 0x55a   :  { %v1557_v30 = vpop.f32.mrb[30].mxu1 }
 0x55b   :  { %v1563_v40 = vpack.c.bf16 %v1557_v30, %v1554_v27  ;;  %v3261_v7 = vpop.f32.mrb[31].mxu1  ;;  %3353 = vmatpush3.bf16.msra.mxu1 %v3550_v44 }
 0x55c   :  { %3339 = vmatmul.mubr.bf16.gmra.mrb[48].mxu0 %v1395_v61  ;;  %3354 = vmatprep.subr.bf16.mxu1 %v4119_v11 }
 0x55d   :  { %3315 = vmatmul.mubr.bf16.gmra.mrb[40].mxu1 %v1563_v40  ;;  %3342 = vmatprep.mubr.msk.bf16.mxu0 %vm4120_vm0, %v4119_v11 }
 0x55e   :  { %3362 = vmatprep.mubr.msk.bf16.mxu1 %vm4120_vm0, %v4119_v11 }
 0x55f   :  { %3355 = vmatpush3.bf16.msra.mxu1 %v3551_v45 }
 0x560   :  { %3356 = vmatprep.subr.bf16.mxu1 %v4119_v11 }
 0x563   :  { %3357 = vmatpush3.bf16.msra.mxu1 %v3552_v47 }
 0x564   :  { %3343 = vmatmul.mubr.bf16.gmra.mrb[52].mxu0 %v1396_v42  ;;  %3358 = vmatprep.subr.bf16.mxu1 %v4119_v11 }
 0x565   :  { %3380 = vmatprep.mubr.msk.bf16.mxu0 %vm4120_vm0, %v4119_v11 }
 0x567   :  { %3359 = vmatpush3.bf16.msra.mxu1 %v3553_v50 }
 0x568   :  { %3360 = vmatprep.subr.bf16.mxu1 %v4119_v11 }
 0x56b   :  { %3361 = vmatpush3.bf16.msra.mxu1 %v3554_v51 }
 0x56c   :  { %3384 = vmatprep.subr.bf16.mxu1 %v4119_v11 }
 0x607   :  { %v1681_v52 = vpop.f32.mrb[32].mxu0 }
 0x608   :  { %v3280_v53 = vpop.f32.mrb[33].mxu0 }
 0x609   :  { %v1684_v55 = vpop.f32.mrb[34].mxu0 }
 0x60a   :  { %v3281_v56 = vpop.f32.mrb[35].mxu0 }
 0x60f   :  { %v1689_v57 = vpop.f32.mrb[36].mxu0 }
 0x610   :  { %v3284_v1 = vpop.f32.mrb[37].mxu0 }
 0x611   :  { %v1692_v3 = vpop.f32.mrb[38].mxu0 }
 0x612   :  { %v3285_v4 = vpop.f32.mrb[39].mxu0 }
 0x617   :  { %v1697_v63 = vpop.f32.mrb[40].mxu0 }
 0x618   :  { %v3288_v8 = vpop.f32.mrb[41].mxu0 }
 0x619   :  { %v1700_v31 = vpop.f32.mrb[42].mxu0 }
 0x61a   :  { %v3289_v9 = vpop.f32.mrb[43].mxu0 }
 0x620   :  { %v1786_v10 = vpop.f32.mrb[32].mxu1 }
 0x621   :  { %v1787_v33 = vadd.f32 %v1786_v10, %v1681_v52  ;;  %v3308_v14 = vpop.f32.mrb[33].mxu1 }
 0x622   :  { %v1789_v62 = vpop.f32.mrb[34].mxu1 }
 0x623   :  { %v1790_v16 = vadd.f32 %v1789_v62, %v1684_v55  ;;  %v3309_v19 = vpop.f32.mrb[35].mxu1 }
 0x627   :  { %v1907_v20 = vpop.f32.mrb[44].mxu0 }
 0x628   :  { %v1930_v21 = vadd.f32 %v1907_v20, %v1787_v33  ;;  %v1794_v23 = vpop.f32.mrb[36].mxu1  ;;  %v3336_v24 = vpop.f32.mrb[45].mxu0 }
 0x629   :  { %v1795_v26 = vadd.f32 %v1794_v23, %v1689_v57  ;;  %v3312_v12 = vpop.f32.mrb[37].mxu1  ;;  %v1910_v59 = vpop.f32.mrb[46].mxu0 }
 0x62a   :  { %v1940_v27 = vadd.f32 %v1939_v39, %v1930_v21  ;;  %v1931_v29 = vadd.f32 %v1910_v59, %v1790_v16  ;;  %v1797_v46 = vpop.f32.mrb[38].mxu1  ;;  %v3337_v30 = vpop.f32.mrb[47].mxu0 }
 0x62b   :  { %v1798_v61 = vadd.f32 %v1797_v46, %v1692_v3  ;;  %v3313_v0 = vpop.f32.mrb[39].mxu1 }
 0x62c   :  { %v2875_v40 = vmul.f32 -1.442695, %v1940_v27  ;;  %v1941_v7 = vadd.f32 %v1939_v39, %v1931_v29 }
 0x62e   :  { %3699 = vpow2.f32 %v2875_v40  ;;  %v2876_v38 = vmul.f32 -1.442695, %v1941_v7 }
 0x62f   :  { %v1915_v42 = vpop.f32.mrb[48].mxu0 }
 0x630   :  { %3701 = vpow2.f32 %v2876_v38  ;;  %v1932_v60 = vadd.f32 %v1915_v42, %v1795_v26  ;;  %v1802_v6 = vpop.f32.mrb[40].mxu1  ;;  %v3340_v41 = vpop.f32.mrb[49].mxu0 }
 0x631   :  { %v1803_v44 = vadd.f32 %v1802_v6, %v1697_v63  ;;  %v3316_v45 = vpop.f32.mrb[41].mxu1  ;;  %v1918_v47 = vpop.f32.mrb[50].mxu0 }
 0x632   :  { %v1942_v50 = vadd.f32 %v1939_v39, %v1932_v60  ;;  %v1933_v51 = vadd.f32 %v1918_v47, %v1798_v61  ;;  %v1805_v52 = vpop.f32.mrb[42].mxu1  ;;  %v3341_v53 = vpop.f32.mrb[51].mxu0 }
 0x633   :  { %v1806_v55 = vadd.f32 %v1805_v52, %v1700_v31  ;;  %v3317_v56 = vpop.f32.mrb[43].mxu1  ;;  %v2010_v52 = vrot.slane %v4912_v34, %v4578_v49 }
 0x634   :  { %v2877_v57 = vmul.f32 -1.442695, %v1942_v50  ;;  %v1943_v1 = vadd.f32 %v1939_v39, %v1933_v51 }
 0x636   :  { %3703 = vpow2.f32 %v2877_v57  ;;  %v2878_v3 = vmul.f32 -1.442695, %v1943_v1 }
 0x637   :  { %v1923_v4 = vpop.f32.mrb[52].mxu0 }
 0x638   :  { %v3700_v8 = vpop.eup %3699  ;;  %3705 = vpow2.f32 %v2878_v3  ;;  %v1934_v9 = vadd.f32 %v1923_v4, %v1803_v44  ;;  %v3344_v54 = vpop.f32.mrb[53].mxu0 }
 0x639   :  { %v1964_v10 = vadd.f32 1.0, %v3700_v8  ;;  %v1926_v33 = vpop.f32.mrb[54].mxu0 }
 0x63a   :  { %v3702_v63 = vpop.eup %3701  ;;  %v1944_v14 = vadd.f32 %v1939_v39, %v1934_v9  ;;  %v1935_v62 = vadd.f32 %v1926_v33, %v1806_v55  ;;  %v3345_v16 = vpop.f32.mrb[55].mxu0 }
 0x63b   :  { %3707 = vrcp.f32 %v1964_v10  ;;  %v1965_v19 = vadd.f32 1.0, %v3702_v63 }
 0x63c   :  { %v2879_v20 = vmul.f32 -1.442695, %v1944_v14  ;;  %v1945_v31 = vadd.f32 %v1939_v39, %v1935_v62 }
 0x63d   :  { %3709 = vrcp.f32 %v1965_v19 }
 0x63e   :  { %3711 = vpow2.f32 %v2879_v20  ;;  %v2880_v21 = vmul.f32 -1.442695, %v1945_v31 }
 0x640   :  { %v3704_v23 = vpop.eup %3703  ;;  %3713 = vpow2.f32 %v2880_v21 }
 0x641   :  { %v1966_v24 = vadd.f32 1.0, %v3704_v23 }
 0x642   :  { %v3706_v26 = vpop.eup %3705 }
 0x643   :  { %3715 = vrcp.f32 %v1966_v24  ;;  %v1967_v12 = vadd.f32 1.0, %v3706_v26 }
 0x645   :  { %v3708_v59 = vpop.eup %3707  ;;  %3717 = vrcp.f32 %v1967_v12 }
 0x646   :  { %v1982_v30 = vmul.f32 %v3708_v59, %v1940_v27 }
 0x647   :  { %v3710_v29 = vpop.eup %3709 }
 0x648   :  { %v3712_v46 = vpop.eup %3711  ;;  %v1983_v61 = vmul.f32 %v3710_v29, %v1941_v7 }
 0x649   :  { %v1968_v0 = vadd.f32 1.0, %v3712_v46 }
 0x64a   :  { %v3714_v40 = vpop.eup %3713  ;;  %v1988_v38 = vpack.c.bf16 %v1983_v61, %v1982_v30 }
 0x64b   :  { %3719 = vrcp.f32 %v1968_v0  ;;  %v1969_v39 = vadd.f32 1.0, %v3714_v40 }
 0x64c   :  { %3363 = vmatmul.mubr.bf16.vlgmr.msra.gmra.mrb[44].mxu1 %v1988_v38 }
 0x64d   :  { %v3716_v42 = vpop.eup %3715  ;;  %3721 = vrcp.f32 %v1969_v39  ;;  %3366 = vmatprep.mubr.msk.bf16.mxu1 %vm4120_vm0, %v4119_v11 }
 0x64e   :  { %v1984_v6 = vmul.f32 %v3716_v42, %v1942_v50 }
 0x64f   :  { %v3718_v60 = vpop.eup %3717 }
 0x650   :  { %v1985_v41 = vmul.f32 %v3718_v60, %v1943_v1 }
 0x652   :  { %v1989_v44 = vpack.c.bf16 %v1985_v41, %v1984_v6 }
 0x654   :  { %3367 = vmatmul.mubr.bf16.gmra.mrb[48].mxu1 %v1989_v44 }
 0x655   :  { %v3720_v45 = vpop.eup %3719  ;;  %3370 = vmatprep.mubr.msk.bf16.mxu1 %vm4120_vm0, %v4119_v11 }
 0x656   :  { %v1986_v7 = vmul.f32 %v3720_v45, %v1944_v14 }
 0x657   :  { %v3722_v27 = vpop.eup %3721 }
 0x658   :  { %v1987_v47 = vmul.f32 %v3722_v27, %v1945_v31 }
 0x65a   :  { %v1990_v51 = vpack.c.bf16 %v1987_v47, %v1986_v7 }
 0x65c   :  { %3371 = vmatmul.mubr.bf16.gmra.mrb[52].mxu1 %v1990_v51 }
 0x65d   :  { %3400 = vmatprep.mubr.msk.bf16.mxu1 %vm4120_vm0, %v4119_v11 }
 0x71f   :  { %v2093_v53 = vpop.f32.mrb[44].mxu1 }
 0x720   :  { %v2094_v50 = vadd.f32 %v2093_v53, %v2010_v52  ;;  %v3364_v55 = vpop.f32.mrb[45].mxu1 }
 0x721   :  { %v2096_v56 = vpop.f32.mrb[46].mxu1 }
 0x722   :  { %v2889_v57 = vmul.f32 -1.442695, %v2094_v50  ;;  %v2097_v1 = vadd.f32 %v2096_v56, %v2010_v52  ;;  %v3365_v3 = vpop.f32.mrb[47].mxu1 }
 0x724   :  { %3723 = vpow2.f32 %v2889_v57  ;;  %v2890_v4 = vmul.f32 -1.442695, %v2097_v1 }
 0x726   :  { %3725 = vpow2.f32 %v2890_v4 }
 0x727   :  { %v2101_v8 = vpop.f32.mrb[48].mxu1 }
 0x728   :  { %v2102_v9 = vadd.f32 %v2101_v8, %v2010_v52  ;;  %v3368_v54 = vpop.f32.mrb[49].mxu1 }
 0x729   :  { %v2104_v10 = vpop.f32.mrb[50].mxu1 }
 0x72a   :  { %v2891_v33 = vmul.f32 -1.442695, %v2102_v9  ;;  %v2105_v63 = vadd.f32 %v2104_v10, %v2010_v52  ;;  %v3369_v14 = vpop.f32.mrb[51].mxu1 }
 0x72c   :  { %3727 = vpow2.f32 %v2891_v33  ;;  %v2892_v62 = vmul.f32 -1.442695, %v2105_v63 }
 0x72e   :  { %v3724_v16 = vpop.eup %3723  ;;  %3729 = vpow2.f32 %v2892_v62 }
 0x72f   :  { %v2134_v19 = vadd.f32 1.0, %v3724_v16  ;;  %v2109_v20 = vpop.f32.mrb[52].mxu1 }
 0x730   :  { %v3726_v31 = vpop.eup %3725  ;;  %v2110_v21 = vadd.f32 %v2109_v20, %v2010_v52  ;;  %v3372_v23 = vpop.f32.mrb[53].mxu1 }
 0x731   :  { %3731 = vrcp.f32 %v2134_v19  ;;  %v2135_v24 = vadd.f32 1.0, %v3726_v31  ;;  %v2112_v26 = vpop.f32.mrb[54].mxu1 }
 0x732   :  { %v2893_v12 = vmul.f32 -1.442695, %v2110_v21  ;;  %v2113_v59 = vadd.f32 %v2112_v26, %v2010_v52  ;;  %v3373_v29 = vpop.f32.mrb[55].mxu1 }
 0x733   :  { %3733 = vrcp.f32 %v2135_v24 }
 0x734   :  { %3735 = vpow2.f32 %v2893_v12  ;;  %v2894_v46 = vmul.f32 -1.442695, %v2113_v59 }
 0x736   :  { %v3728_v30 = vpop.eup %3727  ;;  %3737 = vpow2.f32 %v2894_v46 }
 0x737   :  { %v2136_v61 = vadd.f32 1.0, %v3728_v30 }
 0x738   :  { %v3730_v0 = vpop.eup %3729 }
 0x739   :  { %3739 = vrcp.f32 %v2136_v61  ;;  %v2137_v40 = vadd.f32 1.0, %v3730_v0 }
 0x73b   :  { %v3732_v38 = vpop.eup %3731  ;;  %3741 = vrcp.f32 %v2137_v40 }
 0x73c   :  { %v2152_v39 = vmul.f32 %v3732_v38, %v2094_v50 }
 0x73d   :  { %v3734_v42 = vpop.eup %3733 }
 0x73e   :  { %v3736_v60 = vpop.eup %3735  ;;  %2158 = vadd.xlane.f32.xlu0 %v2152_v39  ;;  %v2153_v6 = vmul.f32 %v3734_v42, %v2097_v1  ;;  %v3564_v42 = vld [vmem:[#allocation19 + $0x48] sm:$0xff]  }
 0x73f   :  { %v2138_v41 = vadd.f32 1.0, %v3736_v60  ;;  %v3565_v60 = vld [vmem:[#allocation19 + $0x50] sm:$0xff]  }
 0x740   :  { %v3738_v44 = vpop.eup %3737  ;;  %2160 = vadd.xlane.f32.xlu1 %v2153_v6 }
 0x741   :  { %3743 = vrcp.f32 %v2138_v41  ;;  %v2139_v45 = vadd.f32 1.0, %v3738_v44  ;;  %v3567_v41 = vld [vmem:[#allocation19 + $0x60] sm:$0xff]  }
 0x743   :  { %v3740_v27 = vpop.eup %3739  ;;  %3745 = vrcp.f32 %v2139_v45 }
 0x744   :  { %v2154_v7 = vmul.f32 %v3740_v27, %v2102_v9 }
 0x745   :  { %v3742_v47 = vpop.eup %3741 }
 0x746   :  { %2162 = vadd.xlane.f32.xlu0 %v2154_v7  ;;  %v2155_v51 = vmul.f32 %v3742_v47, %v2105_v63 }
 0x748   :  { %2164 = vadd.xlane.f32.xlu1 %v2155_v51 }
 0x74b   :  { %v3744_v52 = vpop.eup %3743 }
 0x74c   :  { %v2156_v53 = vmul.f32 %v3744_v52, %v2110_v21 }
 0x74d   :  { %v3746_v55 = vpop.eup %3745 }
 0x74e   :  { %2166 = vadd.xlane.f32.xlu0 %v2156_v53  ;;  %v2157_v50 = vmul.f32 %v3746_v55, %v2113_v59 }
 0x750   :  { %2168 = vadd.xlane.f32.xlu1 %v2157_v50 }
 0x7cb   :  { %v2159_v56 = vpop.xlane.xlu0 %2158 }
 0x7cc   :  { %v2170_v57 = vmul.f32 0.03125, %v2159_v56 }
 0x7cd   :  { %v2161_v1 = vpop.xlane.xlu1 %2160 }
 0x7ce   :  { %v4924_v3 = vsub.f32 %v2152_v39, %v2170_v57  ;;  %v2171_v4 = vmul.f32 0.03125, %v2161_v1  ;;  %v3563_v39 = vld [vmem:[#allocation19 + $0x40] sm:$0xff]   ;;  %v2233_v57 = vrot.slane %v4912_v34, %v4653_v18 }
 0x7cf   :  { %3385 = vmatpush3.bf16.msra.mxu1 %v3563_v39 }
 0x7d0   :  { %v4926_v8 = vsub.f32 %v2153_v6, %v2171_v4  ;;  %v2182_v9 = vmul.f32 %v4594_v58, %v4924_v3  ;;  %3386 = vmatprep.subr.bf16.mxu1 %v4119_v11  ;;  %v3566_v6 = vld [vmem:[#allocation19 + $0x58] sm:$0xff]  }
 0x7d2   :  { %v2188_v54 = vmul.f32 %v2182_v9, %v2182_v9  ;;  %v2183_v10 = vmul.f32 %v4594_v58, %v4926_v8 }
 0x7d3   :  { %v2163_v33 = vpop.xlane.xlu0 %2162  ;;  %3387 = vmatpush3.bf16.msra.mxu1 %v3564_v42 }
 0x7d4   :  { %v2172_v63 = vmul.f32 0.03125, %v2163_v33  ;;  %2194 = vadd.xlane.f32.xlu0 %v2188_v54  ;;  %v2189_v14 = vmul.f32 %v2183_v10, %v2183_v10  ;;  %3388 = vmatprep.subr.bf16.mxu1 %v4119_v11  ;;  %v2243_v54 = vrot.slane %v4912_v34, %v4659_v22 }
 0x7d5   :  { %v2165_v62 = vpop.xlane.xlu1 %2164 }
 0x7d6   :  { %v4932_v16 = vsub.f32 %v2154_v7, %v2172_v63  ;;  %v2173_v19 = vmul.f32 0.03125, %v2165_v62  ;;  %2196 = vadd.xlane.f32.xlu1 %v2189_v14 }
 0x7d7   :  { %3389 = vmatpush3.bf16.msra.mxu1 %v3565_v60 }
 0x7d8   :  { %v4934_v20 = vsub.f32 %v2155_v51, %v2173_v19  ;;  %v2184_v31 = vmul.f32 %v4594_v58, %v4932_v16  ;;  %3390 = vmatprep.subr.bf16.mxu1 %v4119_v11 }
 0x7da   :  { %v2190_v21 = vmul.f32 %v2184_v31, %v2184_v31  ;;  %v2185_v23 = vmul.f32 %v4594_v58, %v4934_v20 }
 0x7db   :  { %v2167_v24 = vpop.xlane.xlu0 %2166  ;;  %3391 = vmatpush3.bf16.msra.mxu1 %v3566_v6 }
 0x7dc   :  { %v2174_v26 = vmul.f32 0.03125, %v2167_v24  ;;  %2198 = vadd.xlane.f32.xlu0 %v2190_v21  ;;  %v2191_v12 = vmul.f32 %v2185_v23, %v2185_v23  ;;  %3392 = vmatprep.subr.bf16.mxu1 %v4119_v11 }
 0x7dd   :  { %v2169_v59 = vpop.xlane.xlu1 %2168 }
 0x7de   :  { %v4940_v29 = vsub.f32 %v2156_v53, %v2174_v26  ;;  %v2175_v46 = vmul.f32 0.03125, %v2169_v59  ;;  %2200 = vadd.xlane.f32.xlu1 %v2191_v12 }
 0x7df   :  { %3393 = vmatpush3.bf16.msra.mxu1 %v3567_v41 }
 0x7e0   :  { %v4942_v30 = vsub.f32 %v2157_v50, %v2175_v46  ;;  %v2186_v61 = vmul.f32 %v4594_v58, %v4940_v29  ;;  %3394 = vmatprep.subr.bf16.mxu1 %v4119_v11 }
 0x7e2   :  { %v2192_v0 = vmul.f32 %v2186_v61, %v2186_v61  ;;  %v2187_v40 = vmul.f32 %v4594_v58, %v4942_v30 }
 0x7e4   :  { %2202 = vadd.xlane.f32.xlu0 %v2192_v0  ;;  %v2193_v38 = vmul.f32 %v2187_v40, %v2187_v40 }
 0x7e6   :  { %2204 = vadd.xlane.f32.xlu1 %v2193_v38 }
 0x811   :  { %2262 = vxpose.xlu0.c.b16.start [1/3] (short) (narrow) %v4739_v35, 16  ;;  %v3568_v35 = vld [vmem:[#allocation19 + $0x68] sm:$0xff]  }
 0x812   :  { %3395 = vmatpush3.bf16.msra.mxu1 %v3568_v35 }
 0x813   :  { %3396 = vmatprep.subr.bf16.mxu1 %v4119_v11 }
 0x815   :  { %2263 = vxpose.xlu0.c.b16.cont [2/3] (short) (narrow) %v4749_v36, 16  ;;  %v3569_v36 = vld [vmem:[#allocation19 + $0x70] sm:$0xff]  }
 0x816   :  { %3397 = vmatpush3.bf16.msra.mxu1 %v3569_v36 }
 0x817   :  { %3398 = vmatprep.subr.bf16.mxu1 %v4119_v11 }
 0x819   :  { %2264 = vxpose.xlu0.c.b16.end [3/3] (short) (narrow) %v4757_v37, 16 }
 0x861   :  { %v2195_v37 = vpop.xlane.xlu0 %2194 }
 0x862   :  { %v2206_v44 = vmul.f32 0.03125, %v2195_v37 }
 0x863   :  { %v2197_v45 = vpop.xlane.xlu1 %2196 }
 0x864   :  { %v2212_v27 = vadd.f32 1e-05, %v2206_v44  ;;  %v2207_v7 = vmul.f32 0.03125, %v2197_v45 }
 0x866   :  { %3747 = vrsqrt.f32 %v2212_v27  ;;  %v2213_v47 = vadd.f32 1e-05, %v2207_v7  ;;  %v3557_v27 = vld [vmem:[#allocation19 + $0x10] sm:$0xff]   ;;  %v3560_v7 = vld [vmem:[#allocation19 + $0x28] sm:$0xff]  }
 0x868   :  { %3749 = vrsqrt.f32 %v2213_v47  ;;  %v3561_v47 = vld [vmem:[#allocation19 + $0x30] sm:$0xff]  }
 0x869   :  { %v2199_v51 = vpop.xlane.xlu0 %2198 }
 0x86a   :  { %v2208_v52 = vmul.f32 0.03125, %v2199_v51  ;;  %v3562_v51 = vld [vmem:[#allocation19 + $0x38] sm:$0xff]  }
 0x86b   :  { %v2201_v53 = vpop.xlane.xlu1 %2200 }
 0x86c   :  { %v2214_v55 = vadd.f32 1e-05, %v2208_v52  ;;  %v2209_v50 = vmul.f32 0.03125, %v2201_v53  ;;  %v3570_v52 = vld [vmem:[#allocation19 + $0x78] sm:$0xff]  }
 0x86d   :  { %3399 = vmatpush3.bf16.msra.mxu1 %v3570_v52 }
 0x86e   :  { %3751 = vrsqrt.f32 %v2214_v55  ;;  %v2215_v56 = vadd.f32 1e-05, %v2209_v50  ;;  %3424 = vmatprep.subr.bf16.mxu1 %v4119_v11 }
 0x870   :  { %v3748_v1 = vpop.eup %3747  ;;  %3753 = vrsqrt.f32 %v2215_v56 }
 0x871   :  { %v2224_v4 = vmul.f32 %v3748_v1, %v4924_v3  ;;  %v2203_v9 = vpop.xlane.xlu0 %2202 }
 0x872   :  { %v3750_v10 = vpop.eup %3749  ;;  %v2210_v33 = vmul.f32 0.03125, %v2203_v9 }
 0x873   :  { %v2225_v63 = vmul.f32 %v3750_v10, %v4926_v8  ;;  %v2205_v14 = vpop.xlane.xlu1 %2204  ;;  %v2234_v62 = vmul.f32 %v2233_v57, %v2224_v4  ;;  %v3571_v10 = vld [vmem:[#allocation21] sm:$0xff]  }
 0x874   :  { %v2216_v19 = vadd.f32 1e-05, %v2210_v33  ;;  %v2211_v31 = vmul.f32 0.03125, %v2205_v14  ;;  %v3573_v33 = vld [vmem:[#allocation21 + $0x10] sm:$0xff]   ;;  %v3575_v14 = vld [vmem:[#allocation21 + $0x20] sm:$0xff]  }
 0x875   :  { %v2235_v21 = vmul.f32 %v2233_v57, %v2225_v63  ;;  %v2244_v23 = vadd.f32 %v2243_v54, %v2234_v62  ;;  %v3574_v63 = vld [vmem:[#allocation21 + $0x18] sm:$0xff]   ;;  %v3576_v62 = vld [vmem:[#allocation21 + $0x28] sm:$0xff]  }
 0x876   :  { %3755 = vrsqrt.f32 %v2216_v19  ;;  %v2217_v24 = vadd.f32 1e-05, %v2211_v31  ;;  %v3577_v19 = vld [vmem:[#allocation21 + $0x30] sm:$0xff]   ;;  %v3578_v31 = vld [vmem:[#allocation21 + $0x38] sm:$0xff]  }
 0x877   :  { %v2245_v26 = vadd.f32 %v2243_v54, %v2235_v21  ;;  %v2250_v59 = vadd.f32 %v2244_v23, %v4874_v15  ;;  %v1391_v21 = vld [vmem:[#allocation22] sm:$0x3] }
 0x878   :  { %v3752_v12 = vpop.eup %3751  ;;  %3757 = vrsqrt.f32 %v2217_v24  ;;  %v4997_v23 = vunpack.c.l.bf16 %v1391_v21 }
 0x879   :  { %v2226_v3 = vmul.f32 %v3752_v12, %v4932_v16  ;;  %v2251_v34 = vadd.f32 %v2245_v26, %v4871_v13 }
 0x87a   :  { %v3754_v46 = vpop.eup %3753  ;;  %v2537_v24 = vrot.slane %v4997_v23, %v4527_v43 }
 0x87b   :  { %v2227_v8 = vmul.f32 %v3754_v46, %v4934_v20  ;;  %v2256_v61 = vpack.c.bf16 %v2251_v34, %v2250_v59  ;;  %v2236_v0 = vmul.f32 %v2233_v57, %v2226_v3 }
 0x87d   :  { %3375 = vmatpush3.bf16.msra.mxu0 %v2256_v61  ;;  %v2237_v40 = vmul.f32 %v2233_v57, %v2227_v8  ;;  %v2246_v38 = vadd.f32 %v2243_v54, %v2236_v0 }
 0x87e   :  { %3376 = vmatprep.subr.bf16.mxu0 %v4119_v11 }
 0x87f   :  { %v2247_v39 = vadd.f32 %v2243_v54, %v2237_v40  ;;  %v2252_v16 = vadd.f32 %v2246_v38, %v4887_v28  ;;  %v2270_v28 = vpop.trf.xlu0 }
 0x880   :  { %v3756_v42 = vpop.eup %3755 }
 0x881   :  { %v2228_v60 = vmul.f32 %v3756_v42, %v4940_v29  ;;  %v2253_v15 = vadd.f32 %v2247_v39, %v4884_v5  ;;  %v3555_v5 = vld [vmem:[#allocation19] sm:$0xff]  }
 0x882   :  { %v3758_v6 = vpop.eup %3757 }
 0x883   :  { %v2229_v13 = vmul.f32 %v3758_v6, %v4942_v30  ;;  %v2257_v41 = vpack.c.bf16 %v2253_v15, %v2252_v16  ;;  %v2238_v20 = vmul.f32 %v2233_v57, %v2228_v60  ;;  %v3556_v30 = vld [vmem:[#allocation19 + $0x8] sm:$0xff]  }
 0x885   :  { %3377 = vmatpush3.bf16.msra.mxu0 %v2257_v41  ;;  %v2239_v35 = vmul.f32 %v2233_v57, %v2229_v13  ;;  %v2248_v36 = vadd.f32 %v2243_v54, %v2238_v20  ;;  %v2574_v13 = vrot.slane %v4997_v23, %v4578_v49 }
 0x886   :  { %3378 = vmatprep.subr.bf16.mxu0 %v4119_v11 }
 0x887   :  { %v2249_v37 = vadd.f32 %v2243_v54, %v2239_v35  ;;  %v2254_v44 = vadd.f32 %v2248_v36, %v4898_v17  ;;  %v3559_v17 = vld [vmem:[#allocation19 + $0x20] sm:$0xff]  }
 0x889   :  { %v2255_v45 = vadd.f32 %v2249_v37, %v4894_v25  ;;  %v3558_v25 = vld [vmem:[#allocation19 + $0x18] sm:$0xff]  }
 0x88b   :  { %v2258_v29 = vpack.c.bf16 %v2255_v45, %v2254_v44 }
 0x88d   :  { %3379 = vmatpush3.bf16.msra.mxu0 %v2258_v29 }
 0x88e   :  { %3404 = vmatprep.subr.bf16.mxu0 %v4119_v11 }
 0x890   :  { %3381 = vmatmul.mubr.msk.bf16.vlgmr.msra.gmra.mrb[56].mxu0 %vm2278_vm4, %v2270_v28 }
 0x891   :  { %3405 = vmatpush3.bf16.msra.mxu0 %v3555_v5  ;;  %3420 = vmatprep.mubr.msk.bf16.mxu0 %vm4120_vm0, %v4119_v11 }
 0x892   :  { %3406 = vmatprep.subr.bf16.mxu0 %v4119_v11 }
 0x895   :  { %3407 = vmatpush3.bf16.msra.mxu0 %v3556_v30 }
 0x896   :  { %3408 = vmatprep.subr.bf16.mxu0 %v4119_v11 }
 0x899   :  { %3409 = vmatpush3.bf16.msra.mxu0 %v3557_v27 }
 0x89a   :  { %3410 = vmatprep.subr.bf16.mxu0 %v4119_v11 }
 0x89d   :  { %3411 = vmatpush3.bf16.msra.mxu0 %v3558_v25 }
 0x89e   :  { %3412 = vmatprep.subr.bf16.mxu0 %v4119_v11 }
 0x8a1   :  { %3413 = vmatpush3.bf16.msra.mxu0 %v3559_v17 }
 0x8a2   :  { %3414 = vmatprep.subr.bf16.mxu0 %v4119_v11 }
 0x8a5   :  { %3415 = vmatpush3.bf16.msra.mxu0 %v3560_v7 }
 0x8a6   :  { %3416 = vmatprep.subr.bf16.mxu0 %v4119_v11 }
 0x8a9   :  { %3417 = vmatpush3.bf16.msra.mxu0 %v3561_v47 }
 0x8aa   :  { %3418 = vmatprep.subr.bf16.mxu0 %v4119_v11 }
 0x8ad   :  { %3419 = vmatpush3.bf16.msra.mxu0 %v3562_v51 }
 0x8b0   :  { %3421 = vmatmul.mubr.bf16.vlgmr.msra.gmra.mrb[60].mxu0 %v4734_v2  ;;  %v3572_v2 = vld [vmem:[#allocation21 + $0x8] sm:$0xff]  }
 0x963   :  { %v2316_v53 = vpop.f32.mrb[56].mxu0 }
 0x964   :  { %v3382_v55 = vpop.f32.mrb[57].mxu0 }
 0x965   :  { %v2319_v50 = vpop.f32.mrb[58].mxu0 }
 0x966   :  { %v2339_v56 = vpack.c.bf16 %v2319_v50, %v2316_v53  ;;  %v3383_v57 = vpop.f32.mrb[59].mxu0 }
 0x968   :  { %3401 = vmatmul.mubr.bf16.vlgmr.msra.gmra.mrb[56].mxu1 %v2339_v56 }
 0x969   :  { %3440 = vmatprep.mubr.msk.bf16.mxu1 %vm4120_vm0, %v4119_v11  ;;  %3425 = vmatpush3.bf16.msra.mxu1 %v3571_v10 }
 0x96a   :  { %3426 = vmatprep.subr.bf16.mxu1 %v4119_v11 }
 0x96d   :  { %3427 = vmatpush3.bf16.msra.mxu1 %v3572_v2 }
 0x96e   :  { %3428 = vmatprep.subr.bf16.mxu1 %v4119_v11 }
 0x971   :  { %3429 = vmatpush3.bf16.msra.mxu1 %v3573_v33 }
 0x972   :  { %3430 = vmatprep.subr.bf16.mxu1 %v4119_v11 }
 0x975   :  { %3431 = vmatpush3.bf16.msra.mxu1 %v3574_v63 }
 0x976   :  { %3432 = vmatprep.subr.bf16.mxu1 %v4119_v11 }
 0x979   :  { %3433 = vmatpush3.bf16.msra.mxu1 %v3575_v14  ;;  %v2705_v14 = vrot.slane %v4997_v23, %v4653_v18 }
 0x97a   :  { %3434 = vmatprep.subr.bf16.mxu1 %v4119_v11 }
 0x97d   :  { %3435 = vmatpush3.bf16.msra.mxu1 %v3576_v62 }
 0x97e   :  { %3436 = vmatprep.subr.bf16.mxu1 %v4119_v11 }
 0x981   :  { %3437 = vmatpush3.bf16.msra.mxu1 %v3577_v19 }
 0x982   :  { %3438 = vmatprep.subr.bf16.mxu1 %v4119_v11 }
 0x983   :  { %v2527_v1 = vpop.f32.mrb[60].mxu0 }
 0x984   :  { %v3422_v4 = vpop.f32.mrb[61].mxu0 }
 0x985   :  { %v2530_v9 = vpop.f32.mrb[62].mxu0  ;;  %3439 = vmatpush3.bf16.msra.mxu1 %v3578_v31  ;;  %v2711_v31 = vrot.slane %v4997_v23, %v4659_v22 }
 0x986   :  { %v3423_v54 = vpop.f32.mrb[63].mxu0 }
 0xa3b   :  { %v2438_v26 = vpop.f32.mrb[56].mxu1 }
 0xa3c   :  { %v2528_v12 = vadd.f32 %v2527_v1, %v2438_v26  ;;  %v3402_v3 = vpop.f32.mrb[57].mxu1 }
 0xa3d   :  { %v2441_v59 = vpop.f32.mrb[58].mxu1 }
 0xa3e   :  { %v2538_v34 = vadd.f32 %v2537_v24, %v2528_v12  ;;  %v2531_v46 = vadd.f32 %v2530_v9, %v2441_v59  ;;  %v3403_v8 = vpop.f32.mrb[59].mxu1 }
 0xa40   :  { %v2912_v61 = vmul.f32 -1.442695, %v2538_v34  ;;  %v2539_v0 = vadd.f32 %v2537_v24, %v2531_v46 }
 0xa42   :  { %3759 = vpow2.f32 %v2912_v61  ;;  %v2913_v40 = vmul.f32 -1.442695, %v2539_v0 }
 0xa44   :  { %3761 = vpow2.f32 %v2913_v40 }
 0xa4c   :  { %v3760_v11 = vpop.eup %3759 }
 0xa4d   :  { %v2546_v38 = vadd.f32 1.0, %v3760_v11 }
 0xa4e   :  { %v3762_v39 = vpop.eup %3761 }
 0xa4f   :  { %3763 = vrcp.f32 %v2546_v38  ;;  %v2547_v42 = vadd.f32 1.0, %v3762_v39 }
 0xa51   :  { %3765 = vrcp.f32 %v2547_v42 }
 0xa59   :  { %v3764_v60 = vpop.eup %3763 }
 0xa5a   :  { %v2552_v16 = vmul.f32 %v3764_v60, %v2538_v34 }
 0xa5b   :  { %v3766_v43 = vpop.eup %3765 }
 0xa5c   :  { %v2553_v15 = vmul.f32 %v3766_v43, %v2539_v0 }
 0xa5e   :  { %v2554_v6 = vpack.c.bf16 %v2553_v15, %v2552_v16 }
 0xa60   :  { %3441 = vmatmul.mubr.bf16.vlgmr.msra.gmra.mrb[60].mxu1 %v2554_v6 }
 0xb33   :  { %v2657_v41 = vpop.f32.mrb[60].mxu1 }
 0xb34   :  { %v2658_v20 = vadd.f32 %v2657_v41, %v2574_v13  ;;  %v3442_v35 = vpop.f32.mrb[61].mxu1 }
 0xb35   :  { %v2660_v36 = vpop.f32.mrb[62].mxu1 }
 0xb36   :  { %v2922_v37 = vmul.f32 -1.442695, %v2658_v20  ;;  %v2661_v44 = vadd.f32 %v2660_v36, %v2574_v13  ;;  %v3443_v45 = vpop.f32.mrb[63].mxu1 }
 0xb38   :  { %3767 = vpow2.f32 %v2922_v37  ;;  %v2923_v29 = vmul.f32 -1.442695, %v2661_v44 }
 0xb3a   :  { %3769 = vpow2.f32 %v2923_v29 }
 0xb42   :  { %v3768_v28 = vpop.eup %3767 }
 0xb43   :  { %v2670_v5 = vadd.f32 1.0, %v3768_v28 }
 0xb44   :  { %v3770_v30 = vpop.eup %3769 }
 0xb45   :  { %3771 = vrcp.f32 %v2670_v5  ;;  %v2671_v27 = vadd.f32 1.0, %v3770_v30 }
 0xb47   :  { %3773 = vrcp.f32 %v2671_v27 }
 0xb4f   :  { %v3772_v25 = vpop.eup %3771 }
 0xb50   :  { %v2676_v17 = vmul.f32 %v3772_v25, %v2658_v20 }
 0xb51   :  { %v3774_v7 = vpop.eup %3773 }
 0xb52   :  { %2678 = vadd.xlane.f32.xlu1 %v2676_v17  ;;  %v2677_v49 = vmul.f32 %v3774_v7, %v2661_v44 }
 0xb56   :  { %2680 = vadd.xlane.f32.xlu1 %v2677_v49 }
 0xbdf   :  { %v2679_v47 = vpop.xlane.xlu1 %2678 }
 0xbe0   :  { %v2682_v51 = vmul.f32 0.03125, %v2679_v47 }
 0xbe2   :  { %v2684_v52 = vsub.f32 %v2676_v17, %v2682_v51 }
 0xbe3   :  { %v2681_v53 = vpop.xlane.xlu1 %2680 }
 0xbe4   :  { %v2683_v55 = vmul.f32 0.03125, %v2681_v53  ;;  %v2686_v50 = vmul.f32 %v4594_v58, %v2684_v52 }
 0xbe6   :  { %v2685_v56 = vsub.f32 %v2677_v49, %v2683_v55  ;;  %v2688_v57 = vmul.f32 %v2686_v50, %v2686_v50 }
 0xbe8   :  { %2690 = vadd.xlane.f32.xlu1 %v2688_v57  ;;  %v2687_v1 = vmul.f32 %v4594_v58, %v2685_v56 }
 0xbea   :  { %v2689_v4 = vmul.f32 %v2687_v1, %v2687_v1 }
 0xbec   :  { %2692 = vadd.xlane.f32.xlu1 %v2689_v4 }
 0xc75   :  { %v2691_v9 = vpop.xlane.xlu1 %2690 }
 0xc76   :  { %v2694_v54 = vmul.f32 0.03125, %v2691_v9 }
 0xc78   :  { %v2696_v10 = vadd.f32 1e-05, %v2694_v54 }
 0xc79   :  { %v2693_v2 = vpop.xlane.xlu1 %2692 }
 0xc7a   :  { %3775 = vrsqrt.f32 %v2696_v10  ;;  %v2695_v33 = vmul.f32 0.03125, %v2693_v2 }
 0xc7c   :  { %v2697_v63 = vadd.f32 1e-05, %v2695_v33 }
 0xc7e   :  { %3777 = vrsqrt.f32 %v2697_v63 }
 0xc84   :  { %v3776_v62 = vpop.eup %3775 }
 0xc85   :  { %v2700_v19 = vmul.f32 %v3776_v62, %v2684_v52 }
 0xc87   :  { %v2706_v21 = vmul.f32 %v2705_v14, %v2700_v19 }
 0xc88   :  { %v3778_v58 = vpop.eup %3777 }
 0xc89   :  { %v2701_v24 = vmul.f32 %v3778_v58, %v2685_v56  ;;  %v2712_v26 = vadd.f32 %v2711_v31, %v2706_v21 }
 0xc8b   :  { %v2707_v12 = vmul.f32 %v2705_v14, %v2701_v24  ;;  %v2714_v59 = vadd.f32 %v2712_v26, %v4728_v32 }
 0xc8d   :  { %v2713_v3 = vadd.f32 %v2711_v31, %v2707_v12 }
 0xc8f   :  { %v2715_v34 = vadd.f32 %v2713_v3, %v4730_v48 }
 0xc91   :  { %v2949_v46 = vpack.c.bf16 %v2715_v34, %v2714_v59 }
 0xc93   :  { %2950 = vst [vmem:[%s5035_s21] sm:$0xff] %v2949_v46  }
 0xc94   :  { %2752 = vsyncpa [#allocation3], 1 }
 0xc95   :  { %2753 = vsyncpa [#allocation5], 1 }
 0xc96   :  { %2754 = vsyncpa [#allocation8], 1 }
 0xc97   :  { %2755 = vsyncpa [#allocation11], 1 }
 0xc98   :  { %2756 = vsyncpa [#allocation14], 1 }
 0xc99   :  { %2757 = vsyncpa [#allocation17], 1 }
 0xc9a   :  { %2758 = vsyncpa [#allocation20], 1 }
 0xc9b   :  { %2759 = vsyncpa [#allocation23], 1 }

// kernel: _forward_impl.4
= control target key start
LH: loop header
LB: loop body
LE: loop exit
PB: predicated region body
PF: predicated region fallthrough
CT: control target
= control target key end

     0   :  { %s3773_s0 = inlined_call_operand.vmem [shape: bf16[16,128], index: 0, kind: input, shape index: {}]   ;;  %s3774_s1 = inlined_call_operand.hbm [shape: bf16[32,128], index: 1, kind: input, shape index: {}]   ;;  %s3775_s2 = inlined_call_operand.vmem [shape: bf16[32,16], index: 2, kind: input, shape index: {}]   ;;  %s3776_s3 = inlined_call_operand.vmem [shape: bf16[32,16], index: 3, kind: input, shape index: {}]   ;;  %s3777_s4 = inlined_call_operand.vmem [shape: bf16[128,128], index: 4, kind: input, shape index: {}]   ;;  %s3778_s5 = inlined_call_operand.vmem [shape: bf16[128,128], index: 5, kind: input, shape index: {}]   ;;  %s3779_s6 = inlined_call_operand.hbm [shape: bf16[4,128], index: 6, kind: input, shape index: {}]   ;;  %s3780_s7 = inlined_call_operand.vmem [shape: bf16[2,384,128], index: 7, kind: input, shape index: {}]   ;;  %s3781_s8 = inlined_call_operand.vmem [shape: bf16[2,128,128], index: 8, kind: input, shape index: {}]   ;;  %s3782_s9 = inlined_call_operand.hbm [shape: bf16[2,4,128], index: 9, kind: input, shape index: {}]   ;;  %s3783_s10 = inlined_call_operand.vmem [shape: bf16[2,256,128], index: 10, kind: input, shape index: {}]   ;;  %s3784_s11 = inlined_call_operand.vmem [shape: bf16[2,128,128], index: 11, kind: input, shape index: {}]   ;;  %s3785_s12 = inlined_call_operand.hbm [shape: bf16[2,4,128], index: 12, kind: input, shape index: {}]   ;;  %s3786_s13 = inlined_call_operand.vmem [shape: bf16[16,128], index: 13, kind: output, shape index: {}]  }
   0x1   :  { %3800 = sst [smem:[#allocation14_spill]] %s3773_s0 }
   0x2   :  { %3801 = sst [smem:[#allocation15_spill]] %s3775_s2 }
   0x3   :  { %3802 = sst [smem:[#allocation16_spill]] %s3776_s3 }
   0x4   :  { %3803 = sst [smem:[#allocation17_spill]] %s3778_s5 }
   0x5   :  { %3804 = sst [smem:[#allocation18_spill]] %s3786_s13 }
   0x6   :  { %18 = vsyncpa [#allocation5], 0 }
   0x7   :  { %19 = vsyncpa [#allocation7], 0  ;;  %s3278_s25 = smov 0   ;;  %s3280_s26 = smov 0  }
   0x8   :  { %s3282_s27 = smov 0   ;;  %s3284_s28 = smov 0  }
   0x9 LB: > { %s3297_s29 = sadd.s32 4294967295, %s3198_s28   ;;  %p244_p0 = scmp.ne.s32.totalorder %s3190_s26, %s3186_s25  ;;  %s3198_s28 = sphi %s3284_s28, %s3830_s28   ;;  %s3194_s27 = sphi %s3282_s27, %s3833_s27   ;;  %s3190_s26 = sphi %s3280_s26, %s3832_s26   ;;  %s3186_s25 = sphi %s3278_s25, %s3831_s25  }
   0xa   : > { %p3789_p1 = scmp.eq.s32.totalorder %s3297_s29, 0  ;;  %p2337_p2 = scmp.ge.s32.totalorder %s3198_s28, 1 }
   0xb   : > { %p354_p3 = scmp.lt.s32.totalorder %s3198_s28, 3  ;;  %s3200_s15 = smov [#allocation4]  }
   0xc   : > { %p3306_p5 = por %p3789_p1, %p244_p0  ;;  %s369_s16 = sshll.u32 %s3200_s15, 4  ;;  %s370_s16 = int_to_ptr.vmem [resolvable:$true] %s369_s16 }
   0xd   : > { %p3310_p6 = pnand %p2337_p2, %p354_p3  ;;  %s3323_s18 = sadd.s32 1, %s3198_s28  }
   0xe   : > { %s3805_s30 = scalar_select %p3306_p5, 1, 0 }
   0xf   : > { %s3806_s14 = scalar_select %p3310_p6, 1, 0 }
  0x10   : > { %p2802_p7 = pneg %p3310_p6  ;;  %3808 = sst [smem:[#allocation13_spill]] %s3323_s18 }
  0x11   : > { %s231_s19 = sadd.s32 1, %s3194_s27  ;;  %s228_s20 = ssub.s32 %s3198_s28, %s3323_s18 }
  0x12   : > { %p3318_p8 = pnand %p2802_p7, %p3789_p1  ;;  %s3040_s23 = scalar_lea.hbm %s3774_s1, 256 }
  0x13   : > { %p3041_p9 = scmp.ne.s32.totalorder %s3774_s1, %s3040_s23  ;;  %p3047_p13 = scmp.lt.u32.totalorder %s3040_s23, %s3774_s1 }
  0x14   : > { %p3796_p10 = pneg %p3318_p8 }
  0x16   : > { %p3043_p11 = pnand %p3796_p10, %p3041_p9 }
  0x18   : > { %p3044_p12 = pneg %p3043_p11 }
  0x1a   : > { %p3049_p0 = pnand %p3047_p13, %p3044_p12 }
  0x1c   : > { %3052 = shalt.err (!%p3049_p0)
}
  0x1d   : > { %s3053_s18 = scalar_lea.vmem %s370_s16, 256  ;;  %p3061_p4 = scmp.lt.s32.totalorder %s370_s16, %s370_s16 }
  0x1e   : > { %p3054_p2 = scmp.ne.s32.totalorder %s370_s16, %s3053_s18  ;;  %p3062_p1 = scmp.lt.s32.totalorder %s3053_s18, %s3053_s18 }
  0x20   : > { %p3056_p3 = pnand %p3054_p2, %p3796_p10  ;;  %p3063_p5 = por %p3062_p1, %p3061_p4 }
  0x22   : > { %p3057_p7 = pneg %p3056_p3 }
  0x24   : > { %p3064_p6 = pnand %p3063_p5, %p3057_p7 }
  0x26   : > { %3067 = shalt.err (!%p3064_p6)
}
  0x27   : > { %s3201_s21 = smov 64   ;;  %s3202_s13 = smov 4  }
  0x28   : > { %2805 = dma.hbm_to_vmem [thread:$0]  (!%p3318_p8), %s3774_s1, 256, %s370_s16, [#allocation5], %s3201_s21, %s3201_s21, %s3202_s13  }
  0x29   : > { %p229_p1 = scmp.eq.s32.totalorder %s228_s20, 0  ;;  %p238_p4 = scmp.ne.s32.totalorder %s3194_s27, %s3190_s26 }
  0x2a   : > { %p239_p5 = scmp.eq.s32.totalorder %s3198_s28, 0  ;;  %p2818_p6 = scmp.lt.s32.totalorder %s3198_s28, 2 }
  0x2b   : > { %s3355_s18 = scalar_select %p229_p1, %s3194_s27, %s231_s19  }
  0x2c   : > { %p240_p9 = por %p239_p5, %p238_p4  ;;  %s422_s24 = sand.u32 1, %s3198_s28  }
  0x2d   : > { %s424_s25 = sand.u32 1, %s3194_s27   ;;  %s3795_s3 = sshll.u32 %s3198_s28, 5 }
  0x2e   : > { %s3359_s15 = sshll.u32 %s424_s25, 1  ;;  %s3367_s5 = scalar_lea.hbm %s3782_s9, %s3795_s3 }
  0x2f   : > { %s426_s16 = scalar_lea.vmem [#allocation8], %s3359_s15  ;;  %p3370_p11 = pnand %p2818_p6, %p240_p9 }
  0x30   : > { %s433_s19 = sshll.u32 %s426_s16, 4  ;;  %s3203_s21 = smov [#allocation6]   ;;  %s3374_s19 = int_to_ptr.vmem [resolvable:$true] %s433_s19 }
  0x31   : > { %s3809_s20 = scalar_select %p3370_p11, 1, 0 }
  0x32   : > { %s3376_s13 = sshll.u32 %s3203_s21, 4  ;;  %s3378_s0 = scalar_lea.sflag [#allocation5], %s422_s24  ;;  %s396_s13 = int_to_ptr.vmem [resolvable:$true] %s3376_s13 }
  0x33   : > { %s3068_s2 = scalar_lea.hbm %s3367_s5, 32  ;;  %p3797_p13 = pneg %p3370_p11 }
  0x34   : > { %p3069_p12 = scmp.ne.s32.totalorder %s3367_s5, %s3068_s2  ;;  %s3073_s25 = scalar_lea.hbm %s3782_s9, 64 }
  0x35   : > { %p3074_p3 = scmp.lt.u32.totalorder %s3367_s5, %s3782_s9  ;;  %p3075_p7 = scmp.lt.u32.totalorder %s3073_s25, %s3068_s2 }
  0x36   : > { %p3071_p0 = pnand %p3797_p13, %p3069_p12  ;;  %p3077_p4 = scmp.lt.u32.totalorder %s3068_s2, %s3367_s5 }
  0x37   : > { %p3076_p1 = por %p3075_p7, %p3074_p3 }
  0x38   : > { %p3072_p2 = pneg %p3071_p0 }
  0x39   : > { %p3078_p5 = por %p3077_p4, %p3076_p1 }
  0x3b   : > { %p3079_p6 = pnand %p3078_p5, %p3072_p2 }
  0x3d   : > { %3082 = shalt.err (!%p3079_p6)
}
  0x3e   : > { %s3083_s24 = scalar_lea.vmem %s3374_s19, 32  ;;  %s3204_s21 = smov [#allocation8]  }
  0x3f   : > { %p3084_p9 = scmp.ne.s32.totalorder %s3374_s19, %s3083_s24  ;;  %s3088_s22 = sshll.u32 %s3204_s21, 4  ;;  %s3089_s22 = int_to_ptr.vmem [resolvable:$false] %s3088_s22 }
  0x40   : > { %s3090_s3 = scalar_lea.vmem %s3089_s22, 64  ;;  %p3091_p10 = scmp.lt.s32.totalorder %s3374_s19, %s3089_s22 }
  0x41   : > { %p3086_p12 = pnand %p3084_p9, %p3797_p13  ;;  %p3092_p3 = scmp.lt.s32.totalorder %s3090_s3, %s3083_s24 }
  0x43   : > { %p3087_p0 = pneg %p3086_p12  ;;  %p3093_p7 = por %p3092_p3, %p3091_p10 }
  0x45   : > { %p3094_p1 = pnand %p3093_p7, %p3087_p0 }
  0x47   : > { %3097 = shalt.err (!%p3094_p1)
}
  0x48   : > { %2812 = dma.hbm_to_vmem [thread:$0]  (!%p3370_p11), %s3367_s5, 32, %s3374_s19, %s3378_s0  }
  0x49   : > { %s3098_s25 = scalar_lea.hbm %s3779_s6, 32  ;;  %p3810_p10 = pneg %p3318_p8 }
  0x4a   : > { %p3099_p2 = scmp.ne.s32.totalorder %s3779_s6, %s3098_s25  ;;  %p3105_p6 = scmp.lt.u32.totalorder %s3098_s25, %s3779_s6 }
  0x4c   : > { %p3101_p4 = pnand %p3099_p2, %p3810_p10 }
  0x4e   : > { %p3102_p5 = pneg %p3101_p4 }
  0x50   : > { %p3107_p9 = pnand %p3105_p6, %p3102_p5 }
  0x52   : > { %3110 = shalt.err (!%p3107_p9)
}
  0x53   : > { %s3111_s5 = scalar_lea.vmem %s396_s13, 32  ;;  %p3811_p0 = pmov %p3810_p10 }
  0x54   : > { %p3112_p12 = scmp.ne.s32.totalorder %s396_s13, %s3111_s5  ;;  %p3119_p1 = scmp.lt.s32.totalorder %s396_s13, %s396_s13 }
  0x55   : > { %p3120_p13 = scmp.lt.s32.totalorder %s3111_s5, %s3111_s5 }
  0x56   : > { %p3114_p3 = pnand %p3112_p12, %p3811_p0 }
  0x57   : > { %p3121_p11 = por %p3120_p13, %p3119_p1 }
  0x58   : > { %p3115_p7 = pneg %p3114_p3 }
  0x5a   : > { %p3122_p2 = pnand %p3121_p11, %p3115_p7 }
  0x5c   : > { %3125 = shalt.err (!%p3122_p2)
}
  0x5d   : > { %2808 = dma.hbm_to_vmem [thread:$0]  (!%p3318_p8), %s3779_s6, 32, %s396_s13, [#allocation7]  }
  0x5e   : > { %s3812_s2 = sshll.u32 %s3198_s28, 5  ;;  %s460_s21 = scalar_lea.vmem [#allocation9], %s3359_s15 }
  0x5f   : > { %s3432_s16 = scalar_lea.hbm %s3785_s12, %s3812_s2  ;;  %s467_s24 = sshll.u32 %s460_s21, 4  ;;  %s468_s24 = int_to_ptr.vmem [resolvable:$true] %s467_s24 }
  0x60   : > { %s3126_s17 = scalar_lea.hbm %s3432_s16, 32  ;;  %p3813_p13 = scmp.ne.s32.totalorder %s3809_s20, 0 }
  0x61   : > { %p3127_p11 = scmp.ne.s32.totalorder %s3432_s16, %s3126_s17  ;;  %s3131_s22 = scalar_lea.hbm %s3785_s12, 64 }
  0x62   : > { %p3814_p10 = pneg %p3813_p13  ;;  %p3132_p8 = scmp.lt.u32.totalorder %s3432_s16, %s3785_s12 }
  0x63   : > { %p3133_p6 = scmp.lt.u32.totalorder %s3131_s22, %s3126_s17  ;;  %p3135_p12 = scmp.lt.u32.totalorder %s3126_s17, %s3432_s16 }
  0x64   : > { %p3129_p4 = pnand %p3127_p11, %p3814_p10 }
  0x65   : > { %p3134_p9 = por %p3133_p6, %p3132_p8 }
  0x66   : > { %p3130_p5 = pneg %p3129_p4 }
  0x67   : > { %p3136_p0 = por %p3135_p12, %p3134_p9 }
  0x69   : > { %p3137_p3 = pnand %p3136_p0, %p3130_p5 }
  0x6b   : > { %3140 = shalt.err (!%p3137_p3)
}
  0x6c   : > { %s3141_s15 = scalar_lea.vmem %s468_s24, 32  ;;  %p3815_p1 = pmov %p3814_p10 }
  0x6d   : > { %p3142_p7 = scmp.ne.s32.totalorder %s468_s24, %s3141_s15  ;;  %s3205_s3 = smov [#allocation9]  }
  0x6e   : > { %s3146_s2 = sshll.u32 %s3205_s3, 4  ;;  %s3147_s2 = int_to_ptr.vmem [resolvable:$false] %s3146_s2 }
  0x6f   : > { %p3144_p2 = pnand %p3142_p7, %p3815_p1  ;;  %s3148_s23 = scalar_lea.vmem %s3147_s2, 64 }
  0x70   : > { %p3149_p10 = scmp.lt.s32.totalorder %s468_s24, %s3147_s2  ;;  %p3150_p4 = scmp.lt.s32.totalorder %s3148_s23, %s3141_s15 }
  0x71   : > { %p3145_p11 = pneg %p3144_p2 }
  0x72   : > { %p3151_p6 = por %p3150_p4, %p3149_p10 }
  0x74   : > { %p3152_p8 = pnand %p3151_p6, %p3145_p11 }
  0x76   : > { %3155 = shalt.err (!%p3152_p8)
}
  0x77   : > { %2815 = dma.hbm_to_vmem [thread:$0]  (!%p3813_p13), %s3432_s16, 32, %s468_s24, %s3378_s0  }
  0x78   : > { %p3816_p5 = scmp.ne.s32.totalorder %s3806_s14, 0 }
  0x79   : > { %p3817_p9 = scmp.eq.s32.totalorder (!%p3816_p5), %s3297_s29, 0 }
  0x7a   : > { %476 = sbr.rel (%p3816_p5) target bundleno = 3157 (0xc55), region = 72 }
  0x81   : > { %3173 = dma.done.wait (%p3817_p9), [#allocation5], 256   ;;  %p3818_p12 = pmov %p3817_p9 }
  0x82   : > { %p3819_p0 = pmov %p3817_p9 }
  0x83   : > { %3175 = vsyncadd (%p3818_p12), [#allocation5], 4294967040 }
  0x84   : > { %3177 = dma.done.wait (%p3819_p0), [#allocation7], 32   ;;  %p3820_p3 = pmov %p3819_p0 }
  0x85   : > { %s486_s20 = sand.u32 1, %s3297_s29   ;;  %s488_s0 = sand.u32 1, %s3190_s26  }
  0x86   : > { %3179 = vsyncadd (%p3820_p3), [#allocation7], 4294967264  ;;  %s3467_s25 = sshll.u32 %s488_s0, 1  ;;  %s487_s14 = scalar_lea.sflag [#allocation5], %s486_s20 }
  0x87   : > { %s490_s16 = scalar_lea.vmem [#allocation8], %s3467_s25  ;;  %p3821_p13 = scmp.ne.s32.totalorder %s3805_s30, 0 }
  0x89   : > { %3181 = dma.done.wait (%p3821_p13), %s487_s14, 64  }
  0x8a   : > { %3183 = vsyncadd (%p3821_p13), %s487_s14, 4294967232  ;;  %p562_p7 = scmp.lt.s32.totalorder %s3297_s29, 1  ;;  %v583_v0 = vlaneseq  ;;  %v3206_v2 = vmov 0.0   ;;  %p3822_p1 = scmp.ne.s32.totalorder %s3297_s29, 0 }
  0x8b   : > { %v2860_v4 = vld [vmem:[%s3777_s4] sm:$0xff] (!%p3822_p1)   ;;  %v2861_v5 = vld [vmem:[%s3777_s4 + $0x8] sm:$0xff] (!%p3822_p1)   ;;  %v2862_v6 = vld [vmem:[%s3777_s4 + $0x10] sm:$0xff] (!%p3822_p1)   ;;  %s3823_s3 = sld [smem:[#allocation17_spill]] (!%p3822_p1)  ;;  %s3824_s30 = sld [smem:[#allocation14_spill]] (!%p3822_p1) }
  0x8c   : > { %s563_s21 = scalar_select %p562_p7, %s3297_s29, 1  ;;  %v584_v1 = vand.u32 127, %v583_v0 }
  0x8d   : > { %591 = sbr.rel (%p3822_p1) target bundleno = 986 (0x3da), region = 92  ;;  %2581 = vmatprep.subr.bf16.mxu0 (!%p3822_p1), %v2860_v4  ;;  %v2863_v7 = vld [vmem:[%s3777_s4 + $0x18] sm:$0xff] (!%p3822_p1)   ;;  %v2868_v8 = vld [vmem:[#allocation4] sm:$0xff] (!%p3822_p1)   ;;  %v2864_v9 = vld [vmem:[%s3777_s4 + $0x20] sm:$0xff] (!%p3822_p1)   ;;  %v3552_v22 = vshrl.u32 (!%p3822_p1), %v583_v0, 7 }
  0x8e   : > { %s2789_s24 = smul.u32 192, %s563_s21  ;;  %s2467_s17 = sshll.u32 %s563_s21, 6  ;;  %vm585_vm0 = vcmp.lt.s32.totalorder %v584_v1, 32  ;;  %2582 = vmatpush3.bf16.msra.mxu0 (!%p3822_p1), %v2860_v4  ;;  %2597 = vmatprep.mubr.bf16.mxu0 (!%p3822_p1), %v2868_v8  ;;  %v2865_v10 = vld [vmem:[%s3777_s4 + $0x28] sm:$0xff] (!%p3822_p1)   ;;  %v2866_v11 = vld [vmem:[%s3777_s4 + $0x30] sm:$0xff] (!%p3822_p1)   ;;  %v2867_v12 = vld [vmem:[%s3777_s4 + $0x38] sm:$0xff] (!%p3822_p1)  }
  0x8f   : > { %s3480_s22 = scalar_lea.vmem %s3781_s8, %s2467_s17  ;;  %s2468_s5 = sshll.u32 %s563_s21, 7  ;;  %v3483_v3 = vsel %vm585_vm0, 1.0, %v3206_v2  ;;  %2583 = vmatprep.subr.bf16.mxu0 (!%p3822_p1), %v2861_v5  ;;  %v2869_v13 = vld [vmem:[#allocation4 + $0x8] sm:$0xff] (!%p3822_p1)   ;;  %v596_v23 = vld [vmem:[#allocation6] sm:$0x3] (!%p3822_p1)  ;;  %v616_v25 = vsub.s32 (!%p3822_p1), 0, %v3552_v22 }
  0x90   : > { %s3488_s15 = scalar_lea.vmem %s3780_s7, %s2789_s24  ;;  %s3493_s23 = scalar_lea.vmem %s3783_s10, %s2468_s5  ;;  %v3554_v24 = vunpack.c.l.bf16 (!%p3822_p1), %v596_v23  ;;  %v775_v57 = vsub.s32 (!%p3822_p1), 1, %v3552_v22 }
  0x91   : > { %s3498_s14 = scalar_lea.vmem %s3784_s11, %s2467_s17  ;;  %s499_s21 = scalar_lea.vmem [#allocation9], %s3467_s25  ;;  %v2870_v14 = vld [vmem:[%s3823_s3] sm:$0xff] (!%p3822_p1)   ;;  %v2871_v15 = vld [vmem:[%s3823_s3 + $0x8] sm:$0xff] (!%p3822_p1)   ;;  %v2872_v16 = vld [vmem:[%s3823_s3 + $0x10] sm:$0xff] (!%p3822_p1)  }
  0x92   : > { %2584 = vmatpush3.bf16.msra.mxu0 (!%p3822_p1), %v2861_v5  ;;  %2601 = vmatprep.subr.bf16.mxu1 (!%p3822_p1), %v2870_v14  ;;  %v2873_v17 = vld [vmem:[%s3823_s3 + $0x18] sm:$0xff] (!%p3822_p1)   ;;  %v2874_v18 = vld [vmem:[%s3823_s3 + $0x20] sm:$0xff] (!%p3822_p1)   ;;  %v2875_v19 = vld [vmem:[%s3823_s3 + $0x28] sm:$0xff] (!%p3822_p1)   ;;  %v617_v26 = vrot.slane (!%p3822_p1), %v3554_v24, %v616_v25  ;;  %v776_v58 = vrot.slane (!%p3822_p1), %v3554_v24, %v775_v57 }
  0x93   : > { %2585 = vmatprep.subr.bf16.mxu0 (!%p3822_p1), %v2862_v6  ;;  %2602 = vmatpush3.bf16.msra.mxu1 (!%p3822_p1), %v2870_v14  ;;  %v2876_v20 = vld [vmem:[%s3823_s3 + $0x30] sm:$0xff] (!%p3822_p1)   ;;  %v2877_v21 = vld [vmem:[%s3823_s3 + $0x38] sm:$0xff] (!%p3822_p1)  }
  0x94   : > { %2603 = vmatprep.subr.bf16.mxu1 %v2871_v15 }
  0x96   : > { %2586 = vmatpush3.bf16.msra.mxu0 %v2862_v6 }
  0x97   : > { %2587 = vmatprep.subr.bf16.mxu0 %v2863_v7  ;;  %2604 = vmatpush3.bf16.msra.mxu1 %v2871_v15 }
  0x98   : > { %2605 = vmatprep.subr.bf16.mxu1 %v2872_v16 }
  0x9a   : > { %2588 = vmatpush3.bf16.msra.mxu0 %v2863_v7 }
  0x9b   : > { %2589 = vmatprep.subr.bf16.mxu0 %v2864_v9  ;;  %2606 = vmatpush3.bf16.msra.mxu1 %v2872_v16 }
  0x9c   : > { %2607 = vmatprep.subr.bf16.mxu1 %v2873_v17 }
  0x9e   : > { %2590 = vmatpush3.bf16.msra.mxu0 %v2864_v9 }
  0x9f   : > { %2591 = vmatprep.subr.bf16.mxu0 %v2865_v10  ;;  %2608 = vmatpush3.bf16.msra.mxu1 %v2873_v17 }
  0xa0   : > { %2609 = vmatprep.subr.bf16.mxu1 %v2874_v18 }
  0xa2   : > { %2592 = vmatpush3.bf16.msra.mxu0 %v2865_v10 }
  0xa3   : > { %2593 = vmatprep.subr.bf16.mxu0 %v2866_v11  ;;  %2610 = vmatpush3.bf16.msra.mxu1 %v2874_v18 }
  0xa4   : > { %2611 = vmatprep.subr.bf16.mxu1 %v2875_v19 }
  0xa6   : > { %2594 = vmatpush3.bf16.msra.mxu0 %v2866_v11 }
  0xa7   : > { %2595 = vmatprep.subr.bf16.mxu0 %v2867_v12  ;;  %2612 = vmatpush3.bf16.msra.mxu1 %v2875_v19 }
  0xa8   : > { %2613 = vmatprep.subr.bf16.mxu1 %v2876_v20 }
  0xaa   : > { %2596 = vmatpush3.bf16.msra.mxu0 %v2867_v12 }
  0xab   : > { %2614 = vmatpush3.bf16.msra.mxu1 %v2876_v20 }
  0xac   : > { %2615 = vmatprep.subr.bf16.mxu1 %v2877_v21 }
  0xad   : > { %2598 = vmatmul.mubr.bf16.vlgmr.msra.gmra.mrb[0].mxu0 %v2869_v13 }
  0xaf   : > { %2616 = vmatpush3.bf16.msra.mxu1 %v2877_v21 }
 0x180   : > { %v2599_v27 = vpop.f32.mrb[0].mxu0 }
 0x181   : > { %v721_v28 = vadd.f32 %v2599_v27, %v617_v26  ;;  %v712_v29 = vpop.f32.mrb[1].mxu0 }
 0x182   : > { %v713_v30 = vadd.f32 %v712_v29, %v617_v26  ;;  %v2600_v31 = vpop.f32.mrb[2].mxu0 }
 0x183   : > { %v2371_v32 = vmul.f32 -1.442695, %v721_v28  ;;  %v724_v33 = vadd.f32 %v2600_v31, %v617_v26  ;;  %v715_v34 = vpop.f32.mrb[3].mxu0 }
 0x184   : > { %v2369_v35 = vmul.f32 -1.442695, %v713_v30  ;;  %v716_v36 = vadd.f32 %v715_v34, %v617_v26 }
 0x185   : > { %2878 = vpow2.f32 %v2371_v32  ;;  %v2372_v37 = vmul.f32 -1.442695, %v724_v33 }
 0x186   : > { %2880 = vpow2.f32 %v2369_v35  ;;  %v2370_v38 = vmul.f32 -1.442695, %v716_v36 }
 0x187   : > { %2882 = vpow2.f32 %v2372_v37 }
 0x188   : > { %2884 = vpow2.f32 %v2370_v38 }
 0x18f   : > { %v2879_v39 = vpop.eup %2878 }
 0x190   : > { %v2881_v40 = vpop.eup %2880  ;;  %v741_v41 = vadd.f32 1.0, %v2879_v39 }
 0x191   : > { %v2883_v42 = vpop.eup %2882  ;;  %v739_v43 = vadd.f32 1.0, %v2881_v40 }
 0x192   : > { %v2885_v44 = vpop.eup %2884  ;;  %2886 = vrcp.f32 %v741_v41  ;;  %v742_v45 = vadd.f32 1.0, %v2883_v42 }
 0x193   : > { %2888 = vrcp.f32 %v739_v43  ;;  %v740_v46 = vadd.f32 1.0, %v2885_v44 }
 0x194   : > { %2890 = vrcp.f32 %v742_v45 }
 0x195   : > { %2892 = vrcp.f32 %v740_v46 }
 0x19c   : > { %v2887_v47 = vpop.eup %2886 }
 0x19d   : > { %v2889_v48 = vpop.eup %2888  ;;  %v753_v51 = vmul.f32 %v2887_v47, %v721_v28 }
 0x19e   : > { %v2891_v49 = vpop.eup %2890  ;;  %v751_v53 = vmul.f32 %v2889_v48, %v713_v30  ;;  %v2473_v48 = vld [vmem:[%s3824_s30] sm:$0xff]  }
 0x19f   : > { %v2893_v50 = vpop.eup %2892  ;;  %v754_v52 = vmul.f32 %v2891_v49, %v724_v33  ;;  %v2474_v49 = vunpack.c.l.bf16 %v2473_v48 }
 0x1a0   : > { %v752_v54 = vmul.f32 %v2893_v50, %v716_v36  ;;  %v2475_v50 = vunpack.c.h.bf16 %v2473_v48 }
 0x1a1   : > { %v756_v55 = vpack.c.bf16 %v754_v52, %v753_v51  ;;  %974 = vst [vmem:[#allocation2] sm:$0xff] %v2474_v49 }
 0x1a2   : > { %v755_v56 = vpack.c.bf16 %v752_v54, %v751_v53  ;;  %975 = vst [vmem:[#allocation2 + $0x8] sm:$0xff] %v2475_v50 }
 0x1a4   : > { %2617 = vmatprep.mubr.bf16.mxu1 %v755_v56 }
 0x1a5   : > { %2618 = vmatmul.mubr.bf16.vlgmr.msra.gmra.mrb[0].mxu1 %v756_v55 }
 0x278   : > { %v2619_v59 = vpop.f32.mrb[0].mxu1 }
 0x279   : > { %v868_v60 = vadd.f32 %v2619_v59, %v776_v58  ;;  %v859_v61 = vpop.f32.mrb[1].mxu1 }
 0x27a   : > { %v860_v62 = vadd.f32 %v859_v61, %v776_v58  ;;  %v2620_v63 = vpop.f32.mrb[2].mxu1 }
 0x27b   : > { %v2383_v1 = vmul.f32 -1.442695, %v868_v60  ;;  %v871_v4 = vadd.f32 %v2620_v63, %v776_v58  ;;  %v862_v5 = vpop.f32.mrb[3].mxu1 }
 0x27c   : > { %v2381_v6 = vmul.f32 -1.442695, %v860_v62  ;;  %v863_v7 = vadd.f32 %v862_v5, %v776_v58 }
 0x27d   : > { %2894 = vpow2.f32 %v2383_v1  ;;  %v2384_v8 = vmul.f32 -1.442695, %v871_v4  ;;  %v960_v1 = vsub.s32 3, %v3552_v22 }
 0x27e   : > { %2896 = vpow2.f32 %v2381_v6  ;;  %v2382_v9 = vmul.f32 -1.442695, %v863_v7 }
 0x27f   : > { %2898 = vpow2.f32 %v2384_v8  ;;  %v961_v6 = vrot.slane %v3554_v24, %v960_v1 }
 0x280   : > { %2900 = vpow2.f32 %v2382_v9 }
 0x287   : > { %v2895_v10 = vpop.eup %2894 }
 0x288   : > { %v2897_v11 = vpop.eup %2896  ;;  %v888_v12 = vadd.f32 1.0, %v2895_v10 }
 0x289   : > { %v2899_v13 = vpop.eup %2898  ;;  %v886_v14 = vadd.f32 1.0, %v2897_v11 }
 0x28a   : > { %v2901_v15 = vpop.eup %2900  ;;  %2902 = vrcp.f32 %v888_v12  ;;  %v889_v16 = vadd.f32 1.0, %v2899_v13 }
 0x28b   : > { %2904 = vrcp.f32 %v886_v14  ;;  %v887_v17 = vadd.f32 1.0, %v2901_v15 }
 0x28c   : > { %2906 = vrcp.f32 %v889_v16 }
 0x28d   : > { %2908 = vrcp.f32 %v887_v17 }
 0x294   : > { %v2903_v18 = vpop.eup %2902 }
 0x295   : > { %v2905_v19 = vpop.eup %2904  ;;  %v900_v20 = vmul.f32 %v2903_v18, %v868_v60 }
 0x296   : > { %v2907_v21 = vpop.eup %2906  ;;  %v898_v23 = vmul.f32 %v2905_v19, %v860_v62  ;;  %v952_v62 = vsub.s32 2, %v3552_v22 }
 0x297   : > { %v2909_v25 = vpop.eup %2908  ;;  %906 = vadd.xlane.f32.xlu1 %v900_v20  ;;  %v901_v26 = vmul.f32 %v2907_v21, %v871_v4 }
 0x298   : > { %902 = vadd.xlane.f32.xlu0 %v898_v23  ;;  %v899_v27 = vmul.f32 %v2909_v25, %v863_v7  ;;  %v953_v4 = vrot.slane %v3554_v24, %v952_v62 }
 0x29b   : > { %908 = vadd.xlane.f32.xlu1 %v901_v26 }
 0x29c   : > { %904 = vadd.xlane.f32.xlu0 %v899_v27 }
 0x324   : > { %v907_v28 = vpop.xlane.xlu1 %906 }
 0x325   : > { %v912_v29 = vmul.f32 0.03125, %v907_v28  ;;  %v903_v30 = vpop.xlane.xlu0 %902 }
 0x326   : > { %v910_v31 = vmul.f32 0.03125, %v903_v30 }
 0x327   : > { %v916_v32 = vsub.f32 %v900_v20, %v912_v29 }
 0x328   : > { %v914_v33 = vsub.f32 %v898_v23, %v910_v31  ;;  %v909_v34 = vpop.xlane.xlu1 %908 }
 0x329   : > { %v913_v35 = vmul.f32 0.03125, %v909_v34  ;;  %v905_v36 = vpop.xlane.xlu0 %904  ;;  %v920_v42 = vmul.f32 %v3483_v3, %v916_v32 }
 0x32a   : > { %v911_v37 = vmul.f32 0.03125, %v905_v36  ;;  %v918_v38 = vmul.f32 %v3483_v3, %v914_v33 }
 0x32b   : > { %v917_v39 = vsub.f32 %v901_v26, %v913_v35  ;;  %v924_v44 = vmul.f32 %v920_v42, %v920_v42 }
 0x32c   : > { %v915_v40 = vsub.f32 %v899_v27, %v911_v37  ;;  %v922_v41 = vmul.f32 %v918_v38, %v918_v38 }
 0x32d   : > { %v921_v46 = vmul.f32 %v3483_v3, %v917_v39 }
 0x32e   : > { %926 = vadd.xlane.f32.xlu0 %v922_v41  ;;  %v919_v43 = vmul.f32 %v3483_v3, %v915_v40 }
 0x32f   : > { %v925_v47 = vmul.f32 %v921_v46, %v921_v46 }
 0x330   : > { %v923_v45 = vmul.f32 %v919_v43, %v919_v43 }
 0x332   : > { %930 = vadd.xlane.f32.xlu0 %v924_v44  ;;  %928 = vadd.xlane.f32.xlu1 %v923_v45 }
 0x336   : > { %932 = vadd.xlane.f32.xlu1 %v925_v47 }
 0x3bb   : > { %v927_v51 = vpop.xlane.xlu0 %926 }
 0x3bc   : > { %v934_v52 = vmul.f32 0.03125, %v927_v51 }
 0x3be   : > { %v938_v53 = vadd.f32 1e-05, %v934_v52 }
 0x3bf   : > { %v929_v54 = vpop.xlane.xlu1 %928  ;;  %v931_v55 = vpop.xlane.xlu0 %930 }
 0x3c0   : > { %2910 = vrsqrt.f32 %v938_v53  ;;  %v935_v56 = vmul.f32 0.03125, %v929_v54  ;;  %v936_v57 = vmul.f32 0.03125, %v931_v55 }
 0x3c2   : > { %v939_v58 = vadd.f32 1e-05, %v935_v56  ;;  %v940_v59 = vadd.f32 1e-05, %v936_v57 }
 0x3c3   : > { %v933_v60 = vpop.xlane.xlu1 %932 }
 0x3c4   : > { %2912 = vrsqrt.f32 %v939_v58  ;;  %v937_v61 = vmul.f32 0.03125, %v933_v60 }
 0x3c5   : > { %2914 = vrsqrt.f32 %v940_v59 }
 0x3c6   : > { %v941_v63 = vadd.f32 1e-05, %v937_v61 }
 0x3c8   : > { %2916 = vrsqrt.f32 %v941_v63 }
 0x3ca   : > { %v2911_v5 = vpop.eup %2910 }
 0x3cb   : > { %v946_v7 = vmul.f32 %v2911_v5, %v914_v33 }
 0x3cd   : > { %v954_v8 = vmul.f32 %v953_v4, %v946_v7 }
 0x3ce   : > { %v2913_v9 = vpop.eup %2912 }
 0x3cf   : > { %v2915_v10 = vpop.eup %2914  ;;  %v962_v11 = vadd.f32 %v961_v6, %v954_v8  ;;  %v947_v12 = vmul.f32 %v2913_v9, %v915_v40 }
 0x3d0   : > { %v948_v13 = vmul.f32 %v2915_v10, %v916_v32 }
 0x3d1   : > { %966 = vst [vmem:[#allocation3] sm:$0xff] %v962_v11  ;;  %v955_v14 = vmul.f32 %v953_v4, %v947_v12 }
 0x3d2   : > { %v2917_v15 = vpop.eup %2916  ;;  %v956_v16 = vmul.f32 %v953_v4, %v948_v13 }
 0x3d3   : > { %v963_v17 = vadd.f32 %v961_v6, %v955_v14  ;;  %v949_v18 = vmul.f32 %v2917_v15, %v917_v39 }
 0x3d4   : > { %v964_v22 = vadd.f32 %v961_v6, %v956_v16 }
 0x3d5   : > { %967 = vst [vmem:[#allocation3 + $0x8] sm:$0xff] %v963_v17  ;;  %v957_v19 = vmul.f32 %v953_v4, %v949_v18 }
 0x3d6   : > { %968 = vst [vmem:[#allocation3 + $0x10] sm:$0xff] %v964_v22 }
 0x3d7   : > { %v965_v20 = vadd.f32 %v961_v6, %v957_v19 }
 0x3d9   : > { %969 = vst [vmem:[#allocation3 + $0x18] sm:$0xff] %v965_v20 }
 0x3da PF: > { %v976_v24 = vld [vmem:[#allocation2] sm:$0xff]  ;;  %v977_v21 = vld [vmem:[#allocation2 + $0x8] sm:$0xff]  ;;  %vm1007_vm1 = vcmask 130048   ;;  %s3825_s17 = sld [smem:[#allocation15_spill]]  ;;  %s3826_s28 = sld [smem:[#allocation16_spill]]  ;;  %v2924_v30 = vld [vmem:[%s3488_s15 + $0x50] sm:$0xff]  }
 0x3db   : > { %v3571_v23 = vpack.c.bf16 %v977_v21, %v976_v24  ;;  %v2922_v28 = vld [vmem:[%s3488_s15 + $0x40] sm:$0xff]   ;;  %v2923_v29 = vld [vmem:[%s3488_s15 + $0x48] sm:$0xff]   ;;  %v2925_v32 = vld [vmem:[%s3488_s15 + $0x58] sm:$0xff]   ;;  %v3646_v18 = vshrl.u32 %v583_v0, 7  ;;  %vm3207_vm2 = vmmov 0   ;;  %vm1746_vm3 = vcmask 261120  }
 0x3dc   : > { %2633 = vmatprep.subr.bf16.mxu0 %v2922_v28  ;;  %v2926_v33 = vld [vmem:[%s3488_s15 + $0x60] sm:$0xff]   ;;  %v2927_v34 = vld [vmem:[%s3488_s15 + $0x68] sm:$0xff]   ;;  %v2928_v35 = vld [vmem:[%s3488_s15 + $0x70] sm:$0xff]   ;;  %p2462_p2 = scmp.ne.s32.totalorder %s3297_s29, 1 }
 0x3dd   : > { %2621 = vmatprep.subr.bf16.mxu1 %v3571_v23  ;;  %2634 = vmatpush3.bf16.msra.mxu0 %v2922_v28  ;;  %v2929_v36 = vld [vmem:[%s3488_s15 + $0x78] sm:$0xff]   ;;  %v2930_v37 = vld [vmem:[%s3488_s15] sm:$0xff]   ;;  %v2931_v44 = vld [vmem:[%s3488_s15 + $0x8] sm:$0xff]   ;;  %v1477_v20 = vsub.s32 0, %v3646_v18 }
 0x3de   : > { %2622 = vmatpush3.bf16.msra.mxu1 %v3571_v23  ;;  %2635 = vmatprep.subr.bf16.mxu0 %v2923_v29  ;;  %v2932_v46 = vld [vmem:[%s3488_s15 + $0x10] sm:$0xff]   ;;  %v2933_v52 = vld [vmem:[%s3488_s15 + $0x18] sm:$0xff]   ;;  %v2934_v53 = vld [vmem:[%s3488_s15 + $0x20] sm:$0xff]  }
 0x3df   : > { %2627 = vmatprep.subr.bf16.mxu1 %v3571_v23  ;;  %v2935_v54 = vld [vmem:[%s3488_s15 + $0x28] sm:$0xff]   ;;  %v2936_v55 = vld [vmem:[%s3488_s15 + $0x30] sm:$0xff]   ;;  %v2937_v56 = vld [vmem:[%s3488_s15 + $0x38] sm:$0xff]  }
 0x3e0   : > { %v2918_v25 = vld [vmem:[%s3825_s17] sm:$0xff]   ;;  %v2919_v26 = vld [vmem:[%s3825_s17 + $0x8] sm:$0xff]   ;;  %s3827_s24 = smov %s3826_s28  ;;  %v3616_v58 = vld [vmem:[#allocation3] sm:$0xff] }
 0x3e1   : > { %2623 = vmatprep.mubr.msk.bf16.mxu1 %vm1007_vm1, %v2918_v25  ;;  %v3585_v27 = vld [vmem:[%s3826_s28] sm:$0xff]   ;;  %v3598_v31 = vld [vmem:[%s3827_s24 + $0x8] sm:$0xff]   ;;  %2636 = vmatpush3.bf16.msra.mxu0 %v2923_v29  ;;  %v3618_v59 = vld [vmem:[#allocation3 + $0x8] sm:$0xff] }
 0x3e2   : > { %2624 = vmatmul.mubr.msk.bf16.vlgmr.msra.gmra.mrb[0].mxu1 %vm1007_vm1, %v2919_v26  ;;  %2637 = vmatprep.subr.bf16.mxu0 %v2924_v30  ;;  %v2938_v57 = vld [vmem:[%s3488_s15 + $0x80] sm:$0xff]   ;;  %v995_v60 = vpack.c.bf16 %v3618_v59, %v3616_v58  ;;  %v2939_v61 = vld [vmem:[%s3488_s15 + $0x88] sm:$0xff]   ;;  %v2940_v62 = vld [vmem:[%s3488_s15 + $0x90] sm:$0xff]  }
 0x3e3   : > { %2628 = vmatpush3.bf16.msra.mxu1 %v3571_v23  ;;  %2629 = vmatprep.mubr.msk.bf16.mxu1 %vm1007_vm1, %v3585_v27  ;;  %v2941_v63 = vld [vmem:[%s3488_s15 + $0x98] sm:$0xff]   ;;  %v2942_v1 = vld [vmem:[%s3488_s15 + $0xa0] sm:$0xff]   ;;  %v2943_v4 = vld [vmem:[%s3488_s15 + $0xa8] sm:$0xff]  }
 0x3e4   : > { %v2944_v5 = vld [vmem:[%s3488_s15 + $0xb0] sm:$0xff]   ;;  %v2945_v6 = vld [vmem:[%s3488_s15 + $0xb8] sm:$0xff]   ;;  %v3629_v7 = vld [vmem:[#allocation3 + $0x10] sm:$0xff] }
 0x3e5   : > { %2638 = vmatpush3.bf16.msra.mxu0 %v2924_v30  ;;  %v3631_v8 = vld [vmem:[#allocation3 + $0x18] sm:$0xff]  ;;  %v2946_v10 = vld [vmem:[%s3480_s22] sm:$0xff]   ;;  %v2948_v12 = vld [vmem:[%s3480_s22 + $0x10] sm:$0xff]  }
 0x3e6   : > { %2639 = vmatprep.subr.bf16.mxu0 %v2925_v32  ;;  %v996_v9 = vpack.c.bf16 %v3631_v8, %v3629_v7  ;;  %2693 = vmatprep.subr.bf16.mxu1 %v2946_v10  ;;  %v2947_v11 = vld [vmem:[%s3480_s22 + $0x8] sm:$0xff]   ;;  %v2949_v13 = vld [vmem:[%s3480_s22 + $0x18] sm:$0xff]   ;;  %v2950_v14 = vld [vmem:[%s3480_s22 + $0x20] sm:$0xff]  }
 0x3e7   : > { %v2951_v15 = vld [vmem:[%s3480_s22 + $0x28] sm:$0xff]   ;;  %v2952_v16 = vld [vmem:[%s3480_s22 + $0x30] sm:$0xff]   ;;  %v2953_v17 = vld [vmem:[%s3480_s22 + $0x38] sm:$0xff]   ;;  %s3828_s22 = sld [smem:[#allocation14_spill]] (!%p2462_p2) }
 0x3e8   : > { %v991_v22 = vld [vmem:[%s490_s16] sm:$0x3] }
 0x3e9   : > { %2640 = vmatpush3.bf16.msra.mxu0 %v2925_v32  ;;  %v3650_v19 = vunpack.c.l.bf16 %v991_v22 }
 0x3ea   : > { %2630 = vmatmul.mubr.msk.bf16.vlgmr.msra.gmra.mrb[4].mxu1 %vm1007_vm1, %v3598_v31  ;;  %2641 = vmatprep.subr.bf16.mxu0 %v2926_v33 }
 0x3eb   : > { %2694 = vmatpush3.bf16.msra.mxu1 %v2946_v10  ;;  %v1478_v24 = vrot.slane %v3650_v19, %v1477_v20 }
 0x3ec   : > { %2695 = vmatprep.subr.bf16.mxu1 %v2947_v11 }
 0x3ed   : > { %2642 = vmatpush3.bf16.msra.mxu0 %v2926_v33 }
 0x3ee   : > { %2643 = vmatprep.subr.bf16.mxu0 %v2927_v34 }
 0x3ef   : > { %2696 = vmatpush3.bf16.msra.mxu1 %v2947_v11 }
 0x3f0   : > { %2697 = vmatprep.subr.bf16.mxu1 %v2948_v12 }
 0x3f1   : > { %2644 = vmatpush3.bf16.msra.mxu0 %v2927_v34 }
 0x3f2   : > { %2645 = vmatprep.subr.bf16.mxu0 %v2928_v35 }
 0x3f3   : > { %2698 = vmatpush3.bf16.msra.mxu1 %v2948_v12 }
 0x3f4   : > { %2699 = vmatprep.subr.bf16.mxu1 %v2949_v13 }
 0x3f5   : > { %2646 = vmatpush3.bf16.msra.mxu0 %v2928_v35 }
 0x3f6   : > { %2647 = vmatprep.subr.bf16.mxu0 %v2929_v36 }
 0x3f7   : > { %2700 = vmatpush3.bf16.msra.mxu1 %v2949_v13 }
 0x3f8   : > { %2701 = vmatprep.subr.bf16.mxu1 %v2950_v14 }
 0x3f9   : > { %2648 = vmatpush3.bf16.msra.mxu0 %v2929_v36 }
 0x3fa   : > { %2653 = vmatprep.subr.bf16.mxu0 %v2930_v37 }
 0x3fb   : > { %2702 = vmatpush3.bf16.msra.mxu1 %v2950_v14 }
 0x3fc   : > { %2703 = vmatprep.subr.bf16.mxu1 %v2951_v15 }
 0x3ff   : > { %2704 = vmatpush3.bf16.msra.mxu1 %v2951_v15 }
 0x400   : > { %2705 = vmatprep.subr.bf16.mxu1 %v2952_v16 }
 0x403   : > { %2706 = vmatpush3.bf16.msra.mxu1 %v2952_v16 }
 0x404   : > { %2707 = vmatprep.subr.bf16.mxu1 %v2953_v17 }
 0x407   : > { %2708 = vmatpush3.bf16.msra.mxu1 %v2953_v17 }
 0x408   : > { %2713 = vmatprep.subr.bf16.mxu1 %v3206_v2 }
 0x4b5   : > { %v2625_v38 = vpop.f32.mrb[0].mxu1 }
 0x4b6   : > { %v1048_v39 = vpop.f32.mrb[1].mxu1 }
 0x4b7   : > { %v2626_v40 = vpop.f32.mrb[2].mxu1 }
 0x4b8   : > { %v1147_v41 = vpack.c.bf16 %v2626_v40, %v2625_v38  ;;  %v1051_v42 = vpop.f32.mrb[3].mxu1 }
 0x4b9   : > { %v1146_v43 = vpack.c.bf16 %v1051_v42, %v1048_v39 }
 0x4bb   : > { %2649 = vmatprep.mubr.bf16.mxu0 %v1146_v43 }
 0x4bc   : > { %2650 = vmatmul.mubr.bf16.vlgmr.msra.gmra.mrb[0].mxu0 %v1147_v41 }
 0x4bd   : > { %2654 = vmatpush3.bf16.msra.mxu0 %v2930_v37  ;;  %v2631_v45 = vpop.f32.mrb[4].mxu1 }
 0x4be   : > { %2655 = vmatprep.subr.bf16.mxu0 %v2931_v44  ;;  %v1113_v47 = vpop.f32.mrb[5].mxu1 }
 0x4bf   : > { %v2632_v48 = vpop.f32.mrb[6].mxu1 }
 0x4c0   : > { %v1129_v49 = vpack.c.bf16 %v2632_v48, %v2631_v45  ;;  %v1116_v50 = vpop.f32.mrb[7].mxu1 }
 0x4c1   : > { %2656 = vmatpush3.bf16.msra.mxu0 %v2931_v44  ;;  %v1128_v51 = vpack.c.bf16 %v1116_v50, %v1113_v47 }
 0x4c2   : > { %2657 = vmatprep.subr.bf16.mxu0 %v2932_v46 }
 0x4c3   : > { %2669 = vmatprep.mubr.bf16.mxu0 %v1128_v51 }
 0x4c5   : > { %2658 = vmatpush3.bf16.msra.mxu0 %v2932_v46 }
 0x4c6   : > { %2659 = vmatprep.subr.bf16.mxu0 %v2933_v52 }
 0x4c9   : > { %2660 = vmatpush3.bf16.msra.mxu0 %v2933_v52 }
 0x4ca   : > { %2661 = vmatprep.subr.bf16.mxu0 %v2934_v53 }
 0x4cd   : > { %2662 = vmatpush3.bf16.msra.mxu0 %v2934_v53 }
 0x4ce   : > { %2663 = vmatprep.subr.bf16.mxu0 %v2935_v54 }
 0x4d1   : > { %2664 = vmatpush3.bf16.msra.mxu0 %v2935_v54 }
 0x4d2   : > { %2665 = vmatprep.subr.bf16.mxu0 %v2936_v55 }
 0x4d5   : > { %2666 = vmatpush3.bf16.msra.mxu0 %v2936_v55  ;;  %v1531_v55 = vsub.s32 1, %v3646_v18 }
 0x4d6   : > { %2667 = vmatprep.subr.bf16.mxu0 %v2937_v56 }
 0x4d9   : > { %2668 = vmatpush3.bf16.msra.mxu0 %v2937_v56  ;;  %v1532_v56 = vrot.slane %v3650_v19, %v1531_v55 }
 0x4da   : > { %2673 = vmatprep.subr.bf16.mxu0 %v2938_v57 }
 0x4dc   : > { %2670 = vmatmul.mubr.bf16.vlgmr.msra.gmra.mrb[0].mxu0 %v1129_v49 }
 0x4dd   : > { %2674 = vmatpush3.bf16.msra.mxu0 %v2938_v57  ;;  %2689 = vmatprep.mubr.bf16.mxu0 %v995_v60 }
 0x4de   : > { %2675 = vmatprep.subr.bf16.mxu0 %v2939_v61 }
 0x4e1   : > { %2676 = vmatpush3.bf16.msra.mxu0 %v2939_v61 }
 0x4e2   : > { %2677 = vmatprep.subr.bf16.mxu0 %v2940_v62 }
 0x4e5   : > { %2678 = vmatpush3.bf16.msra.mxu0 %v2940_v62 }
 0x4e6   : > { %2679 = vmatprep.subr.bf16.mxu0 %v2941_v63 }
 0x4e9   : > { %2680 = vmatpush3.bf16.msra.mxu0 %v2941_v63 }
 0x4ea   : > { %2681 = vmatprep.subr.bf16.mxu0 %v2942_v1 }
 0x4ed   : > { %2682 = vmatpush3.bf16.msra.mxu0 %v2942_v1 }
 0x4ee   : > { %2683 = vmatprep.subr.bf16.mxu0 %v2943_v4 }
 0x4f1   : > { %2684 = vmatpush3.bf16.msra.mxu0 %v2943_v4 }
 0x4f2   : > { %2685 = vmatprep.subr.bf16.mxu0 %v2944_v5 }
 0x4f5   : > { %2686 = vmatpush3.bf16.msra.mxu0 %v2944_v5 }
 0x4f6   : > { %2687 = vmatprep.subr.bf16.mxu0 %v2945_v6 }
 0x4f9   : > { %2688 = vmatpush3.bf16.msra.mxu0 %v2945_v6 }
 0x4fa   : > { %2761 = vmatprep.subr.bf16.mxu0 %v3206_v2 }
 0x4fc   : > { %2690 = vmatmul.mubr.bf16.vlgmr.msra.gmra.mrb[0].mxu0 %v996_v9 }
 0x4fd   : > { %2777 = vmatprep.mubr.msk.bf16.mxu0 %vm3207_vm2, %v3206_v2 }
 0x5cf   : > { %v2691_v21 = vpop.f32.mrb[0].mxu0 }
 0x5d0   : > { %v1481_v25 = vadd.f32 %v2691_v21, %v1478_v24  ;;  %v1456_v26 = vpop.f32.mrb[1].mxu0 }
 0x5d1   : > { %v1479_v28 = vadd.f32 %v1478_v24, %v1456_v26  ;;  %v2692_v29 = vpop.f32.mrb[2].mxu0 }
 0x5d2   : > { %v2419_v30 = vmul.f32 -1.442695, %v1481_v25  ;;  %v1482_v32 = vadd.f32 %v2692_v29, %v1478_v24  ;;  %v1459_v33 = vpop.f32.mrb[3].mxu0 }
 0x5d3   : > { %v2417_v0 = vmul.f32 -1.442695, %v1479_v28  ;;  %v1480_v34 = vadd.f32 %v1478_v24, %v1459_v33 }
 0x5d4   : > { %2978 = vpow2.f32 %v2419_v30  ;;  %v2420_v35 = vmul.f32 -1.442695, %v1482_v32 }
 0x5d5   : > { %2980 = vpow2.f32 %v2417_v0  ;;  %v2418_v36 = vmul.f32 -1.442695, %v1480_v34 }
 0x5d6   : > { %2982 = vpow2.f32 %v2420_v35 }
 0x5d7   : > { %2984 = vpow2.f32 %v2418_v36 }
 0x5de   : > { %v2979_v37 = vpop.eup %2978 }
 0x5df   : > { %v2981_v38 = vpop.eup %2980  ;;  %v1497_v39 = vadd.f32 1.0, %v2979_v37 }
 0x5e0   : > { %v2983_v40 = vpop.eup %2982  ;;  %v1495_v41 = vadd.f32 1.0, %v2981_v38 }
 0x5e1   : > { %v2985_v42 = vpop.eup %2984  ;;  %2986 = vrcp.f32 %v1497_v39  ;;  %v1498_v43 = vadd.f32 1.0, %v2983_v40 }
 0x5e2   : > { %2988 = vrcp.f32 %v1495_v41  ;;  %v1496_v44 = vadd.f32 1.0, %v2985_v42 }
 0x5e3   : > { %2990 = vrcp.f32 %v1498_v43 }
 0x5e4   : > { %2992 = vrcp.f32 %v1496_v44 }
 0x5eb   : > { %v2987_v45 = vpop.eup %2986 }
 0x5ec   : > { %v2989_v46 = vpop.eup %2988  ;;  %v1509_v49 = vmul.f32 %v2987_v45, %v1481_v25 }
 0x5ed   : > { %v2991_v47 = vpop.eup %2990  ;;  %v1507_v51 = vmul.f32 %v2989_v46, %v1479_v28 }
 0x5ee   : > { %v2993_v48 = vpop.eup %2992  ;;  %v1510_v50 = vmul.f32 %v2991_v47, %v1482_v32 }
 0x5ef   : > { %v1508_v52 = vmul.f32 %v2993_v48, %v1480_v34 }
 0x5f0   : > { %v1512_v53 = vpack.c.bf16 %v1510_v50, %v1509_v49 }
 0x5f1   : > { %v1511_v54 = vpack.c.bf16 %v1508_v52, %v1507_v51 }
 0x5f3   : > { %2709 = vmatprep.mubr.bf16.mxu1 %v1511_v54 }
 0x5f4   : > { %2710 = vmatmul.mubr.bf16.vlgmr.msra.gmra.mrb[8].mxu1 %v1512_v53 }
 0x5f5   : > { %2717 = vmatprep.mubr.msk.bf16.mxu1 %vm3207_vm2, %v3206_v2 }
 0x6c7   : > { %v2711_v57 = vpop.f32.mrb[8].mxu1 }
 0x6c8   : > { %v1624_v60 = vadd.f32 %v2711_v57, %v1532_v56  ;;  %v1615_v61 = vpop.f32.mrb[9].mxu1 }
 0x6c9   : > { %v1616_v62 = vadd.f32 %v1615_v61, %v1532_v56  ;;  %v2712_v63 = vpop.f32.mrb[10].mxu1 }
 0x6ca   : > { %v2431_v1 = vmul.f32 -1.442695, %v1624_v60  ;;  %v1627_v4 = vadd.f32 %v2712_v63, %v1532_v56  ;;  %v1618_v5 = vpop.f32.mrb[11].mxu1 }
 0x6cb   : > { %v2429_v6 = vmul.f32 -1.442695, %v1616_v62  ;;  %v1619_v9 = vadd.f32 %v1618_v5, %v1532_v56 }
 0x6cc   : > { %2994 = vpow2.f32 %v2431_v1  ;;  %v2432_v10 = vmul.f32 -1.442695, %v1627_v4 }
 0x6cd   : > { %2996 = vpow2.f32 %v2429_v6  ;;  %v2430_v11 = vmul.f32 -1.442695, %v1619_v9  ;;  %v1708_v6 = vsub.s32 2, %v3646_v18 }
 0x6ce   : > { %2998 = vpow2.f32 %v2432_v10 }
 0x6cf   : > { %3000 = vpow2.f32 %v2430_v11 }
 0x6d6   : > { %v2995_v12 = vpop.eup %2994 }
 0x6d7   : > { %v2997_v13 = vpop.eup %2996  ;;  %v1644_v14 = vadd.f32 1.0, %v2995_v12 }
 0x6d8   : > { %v2999_v15 = vpop.eup %2998  ;;  %v1642_v16 = vadd.f32 1.0, %v2997_v13 }
 0x6d9   : > { %v3001_v17 = vpop.eup %3000  ;;  %3002 = vrcp.f32 %v1644_v14  ;;  %v1645_v22 = vadd.f32 1.0, %v2999_v15 }
 0x6da   : > { %3004 = vrcp.f32 %v1642_v16  ;;  %v1643_v24 = vadd.f32 1.0, %v3001_v17 }
 0x6db   : > { %3006 = vrcp.f32 %v1645_v22 }
 0x6dc   : > { %3008 = vrcp.f32 %v1643_v24 }
 0x6e3   : > { %v3003_v21 = vpop.eup %3002 }
 0x6e4   : > { %v3005_v25 = vpop.eup %3004  ;;  %v1656_v26 = vmul.f32 %v3003_v21, %v1624_v60 }
 0x6e5   : > { %v3007_v28 = vpop.eup %3006  ;;  %v1654_v29 = vmul.f32 %v3005_v25, %v1616_v62 }
 0x6e6   : > { %v3009_v30 = vpop.eup %3008  ;;  %1662 = vadd.xlane.f32.xlu1 %v1656_v26  ;;  %v1657_v32 = vmul.f32 %v3007_v28, %v1627_v4 }
 0x6e7   : > { %1658 = vadd.xlane.f32.xlu0 %v1654_v29  ;;  %v1655_v33 = vmul.f32 %v3009_v30, %v1619_v9 }
 0x6ea   : > { %1664 = vadd.xlane.f32.xlu1 %v1657_v32 }
 0x6eb   : > { %1660 = vadd.xlane.f32.xlu0 %v1655_v33 }
 0x773   : > { %v1663_v0 = vpop.xlane.xlu1 %1662 }
 0x774   : > { %v1668_v34 = vmul.f32 0.03125, %v1663_v0  ;;  %v1659_v35 = vpop.xlane.xlu0 %1658 }
 0x775   : > { %v1666_v36 = vmul.f32 0.03125, %v1659_v35 }
 0x776   : > { %v1672_v37 = vsub.f32 %v1656_v26, %v1668_v34 }
 0x777   : > { %v1670_v38 = vsub.f32 %v1654_v29, %v1666_v36  ;;  %v1665_v39 = vpop.xlane.xlu1 %1664 }
 0x778   : > { %v1669_v40 = vmul.f32 0.03125, %v1665_v39  ;;  %v1661_v41 = vpop.xlane.xlu0 %1660  ;;  %v1676_v47 = vmul.f32 %v3483_v3, %v1672_v37  ;;  %v2959_v39 = vld [vmem:[%s3493_s23 + $0x68] sm:$0xff]  }
 0x779   : > { %v1667_v42 = vmul.f32 0.03125, %v1661_v41  ;;  %v1674_v43 = vmul.f32 %v3483_v3, %v1670_v38  ;;  %v2961_v41 = vld [vmem:[%s3493_s23 + $0x78] sm:$0xff]  }
 0x77a   : > { %v1673_v44 = vsub.f32 %v1657_v32, %v1669_v40  ;;  %v1680_v49 = vmul.f32 %v1676_v47, %v1676_v47  ;;  %v2960_v40 = vld [vmem:[%s3493_s23 + $0x70] sm:$0xff]  }
 0x77b   : > { %v1671_v45 = vsub.f32 %v1655_v33, %v1667_v42  ;;  %v1678_v46 = vmul.f32 %v1674_v43, %v1674_v43 }
 0x77c   : > { %v1677_v51 = vmul.f32 %v3483_v3, %v1673_v44 }
 0x77d   : > { %1682 = vadd.xlane.f32.xlu0 %v1678_v46  ;;  %v1675_v48 = vmul.f32 %v3483_v3, %v1671_v45 }
 0x77e   : > { %v1681_v52 = vmul.f32 %v1677_v51, %v1677_v51  ;;  %v2966_v51 = vld [vmem:[%s3493_s23 + $0x20] sm:$0xff]  }
 0x77f   : > { %v1679_v50 = vmul.f32 %v1675_v48, %v1675_v48  ;;  %v2963_v48 = vld [vmem:[%s3493_s23 + $0x8] sm:$0xff]  }
 0x781   : > { %1686 = vadd.xlane.f32.xlu0 %v1680_v49  ;;  %1684 = vadd.xlane.f32.xlu1 %v1679_v50  ;;  %v2964_v49 = vld [vmem:[%s3493_s23 + $0x10] sm:$0xff]   ;;  %v2965_v50 = vld [vmem:[%s3493_s23 + $0x18] sm:$0xff]  }
 0x785   : > { %1688 = vadd.xlane.f32.xlu1 %v1681_v52  ;;  %v2967_v52 = vld [vmem:[%s3493_s23 + $0x28] sm:$0xff]  }
 0x7ae   : > { %1730 = vxpose.xlu0.c.b16.start [1/2] (short) (narrow) %v3585_v27, 16  ;;  %v1716_v27 = vsub.s32 3, %v3646_v18  ;;  %v2477_v18 = vld [vmem:[%s3828_s22] sm:$0xff] (!%p2462_p2)  }
 0x7b0   : > { %v1717_v12 = vrot.slane %v3650_v19, %v1716_v27 }
 0x7b2   : > { %1731 = vxpose.xlu0.c.b16.end [2/2] (short) (narrow) %v3598_v31, 16  ;;  %v1709_v31 = vrot.slane %v3650_v19, %v1708_v6 }
 0x80a   : > { %v1683_v53 = vpop.xlane.xlu0 %1682 }
 0x80b   : > { %v1690_v54 = vmul.f32 0.03125, %v1683_v53  ;;  %v2968_v53 = vld [vmem:[%s3493_s23 + $0x30] sm:$0xff]  }
 0x80d   : > { %v1694_v56 = vadd.f32 1e-05, %v1690_v54  ;;  %v2969_v54 = vld [vmem:[%s3493_s23 + $0x38] sm:$0xff]  }
 0x80e   : > { %v1685_v57 = vpop.xlane.xlu1 %1684  ;;  %v1687_v60 = vpop.xlane.xlu0 %1686 }
 0x80f   : > { %3010 = vrsqrt.f32 %v1694_v56  ;;  %v1691_v61 = vmul.f32 0.03125, %v1685_v57  ;;  %v1692_v62 = vmul.f32 0.03125, %v1687_v60  ;;  %v2970_v56 = vld [vmem:[%s3498_s14] sm:$0xff]   ;;  %v2971_v57 = vld [vmem:[%s3498_s14 + $0x8] sm:$0xff]   ;;  %v2972_v60 = vld [vmem:[%s3498_s14 + $0x10] sm:$0xff]  }
 0x810   : > { %2762 = vmatpush3.bf16.msra.mxu0 %v2970_v56 }
 0x811   : > { %v1695_v63 = vadd.f32 1e-05, %v1691_v61  ;;  %v1696_v1 = vadd.f32 1e-05, %v1692_v62  ;;  %2763 = vmatprep.subr.bf16.mxu0 %v3206_v2  ;;  %v2973_v61 = vld [vmem:[%s3498_s14 + $0x18] sm:$0xff]   ;;  %v2975_v62 = vld [vmem:[%s3498_s14 + $0x28] sm:$0xff]  }
 0x812   : > { %v1689_v4 = vpop.xlane.xlu1 %1688 }
 0x813   : > { %3012 = vrsqrt.f32 %v1695_v63  ;;  %v1693_v5 = vmul.f32 0.03125, %v1689_v4  ;;  %v2976_v63 = vld [vmem:[%s3498_s14 + $0x30] sm:$0xff]  }
 0x814   : > { %3014 = vrsqrt.f32 %v1696_v1  ;;  %v1738_v36 = vpop.trf.xlu0  ;;  %2764 = vmatpush3.bf16.msra.mxu0 %v2971_v57  ;;  %v2977_v1 = vld [vmem:[%s3498_s14 + $0x38] sm:$0xff]  }
 0x815   : > { %v1697_v9 = vadd.f32 1e-05, %v1693_v5  ;;  %2765 = vmatprep.subr.bf16.mxu0 %v3206_v2 }
 0x817   : > { %3016 = vrsqrt.f32 %v1697_v9 }
 0x818   : > { %2766 = vmatpush3.bf16.msra.mxu0 %v2972_v60 }
 0x819   : > { %v3011_v10 = vpop.eup %3010  ;;  %2767 = vmatprep.subr.bf16.mxu0 %v3206_v2 }
 0x81a   : > { %v1702_v11 = vmul.f32 %v3011_v10, %v1670_v38  ;;  %v2958_v38 = vld [vmem:[%s3493_s23 + $0x60] sm:$0xff]  }
 0x81b   : > { %v993_v10 = vld [vmem:[%s499_s21] sm:$0x3] }
 0x81c   : > { %v1710_v13 = vmul.f32 %v1709_v31, %v1702_v11  ;;  %2768 = vmatpush3.bf16.msra.mxu0 %v2973_v61  ;;  %v3737_v11 = vunpack.c.l.bf16 %v993_v10 }
 0x81d   : > { %v3013_v14 = vpop.eup %3012  ;;  %2769 = vmatprep.subr.bf16.mxu0 %v3206_v2 }
 0x81e   : > { %v3015_v15 = vpop.eup %3014  ;;  %v1703_v16 = vmul.f32 %v3013_v14, %v1671_v45  ;;  %v1718_v17 = vadd.f32 %v1717_v12, %v1710_v13  ;;  %v2962_v45 = vld [vmem:[%s3493_s23] sm:$0xff]  }
 0x81f   : > { %v1704_v22 = vmul.f32 %v3015_v15, %v1672_v37  ;;  %v2957_v37 = vld [vmem:[%s3493_s23 + $0x58] sm:$0xff]  }
 0x820   : > { %v1711_v24 = vmul.f32 %v1709_v31, %v1703_v16  ;;  %v1722_v21 = vadd.f32 %v1718_v17, %v3616_v58 }
 0x821   : > { %v3017_v25 = vpop.eup %3016  ;;  %v1712_v26 = vmul.f32 %v1709_v31, %v1704_v22 }
 0x822   : > { %v1705_v28 = vmul.f32 %v3017_v25, %v1673_v44  ;;  %v1719_v29 = vadd.f32 %v1717_v12, %v1711_v24  ;;  %2186 = vst [vmem:[#allocation3] sm:$0xff] %v1722_v21 }
 0x823   : > { %v1720_v30 = vadd.f32 %v1717_v12, %v1712_v26 }
 0x824   : > { %v1723_v32 = vadd.f32 %v1719_v29, %v3618_v59  ;;  %v1713_v33 = vmul.f32 %v1709_v31, %v1705_v28  ;;  %v2954_v59 = vld [vmem:[%s3493_s23 + $0x40] sm:$0xff]  }
 0x825   : > { %v1724_v19 = vadd.f32 %v1720_v30, %v3629_v7  ;;  %v2955_v7 = vld [vmem:[%s3493_s23 + $0x48] sm:$0xff]  }
 0x826   : > { %v1726_v0 = vpack.c.bf16 %v1723_v32, %v1722_v21  ;;  %2187 = vst [vmem:[#allocation3 + $0x8] sm:$0xff] %v1723_v32  ;;  %v1721_v34 = vadd.f32 %v1717_v12, %v1713_v33  ;;  %v2005_v12 = vrot.slane %v3737_v11, %v1477_v20 }
 0x827   : > { %2188 = vst [vmem:[#allocation3 + $0x10] sm:$0xff] %v1724_v19 }
 0x828   : > { %2714 = vmatpush3.bf16.msra.mxu1 %v1726_v0  ;;  %v1725_v58 = vadd.f32 %v1721_v34, %v3631_v8  ;;  %v2956_v8 = vld [vmem:[%s3493_s23 + $0x50] sm:$0xff]   ;;  %v2042_v34 = vrot.slane %v3737_v11, %v1531_v55 }
 0x829   : > { %2715 = vmatprep.subr.bf16.mxu1 %v3206_v2 }
 0x82a   : > { %v1727_v35 = vpack.c.bf16 %v1725_v58, %v1724_v19  ;;  %2189 = vst [vmem:[#allocation3 + $0x18] sm:$0xff] %v1725_v58 }
 0x82c   : > { %2716 = vmatpush3.bf16.msra.mxu1 %v1727_v35 }
 0x82d   : > { %2721 = vmatprep.subr.bf16.mxu1 %v3206_v2 }
 0x82f   : > { %2718 = vmatmul.mubr.msk.bf16.vlgmr.msra.gmra.mrb[12].mxu1 %vm1746_vm3, %v1738_v36 }
 0x830   : > { %2722 = vmatpush3.bf16.msra.mxu1 %v2954_v59  ;;  %2737 = vmatprep.mubr.msk.bf16.mxu1 %vm3207_vm2, %v3206_v2 }
 0x831   : > { %2723 = vmatprep.subr.bf16.mxu1 %v3206_v2 }
 0x834   : > { %2724 = vmatpush3.bf16.msra.mxu1 %v2955_v7 }
 0x835   : > { %2725 = vmatprep.subr.bf16.mxu1 %v3206_v2 }
 0x838   : > { %2726 = vmatpush3.bf16.msra.mxu1 %v2956_v8 }
 0x839   : > { %2727 = vmatprep.subr.bf16.mxu1 %v3206_v2 }
 0x83c   : > { %2728 = vmatpush3.bf16.msra.mxu1 %v2957_v37 }
 0x83d   : > { %2729 = vmatprep.subr.bf16.mxu1 %v3206_v2 }
 0x840   : > { %2730 = vmatpush3.bf16.msra.mxu1 %v2958_v38 }
 0x841   : > { %2731 = vmatprep.subr.bf16.mxu1 %v3206_v2 }
 0x844   : > { %2732 = vmatpush3.bf16.msra.mxu1 %v2959_v39 }
 0x845   : > { %2733 = vmatprep.subr.bf16.mxu1 %v3206_v2 }
 0x848   : > { %2734 = vmatpush3.bf16.msra.mxu1 %v2960_v40 }
 0x849   : > { %2735 = vmatprep.subr.bf16.mxu1 %v3206_v2 }
 0x84c   : > { %2736 = vmatpush3.bf16.msra.mxu1 %v2961_v41 }
 0x84d   : > { %2741 = vmatprep.subr.bf16.mxu1 %v3206_v2 }
 0x902   : > { %v1784_v42 = vpop.f32.mrb[12].mxu1 }
 0x903   : > { %v2719_v43 = vpop.f32.mrb[13].mxu1 }
 0x904   : > { %v1787_v44 = vpop.f32.mrb[14].mxu1 }
 0x905   : > { %v1807_v46 = vpack.c.bf16 %v1787_v44, %v1784_v42  ;;  %v2720_v47 = vpop.f32.mrb[15].mxu1 }
 0x907   : > { %2738 = vmatmul.mubr.bf16.vlgmr.msra.gmra.mrb[16].mxu1 %v1807_v46 }
 0x908   : > { %2742 = vmatpush3.bf16.msra.mxu1 %v2962_v45  ;;  %2757 = vmatprep.mubr.msk.bf16.mxu1 %vm3207_vm2, %v3206_v2 }
 0x909   : > { %2743 = vmatprep.subr.bf16.mxu1 %v3206_v2 }
 0x90c   : > { %2744 = vmatpush3.bf16.msra.mxu1 %v2963_v48 }
 0x90d   : > { %2745 = vmatprep.subr.bf16.mxu1 %v3206_v2 }
 0x910   : > { %2746 = vmatpush3.bf16.msra.mxu1 %v2964_v49 }
 0x911   : > { %2747 = vmatprep.subr.bf16.mxu1 %v3206_v2 }
 0x914   : > { %2748 = vmatpush3.bf16.msra.mxu1 %v2965_v50 }
 0x915   : > { %2749 = vmatprep.subr.bf16.mxu1 %v3206_v2 }
 0x918   : > { %2750 = vmatpush3.bf16.msra.mxu1 %v2966_v51 }
 0x919   : > { %2751 = vmatprep.subr.bf16.mxu1 %v3206_v2 }
 0x91c   : > { %2752 = vmatpush3.bf16.msra.mxu1 %v2967_v52 }
 0x91d   : > { %2753 = vmatprep.subr.bf16.mxu1 %v3206_v2 }
 0x920   : > { %2754 = vmatpush3.bf16.msra.mxu1 %v2968_v53 }
 0x921   : > { %2755 = vmatprep.subr.bf16.mxu1 %v3206_v2 }
 0x924   : > { %2756 = vmatpush3.bf16.msra.mxu1 %v2969_v54 }
 0x927   : > { %2758 = vmatmul.mubr.bf16.vlgmr.msra.gmra.mrb[20].mxu1 %v3571_v23  ;;  %v2974_v23 = vld [vmem:[%s3498_s14 + $0x20] sm:$0xff]   ;;  %s3829_s14 = sld [smem:[#allocation18_spill]] (!%p2462_p2) }
 0x928   : > { %2770 = vmatpush3.bf16.msra.mxu0 %v2974_v23 }
 0x929   : > { %2771 = vmatprep.subr.bf16.mxu0 %v3206_v2 }
 0x92c   : > { %2772 = vmatpush3.bf16.msra.mxu0 %v2975_v62 }
 0x92d   : > { %2773 = vmatprep.subr.bf16.mxu0 %v3206_v2 }
 0x930   : > { %2774 = vmatpush3.bf16.msra.mxu0 %v2976_v63 }
 0x931   : > { %2775 = vmatprep.subr.bf16.mxu0 %v3206_v2 }
 0x934   : > { %2776 = vmatpush3.bf16.msra.mxu0 %v2977_v1  ;;  %v2173_v1 = vrot.slane %v3737_v11, %v1708_v6  ;;  %v2478_v6 = vunpack.c.l.bf16 (!%p2462_p2), %v2477_v18 }
 0x9da   : > { %v1906_v4 = vpop.f32.mrb[16].mxu1 }
 0x9db   : > { %v2739_v5 = vpop.f32.mrb[17].mxu1 }
 0x9dc   : > { %v1909_v9 = vpop.f32.mrb[18].mxu1  ;;  %v2179_v5 = vrot.slane %v3737_v11, %v1716_v27  ;;  %v2479_v27 = vunpack.c.h.bf16 (!%p2462_p2), %v2477_v18 }
 0x9dd   : > { %v2740_v31 = vpop.f32.mrb[19].mxu1 }
 0x9fa   : > { %v1995_v13 = vpop.f32.mrb[20].mxu1 }
 0x9fb   : > { %v1996_v14 = vadd.f32 %v1995_v13, %v1906_v4  ;;  %v2759_v15 = vpop.f32.mrb[21].mxu1  ;;  %v3038_v13 = vld [vmem:[#allocation2] sm:$0xff] }
 0x9fc   : > { %v1998_v16 = vpop.f32.mrb[22].mxu1 }
 0x9fd   : > { %v2006_v17 = vadd.f32 %v2005_v12, %v1996_v14  ;;  %v1999_v2 = vadd.f32 %v1998_v16, %v1909_v9  ;;  %v2760_v22 = vpop.f32.mrb[23].mxu1 }
 0x9ff   : > { %v2450_v24 = vmul.f32 -1.442695, %v2006_v17  ;;  %v2007_v21 = vadd.f32 %v2005_v12, %v1999_v2 }
 0xa01   : > { %3018 = vpow2.f32 %v2450_v24  ;;  %v2451_v25 = vmul.f32 -1.442695, %v2007_v21 }
 0xa03   : > { %3020 = vpow2.f32 %v2451_v25 }
 0xa0b   : > { %v3019_v26 = vpop.eup %3018 }
 0xa0c   : > { %v2014_v28 = vadd.f32 1.0, %v3019_v26 }
 0xa0d   : > { %v3021_v29 = vpop.eup %3020 }
 0xa0e   : > { %3022 = vrcp.f32 %v2014_v28  ;;  %v2015_v30 = vadd.f32 1.0, %v3021_v29 }
 0xa10   : > { %3024 = vrcp.f32 %v2015_v30 }
 0xa18   : > { %v3023_v32 = vpop.eup %3022 }
 0xa19   : > { %v2020_v33 = vmul.f32 %v3023_v32, %v2006_v17  ;;  %v3039_v17 = vld [vmem:[#allocation2 + $0x8] sm:$0xff] }
 0xa1a   : > { %v3025_v20 = vpop.eup %3024 }
 0xa1b   : > { %v2021_v19 = vmul.f32 %v3025_v20, %v2007_v21 }
 0xa1d   : > { %v2022_v0 = vpack.c.bf16 %v2021_v19, %v2020_v33 }
 0xa1f   : > { %2778 = vmatmul.mubr.bf16.vlgmr.msra.gmra.mrb[4].mxu0 %v2022_v0 }
 0xaf2   : > { %v2125_v58 = vpop.f32.mrb[4].mxu0 }
 0xaf3   : > { %v2126_v35 = vadd.f32 %v2125_v58, %v2042_v34  ;;  %v2779_v36 = vpop.f32.mrb[5].mxu0 }
 0xaf4   : > { %v2128_v59 = vpop.f32.mrb[6].mxu0 }
 0xaf5   : > { %v2460_v7 = vmul.f32 -1.442695, %v2126_v35  ;;  %v2129_v8 = vadd.f32 %v2128_v59, %v2042_v34  ;;  %v2780_v37 = vpop.f32.mrb[7].mxu0 }
 0xaf7   : > { %3026 = vpow2.f32 %v2460_v7  ;;  %v2461_v38 = vmul.f32 -1.442695, %v2129_v8 }
 0xaf9   : > { %3028 = vpow2.f32 %v2461_v38 }
 0xb01   : > { %v3027_v39 = vpop.eup %3026 }
 0xb02   : > { %v2138_v40 = vadd.f32 1.0, %v3027_v39 }
 0xb03   : > { %v3029_v41 = vpop.eup %3028 }
 0xb04   : > { %3030 = vrcp.f32 %v2138_v40  ;;  %v2139_v42 = vadd.f32 1.0, %v3029_v41 }
 0xb06   : > { %3032 = vrcp.f32 %v2139_v42 }
 0xb0e   : > { %v3031_v43 = vpop.eup %3030 }
 0xb0f   : > { %v2144_v44 = vmul.f32 %v3031_v43, %v2126_v35 }
 0xb10   : > { %v3033_v45 = vpop.eup %3032 }
 0xb11   : > { %2146 = vadd.xlane.f32.xlu1 %v2144_v44  ;;  %v2145_v55 = vmul.f32 %v3033_v45, %v2129_v8 }
 0xb15   : > { %2148 = vadd.xlane.f32.xlu1 %v2145_v55 }
 0xb9e   : > { %v2147_v46 = vpop.xlane.xlu1 %2146 }
 0xb9f   : > { %v2150_v47 = vmul.f32 0.03125, %v2147_v46 }
 0xba1   : > { %v2152_v48 = vsub.f32 %v2144_v44, %v2150_v47 }
 0xba2   : > { %v2149_v49 = vpop.xlane.xlu1 %2148 }
 0xba3   : > { %v2151_v50 = vmul.f32 0.03125, %v2149_v49  ;;  %v2154_v51 = vmul.f32 %v3483_v3, %v2152_v48 }
 0xba5   : > { %v2153_v52 = vsub.f32 %v2145_v55, %v2151_v50  ;;  %v2156_v53 = vmul.f32 %v2154_v51, %v2154_v51 }
 0xba7   : > { %2158 = vadd.xlane.f32.xlu1 %v2156_v53  ;;  %v2155_v54 = vmul.f32 %v3483_v3, %v2153_v52 }
 0xba9   : > { %v2157_v56 = vmul.f32 %v2155_v54, %v2155_v54 }
 0xbab   : > { %2160 = vadd.xlane.f32.xlu1 %v2157_v56 }
 0xc34   : > { %v2159_v57 = vpop.xlane.xlu1 %2158 }
 0xc35   : > { %v2162_v60 = vmul.f32 0.03125, %v2159_v57 }
 0xc37   : > { %v2164_v61 = vadd.f32 1e-05, %v2162_v60 }
 0xc38   : > { %v2161_v23 = vpop.xlane.xlu1 %2160 }
 0xc39   : > { %3034 = vrsqrt.f32 %v2164_v61  ;;  %v2163_v62 = vmul.f32 0.03125, %v2161_v23 }
 0xc3b   : > { %v2165_v63 = vadd.f32 1e-05, %v2163_v62 }
 0xc3d   : > { %3036 = vrsqrt.f32 %v2165_v63 }
 0xc43   : > { %v3035_v4 = vpop.eup %3034 }
 0xc44   : > { %v2168_v3 = vmul.f32 %v3035_v4, %v2152_v48 }
 0xc46   : > { %v2174_v9 = vmul.f32 %v2173_v1, %v2168_v3 }
 0xc47   : > { %v3037_v31 = vpop.eup %3036 }
 0xc48   : > { %v2180_v10 = vadd.f32 %v2179_v5, %v2174_v9  ;;  %v2169_v12 = vmul.f32 %v3037_v31, %v2153_v52 }
 0xc4a   : > { %v2182_v14 = vadd.f32 %v3038_v13, %v2180_v10  ;;  %v2175_v15 = vmul.f32 %v2173_v1, %v2169_v12  ;;  %2193 = sbr.rel (%p2462_p2) target bundleno = 3157 (0xc55), region = 96 }
 0xc4c   : > { %2184 = vst [vmem:[#allocation2] sm:$0xff] %v2182_v14  ;;  %v2181_v16 = vadd.f32 %v2179_v5, %v2175_v15  ;;  %v2198_v11 = vadd.f32 (!%p2462_p2), %v2478_v6, %v2182_v14 }
 0xc4e   : > { %v2183_v2 = vadd.f32 %v3039_v17, %v2181_v16 }
 0xc50   : > { %2185 = vst [vmem:[#allocation2 + $0x8] sm:$0xff] %v2183_v2  ;;  %v2199_v22 = vadd.f32 (!%p2462_p2), %v2479_v27, %v2183_v2 }
 0xc52   : > { %v2483_v24 = vpack.c.bf16 %v2199_v22, %v2198_v11 }
 0xc54   : > { %2484 = vst [vmem:[%s3829_s14] sm:$0xff] %v2483_v24  }
 0xc55 PF: > { %s3830_s28 = sld [smem:[#allocation13_spill]]  ;;  %s3831_s25 = smov %s3190_s26 }
 0xc56   : > { %s3832_s26 = smov %s3194_s27  ;;  %s3833_s27 = smov %s3355_s18 }
 0xc5b   : > { %p22_p11 = scmp.ge.s32.totalorder %s3830_s28, 4  }
 0xc5d   :  { %24 = sbr.rel (!%p22_p11) target bundleno = 9 (0x9), region = 146 }
 0xc64   :  { %2221 = vsyncpa [#allocation5], 1 }
 0xc65   :  { %2223 = vsyncpa [#allocation5 + $0x1], 1 }
 0xc66   :  { %2224 = vsyncpa [#allocation7], 1 }

// kernel: _forward_impl.5
= control target key start
LH: loop header
LB: loop body
LE: loop exit
PB: predicated region body
PF: predicated region fallthrough
CT: control target
= control target key end

     0   :  { %v3129_v0 = vmov 0.0   ;;  %vm3130_vm0 = vmmov 0   ;;  %v57_v20 = vlaneseq  ;;  %vm567_vm1 = vcmask 130048   ;;  %s3843_s5 = inlined_call_operand.vmem [shape: bf16[128,128], index: 5, kind: input, shape index: {}]   ;;  %s3844_s2 = inlined_call_operand.vmem [shape: bf16[48,128], index: 2, kind: input, shape index: {}]   ;;  %s3845_s6 = inlined_call_operand.vmem [shape: bf16[128,128], index: 6, kind: input, shape index: {}]   ;;  %s3846_s7 = inlined_call_operand.vmem [shape: bf16[4,128], index: 7, kind: input, shape index: {}]   ;;  %s3847_s0 = inlined_call_operand.vmem [shape: bf16[16,128], index: 0, kind: input, shape index: {}]   ;;  %s3848_s1 = inlined_call_operand.vmem [shape: bf16[32,128], index: 1, kind: input, shape index: {}]   ;;  %s3849_s3 = inlined_call_operand.vmem [shape: bf16[48,16], index: 3, kind: input, shape index: {}]   ;;  %s3850_s4 = inlined_call_operand.vmem [shape: bf16[48,32], index: 4, kind: input, shape index: {}]   ;;  %s3851_s8 = inlined_call_operand.vmem [shape: bf16[384,128], index: 8, kind: input, shape index: {}]   ;;  %s3852_s9 = inlined_call_operand.vmem [shape: bf16[128,128], index: 9, kind: input, shape index: {}]   ;;  %s3853_s10 = inlined_call_operand.vmem [shape: bf16[4,128], index: 10, kind: input, shape index: {}]   ;;  %s3854_s11 = inlined_call_operand.vmem [shape: bf16[256,128], index: 11, kind: input, shape index: {}]   ;;  %s3855_s12 = inlined_call_operand.vmem [shape: bf16[128,128], index: 12, kind: input, shape index: {}]   ;;  %s3856_s13 = inlined_call_operand.vmem [shape: bf16[4,128], index: 13, kind: input, shape index: {}]   ;;  %s3857_s14 = inlined_call_operand.vmem [shape: bf16[128,128], index: 14, kind: input, shape index: {}]   ;;  %s3858_s15 = inlined_call_operand.vmem [shape: bf16[128,128], index: 15, kind: input, shape index: {}]   ;;  %s3859_s16 = inlined_call_operand.vmem [shape: bf16[4,128], index: 16, kind: input, shape index: {}]   ;;  %s3860_s17 = inlined_call_operand.vmem [shape: f32[32,128], index: 17, kind: output, shape index: {}]  }
   0x1   :  { %3863 = sst [smem:[#allocation2_spill]] %s3843_s5  ;;  %2531 = vmatprep.subr.bf16.mxu0 %v3129_v0  ;;  %2547 = vmatprep.mubr.msk.bf16.mxu0 %vm3130_vm0, %v3129_v0  ;;  %v2857_v12 = vld [vmem:[%s3845_s6] sm:$0xff]   ;;  %v2858_v13 = vld [vmem:[%s3845_s6 + $0x8] sm:$0xff]   ;;  %v2859_v14 = vld [vmem:[%s3845_s6 + $0x10] sm:$0xff]   ;;  %vm661_vm2 = vcmask 261120   ;;  %vm1445_vm4 = vcmask 392192  }
   0x2   :  { %3864 = sst [smem:[#allocation3_spill]] %s3844_s2  ;;  %s3865_s26 = sld [smem:[#allocation2_spill]]  ;;  %2559 = vmatprep.subr.bf16.mxu1 %v3129_v0  ;;  %2575 = vmatprep.mubr.msk.bf16.mxu1 %vm3130_vm0, %v3129_v0  ;;  %v2860_v15 = vld [vmem:[%s3845_s6 + $0x18] sm:$0xff]   ;;  %v2861_v16 = vld [vmem:[%s3845_s6 + $0x20] sm:$0xff]   ;;  %v2862_v17 = vld [vmem:[%s3845_s6 + $0x28] sm:$0xff]   ;;  %v3307_v21 = vshrl.u32 %v57_v20, 7 }
   0x3   :  { %s3866_s29 = sld [smem:[#allocation3_spill]]  ;;  %2560 = vmatpush3.bf16.msra.mxu1 %v2857_v12  ;;  %v2863_v18 = vld [vmem:[%s3845_s6 + $0x30] sm:$0xff]   ;;  %v2864_v19 = vld [vmem:[%s3845_s6 + $0x38] sm:$0xff]   ;;  %v68_v22 = vld [vmem:[%s3846_s7] sm:$0x3] }
   0x4   :  { %2561 = vmatprep.subr.bf16.mxu1 %v3129_v0  ;;  %v3312_v23 = vunpack.c.l.bf16 %v68_v22  ;;  %v3315_v24 = vsub.s32 0, %v3307_v21  ;;  %v2871_v22 = vld [vmem:[%s3850_s4 + $0x8] sm:$0xff]  }
   0x6   :  { %v89_v25 = vrot.slane %v3312_v23, %v3315_v24 }
   0x7   :  { %2562 = vmatpush3.bf16.msra.mxu1 %v2858_v13 }
   0x8   :  { %v2846_v1 = vld [vmem:[%s3865_s26] sm:$0xff]   ;;  %v2847_v2 = vld [vmem:[%s3865_s26 + $0x8] sm:$0xff]   ;;  %v2848_v3 = vld [vmem:[%s3865_s26 + $0x10] sm:$0xff]   ;;  %2563 = vmatprep.subr.bf16.mxu1 %v3129_v0 }
   0x9   :  { %2532 = vmatpush3.bf16.msra.mxu0 %v2846_v1  ;;  %v2849_v4 = vld [vmem:[%s3865_s26 + $0x18] sm:$0xff]   ;;  %v2850_v5 = vld [vmem:[%s3865_s26 + $0x20] sm:$0xff]   ;;  %v2851_v6 = vld [vmem:[%s3865_s26 + $0x28] sm:$0xff]  }
   0xa   :  { %2533 = vmatprep.subr.bf16.mxu0 %v3129_v0  ;;  %v2852_v7 = vld [vmem:[%s3865_s26 + $0x30] sm:$0xff]   ;;  %v2853_v8 = vld [vmem:[%s3865_s26 + $0x38] sm:$0xff]   ;;  %v2854_v9 = vld [vmem:[%s3866_s29] sm:$0xff]  }
   0xb   :  { %v2855_v10 = vld [vmem:[%s3866_s29 + $0x8] sm:$0xff]   ;;  %v2856_v11 = vld [vmem:[%s3866_s29 + $0x10] sm:$0xff]   ;;  %2564 = vmatpush3.bf16.msra.mxu1 %v2859_v14  ;;  %v2865_v14 = vld [vmem:[%s3847_s0] sm:$0xff]  }
   0xc   :  { %2565 = vmatprep.subr.bf16.mxu1 %v3129_v0 }
   0xd   :  { %2534 = vmatpush3.bf16.msra.mxu0 %v2847_v2 }
   0xe   :  { %2535 = vmatprep.subr.bf16.mxu0 %v3129_v0 }
   0xf   :  { %2566 = vmatpush3.bf16.msra.mxu1 %v2860_v15  ;;  %v3331_v15 = vld [vmem:[%s3848_s1] sm:$0xff]  }
  0x10   :  { %2567 = vmatprep.subr.bf16.mxu1 %v3129_v0 }
  0x11   :  { %2536 = vmatpush3.bf16.msra.mxu0 %v2848_v3 }
  0x12   :  { %2537 = vmatprep.subr.bf16.mxu0 %v3129_v0 }
  0x13   :  { %2568 = vmatpush3.bf16.msra.mxu1 %v2861_v16  ;;  %v3336_v16 = vld [vmem:[%s3848_s1 + $0x8] sm:$0xff]  }
  0x14   :  { %2569 = vmatprep.subr.bf16.mxu1 %v3129_v0 }
  0x15   :  { %2538 = vmatpush3.bf16.msra.mxu0 %v2849_v4 }
  0x16   :  { %2539 = vmatprep.subr.bf16.mxu0 %v3129_v0 }
  0x17   :  { %2570 = vmatpush3.bf16.msra.mxu1 %v2862_v17  ;;  %v2868_v17 = vld [vmem:[%s3849_s3] sm:$0xff]  }
  0x18   :  { %2571 = vmatprep.subr.bf16.mxu1 %v3129_v0 }
  0x19   :  { %2540 = vmatpush3.bf16.msra.mxu0 %v2850_v5 }
  0x1a   :  { %2541 = vmatprep.subr.bf16.mxu0 %v3129_v0 }
  0x1b   :  { %2572 = vmatpush3.bf16.msra.mxu1 %v2863_v18  ;;  %v2869_v18 = vld [vmem:[%s3850_s4] sm:$0xff]  }
  0x1c   :  { %2573 = vmatprep.subr.bf16.mxu1 %v3129_v0 }
  0x1d   :  { %2542 = vmatpush3.bf16.msra.mxu0 %v2851_v6 }
  0x1e   :  { %2543 = vmatprep.subr.bf16.mxu0 %v3129_v0 }
  0x1f   :  { %2574 = vmatpush3.bf16.msra.mxu1 %v2864_v19  ;;  %v2870_v19 = vld [vmem:[%s3849_s3 + $0x8] sm:$0xff]  }
  0x20   :  { %2601 = vmatprep.subr.bf16.mxu1 %v3129_v0 }
  0x21   :  { %2544 = vmatpush3.bf16.msra.mxu0 %v2852_v7 }
  0x22   :  { %2545 = vmatprep.subr.bf16.mxu0 %v3129_v0 }
  0x25   :  { %2546 = vmatpush3.bf16.msra.mxu0 %v2853_v8 }
  0x26   :  { %2587 = vmatprep.subr.bf16.mxu0 %v3129_v0 }
  0x28   :  { %2548 = vmatmul.mubr.bf16.vlgmr.msra.gmra.mrb[0].mxu0 %v2854_v9 }
  0x29   :  { %2551 = vmatprep.mubr.msk.bf16.mxu0 %vm3130_vm0, %v3129_v0  ;;  %2588 = vmatpush3.bf16.msra.mxu0 %v2865_v14  ;;  %v2874_v14 = vld [vmem:[%s3851_s8 + $0x40] sm:$0xff]  }
  0x2a   :  { %2617 = vmatprep.subr.bf16.mxu0 %v3129_v0 }
  0x30   :  { %2552 = vmatmul.mubr.bf16.gmra.mrb[4].mxu0 %v2855_v10 }
  0x31   :  { %2555 = vmatprep.mubr.msk.bf16.mxu0 %vm3130_vm0, %v3129_v0 }
  0x38   :  { %2556 = vmatmul.mubr.bf16.gmra.mrb[8].mxu0 %v2856_v11 }
  0x39   :  { %2589 = vmatprep.mubr.msk.bf16.mxu0 %vm3130_vm0, %v3129_v0 }
  0x40   :  { %2590 = vmatmul.mubr.msk.bf16.vlgmr.msra.gmra.mrb[12].mxu0 %vm567_vm1, %v2868_v17  ;;  %v2875_v17 = vld [vmem:[%s3851_s8] sm:$0xff]  }
  0x41   :  { %2593 = vmatprep.mubr.msk.bf16.mxu0 %vm3130_vm0, %v3129_v0  ;;  %2618 = vmatpush3.bf16.msra.mxu0 %v2874_v14 }
  0x42   :  { %2619 = vmatprep.subr.bf16.mxu0 %v3129_v0 }
  0x48   :  { %2594 = vmatmul.mubr.msk.bf16.gmra.mrb[16].mxu0 %vm567_vm1, %v2870_v19  ;;  %v2877_v19 = vld [vmem:[%s3851_s8 + $0x8] sm:$0xff]  }
  0x49   :  { %2597 = vmatprep.mubr.msk.bf16.mxu0 %vm3130_vm0, %v3129_v0 }
  0xfb   :  { %v190_v26 = vpop.f32.mrb[0].mxu0 }
  0xfc   :  { %v191_v27 = vadd.f32 %v190_v26, %v89_v25  ;;  %v2549_v28 = vpop.f32.mrb[1].mxu0  ;;  %v2873_v26 = vld [vmem:[%s3850_s4 + $0x10] sm:$0xff]  }
  0xfd   :  { %v193_v29 = vpop.f32.mrb[2].mxu0 }
  0xfe   :  { %v2268_v30 = vmul.f32 -1.442695, %v191_v27  ;;  %v194_v31 = vadd.f32 %v193_v29, %v89_v25  ;;  %v2550_v32 = vpop.f32.mrb[3].mxu0 }
 0x100   :  { %2948 = vpow2.f32 %v2268_v30  ;;  %v2269_v33 = vmul.f32 -1.442695, %v194_v31 }
 0x102   :  { %2950 = vpow2.f32 %v2269_v33 }
 0x103   :  { %v198_v34 = vpop.f32.mrb[4].mxu0 }
 0x104   :  { %v199_v35 = vadd.f32 %v198_v34, %v89_v25  ;;  %v2553_v36 = vpop.f32.mrb[5].mxu0 }
 0x105   :  { %v201_v37 = vpop.f32.mrb[6].mxu0 }
 0x106   :  { %v2270_v38 = vmul.f32 -1.442695, %v199_v35  ;;  %v202_v39 = vadd.f32 %v201_v37, %v89_v25  ;;  %v2554_v40 = vpop.f32.mrb[7].mxu0 }
 0x108   :  { %2952 = vpow2.f32 %v2270_v38  ;;  %v2271_v41 = vmul.f32 -1.442695, %v202_v39 }
 0x10a   :  { %v2949_v42 = vpop.eup %2948  ;;  %2954 = vpow2.f32 %v2271_v41 }
 0x10b   :  { %v231_v43 = vadd.f32 1.0, %v2949_v42  ;;  %v206_v44 = vpop.f32.mrb[8].mxu0 }
 0x10c   :  { %v2951_v45 = vpop.eup %2950  ;;  %v207_v46 = vadd.f32 %v206_v44, %v89_v25  ;;  %v2557_v47 = vpop.f32.mrb[9].mxu0 }
 0x10d   :  { %2956 = vrcp.f32 %v231_v43  ;;  %v232_v48 = vadd.f32 1.0, %v2951_v45  ;;  %v209_v49 = vpop.f32.mrb[10].mxu0 }
 0x10e   :  { %v2272_v50 = vmul.f32 -1.442695, %v207_v46  ;;  %v210_v51 = vadd.f32 %v209_v49, %v89_v25  ;;  %v2558_v52 = vpop.f32.mrb[11].mxu0  ;;  %v2872_v25 = vld [vmem:[%s3849_s3 + $0x10] sm:$0xff]  }
 0x10f   :  { %2958 = vrcp.f32 %v232_v48  ;;  %2598 = vmatmul.mubr.msk.bf16.gmra.mrb[20].mxu0 %vm567_vm1, %v2872_v25  ;;  %v2879_v25 = vld [vmem:[%s3851_s8 + $0x10] sm:$0xff]  }
 0x110   :  { %2960 = vpow2.f32 %v2272_v50  ;;  %v2273_v53 = vmul.f32 -1.442695, %v210_v51  ;;  %2633 = vmatprep.mubr.msk.bf16.mxu0 %vm3130_vm0, %v3129_v0 }
 0x112   :  { %v2953_v54 = vpop.eup %2952  ;;  %2962 = vpow2.f32 %v2273_v53 }
 0x113   :  { %v233_v55 = vadd.f32 1.0, %v2953_v54 }
 0x114   :  { %v2955_v56 = vpop.eup %2954 }
 0x115   :  { %2964 = vrcp.f32 %v233_v55  ;;  %v234_v57 = vadd.f32 1.0, %v2955_v56 }
 0x117   :  { %v2957_v58 = vpop.eup %2956  ;;  %2966 = vrcp.f32 %v234_v57 }
 0x118   :  { %v249_v61 = vmul.f32 %v2957_v58, %v191_v27  ;;  %v3377_v27 = vsub.s32 1, %v3307_v21 }
 0x119   :  { %v2959_v59 = vpop.eup %2958 }
 0x11a   :  { %v2961_v60 = vpop.eup %2960  ;;  %v250_v62 = vmul.f32 %v2959_v59, %v194_v31  ;;  %v277_v28 = vrot.slane %v3312_v23, %v3377_v27 }
 0x11b   :  { %v235_v63 = vadd.f32 1.0, %v2961_v60 }
 0x11c   :  { %v2963_v1 = vpop.eup %2962  ;;  %v255_v2 = vpack.c.bf16 %v250_v62, %v249_v61 }
 0x11d   :  { %2968 = vrcp.f32 %v235_v63  ;;  %v236_v3 = vadd.f32 1.0, %v2963_v1 }
 0x11e   :  { %2576 = vmatmul.mubr.bf16.vlgmr.msra.gmra.mrb[0].mxu1 %v255_v2 }
 0x11f   :  { %v2965_v4 = vpop.eup %2964  ;;  %2970 = vrcp.f32 %v236_v3  ;;  %2579 = vmatprep.mubr.msk.bf16.mxu1 %vm3130_vm0, %v3129_v0  ;;  %2602 = vmatpush3.bf16.msra.mxu1 %v3331_v15 }
 0x120   :  { %v251_v6 = vmul.f32 %v2965_v4, %v199_v35  ;;  %2603 = vmatprep.subr.bf16.mxu1 %v3129_v0 }
 0x121   :  { %v2967_v5 = vpop.eup %2966 }
 0x122   :  { %v252_v7 = vmul.f32 %v2967_v5, %v202_v39 }
 0x123   :  { %2604 = vmatpush3.bf16.msra.mxu1 %v3336_v16 }
 0x124   :  { %v256_v8 = vpack.c.bf16 %v252_v7, %v251_v6  ;;  %2645 = vmatprep.subr.bf16.mxu1 %v3129_v0 }
 0x126   :  { %2580 = vmatmul.mubr.bf16.gmra.mrb[4].mxu1 %v256_v8 }
 0x127   :  { %v2969_v9 = vpop.eup %2968  ;;  %2583 = vmatprep.mubr.msk.bf16.mxu1 %vm3130_vm0, %v3129_v0 }
 0x128   :  { %v253_v11 = vmul.f32 %v2969_v9, %v207_v46 }
 0x129   :  { %v2971_v10 = vpop.eup %2970 }
 0x12a   :  { %v254_v12 = vmul.f32 %v2971_v10, %v210_v51 }
 0x12c   :  { %v257_v13 = vpack.c.bf16 %v254_v12, %v253_v11 }
 0x12e   :  { %2584 = vmatmul.mubr.bf16.gmra.mrb[8].mxu1 %v257_v13 }
 0x12f   :  { %2605 = vmatprep.mubr.msk.bf16.mxu1 %vm3130_vm0, %v3129_v0 }
 0x136   :  { %2606 = vmatmul.mubr.msk.bf16.vlgmr.msra.gmra.mrb[12].mxu1 %vm661_vm2, %v2869_v18  ;;  %v2876_v18 = vld [vmem:[%s3851_s8 + $0x48] sm:$0xff]  }
 0x137   :  { %2609 = vmatprep.mubr.msk.bf16.mxu1 %vm3130_vm0, %v3129_v0  ;;  %2646 = vmatpush3.bf16.msra.mxu1 %v2875_v17  ;;  %v2891_v17 = vld [vmem:[%s3851_s8 + $0x88] sm:$0xff]  }
 0x138   :  { %2647 = vmatprep.subr.bf16.mxu1 %v3129_v0  ;;  %2620 = vmatpush3.bf16.msra.mxu0 %v2876_v18 }
 0x139   :  { %2621 = vmatprep.subr.bf16.mxu0 %v3129_v0 }
 0x13b   :  { %2648 = vmatpush3.bf16.msra.mxu1 %v2877_v19 }
 0x13c   :  { %2649 = vmatprep.subr.bf16.mxu1 %v3129_v0 }
 0x13e   :  { %2610 = vmatmul.mubr.msk.bf16.gmra.mrb[16].mxu1 %vm661_vm2, %v2871_v22  ;;  %v2878_v22 = vld [vmem:[%s3851_s8 + $0x50] sm:$0xff]  }
 0x13f   :  { %2613 = vmatprep.mubr.msk.bf16.mxu1 %vm3130_vm0, %v3129_v0  ;;  %2622 = vmatpush3.bf16.msra.mxu0 %v2878_v22 }
 0x140   :  { %2650 = vmatpush3.bf16.msra.mxu1 %v2879_v25  ;;  %2623 = vmatprep.subr.bf16.mxu0 %v3129_v0 }
 0x141   :  { %2651 = vmatprep.subr.bf16.mxu1 %v3129_v0 }
 0x146   :  { %2614 = vmatmul.mubr.msk.bf16.gmra.mrb[20].mxu1 %vm661_vm2, %v2873_v26  ;;  %v2880_v26 = vld [vmem:[%s3851_s8 + $0x58] sm:$0xff]  }
 0x147   :  { %2661 = vmatprep.mubr.msk.bf16.mxu1 %vm3130_vm0, %v3129_v0  ;;  %2624 = vmatpush3.bf16.msra.mxu0 %v2880_v26  ;;  %v2892_v26 = vld [vmem:[%s3851_s8 + $0x90] sm:$0xff]  }
 0x148   :  { %2625 = vmatprep.subr.bf16.mxu0 %v3129_v0 }
 0x1f1   :  { %v360_v29 = vpop.f32.mrb[0].mxu1 }
 0x1f2   :  { %v361_v30 = vadd.f32 %v360_v29, %v277_v28  ;;  %v2577_v31 = vpop.f32.mrb[1].mxu1  ;;  %v2882_v29 = vld [vmem:[%s3851_s8 + $0x60] sm:$0xff]  }
 0x1f3   :  { %v363_v32 = vpop.f32.mrb[2].mxu1  ;;  %v2884_v31 = vld [vmem:[%s3851_s8 + $0x68] sm:$0xff]   ;;  %2626 = vmatpush3.bf16.msra.mxu0 %v2882_v29 }
 0x1f4   :  { %v2282_v33 = vmul.f32 -1.442695, %v361_v30  ;;  %v364_v34 = vadd.f32 %v363_v32, %v277_v28  ;;  %v2578_v35 = vpop.f32.mrb[3].mxu1  ;;  %v2885_v32 = vld [vmem:[%s3851_s8 + $0x28] sm:$0xff]   ;;  %2627 = vmatprep.subr.bf16.mxu0 %v3129_v0 }
 0x1f5   :  { %v2888_v35 = vld [vmem:[%s3851_s8 + $0x78] sm:$0xff]  }
 0x1f6   :  { %2972 = vpow2.f32 %v2282_v33  ;;  %v2283_v36 = vmul.f32 -1.442695, %v364_v34  ;;  %v2886_v33 = vld [vmem:[%s3851_s8 + $0x70] sm:$0xff]  }
 0x1f7   :  { %2628 = vmatpush3.bf16.msra.mxu0 %v2884_v31 }
 0x1f8   :  { %2974 = vpow2.f32 %v2283_v36  ;;  %2629 = vmatprep.subr.bf16.mxu0 %v3129_v0  ;;  %v2889_v36 = vld [vmem:[%s3851_s8 + $0x38] sm:$0xff]  }
 0x1f9   :  { %v368_v37 = vpop.f32.mrb[4].mxu1 }
 0x1fa   :  { %v369_v38 = vadd.f32 %v368_v37, %v277_v28  ;;  %v2581_v39 = vpop.f32.mrb[5].mxu1  ;;  %v611_v37 = vpop.f32.mrb[12].mxu0 }
 0x1fb   :  { %v371_v40 = vpop.f32.mrb[6].mxu1  ;;  %2630 = vmatpush3.bf16.msra.mxu0 %v2886_v33 }
 0x1fc   :  { %v2284_v41 = vmul.f32 -1.442695, %v369_v38  ;;  %v372_v42 = vadd.f32 %v371_v40, %v277_v28  ;;  %v2582_v43 = vpop.f32.mrb[7].mxu1  ;;  %2631 = vmatprep.subr.bf16.mxu0 %v3129_v0  ;;  %v2890_v40 = vld [vmem:[%s3851_s8 + $0x80] sm:$0xff]  }
 0x1fe   :  { %2976 = vpow2.f32 %v2284_v41  ;;  %v2285_v44 = vmul.f32 -1.442695, %v372_v42 }
 0x1ff   :  { %2632 = vmatpush3.bf16.msra.mxu0 %v2888_v35  ;;  %v2893_v35 = vld [vmem:[%s3851_s8 + $0x98] sm:$0xff]  }
 0x200   :  { %v2973_v45 = vpop.eup %2972  ;;  %2978 = vpow2.f32 %v2285_v44  ;;  %2673 = vmatprep.subr.bf16.mxu0 %v3129_v0 }
 0x201   :  { %v401_v46 = vadd.f32 1.0, %v2973_v45  ;;  %v376_v47 = vpop.f32.mrb[8].mxu1 }
 0x202   :  { %v2975_v48 = vpop.eup %2974  ;;  %v377_v49 = vadd.f32 %v376_v47, %v277_v28  ;;  %v2585_v50 = vpop.f32.mrb[9].mxu1 }
 0x203   :  { %2980 = vrcp.f32 %v401_v46  ;;  %v402_v51 = vadd.f32 1.0, %v2975_v48  ;;  %v379_v52 = vpop.f32.mrb[10].mxu1  ;;  %v58_v48 = vand.u32 127, %v57_v20 }
 0x204   :  { %v2286_v53 = vmul.f32 -1.442695, %v377_v49  ;;  %v380_v54 = vadd.f32 %v379_v52, %v277_v28  ;;  %v2586_v55 = vpop.f32.mrb[11].mxu1  ;;  %v2881_v28 = vld [vmem:[%s3851_s8 + $0x18] sm:$0xff]  }
 0x205   :  { %2982 = vrcp.f32 %v402_v51  ;;  %2652 = vmatpush3.bf16.msra.mxu1 %v2881_v28  ;;  %vm59_vm3 = vcmp.lt.s32.totalorder %v58_v48, 32  ;;  %v2896_v48 = vld [vmem:[%s3851_s8 + $0xb0] sm:$0xff]  }
 0x206   :  { %2984 = vpow2.f32 %v2286_v53  ;;  %v2287_v56 = vmul.f32 -1.442695, %v380_v54  ;;  %2653 = vmatprep.subr.bf16.mxu1 %v3129_v0  ;;  %v3473_v51 = vsel %vm59_vm3, 1.0, %v3129_v0 }
 0x208   :  { %v2977_v57 = vpop.eup %2976  ;;  %2986 = vpow2.f32 %v2287_v56 }
 0x209   :  { %v403_v58 = vadd.f32 1.0, %v2977_v57  ;;  %v705_v43 = vpop.f32.mrb[12].mxu1 }
 0x20a   :  { %v2979_v59 = vpop.eup %2978  ;;  %v2607_v44 = vpop.f32.mrb[13].mxu1 }
 0x20b   :  { %2988 = vrcp.f32 %v403_v58  ;;  %v404_v60 = vadd.f32 1.0, %v2979_v59  ;;  %v708_v45 = vpop.f32.mrb[14].mxu1 }
 0x20c   :  { %v728_v46 = vpack.c.bf16 %v708_v45, %v705_v43  ;;  %v2608_v47 = vpop.f32.mrb[15].mxu1 }
 0x20d   :  { %v2981_v61 = vpop.eup %2980  ;;  %2990 = vrcp.f32 %v404_v60  ;;  %v2895_v47 = vld [vmem:[%s3851_s8 + $0xa8] sm:$0xff]  }
 0x20e   :  { %v3381_v62 = vmul.f32 %v2981_v61, %v361_v30  ;;  %v2883_v30 = vld [vmem:[%s3851_s8 + $0x20] sm:$0xff]  }
 0x20f   :  { %v2983_v63 = vpop.eup %2982  ;;  %2654 = vmatpush3.bf16.msra.mxu1 %v2883_v30 }
 0x210   :  { %v2985_v1 = vpop.eup %2984  ;;  %425 = vadd.xlane.f32.xlu0 %v3381_v62  ;;  %v3384_v4 = vmul.f32 %v2983_v63, %v364_v34  ;;  %2655 = vmatprep.subr.bf16.mxu1 %v3129_v0  ;;  %v2887_v34 = vld [vmem:[%s3851_s8 + $0x30] sm:$0xff]  }
 0x211   :  { %v405_v2 = vadd.f32 1.0, %v2985_v1  ;;  %v713_v25 = vpop.f32.mrb[16].mxu1 }
 0x212   :  { %v2987_v3 = vpop.eup %2986  ;;  %v2611_v29 = vpop.f32.mrb[17].mxu1 }
 0x213   :  { %2992 = vrcp.f32 %v405_v2  ;;  %v406_v5 = vadd.f32 1.0, %v2987_v3  ;;  %2656 = vmatpush3.bf16.msra.mxu1 %v2885_v32  ;;  %v716_v31 = vpop.f32.mrb[18].mxu1 }
 0x214   :  { %427 = vadd.xlane.f32.xlu0 %v3384_v4  ;;  %2657 = vmatprep.subr.bf16.mxu1 %v3129_v0  ;;  %v729_v33 = vpack.c.bf16 %v716_v31, %v713_v25 }
 0x215   :  { %v2989_v6 = vpop.eup %2988  ;;  %2994 = vrcp.f32 %v406_v5 }
 0x216   :  { %v3387_v7 = vmul.f32 %v2989_v6, %v369_v38  ;;  %v2591_v38 = vpop.f32.mrb[13].mxu0 }
 0x217   :  { %v2991_v8 = vpop.eup %2990  ;;  %2658 = vmatpush3.bf16.msra.mxu1 %v2887_v34  ;;  %v614_v39 = vpop.f32.mrb[14].mxu0 }
 0x218   :  { %429 = vadd.xlane.f32.xlu1 %v3387_v7  ;;  %v3390_v9 = vmul.f32 %v2991_v8, %v372_v42  ;;  %2659 = vmatprep.subr.bf16.mxu1 %v3129_v0  ;;  %v747_v41 = vpack.c.bf16 %v614_v39, %v611_v37  ;;  %v2592_v42 = vpop.f32.mrb[15].mxu0  ;;  %v2612_v34 = vpop.f32.mrb[19].mxu1  ;;  %v2894_v39 = vld [vmem:[%s3851_s8 + $0xa0] sm:$0xff]  }
 0x219   :  { %v721_v38 = vpop.f32.mrb[20].mxu1 }
 0x21a   :  { %2634 = vmatmul.mubr.bf16.vlgmr.msra.gmra.mrb[24].mxu0 %v747_v41  ;;  %v2615_v41 = vpop.f32.mrb[21].mxu1 }
 0x21b   :  { %2660 = vmatpush3.bf16.msra.mxu1 %v2889_v36  ;;  %2674 = vmatpush3.bf16.msra.mxu0 %v2890_v40  ;;  %v724_v43 = vpop.f32.mrb[22].mxu1 }
 0x21c   :  { %431 = vadd.xlane.f32.xlu1 %v3390_v9  ;;  %2701 = vmatprep.subr.bf16.mxu1 %v3129_v0  ;;  %v730_v45 = vpack.c.bf16 %v724_v43, %v721_v38 }
 0x21d   :  { %v2993_v10 = vpop.eup %2992  ;;  %2637 = vmatprep.mubr.msk.bf16.mxu0 %vm3130_vm0, %v3129_v0  ;;  %2675 = vmatprep.subr.bf16.mxu0 %v3129_v0 }
 0x21e   :  { %v3393_v11 = vmul.f32 %v2993_v10, %v377_v49  ;;  %2662 = vmatmul.mubr.bf16.vlgmr.msra.gmra.mrb[24].mxu1 %v728_v46  ;;  %v2616_v46 = vpop.f32.mrb[23].mxu1 }
 0x21f   :  { %v2995_v12 = vpop.eup %2994  ;;  %2665 = vmatprep.mubr.msk.bf16.mxu1 %vm3130_vm0, %v3129_v0  ;;  %2676 = vmatpush3.bf16.msra.mxu0 %v2891_v17 }
 0x220   :  { %433 = vadd.xlane.f32.xlu0 %v3393_v11  ;;  %v3396_v13 = vmul.f32 %v2995_v12, %v380_v54  ;;  %2677 = vmatprep.subr.bf16.mxu0 %v3129_v0 }
 0x222   :  { %435 = vadd.xlane.f32.xlu1 %v3396_v13 }
 0x223   :  { %2678 = vmatpush3.bf16.msra.mxu0 %v2892_v26 }
 0x224   :  { %2679 = vmatprep.subr.bf16.mxu0 %v3129_v0 }
 0x226   :  { %2666 = vmatmul.mubr.bf16.gmra.mrb[28].mxu1 %v729_v33 }
 0x227   :  { %2680 = vmatpush3.bf16.msra.mxu0 %v2893_v35  ;;  %2669 = vmatprep.mubr.msk.bf16.mxu1 %vm3130_vm0, %v3129_v0 }
 0x228   :  { %2681 = vmatprep.subr.bf16.mxu0 %v3129_v0 }
 0x22b   :  { %2682 = vmatpush3.bf16.msra.mxu0 %v2894_v39 }
 0x22c   :  { %2683 = vmatprep.subr.bf16.mxu0 %v3129_v0 }
 0x22e   :  { %2670 = vmatmul.mubr.bf16.gmra.mrb[32].mxu1 %v730_v45 }
 0x22f   :  { %2684 = vmatpush3.bf16.msra.mxu0 %v2895_v47  ;;  %2717 = vmatprep.mubr.msk.bf16.mxu1 %vm3130_vm0, %v3129_v0 }
 0x230   :  { %2685 = vmatprep.subr.bf16.mxu0 %v3129_v0 }
 0x233   :  { %2686 = vmatpush3.bf16.msra.mxu0 %v2896_v48 }
 0x234   :  { %2687 = vmatprep.subr.bf16.mxu0 %v3129_v0 }
 0x29d   :  { %v426_v49 = vpop.xlane.xlu0 %425 }
 0x29e   :  { %v437_v50 = vmul.f32 0.03125, %v426_v49  ;;  %v2897_v49 = vld [vmem:[%s3851_s8 + $0xb8] sm:$0xff]  }
 0x29f   :  { %2688 = vmatpush3.bf16.msra.mxu0 %v2897_v49 }
 0x2a0   :  { %v3476_v52 = vsub.f32 %v3381_v62, %v437_v50 }
 0x2a1   :  { %v428_v53 = vpop.xlane.xlu0 %427 }
 0x2a2   :  { %v438_v54 = vmul.f32 0.03125, %v428_v53  ;;  %v449_v55 = vmul.f32 %v3473_v51, %v3476_v52 }
 0x2a4   :  { %v3481_v56 = vsub.f32 %v3384_v4, %v438_v54  ;;  %v455_v57 = vmul.f32 %v449_v55, %v449_v55 }
 0x2a5   :  { %v430_v58 = vpop.xlane.xlu1 %429 }
 0x2a6   :  { %v439_v20 = vmul.f32 0.03125, %v430_v58  ;;  %461 = vadd.xlane.f32.xlu0 %v455_v57  ;;  %v450_v59 = vmul.f32 %v3473_v51, %v3481_v56 }
 0x2a8   :  { %v3486_v60 = vsub.f32 %v3387_v7, %v439_v20  ;;  %v456_v61 = vmul.f32 %v450_v59, %v450_v59 }
 0x2a9   :  { %v432_v62 = vpop.xlane.xlu1 %431 }
 0x2aa   :  { %v440_v63 = vmul.f32 0.03125, %v432_v62  ;;  %463 = vadd.xlane.f32.xlu1 %v456_v61  ;;  %v451_v1 = vmul.f32 %v3473_v51, %v3486_v60  ;;  %v3541_v62 = vsub.s32 2, %v3307_v21 }
 0x2ac   :  { %v3491_v2 = vsub.f32 %v3390_v9, %v440_v63  ;;  %v457_v3 = vmul.f32 %v451_v1, %v451_v1 }
 0x2ad   :  { %v434_v4 = vpop.xlane.xlu0 %433 }
 0x2ae   :  { %v441_v5 = vmul.f32 0.03125, %v434_v4  ;;  %465 = vadd.xlane.f32.xlu0 %v457_v3  ;;  %v452_v6 = vmul.f32 %v3473_v51, %v3491_v2 }
 0x2af   :  { %v436_v8 = vpop.xlane.xlu1 %435 }
 0x2b0   :  { %v3496_v7 = vsub.f32 %v3393_v11, %v441_v5  ;;  %v442_v10 = vmul.f32 0.03125, %v436_v8  ;;  %v458_v12 = vmul.f32 %v452_v6, %v452_v6  ;;  %v619_v11 = vpop.f32.mrb[16].mxu0  ;;  %v500_v5 = vrot.slane %v3312_v23, %v3541_v62 }
 0x2b2   :  { %v3499_v14 = vsub.f32 %v3396_v13, %v442_v10  ;;  %467 = vadd.xlane.f32.xlu1 %v458_v12  ;;  %v453_v9 = vmul.f32 %v3473_v51, %v3496_v7  ;;  %v2595_v13 = vpop.f32.mrb[17].mxu0  ;;  %v3547_v10 = vsub.s32 3, %v3307_v21 }
 0x2b3   :  { %v622_v28 = vpop.f32.mrb[18].mxu0 }
 0x2b4   :  { %v459_v18 = vmul.f32 %v453_v9, %v453_v9  ;;  %v454_v19 = vmul.f32 %v3473_v51, %v3499_v14  ;;  %v748_v30 = vpack.c.bf16 %v622_v28, %v619_v11  ;;  %v2596_v32 = vpop.f32.mrb[19].mxu0  ;;  %v510_v13 = vrot.slane %v3312_v23, %v3547_v10 }
 0x2b5   :  { %v627_v36 = vpop.f32.mrb[20].mxu0 }
 0x2b6   :  { %469 = vadd.xlane.f32.xlu0 %v459_v18  ;;  %v460_v22 = vmul.f32 %v454_v19, %v454_v19  ;;  %2638 = vmatmul.mubr.bf16.gmra.mrb[28].mxu0 %v748_v30  ;;  %v2599_v37 = vpop.f32.mrb[21].mxu0 }
 0x2b7   :  { %2641 = vmatprep.mubr.msk.bf16.mxu0 %vm3130_vm0, %v3129_v0  ;;  %v630_v40 = vpop.f32.mrb[22].mxu0 }
 0x2b8   :  { %471 = vadd.xlane.f32.xlu1 %v460_v22  ;;  %v749_v42 = vpack.c.bf16 %v630_v40, %v627_v36  ;;  %v2600_v44 = vpop.f32.mrb[23].mxu0 }
 0x2be   :  { %2642 = vmatmul.mubr.bf16.gmra.mrb[32].mxu0 %v749_v42 }
 0x2bf   :  { %2689 = vmatprep.mubr.msk.bf16.mxu0 %vm3130_vm0, %v3129_v0 }
 0x2f1   :  { %v953_v45 = vpop.f32.mrb[24].mxu1 }
 0x2f2   :  { %v2663_v46 = vpop.f32.mrb[25].mxu1 }
 0x2f3   :  { %v956_v48 = vpop.f32.mrb[26].mxu1 }
 0x333   :  { %v462_v50 = vpop.xlane.xlu0 %461 }
 0x334   :  { %v473_v53 = vmul.f32 0.03125, %v462_v50  ;;  %v2664_v50 = vpop.f32.mrb[27].mxu1 }
 0x336   :  { %v479_v54 = vadd.f32 1e-05, %v473_v53 }
 0x337   :  { %v464_v55 = vpop.xlane.xlu1 %463 }
 0x338   :  { %2996 = vrsqrt.f32 %v479_v54  ;;  %v474_v57 = vmul.f32 0.03125, %v464_v55  ;;  %v961_v55 = vpop.f32.mrb[28].mxu1 }
 0x33a   :  { %v480_v58 = vadd.f32 1e-05, %v474_v57 }
 0x33b   :  { %v466_v20 = vpop.xlane.xlu0 %465 }
 0x33c   :  { %2998 = vrsqrt.f32 %v480_v58  ;;  %v475_v59 = vmul.f32 0.03125, %v466_v20  ;;  %v2667_v20 = vpop.f32.mrb[29].mxu1 }
 0x33e   :  { %v481_v61 = vadd.f32 1e-05, %v475_v59 }
 0x33f   :  { %v468_v63 = vpop.xlane.xlu1 %467 }
 0x340   :  { %3000 = vrsqrt.f32 %v481_v61  ;;  %v476_v1 = vmul.f32 0.03125, %v468_v63  ;;  %v964_v61 = vpop.f32.mrb[30].mxu1 }
 0x342   :  { %v2997_v3 = vpop.eup %2996  ;;  %v482_v4 = vadd.f32 1e-05, %v476_v1  ;;  %v2668_v1 = vpop.f32.mrb[31].mxu1 }
 0x343   :  { %v491_v6 = vmul.f32 %v2997_v3, %v3476_v52  ;;  %v470_v8 = vpop.xlane.xlu0 %469 }
 0x344   :  { %3002 = vrsqrt.f32 %v482_v4  ;;  %v477_v12 = vmul.f32 0.03125, %v470_v8 }
 0x345   :  { %v472_v9 = vpop.xlane.xlu1 %471  ;;  %v501_v11 = vmul.f32 %v500_v5, %v491_v6 }
 0x346   :  { %v2999_v17 = vpop.eup %2998  ;;  %v483_v18 = vadd.f32 1e-05, %v477_v12  ;;  %v478_v19 = vmul.f32 0.03125, %v472_v9 }
 0x347   :  { %v492_v22 = vmul.f32 %v2999_v17, %v3481_v56  ;;  %v3552_v28 = vadd.f32 %v510_v13, %v501_v11  ;;  %v2898_v11 = vld [vmem:[%s3852_s9] sm:$0xff]  }
 0x348   :  { %3004 = vrsqrt.f32 %v483_v18  ;;  %v484_v25 = vadd.f32 1e-05, %v478_v19  ;;  %2702 = vmatpush3.bf16.msra.mxu1 %v2898_v11 }
 0x349   :  { %v502_v26 = vmul.f32 %v500_v5, %v492_v22  ;;  %2703 = vmatprep.subr.bf16.mxu1 %v3129_v0  ;;  %v2899_v22 = vld [vmem:[%s3852_s9 + $0x8] sm:$0xff]  }
 0x34a   :  { %v3001_v52 = vpop.eup %3000  ;;  %3006 = vrsqrt.f32 %v484_v25  ;;  %v2901_v25 = vld [vmem:[%s3852_s9 + $0x18] sm:$0xff]  }
 0x34b   :  { %v3554_v21 = vadd.f32 %v510_v13, %v502_v26  ;;  %v493_v29 = vmul.f32 %v3001_v52, %v3486_v60  ;;  %v848_v60 = vpop.f32.mrb[24].mxu0  ;;  %v2902_v26 = vld [vmem:[%s3852_s9 + $0x20] sm:$0xff]   ;;  %v2903_v52 = vld [vmem:[%s3852_s9 + $0x28] sm:$0xff]  }
 0x34c   :  { %v2635_v38 = vpop.f32.mrb[25].mxu0  ;;  %2704 = vmatpush3.bf16.msra.mxu1 %v2899_v22 }
 0x34d   :  { %v543_v30 = vpack.c.bf16 %v3554_v21, %v3552_v28  ;;  %v503_v32 = vmul.f32 %v500_v5, %v493_v29  ;;  %v851_v40 = vpop.f32.mrb[26].mxu0  ;;  %2705 = vmatprep.subr.bf16.mxu1 %v3129_v0  ;;  %v2904_v29 = vld [vmem:[%s3852_s9 + $0x30] sm:$0xff]  }
 0x34e   :  { %v3003_v31 = vpop.eup %3002  ;;  %v2636_v41 = vpop.f32.mrb[27].mxu0  ;;  %v957_v49 = vadd.f32 %v956_v48, %v851_v40 }
 0x34f   :  { %2690 = vmatmul.mubr.bf16.vlgmr.msra.gmra.mrb[36].mxu0 %v543_v30  ;;  %v494_v56 = vmul.f32 %v3003_v31, %v3491_v2  ;;  %v3562_v34 = vadd.f32 %v510_v13, %v503_v32  ;;  %v2905_v30 = vld [vmem:[%s3852_s9 + $0x38] sm:$0xff]   ;;  %v539_v31 = vld [vmem:[%s3853_s10] sm:$0x3] }
 0x350   :  { %2693 = vmatprep.mubr.msk.bf16.mxu0 %vm3130_vm0, %v3129_v0 }
 0x351   :  { %v504_v23 = vmul.f32 %v500_v5, %v494_v56  ;;  %v3612_v56 = vunpack.c.l.bf16 %v539_v31 }
 0x352   :  { %v3005_v33 = vpop.eup %3004 }
 0x353   :  { %v3564_v35 = vadd.f32 %v510_v13, %v504_v23  ;;  %v495_v36 = vmul.f32 %v3005_v33, %v3496_v7  ;;  %v954_v7 = vadd.f32 %v953_v45, %v848_v60  ;;  %v1106_v32 = vrot.slane %v3612_v56, %v3315_v24 }
 0x354   :  { %v3007_v37 = vpop.eup %3006 }
 0x355   :  { %v544_v39 = vpack.c.bf16 %v3564_v35, %v3562_v34  ;;  %v496_v2 = vmul.f32 %v3007_v37, %v3499_v14  ;;  %v505_v42 = vmul.f32 %v500_v5, %v495_v36 }
 0x357   :  { %2694 = vmatmul.mubr.bf16.gmra.mrb[40].mxu0 %v544_v39  ;;  %v506_v43 = vmul.f32 %v500_v5, %v496_v2  ;;  %v3574_v47 = vadd.f32 %v510_v13, %v505_v42  ;;  %v969_v5 = vpop.f32.mrb[32].mxu1 }
 0x358   :  { %2697 = vmatprep.mubr.msk.bf16.mxu0 %vm3130_vm0, %v3129_v0  ;;  %v2671_v12 = vpop.f32.mrb[33].mxu1 }
 0x359   :  { %v3572_v44 = vadd.f32 %v510_v13, %v506_v43  ;;  %v972_v17 = vpop.f32.mrb[34].mxu1  ;;  %v2900_v13 = vld [vmem:[%s3852_s9 + $0x10] sm:$0xff]  }
 0x35a   :  { %v2672_v19 = vpop.f32.mrb[35].mxu1  ;;  %2706 = vmatpush3.bf16.msra.mxu1 %v2900_v13 }
 0x35b   :  { %v545_v14 = vpack.c.bf16 %v3572_v44, %v3574_v47  ;;  %2707 = vmatprep.subr.bf16.mxu1 %v3129_v0 }
 0x35e   :  { %2708 = vmatpush3.bf16.msra.mxu1 %v2901_v25 }
 0x35f   :  { %2698 = vmatmul.mubr.bf16.gmra.mrb[44].mxu0 %v545_v14  ;;  %2709 = vmatprep.subr.bf16.mxu1 %v3129_v0 }
 0x362   :  { %2710 = vmatpush3.bf16.msra.mxu1 %v2902_v26 }
 0x363   :  { %2711 = vmatprep.subr.bf16.mxu1 %v3129_v0 }
 0x366   :  { %2712 = vmatpush3.bf16.msra.mxu1 %v2903_v52 }
 0x367   :  { %2713 = vmatprep.subr.bf16.mxu1 %v3129_v0 }
 0x36a   :  { %2714 = vmatpush3.bf16.msra.mxu1 %v2904_v29 }
 0x36b   :  { %2715 = vmatprep.subr.bf16.mxu1 %v3129_v0 }
 0x36e   :  { %2716 = vmatpush3.bf16.msra.mxu1 %v2905_v30 }
 0x389   :  { %v856_v53 = vpop.f32.mrb[28].mxu0 }
 0x38a   :  { %v2639_v54 = vpop.f32.mrb[29].mxu0  ;;  %v962_v57 = vadd.f32 %v961_v55, %v856_v53 }
 0x38b   :  { %v859_v58 = vpop.f32.mrb[30].mxu0 }
 0x38c   :  { %v2640_v59 = vpop.f32.mrb[31].mxu0  ;;  %v965_v63 = vadd.f32 %v964_v61, %v859_v58 }
 0x391   :  { %v864_v3 = vpop.f32.mrb[32].mxu0 }
 0x392   :  { %v2643_v4 = vpop.f32.mrb[33].mxu0  ;;  %v970_v6 = vadd.f32 %v969_v5, %v864_v3 }
 0x393   :  { %v867_v8 = vpop.f32.mrb[34].mxu0 }
 0x394   :  { %v2644_v9 = vpop.f32.mrb[35].mxu0  ;;  %v973_v18 = vadd.f32 %v972_v17, %v867_v8 }
 0x422   :  { %v1074_v23 = vpop.f32.mrb[36].mxu0 }
 0x423   :  { %v1097_v33 = vadd.f32 %v1074_v23, %v954_v7  ;;  %v2691_v36 = vpop.f32.mrb[37].mxu0 }
 0x424   :  { %v1077_v60 = vpop.f32.mrb[38].mxu0 }
 0x425   :  { %v1107_v37 = vadd.f32 %v1106_v32, %v1097_v33  ;;  %v1098_v38 = vadd.f32 %v1077_v60, %v957_v49  ;;  %v2692_v39 = vpop.f32.mrb[39].mxu0 }
 0x427   :  { %v2327_v2 = vmul.f32 -1.442695, %v1107_v37  ;;  %v1108_v40 = vadd.f32 %v1106_v32, %v1098_v38 }
 0x429   :  { %3008 = vpow2.f32 %v2327_v2  ;;  %v2328_v41 = vmul.f32 -1.442695, %v1108_v40 }
 0x42a   :  { %v1082_v42 = vpop.f32.mrb[40].mxu0 }
 0x42b   :  { %3010 = vpow2.f32 %v2328_v41  ;;  %v1099_v43 = vadd.f32 %v1082_v42, %v962_v57  ;;  %v2695_v45 = vpop.f32.mrb[41].mxu0 }
 0x42c   :  { %v1085_v46 = vpop.f32.mrb[42].mxu0 }
 0x42d   :  { %v1109_v48 = vadd.f32 %v1106_v32, %v1099_v43  ;;  %v1100_v50 = vadd.f32 %v1085_v46, %v965_v63  ;;  %v2696_v14 = vpop.f32.mrb[43].mxu0 }
 0x42f   :  { %v2329_v53 = vmul.f32 -1.442695, %v1109_v48  ;;  %v1110_v54 = vadd.f32 %v1106_v32, %v1100_v50 }
 0x431   :  { %3012 = vpow2.f32 %v2329_v53  ;;  %v2330_v7 = vmul.f32 -1.442695, %v1110_v54 }
 0x432   :  { %v1090_v55 = vpop.f32.mrb[44].mxu0 }
 0x433   :  { %v3009_v58 = vpop.eup %3008  ;;  %3014 = vpow2.f32 %v2330_v7  ;;  %v1101_v49 = vadd.f32 %v1090_v55, %v970_v6  ;;  %v2699_v20 = vpop.f32.mrb[45].mxu0 }
 0x434   :  { %v1131_v59 = vadd.f32 1.0, %v3009_v58  ;;  %v1093_v61 = vpop.f32.mrb[46].mxu0 }
 0x435   :  { %v3011_v1 = vpop.eup %3010  ;;  %v1111_v3 = vadd.f32 %v1106_v32, %v1101_v49  ;;  %v1102_v4 = vadd.f32 %v1093_v61, %v973_v18  ;;  %v2700_v57 = vpop.f32.mrb[47].mxu0 }
 0x436   :  { %3016 = vrcp.f32 %v1131_v59  ;;  %v1132_v5 = vadd.f32 1.0, %v3011_v1 }
 0x437   :  { %v2331_v8 = vmul.f32 -1.442695, %v1111_v3  ;;  %v1112_v63 = vadd.f32 %v1106_v32, %v1102_v4 }
 0x438   :  { %3018 = vrcp.f32 %v1132_v5 }
 0x439   :  { %3020 = vpow2.f32 %v2331_v8  ;;  %v2332_v12 = vmul.f32 -1.442695, %v1112_v63 }
 0x43b   :  { %v3013_v9 = vpop.eup %3012  ;;  %3022 = vpow2.f32 %v2332_v12 }
 0x43c   :  { %v1133_v17 = vadd.f32 1.0, %v3013_v9 }
 0x43d   :  { %v3015_v19 = vpop.eup %3014 }
 0x43e   :  { %3024 = vrcp.f32 %v1133_v17  ;;  %v1134_v6 = vadd.f32 1.0, %v3015_v19 }
 0x440   :  { %v3017_v11 = vpop.eup %3016  ;;  %3026 = vrcp.f32 %v1134_v6 }
 0x441   :  { %v1149_v25 = vmul.f32 %v3017_v11, %v1107_v37 }
 0x442   :  { %v3019_v22 = vpop.eup %3018 }
 0x443   :  { %v3021_v13 = vpop.eup %3020  ;;  %v1150_v18 = vmul.f32 %v3019_v22, %v1108_v40  ;;  %v1177_v40 = vrot.slane %v3612_v56, %v3377_v27 }
 0x444   :  { %v1135_v26 = vadd.f32 1.0, %v3021_v13 }
 0x445   :  { %v3023_v52 = vpop.eup %3022  ;;  %v1155_v29 = vpack.c.bf16 %v1150_v18, %v1149_v25 }
 0x446   :  { %3028 = vrcp.f32 %v1135_v26  ;;  %v1136_v30 = vadd.f32 1.0, %v3023_v52 }
 0x447   :  { %2718 = vmatmul.mubr.bf16.vlgmr.msra.gmra.mrb[36].mxu1 %v1155_v29 }
 0x448   :  { %v3025_v31 = vpop.eup %3024  ;;  %3030 = vrcp.f32 %v1136_v30  ;;  %2721 = vmatprep.mubr.msk.bf16.mxu1 %vm3130_vm0, %v3129_v0 }
 0x449   :  { %v1151_v23 = vmul.f32 %v3025_v31, %v1109_v48 }
 0x44a   :  { %v3027_v32 = vpop.eup %3026 }
 0x44b   :  { %v1152_v33 = vmul.f32 %v3027_v32, %v1110_v54 }
 0x44d   :  { %v1156_v36 = vpack.c.bf16 %v1152_v33, %v1151_v23 }
 0x44f   :  { %2722 = vmatmul.mubr.bf16.gmra.mrb[40].mxu1 %v1156_v36 }
 0x450   :  { %v3029_v60 = vpop.eup %3028  ;;  %2725 = vmatprep.mubr.msk.bf16.mxu1 %vm3130_vm0, %v3129_v0 }
 0x451   :  { %v1153_v38 = vmul.f32 %v3029_v60, %v1111_v3 }
 0x452   :  { %v3031_v37 = vpop.eup %3030 }
 0x453   :  { %v1154_v39 = vmul.f32 %v3031_v37, %v1112_v63 }
 0x455   :  { %v1157_v2 = vpack.c.bf16 %v1154_v39, %v1153_v38 }
 0x457   :  { %2726 = vmatmul.mubr.bf16.gmra.mrb[44].mxu1 %v1157_v2 }
 0x51a   :  { %v1260_v41 = vpop.f32.mrb[36].mxu1 }
 0x51b   :  { %v1261_v42 = vadd.f32 %v1260_v41, %v1177_v40  ;;  %v2719_v43 = vpop.f32.mrb[37].mxu1 }
 0x51c   :  { %v1263_v45 = vpop.f32.mrb[38].mxu1 }
 0x51d   :  { %v2341_v46 = vmul.f32 -1.442695, %v1261_v42  ;;  %v1264_v48 = vadd.f32 %v1263_v45, %v1177_v40  ;;  %v2720_v50 = vpop.f32.mrb[39].mxu1 }
 0x51f   :  { %3032 = vpow2.f32 %v2341_v46  ;;  %v2342_v14 = vmul.f32 -1.442695, %v1264_v48 }
 0x521   :  { %3034 = vpow2.f32 %v2342_v14 }
 0x522   :  { %v1268_v53 = vpop.f32.mrb[40].mxu1 }
 0x523   :  { %v1269_v0 = vadd.f32 %v1268_v53, %v1177_v40  ;;  %v2723_v54 = vpop.f32.mrb[41].mxu1 }
 0x524   :  { %v1271_v7 = vpop.f32.mrb[42].mxu1 }
 0x525   :  { %v2343_v55 = vmul.f32 -1.442695, %v1269_v0  ;;  %v1272_v58 = vadd.f32 %v1271_v7, %v1177_v40  ;;  %v2724_v49 = vpop.f32.mrb[43].mxu1 }
 0x527   :  { %3036 = vpow2.f32 %v2343_v55  ;;  %v2344_v20 = vmul.f32 -1.442695, %v1272_v58 }
 0x529   :  { %v3033_v59 = vpop.eup %3032  ;;  %3038 = vpow2.f32 %v2344_v20 }
 0x52a   :  { %v1301_v61 = vadd.f32 1.0, %v3033_v59  ;;  %v1276_v1 = vpop.f32.mrb[44].mxu1 }
 0x52b   :  { %v3035_v3 = vpop.eup %3034  ;;  %v1277_v4 = vadd.f32 %v1276_v1, %v1177_v40  ;;  %v2727_v57 = vpop.f32.mrb[45].mxu1 }
 0x52c   :  { %3040 = vrcp.f32 %v1301_v61  ;;  %v1302_v5 = vadd.f32 1.0, %v3035_v3  ;;  %v1279_v8 = vpop.f32.mrb[46].mxu1 }
 0x52d   :  { %v2345_v63 = vmul.f32 -1.442695, %v1277_v4  ;;  %v1280_v12 = vadd.f32 %v1279_v8, %v1177_v40  ;;  %v2728_v9 = vpop.f32.mrb[47].mxu1 }
 0x52e   :  { %3042 = vrcp.f32 %v1302_v5 }
 0x52f   :  { %3044 = vpow2.f32 %v2345_v63  ;;  %v2346_v17 = vmul.f32 -1.442695, %v1280_v12 }
 0x531   :  { %v3037_v19 = vpop.eup %3036  ;;  %3046 = vpow2.f32 %v2346_v17 }
 0x532   :  { %v1303_v6 = vadd.f32 1.0, %v3037_v19  ;;  %v3124_v19 = vld [vmem:[%s3850_s4] sm:$0xff]  }
 0x533   :  { %v3039_v11 = vpop.eup %3038 }
 0x534   :  { %3048 = vrcp.f32 %v1303_v6  ;;  %v1304_v22 = vadd.f32 1.0, %v3039_v11  ;;  %v2906_v6 = vld [vmem:[%s3854_s11 + $0x40] sm:$0xff]   ;;  %v2907_v11 = vld [vmem:[%s3854_s11 + $0x48] sm:$0xff]  }
 0x535   :  { %2739 = vmatprep.subr.bf16.mxu1 %v2906_v6 }
 0x536   :  { %v3041_v13 = vpop.eup %3040  ;;  %3050 = vrcp.f32 %v1304_v22  ;;  %v3125_v22 = vld [vmem:[%s3850_s4 + $0x8] sm:$0xff]   ;;  %2740 = vmatpush3.bf16.msra.mxu1 %v2906_v6 }
 0x537   :  { %v1319_v25 = vmul.f32 %v3041_v13, %v1261_v42  ;;  %2741 = vmatprep.subr.bf16.mxu1 %v2907_v11  ;;  %v2908_v13 = vld [vmem:[%s3854_s11 + $0x50] sm:$0xff]  }
 0x538   :  { %v3043_v18 = vpop.eup %3042 }
 0x539   :  { %v3045_v26 = vpop.eup %3044  ;;  %1325 = vadd.xlane.f32.xlu0 %v1319_v25  ;;  %v1320_v52 = vmul.f32 %v3043_v18, %v1264_v48  ;;  %v2909_v18 = vld [vmem:[%s3854_s11 + $0x58] sm:$0xff]  }
 0x53a   :  { %v1305_v29 = vadd.f32 1.0, %v3045_v26  ;;  %2742 = vmatpush3.bf16.msra.mxu1 %v2907_v11  ;;  %v2910_v26 = vld [vmem:[%s3854_s11 + $0x60] sm:$0xff]  }
 0x53b   :  { %v3047_v30 = vpop.eup %3046  ;;  %1327 = vadd.xlane.f32.xlu1 %v1320_v52  ;;  %2743 = vmatprep.subr.bf16.mxu1 %v2908_v13 }
 0x53c   :  { %3052 = vrcp.f32 %v1305_v29  ;;  %v1306_v31 = vadd.f32 1.0, %v3047_v30  ;;  %v2912_v29 = vld [vmem:[%s3854_s11 + $0x70] sm:$0xff]  }
 0x53e   :  { %v3049_v32 = vpop.eup %3048  ;;  %3054 = vrcp.f32 %v1306_v31  ;;  %2744 = vmatpush3.bf16.msra.mxu1 %v2908_v13 }
 0x53f   :  { %v1321_v23 = vmul.f32 %v3049_v32, %v1269_v0  ;;  %2745 = vmatprep.subr.bf16.mxu1 %v2909_v18 }
 0x540   :  { %v3051_v33 = vpop.eup %3050 }
 0x541   :  { %1329 = vadd.xlane.f32.xlu0 %v1321_v23  ;;  %v1322_v36 = vmul.f32 %v3051_v33, %v1272_v58 }
 0x542   :  { %2746 = vmatpush3.bf16.msra.mxu1 %v2909_v18 }
 0x543   :  { %1331 = vadd.xlane.f32.xlu1 %v1322_v36  ;;  %2747 = vmatprep.subr.bf16.mxu1 %v2910_v26 }
 0x546   :  { %v3053_v60 = vpop.eup %3052  ;;  %2748 = vmatpush3.bf16.msra.mxu1 %v2910_v26 }
 0x547   :  { %v1323_v37 = vmul.f32 %v3053_v60, %v1277_v4 }
 0x548   :  { %v3055_v38 = vpop.eup %3054 }
 0x549   :  { %1333 = vadd.xlane.f32.xlu0 %v1323_v37  ;;  %v1324_v39 = vmul.f32 %v3055_v38, %v1280_v12 }
 0x54b   :  { %1335 = vadd.xlane.f32.xlu1 %v1324_v39 }
 0x5c6   :  { %v1326_v2 = vpop.xlane.xlu0 %1325 }
 0x5c7   :  { %v1337_v40 = vmul.f32 0.03125, %v1326_v2 }
 0x5c8   :  { %v1328_v41 = vpop.xlane.xlu1 %1327 }
 0x5c9   :  { %v3622_v42 = vsub.f32 %v1319_v25, %v1337_v40  ;;  %v1338_v43 = vmul.f32 0.03125, %v1328_v41  ;;  %v3126_v25 = vld [vmem:[%s3850_s4 + $0x10] sm:$0xff]   ;;  %v1400_v41 = vrot.slane %v3612_v56, %v3541_v62 }
 0x5cb   :  { %v3624_v45 = vsub.f32 %v1320_v52, %v1338_v43  ;;  %v1349_v46 = vmul.f32 %v3473_v51, %v3622_v42  ;;  %v2911_v52 = vld [vmem:[%s3854_s11 + $0x68] sm:$0xff]  }
 0x5cc   :  { %2749 = vmatprep.subr.bf16.mxu1 %v2911_v52 }
 0x5cd   :  { %v1355_v48 = vmul.f32 %v1349_v46, %v1349_v46  ;;  %v1350_v50 = vmul.f32 %v3473_v51, %v3624_v45  ;;  %2750 = vmatpush3.bf16.msra.mxu1 %v2911_v52 }
 0x5ce   :  { %v1330_v14 = vpop.xlane.xlu0 %1329  ;;  %2751 = vmatprep.subr.bf16.mxu1 %v2912_v29 }
 0x5cf   :  { %v1339_v53 = vmul.f32 0.03125, %v1330_v14  ;;  %1361 = vadd.xlane.f32.xlu0 %v1355_v48  ;;  %v1356_v0 = vmul.f32 %v1350_v50, %v1350_v50  ;;  %v1410_v50 = vrot.slane %v3612_v56, %v3547_v10 }
 0x5d0   :  { %v1332_v54 = vpop.xlane.xlu1 %1331 }
 0x5d1   :  { %v3630_v7 = vsub.f32 %v1321_v23, %v1339_v53  ;;  %v1340_v55 = vmul.f32 0.03125, %v1332_v54  ;;  %1363 = vadd.xlane.f32.xlu1 %v1356_v0  ;;  %2752 = vmatpush3.bf16.msra.mxu1 %v2912_v29 }
 0x5d3   :  { %v3632_v58 = vsub.f32 %v1322_v36, %v1340_v55  ;;  %v1351_v49 = vmul.f32 %v3473_v51, %v3630_v7 }
 0x5d5   :  { %v1357_v20 = vmul.f32 %v1351_v49, %v1351_v49  ;;  %v1352_v59 = vmul.f32 %v3473_v51, %v3632_v58 }
 0x5d6   :  { %v1334_v61 = vpop.xlane.xlu0 %1333 }
 0x5d7   :  { %v1341_v1 = vmul.f32 0.03125, %v1334_v61  ;;  %1365 = vadd.xlane.f32.xlu0 %v1357_v20  ;;  %v1358_v3 = vmul.f32 %v1352_v59, %v1352_v59 }
 0x5d8   :  { %v1336_v4 = vpop.xlane.xlu1 %1335 }
 0x5d9   :  { %v3638_v57 = vsub.f32 %v1323_v37, %v1341_v1  ;;  %v1342_v5 = vmul.f32 0.03125, %v1336_v4  ;;  %1367 = vadd.xlane.f32.xlu1 %v1358_v3 }
 0x5db   :  { %v3640_v8 = vsub.f32 %v1324_v39, %v1342_v5  ;;  %v1353_v63 = vmul.f32 %v3473_v51, %v3638_v57 }
 0x5dd   :  { %v1359_v12 = vmul.f32 %v1353_v63, %v1353_v63  ;;  %v1354_v9 = vmul.f32 %v3473_v51, %v3640_v8 }
 0x5df   :  { %1369 = vadd.xlane.f32.xlu0 %v1359_v12  ;;  %v1360_v17 = vmul.f32 %v1354_v9, %v1354_v9 }
 0x5e1   :  { %1371 = vadd.xlane.f32.xlu1 %v1360_v17 }
 0x60c   :  { %1429 = vxpose.xlu0.c.b16.start [1/3] (short) (narrow) %v3124_v19, 32 }
 0x610   :  { %1430 = vxpose.xlu0.c.b16.cont [2/3] (short) (narrow) %v3125_v22, 32 }
 0x614   :  { %1431 = vxpose.xlu0.c.b16.end [3/3] (short) (narrow) %v3126_v25, 32 }
 0x65c   :  { %v1362_v30 = vpop.xlane.xlu0 %1361 }
 0x65d   :  { %v1373_v31 = vmul.f32 0.03125, %v1362_v30 }
 0x65e   :  { %v1364_v32 = vpop.xlane.xlu1 %1363 }
 0x65f   :  { %v1379_v23 = vadd.f32 1e-05, %v1373_v31  ;;  %v1374_v33 = vmul.f32 0.03125, %v1364_v32 }
 0x661   :  { %3056 = vrsqrt.f32 %v1379_v23  ;;  %v1380_v36 = vadd.f32 1e-05, %v1374_v33 }
 0x663   :  { %3058 = vrsqrt.f32 %v1380_v36 }
 0x664   :  { %v1366_v60 = vpop.xlane.xlu0 %1365 }
 0x665   :  { %v1375_v37 = vmul.f32 0.03125, %v1366_v60  ;;  %v2915_v60 = vld [vmem:[%s3854_s11 + $0x8] sm:$0xff]  }
 0x666   :  { %v1368_v38 = vpop.xlane.xlu1 %1367 }
 0x667   :  { %v1381_v39 = vadd.f32 1e-05, %v1375_v37  ;;  %v1376_v2 = vmul.f32 0.03125, %v1368_v38  ;;  %v2916_v37 = vld [vmem:[%s3854_s11 + $0x10] sm:$0xff]   ;;  %v2917_v38 = vld [vmem:[%s3854_s11 + $0x18] sm:$0xff]  }
 0x669   :  { %3060 = vrsqrt.f32 %v1381_v39  ;;  %v1382_v40 = vadd.f32 1e-05, %v1376_v2  ;;  %v2918_v39 = vld [vmem:[%s3854_s11 + $0x20] sm:$0xff]   ;;  %v2920_v2 = vld [vmem:[%s3854_s11 + $0x30] sm:$0xff]  }
 0x66b   :  { %v3057_v43 = vpop.eup %3056  ;;  %3062 = vrsqrt.f32 %v1382_v40  ;;  %v2921_v40 = vld [vmem:[%s3854_s11 + $0x38] sm:$0xff]  }
 0x66c   :  { %v1370_v46 = vpop.xlane.xlu0 %1369  ;;  %v1391_v48 = vmul.f32 %v3057_v43, %v3622_v42  ;;  %v2923_v43 = vld [vmem:[%s3855_s12 + $0x8] sm:$0xff]  }
 0x66d   :  { %v3059_v14 = vpop.eup %3058  ;;  %v1377_v53 = vmul.f32 0.03125, %v1370_v46  ;;  %v2924_v46 = vld [vmem:[%s3855_s12 + $0x10] sm:$0xff]  }
 0x66e   :  { %v1372_v0 = vpop.xlane.xlu1 %1371  ;;  %v1392_v54 = vmul.f32 %v3059_v14, %v3624_v45  ;;  %v1401_v55 = vmul.f32 %v1400_v41, %v1391_v48  ;;  %v2926_v48 = vld [vmem:[%s3855_s12 + $0x20] sm:$0xff]   ;;  %v2928_v14 = vld [vmem:[%s3855_s12 + $0x30] sm:$0xff]  }
 0x66f   :  { %v1383_v49 = vadd.f32 1e-05, %v1377_v53  ;;  %v1378_v20 = vmul.f32 0.03125, %v1372_v0  ;;  %v2929_v53 = vld [vmem:[%s3855_s12 + $0x38] sm:$0xff]   ;;  %v541_v0 = vld [vmem:[%s3856_s13] sm:$0x3] }
 0x670   :  { %v1402_v59 = vmul.f32 %v1400_v41, %v1392_v54  ;;  %v1411_v61 = vadd.f32 %v1410_v50, %v1401_v55  ;;  %v3750_v54 = vunpack.c.l.bf16 %v541_v0 }
 0x671   :  { %3064 = vrsqrt.f32 %v1383_v49  ;;  %v1384_v1 = vadd.f32 1e-05, %v1378_v20 }
 0x672   :  { %v1412_v3 = vadd.f32 %v1410_v50, %v1402_v59  ;;  %v1437_v4 = vpop.trf.xlu0  ;;  %v1417_v56 = vadd.f32 %v1411_v61, %v3552_v28  ;;  %v1732_v55 = vrot.slane %v3750_v54, %v3315_v24 }
 0x673   :  { %v3061_v5 = vpop.eup %3060  ;;  %3066 = vrsqrt.f32 %v1384_v1  ;;  %2735 = vmatprep.mubr.msk.bf16.mxu0 %vm1445_vm4, %v1437_v4 }
 0x674   :  { %v1418_v42 = vadd.f32 %v1412_v3, %v3554_v21  ;;  %v1393_v45 = vmul.f32 %v3061_v5, %v3630_v7 }
 0x675   :  { %v3063_v63 = vpop.eup %3062 }
 0x676   :  { %v1423_v12 = vpack.c.bf16 %v1418_v42, %v1417_v56  ;;  %v1394_v9 = vmul.f32 %v3063_v63, %v3632_v58  ;;  %v1403_v17 = vmul.f32 %v1400_v41, %v1393_v45 }
 0x678   :  { %2729 = vmatprep.subr.bf16.mxu0 %v1423_v12  ;;  %v1404_v19 = vmul.f32 %v1400_v41, %v1394_v9  ;;  %v1413_v6 = vadd.f32 %v1410_v50, %v1403_v17 }
 0x679   :  { %2730 = vmatpush3.bf16.msra.mxu0 %v1423_v12 }
 0x67a   :  { %v1414_v11 = vadd.f32 %v1410_v50, %v1404_v19  ;;  %v1419_v13 = vadd.f32 %v1413_v6, %v3562_v34  ;;  %v1438_v34 = vpop.trf.xlu0 }
 0x67b   :  { %v3065_v22 = vpop.eup %3064 }
 0x67c   :  { %v1420_v25 = vadd.f32 %v1414_v11, %v3564_v35  ;;  %v1395_v28 = vmul.f32 %v3065_v22, %v3638_v57  ;;  %v2913_v35 = vld [vmem:[%s3854_s11 + $0x78] sm:$0xff]   ;;  %v2914_v57 = vld [vmem:[%s3854_s11] sm:$0xff]  }
 0x67d   :  { %v3067_v21 = vpop.eup %3066  ;;  %2753 = vmatprep.subr.bf16.mxu1 %v2913_v35 }
 0x67e   :  { %v1424_v18 = vpack.c.bf16 %v1420_v25, %v1419_v13  ;;  %v1396_v7 = vmul.f32 %v3067_v21, %v3640_v8  ;;  %v1405_v26 = vmul.f32 %v1400_v41, %v1395_v28  ;;  %2754 = vmatpush3.bf16.msra.mxu1 %v2913_v35 }
 0x67f   :  { %2759 = vmatprep.subr.bf16.mxu1 %v2914_v57 }
 0x680   :  { %2731 = vmatprep.subr.bf16.mxu0 %v1424_v18  ;;  %v1406_v58 = vmul.f32 %v1400_v41, %v1396_v7  ;;  %v1415_v52 = vadd.f32 %v1410_v50, %v1405_v26  ;;  %v2922_v41 = vld [vmem:[%s3855_s12] sm:$0xff]  }
 0x681   :  { %2732 = vmatpush3.bf16.msra.mxu0 %v1424_v18 }
 0x682   :  { %v1416_v29 = vadd.f32 %v1410_v50, %v1406_v58  ;;  %v1421_v30 = vadd.f32 %v1415_v52, %v3574_v47  ;;  %v2927_v50 = vld [vmem:[%s3855_s12 + $0x28] sm:$0xff]  }
 0x684   :  { %v1422_v31 = vadd.f32 %v1416_v29, %v3572_v44 }
 0x686   :  { %v1425_v32 = vpack.c.bf16 %v1422_v31, %v1421_v30  ;;  %v1786_v31 = vrot.slane %v3750_v54, %v3377_v27 }
 0x688   :  { %2733 = vmatprep.subr.bf16.mxu0 %v1425_v32 }
 0x689   :  { %2734 = vmatpush3.bf16.msra.mxu0 %v1425_v32 }
 0x68a   :  { %2779 = vmatprep.subr.bf16.mxu0 %v2922_v41 }
 0x68c   :  { %2736 = vmatmul.mubr.msk.bf16.vlgmr.msra.gmra.mrb[48].mxu0 %vm1445_vm4, %v1438_v34 }
 0x68d   :  { %2780 = vmatpush3.bf16.msra.mxu0 %v2922_v41 }
 0x68e   :  { %2781 = vmatprep.subr.bf16.mxu0 %v2923_v43 }
 0x691   :  { %2782 = vmatpush3.bf16.msra.mxu0 %v2923_v43 }
 0x692   :  { %2783 = vmatprep.subr.bf16.mxu0 %v2924_v46 }
 0x695   :  { %2784 = vmatpush3.bf16.msra.mxu0 %v2924_v46 }
 0x75f   :  { %v2737_v47 = vpop.f32.mrb[48].mxu0 }
 0x760   :  { %v1486_v8 = vpop.f32.mrb[49].mxu0 }
 0x761   :  { %v2738_v44 = vpop.f32.mrb[50].mxu0 }
 0x762   :  { %v1518_v23 = vpack.c.bf16 %v2738_v44, %v2737_v47  ;;  %v1489_v33 = vpop.f32.mrb[51].mxu0 }
 0x763   :  { %v1517_v36 = vpack.c.bf16 %v1489_v33, %v1486_v8 }
 0x765   :  { %2755 = vmatprep.mubr.bf16.mxu1 %v1517_v36 }
 0x766   :  { %2756 = vmatmul.mubr.bf16.vlgmr.msra.gmra.mrb[48].mxu1 %v1518_v23 }
 0x767   :  { %2760 = vmatpush3.bf16.msra.mxu1 %v2914_v57  ;;  %2775 = vmatprep.mubr.bf16.mxu1 %v3331_v15  ;;  %v2919_v15 = vld [vmem:[%s3854_s11 + $0x28] sm:$0xff]  }
 0x768   :  { %2761 = vmatprep.subr.bf16.mxu1 %v2915_v60 }
 0x76b   :  { %2762 = vmatpush3.bf16.msra.mxu1 %v2915_v60 }
 0x76c   :  { %2763 = vmatprep.subr.bf16.mxu1 %v2916_v37 }
 0x76f   :  { %2764 = vmatpush3.bf16.msra.mxu1 %v2916_v37 }
 0x770   :  { %2765 = vmatprep.subr.bf16.mxu1 %v2917_v38 }
 0x773   :  { %2766 = vmatpush3.bf16.msra.mxu1 %v2917_v38 }
 0x774   :  { %2767 = vmatprep.subr.bf16.mxu1 %v2918_v39 }
 0x777   :  { %2768 = vmatpush3.bf16.msra.mxu1 %v2918_v39 }
 0x778   :  { %2769 = vmatprep.subr.bf16.mxu1 %v2919_v15 }
 0x77b   :  { %2770 = vmatpush3.bf16.msra.mxu1 %v2919_v15 }
 0x77c   :  { %2771 = vmatprep.subr.bf16.mxu1 %v2920_v2 }
 0x77f   :  { %2772 = vmatpush3.bf16.msra.mxu1 %v2920_v2 }
 0x780   :  { %2773 = vmatprep.subr.bf16.mxu1 %v2921_v40 }
 0x783   :  { %2774 = vmatpush3.bf16.msra.mxu1 %v2921_v40 }
 0x786   :  { %2776 = vmatmul.mubr.bf16.vlgmr.msra.gmra.mrb[48].mxu1 %v3336_v16  ;;  %v2925_v16 = vld [vmem:[%s3855_s12 + $0x18] sm:$0xff]  }
 0x787   :  { %2785 = vmatprep.subr.bf16.mxu0 %v2925_v16 }
 0x788   :  { %2786 = vmatpush3.bf16.msra.mxu0 %v2925_v16 }
 0x789   :  { %2787 = vmatprep.subr.bf16.mxu0 %v2926_v48 }
 0x78c   :  { %2788 = vmatpush3.bf16.msra.mxu0 %v2926_v48 }
 0x78d   :  { %2789 = vmatprep.subr.bf16.mxu0 %v2927_v50 }
 0x790   :  { %2790 = vmatpush3.bf16.msra.mxu0 %v2927_v50 }
 0x791   :  { %2791 = vmatprep.subr.bf16.mxu0 %v2928_v14 }
 0x794   :  { %2792 = vmatpush3.bf16.msra.mxu0 %v2928_v14 }
 0x795   :  { %2793 = vmatprep.subr.bf16.mxu0 %v2929_v53 }
 0x798   :  { %2794 = vmatpush3.bf16.msra.mxu0 %v2929_v53 }
 0x859   :  { %v2777_v49 = vpop.f32.mrb[48].mxu1 }
 0x85a   :  { %v1735_v20 = vadd.f32 %v2777_v49, %v1732_v55  ;;  %v1714_v59 = vpop.f32.mrb[49].mxu1 }
 0x85b   :  { %v1733_v61 = vadd.f32 %v1732_v55, %v1714_v59  ;;  %v2778_v1 = vpop.f32.mrb[50].mxu1 }
 0x85c   :  { %v2367_v3 = vmul.f32 -1.442695, %v1735_v20  ;;  %v1736_v4 = vadd.f32 %v2778_v1, %v1732_v55  ;;  %v1717_v5 = vpop.f32.mrb[51].mxu1 }
 0x85d   :  { %v2365_v56 = vmul.f32 -1.442695, %v1733_v61  ;;  %v1734_v42 = vadd.f32 %v1732_v55, %v1717_v5 }
 0x85e   :  { %3068 = vpow2.f32 %v2367_v3  ;;  %v2368_v45 = vmul.f32 -1.442695, %v1736_v4 }
 0x85f   :  { %3070 = vpow2.f32 %v2365_v56  ;;  %v2366_v63 = vmul.f32 -1.442695, %v1734_v42 }
 0x860   :  { %3072 = vpow2.f32 %v2368_v45 }
 0x861   :  { %3074 = vpow2.f32 %v2366_v63 }
 0x868   :  { %v3069_v12 = vpop.eup %3068 }
 0x869   :  { %v3071_v9 = vpop.eup %3070  ;;  %v1751_v17 = vadd.f32 1.0, %v3069_v12 }
 0x86a   :  { %v3073_v19 = vpop.eup %3072  ;;  %v1749_v6 = vadd.f32 1.0, %v3071_v9 }
 0x86b   :  { %v3075_v11 = vpop.eup %3074  ;;  %3076 = vrcp.f32 %v1751_v17  ;;  %v1752_v22 = vadd.f32 1.0, %v3073_v19 }
 0x86c   :  { %3078 = vrcp.f32 %v1749_v6  ;;  %v1750_v13 = vadd.f32 1.0, %v3075_v11 }
 0x86d   :  { %3080 = vrcp.f32 %v1752_v22 }
 0x86e   :  { %3082 = vrcp.f32 %v1750_v13 }
 0x875   :  { %v3077_v25 = vpop.eup %3076 }
 0x876   :  { %v3079_v28 = vpop.eup %3078  ;;  %v1763_v7 = vmul.f32 %v3077_v25, %v1735_v20 }
 0x877   :  { %v3081_v21 = vpop.eup %3080  ;;  %v1761_v58 = vmul.f32 %v3079_v28, %v1733_v61  ;;  %v2930_v28 = vld [vmem:[%s3857_s14] sm:$0xff]  }
 0x878   :  { %v3083_v18 = vpop.eup %3082  ;;  %v1764_v26 = vmul.f32 %v3081_v21, %v1736_v4  ;;  %2799 = vmatprep.subr.bf16.mxu0 %v2930_v28  ;;  %v2931_v21 = vld [vmem:[%s3857_s14 + $0x8] sm:$0xff]  }
 0x879   :  { %v1762_v52 = vmul.f32 %v3083_v18, %v1734_v42  ;;  %v2932_v18 = vld [vmem:[%s3857_s14 + $0x10] sm:$0xff]  }
 0x87a   :  { %v1766_v29 = vpack.c.bf16 %v1764_v26, %v1763_v7  ;;  %v2934_v7 = vld [vmem:[%s3857_s14 + $0x20] sm:$0xff]   ;;  %v2935_v26 = vld [vmem:[%s3857_s14 + $0x28] sm:$0xff]  }
 0x87b   :  { %v1765_v30 = vpack.c.bf16 %v1762_v52, %v1761_v58  ;;  %v2936_v58 = vld [vmem:[%s3857_s14 + $0x30] sm:$0xff]   ;;  %v2937_v52 = vld [vmem:[%s3857_s14 + $0x38] sm:$0xff]  }
 0x87d   :  { %2795 = vmatprep.mubr.bf16.mxu0 %v1765_v30 }
 0x87e   :  { %2796 = vmatmul.mubr.bf16.vlgmr.msra.gmra.mrb[52].mxu0 %v1766_v29 }
 0x87f   :  { %2800 = vmatpush3.bf16.msra.mxu0 %v2930_v28 }
 0x880   :  { %2801 = vmatprep.subr.bf16.mxu0 %v2931_v21 }
 0x883   :  { %2802 = vmatpush3.bf16.msra.mxu0 %v2931_v21 }
 0x884   :  { %2803 = vmatprep.subr.bf16.mxu0 %v2932_v18 }
 0x887   :  { %2804 = vmatpush3.bf16.msra.mxu0 %v2932_v18 }
 0x951   :  { %v2797_v32 = vpop.f32.mrb[52].mxu0 }
 0x952   :  { %v1878_v34 = vadd.f32 %v2797_v32, %v1786_v31  ;;  %v1869_v35 = vpop.f32.mrb[53].mxu0 }
 0x953   :  { %v1870_v57 = vadd.f32 %v1869_v35, %v1786_v31  ;;  %v2798_v47 = vpop.f32.mrb[54].mxu0 }
 0x954   :  { %v2379_v8 = vmul.f32 -1.442695, %v1878_v34  ;;  %v1881_v44 = vadd.f32 %v2798_v47, %v1786_v31  ;;  %v1872_v23 = vpop.f32.mrb[55].mxu0 }
 0x955   :  { %v2377_v33 = vmul.f32 -1.442695, %v1870_v57  ;;  %v1873_v36 = vadd.f32 %v1872_v23, %v1786_v31 }
 0x956   :  { %3084 = vpow2.f32 %v2379_v8  ;;  %v2380_v37 = vmul.f32 -1.442695, %v1881_v44 }
 0x957   :  { %3086 = vpow2.f32 %v2377_v33  ;;  %v2378_v60 = vmul.f32 -1.442695, %v1873_v36 }
 0x959   :  { %3088 = vpow2.f32 %v2378_v60 }
 0x95a   :  { %3090 = vpow2.f32 %v2380_v37 }
 0x960   :  { %v3085_v38 = vpop.eup %3084 }
 0x961   :  { %v3087_v39 = vpop.eup %3086  ;;  %v1898_v15 = vadd.f32 1.0, %v3085_v38  ;;  %v1963_v38 = vrot.slane %v3750_v54, %v3541_v62 }
 0x962   :  { %v1896_v2 = vadd.f32 1.0, %v3087_v39 }
 0x963   :  { %v3089_v40 = vpop.eup %3088  ;;  %3092 = vrcp.f32 %v1898_v15 }
 0x964   :  { %3094 = vrcp.f32 %v1896_v2  ;;  %v1897_v41 = vadd.f32 1.0, %v3089_v40  ;;  %v3091_v43 = vpop.eup %3090 }
 0x965   :  { %v1899_v46 = vadd.f32 1.0, %v3091_v43  ;;  %v3127_v43 = vld [vmem:[%s3848_s1] sm:$0xff]  }
 0x966   :  { %3096 = vrcp.f32 %v1897_v41  ;;  %v1971_v41 = vrot.slane %v3750_v54, %v3547_v10 }
 0x967   :  { %3098 = vrcp.f32 %v1899_v46  ;;  %v521_v46 = vunpack.c.l.bf16 %v3127_v43 }
 0x96d   :  { %v3093_v16 = vpop.eup %3092 }
 0x96e   :  { %v1910_v48 = vmul.f32 %v3093_v16, %v1878_v34  ;;  %v3095_v50 = vpop.eup %3094  ;;  %v522_v16 = vunpack.c.h.bf16 %v3127_v43 }
 0x96f   :  { %v1908_v14 = vmul.f32 %v3095_v50, %v1870_v57 }
 0x970   :  { %1916 = vadd.xlane.f32.xlu1 %v1910_v48  ;;  %v3097_v53 = vpop.eup %3096 }
 0x971   :  { %v1909_v0 = vmul.f32 %v3097_v53, %v1873_v36  ;;  %v3099_v55 = vpop.eup %3098 }
 0x972   :  { %v1911_v49 = vmul.f32 %v3099_v55, %v1881_v44  ;;  %v3128_v55 = vld [vmem:[%s3848_s1 + $0x8] sm:$0xff]  }
 0x974   :  { %1912 = vadd.xlane.f32.xlu1 %v1908_v14 }
 0x978   :  { %1914 = vadd.xlane.f32.xlu1 %v1909_v0 }
 0x97c   :  { %1918 = vadd.xlane.f32.xlu1 %v1911_v49 }
 0x9fd   :  { %v1917_v20 = vpop.xlane.xlu1 %1916 }
 0x9fe   :  { %v1922_v59 = vmul.f32 0.03125, %v1917_v20  ;;  %v524_v20 = vunpack.c.h.bf16 %v3128_v55 }
 0xa00   :  { %v3756_v61 = vsub.f32 %v1910_v48, %v1922_v59 }
 0xa01   :  { %v1913_v1 = vpop.xlane.xlu1 %1912 }
 0xa02   :  { %v1920_v3 = vmul.f32 0.03125, %v1913_v1  ;;  %v1930_v4 = vmul.f32 %v3473_v51, %v3756_v61 }
 0xa04   :  { %v1924_v5 = vsub.f32 %v1908_v14, %v1920_v3  ;;  %v1934_v56 = vmul.f32 %v1930_v4, %v1930_v4 }
 0xa05   :  { %v1915_v42 = vpop.xlane.xlu1 %1914 }
 0xa06   :  { %v1921_v45 = vmul.f32 0.03125, %v1915_v42  ;;  %1940 = vadd.xlane.f32.xlu1 %v1934_v56  ;;  %v1928_v63 = vmul.f32 %v3473_v51, %v1924_v5  ;;  %v2938_v42 = vld [vmem:[%s3858_s15] sm:$0xff]  }
 0xa07   :  { %2819 = vmatprep.subr.bf16.mxu1 %v2938_v42 }
 0xa08   :  { %v1925_v12 = vsub.f32 %v1909_v0, %v1921_v45  ;;  %v1932_v9 = vmul.f32 %v1928_v63, %v1928_v63  ;;  %2820 = vmatpush3.bf16.msra.mxu1 %v2938_v42  ;;  %v2939_v45 = vld [vmem:[%s3858_s15 + $0x8] sm:$0xff]   ;;  %v2940_v63 = vld [vmem:[%s3858_s15 + $0x10] sm:$0xff]  }
 0xa09   :  { %v1919_v17 = vpop.xlane.xlu1 %1918  ;;  %2821 = vmatprep.subr.bf16.mxu1 %v2939_v45 }
 0xa0a   :  { %v1923_v19 = vmul.f32 0.03125, %v1919_v17  ;;  %1936 = vadd.xlane.f32.xlu1 %v1932_v9  ;;  %v1929_v6 = vmul.f32 %v3473_v51, %v1925_v12  ;;  %v2942_v9 = vld [vmem:[%s3858_s15 + $0x20] sm:$0xff]   ;;  %v2943_v17 = vld [vmem:[%s3858_s15 + $0x28] sm:$0xff]  }
 0xa0c   :  { %v3762_v11 = vsub.f32 %v1911_v49, %v1923_v19  ;;  %v1933_v22 = vmul.f32 %v1929_v6, %v1929_v6  ;;  %v523_v49 = vunpack.c.l.bf16 %v3128_v55  ;;  %2822 = vmatpush3.bf16.msra.mxu1 %v2939_v45  ;;  %v2944_v19 = vld [vmem:[%s3858_s15 + $0x30] sm:$0xff]   ;;  %v2945_v6 = vld [vmem:[%s3858_s15 + $0x38] sm:$0xff]  }
 0xa0d   :  { %2823 = vmatprep.subr.bf16.mxu1 %v2940_v63 }
 0xa0e   :  { %1938 = vadd.xlane.f32.xlu1 %v1933_v22  ;;  %v1931_v13 = vmul.f32 %v3473_v51, %v3762_v11  ;;  %v2933_v51 = vld [vmem:[%s3857_s14 + $0x18] sm:$0xff]  }
 0xa0f   :  { %2805 = vmatprep.subr.bf16.mxu0 %v2933_v51 }
 0xa10   :  { %v1935_v25 = vmul.f32 %v1931_v13, %v1931_v13  ;;  %2806 = vmatpush3.bf16.msra.mxu0 %v2933_v51  ;;  %2824 = vmatpush3.bf16.msra.mxu1 %v2940_v63 }
 0xa11   :  { %2807 = vmatprep.subr.bf16.mxu0 %v2934_v7 }
 0xa12   :  { %1942 = vadd.xlane.f32.xlu1 %v1935_v25 }
 0xa14   :  { %2808 = vmatpush3.bf16.msra.mxu0 %v2934_v7 }
 0xa15   :  { %2809 = vmatprep.subr.bf16.mxu0 %v2935_v26 }
 0xa18   :  { %2810 = vmatpush3.bf16.msra.mxu0 %v2935_v26 }
 0xa19   :  { %2811 = vmatprep.subr.bf16.mxu0 %v2936_v58 }
 0xa1c   :  { %2812 = vmatpush3.bf16.msra.mxu0 %v2936_v58 }
 0xa1d   :  { %2813 = vmatprep.subr.bf16.mxu0 %v2937_v52 }
 0xa20   :  { %2814 = vmatpush3.bf16.msra.mxu0 %v2937_v52 }
 0xa93   :  { %v1941_v29 = vpop.xlane.xlu1 %1940 }
 0xa94   :  { %v1946_v30 = vmul.f32 0.03125, %v1941_v29 }
 0xa96   :  { %v1950_v31 = vadd.f32 1e-05, %v1946_v30 }
 0xa97   :  { %v1937_v32 = vpop.xlane.xlu1 %1936 }
 0xa98   :  { %v1944_v34 = vmul.f32 0.03125, %v1937_v32  ;;  %3100 = vrsqrt.f32 %v1950_v31 }
 0xa9a   :  { %v1948_v35 = vadd.f32 1e-05, %v1944_v34 }
 0xa9b   :  { %v1939_v57 = vpop.xlane.xlu1 %1938 }
 0xa9c   :  { %3102 = vrsqrt.f32 %v1948_v35  ;;  %v1945_v47 = vmul.f32 0.03125, %v1939_v57 }
 0xa9e   :  { %v1949_v8 = vadd.f32 1e-05, %v1945_v47 }
 0xa9f   :  { %v1943_v44 = vpop.xlane.xlu1 %1942 }
 0xaa0   :  { %3104 = vrsqrt.f32 %v1949_v8  ;;  %v1947_v23 = vmul.f32 0.03125, %v1943_v44 }
 0xaa2   :  { %v1951_v33 = vadd.f32 1e-05, %v1947_v23  ;;  %v3101_v36 = vpop.eup %3100 }
 0xaa3   :  { %v1958_v39 = vmul.f32 %v3101_v36, %v3756_v61 }
 0xaa4   :  { %3106 = vrsqrt.f32 %v1951_v33 }
 0xaa5   :  { %v1966_v14 = vmul.f32 %v1963_v38, %v1958_v39 }
 0xaa6   :  { %v3103_v60 = vpop.eup %3102 }
 0xaa7   :  { %v1956_v37 = vmul.f32 %v3103_v60, %v1924_v5  ;;  %v1974_v61 = vadd.f32 %v1971_v41, %v1966_v14 }
 0xaa9   :  { %v1964_v15 = vmul.f32 %v1963_v38, %v1956_v37  ;;  %v1978_v4 = vadd.f32 %v1974_v61, %v523_v49 }
 0xaaa   :  { %v3105_v2 = vpop.eup %3104 }
 0xaab   :  { %v1957_v40 = vmul.f32 %v3105_v2, %v1925_v12  ;;  %v1972_v50 = vadd.f32 %v1971_v41, %v1964_v15  ;;  %v2941_v12 = vld [vmem:[%s3858_s15 + $0x18] sm:$0xff]  }
 0xaac   :  { %2825 = vmatprep.subr.bf16.mxu1 %v2941_v12 }
 0xaad   :  { %v1965_v48 = vmul.f32 %v1963_v38, %v1957_v40  ;;  %v1976_v10 = vadd.f32 %v1972_v50, %v521_v46  ;;  %2826 = vmatpush3.bf16.msra.mxu1 %v2941_v12 }
 0xaae   :  { %v3107_v53 = vpop.eup %3106  ;;  %2827 = vmatprep.subr.bf16.mxu1 %v2942_v9 }
 0xaaf   :  { %v1959_v62 = vmul.f32 %v3107_v53, %v3762_v11  ;;  %v1973_v0 = vadd.f32 %v1971_v41, %v1965_v48  ;;  %v1982_v11 = vld [vmem:[%s3859_s16] sm:$0x3] }
 0xab0   :  { %v1983_v22 = vunpack.c.l.bf16 %v1982_v11 }
 0xab1   :  { %v1977_v54 = vadd.f32 %v1973_v0, %v522_v16  ;;  %v1967_v59 = vmul.f32 %v1963_v38, %v1959_v62  ;;  %2828 = vmatpush3.bf16.msra.mxu1 %v2942_v9 }
 0xab2   :  { %2829 = vmatprep.subr.bf16.mxu1 %v2943_v17  ;;  %v2003_v13 = vrot.slane %v1983_v22, %v3315_v24 }
 0xab3   :  { %v1980_v1 = vpack.c.bf16 %v1977_v54, %v1976_v10  ;;  %v1975_v3 = vadd.f32 %v1971_v41, %v1967_v59  ;;  %v2150_v41 = vrot.slane %v1983_v22, %v3377_v27 }
 0xab5   :  { %2815 = vmatprep.mubr.bf16.mxu0 %v1980_v1  ;;  %v1979_v5 = vadd.f32 %v1975_v3, %v524_v20  ;;  %2830 = vmatpush3.bf16.msra.mxu1 %v2943_v17 }
 0xab6   :  { %2831 = vmatprep.subr.bf16.mxu1 %v2944_v19 }
 0xab7   :  { %v1981_v56 = vpack.c.bf16 %v1979_v5, %v1978_v4 }
 0xab9   :  { %2816 = vmatmul.mubr.bf16.vlgmr.msra.gmra.mrb[56].mxu0 %v1981_v56  ;;  %2832 = vmatpush3.bf16.msra.mxu1 %v2944_v19 }
 0xaba   :  { %2833 = vmatprep.subr.bf16.mxu1 %v2945_v6 }
 0xabd   :  { %2834 = vmatpush3.bf16.msra.mxu1 %v2945_v6 }
 0xb8c   :  { %v2817_v25 = vpop.f32.mrb[56].mxu0 }
 0xb8d   :  { %v2095_v28 = vadd.f32 %v2817_v25, %v2003_v13  ;;  %v2086_v21 = vpop.f32.mrb[57].mxu0 }
 0xb8e   :  { %v2087_v18 = vadd.f32 %v2086_v21, %v2003_v13  ;;  %v2818_v51 = vpop.f32.mrb[58].mxu0 }
 0xb8f   :  { %v2391_v7 = vmul.f32 -1.442695, %v2095_v28  ;;  %v2098_v26 = vadd.f32 %v2818_v51, %v2003_v13  ;;  %v2089_v58 = vpop.f32.mrb[59].mxu0 }
 0xb90   :  { %v2389_v52 = vmul.f32 -1.442695, %v2087_v18  ;;  %v2090_v29 = vadd.f32 %v2089_v58, %v2003_v13 }
 0xb91   :  { %3108 = vpow2.f32 %v2391_v7  ;;  %v2392_v30 = vmul.f32 -1.442695, %v2098_v26 }
 0xb92   :  { %3110 = vpow2.f32 %v2389_v52  ;;  %v2390_v31 = vmul.f32 -1.442695, %v2090_v29 }
 0xb93   :  { %3112 = vpow2.f32 %v2392_v30 }
 0xb94   :  { %3114 = vpow2.f32 %v2390_v31 }
 0xb9b   :  { %v3109_v32 = vpop.eup %3108 }
 0xb9c   :  { %v3111_v34 = vpop.eup %3110  ;;  %v2115_v35 = vadd.f32 1.0, %v3109_v32 }
 0xb9d   :  { %v3113_v24 = vpop.eup %3112  ;;  %v2113_v57 = vadd.f32 1.0, %v3111_v34 }
 0xb9e   :  { %v3115_v47 = vpop.eup %3114  ;;  %3116 = vrcp.f32 %v2115_v35  ;;  %v2116_v8 = vadd.f32 1.0, %v3113_v24 }
 0xb9f   :  { %3118 = vrcp.f32 %v2113_v57  ;;  %v2114_v44 = vadd.f32 1.0, %v3115_v47 }
 0xba0   :  { %3120 = vrcp.f32 %v2116_v8 }
 0xba1   :  { %3122 = vrcp.f32 %v2114_v44 }
 0xba8   :  { %v3117_v23 = vpop.eup %3116 }
 0xba9   :  { %v3119_v33 = vpop.eup %3118  ;;  %v2127_v37 = vmul.f32 %v3117_v23, %v2095_v28 }
 0xbaa   :  { %v3121_v36 = vpop.eup %3120  ;;  %v2125_v39 = vmul.f32 %v3119_v33, %v2087_v18 }
 0xbab   :  { %v3123_v60 = vpop.eup %3122  ;;  %v2128_v38 = vmul.f32 %v3121_v36, %v2098_v26 }
 0xbac   :  { %v2126_v15 = vmul.f32 %v3123_v60, %v2090_v29 }
 0xbad   :  { %v2130_v2 = vpack.c.bf16 %v2128_v38, %v2127_v37 }
 0xbae   :  { %v2129_v40 = vpack.c.bf16 %v2126_v15, %v2125_v39 }
 0xbb0   :  { %2835 = vmatprep.mubr.bf16.mxu1 %v2129_v40 }
 0xbb1   :  { %2836 = vmatmul.mubr.bf16.vlgmr.msra.gmra.mrb[52].mxu1 %v2130_v2 }
 0xc84   :  { %v2837_v43 = vpop.f32.mrb[52].mxu1 }
 0xc85   :  { %v2242_v46 = vadd.f32 %v2837_v43, %v2150_v41  ;;  %v2233_v16 = vpop.f32.mrb[53].mxu1 }
 0xc86   :  { %v2234_v48 = vadd.f32 %v2233_v16, %v2150_v41  ;;  %v2838_v50 = vpop.f32.mrb[54].mxu1 }
 0xc87   :  { %2250 = vst [vmem:[%s3860_s17 + $0x10] sm:$0xff] %v2242_v46  ;;  %v2245_v14 = vadd.f32 %v2838_v50, %v2150_v41  ;;  %v2236_v53 = vpop.f32.mrb[55].mxu1 }
 0xc88   :  { %2248 = vst [vmem:[%s3860_s17] sm:$0xff] %v2234_v48  ;;  %v2237_v62 = vadd.f32 %v2236_v53, %v2150_v41 }
 0xc89   :  { %2251 = vst [vmem:[%s3860_s17 + $0x18] sm:$0xff] %v2245_v14 }
 0xc8a   :  { %2249 = vst [vmem:[%s3860_s17 + $0x8] sm:$0xff] %v2237_v62 }

</bundles_post_ra>
